<compile_context>
chip_gen: v6e
topology: v6e:2x2x1
jax: 0.10.0
libtpu: 0.0.40
codegen_flags: <defaults>
</compile_context>

<pallas_src>
import functools

import jax
import jax.numpy as jnp
from jax.experimental import pallas as pl
from jax.experimental.pallas import tpu as pltpu

# Matmul operand dtype.  Kept f32 to match the PyTorch reference bit-for-bit in
# spirit; switch to jnp.bfloat16 on v6e/v7x for ~2x MXU throughput (gate /
# cell elementwise math and accumulators stay f32 either way).
MATMUL_DTYPE = jnp.float32


# ----------------------------------------------------------------------------
# Kernels
# ----------------------------------------------------------------------------
def _conv3x3_taps_kernel(xp_ref, w_ref, o_ref, *, Nb, H, W, G, relu):
    """Bias-free 3x3 same-padding conv for a block of Nb images (9 shifted matmuls).

    xp_ref: (Nb, H+2, W+2, C)  zero-padded NHWC inputs
    w_ref : (9, C, G)          tap-major weights
    o_ref : (Nb, H, W, G)
    """
    xp = xp_ref[...].astype(MATMUL_DTYPE)
    acc = jnp.zeros((Nb * H * W, G), jnp.float32)
    # TODO(synk): the strided tap slice+reshape is a small VMEM relayout; a
    # pltpu.roll-based shift would move it to the XLU slot.
    for dy in range(3):
        for dx in range(3):
            patch = xp[:, dy:dy + H, dx:dx + W, :].reshape(Nb * H * W, -1)
            acc = acc + jnp.dot(patch,
                                w_ref[dy * 3 + dx].astype(MATMUL_DTYPE),
                                preferred_element_type=jnp.float32)
    if relu:
        acc = jnp.maximum(acc, 0.0)
    o_ref[...] = acc.reshape(Nb, H, W, G)


def _convlstm_recur_kernel(xg_ref, wh_ref, h_ref, hpad_ref, c_ref, *, H, W, F):
    """One ConvLSTM timestep for one batch element; h/c persist in VMEM scratch.

    xg_ref : (1, 1, H, W, 4F)  precomputed conv(x_t, W_x) gate pre-activations
    wh_ref : (9, F, 4F)        recurrent (hidden -> gates) conv taps
    h_ref  : (1, 1, H, W, F)   hidden-state output for this (b, t)
    hpad_ref: VMEM (H+2, W+2, F)  zero-padded h_{t-1} (border stays zero)
    c_ref   : VMEM (H*W, F)       c_{t-1}
    """
    t = pl.program_id(1)

    @pl.when(t == 0)
    def _():
        hpad_ref[...] = jnp.zeros_like(hpad_ref)
        c_ref[...] = jnp.zeros_like(c_ref)

    hp = hpad_ref[...].astype(MATMUL_DTYPE)
    # Fused gates: (H*W, 4F) = x-contribution + 9-tap recurrent conv of h_{t-1}.
    gates = xg_ref[0, 0].reshape(H * W, 4 * F)
    for dy in range(3):
        for dx in range(3):
            patch = hp[dy:dy + H, dx:dx + W, :].reshape(H * W, F)
            gates = gates + jnp.dot(patch,
                                    wh_ref[dy * 3 + dx].astype(MATMUL_DTYPE),
                                    preferred_element_type=jnp.float32)

    ingate = jax.nn.sigmoid(gates[:, 0 * F:1 * F])
    forgetgate = jax.nn.sigmoid(gates[:, 1 * F:2 * F])
    cellgate = gates[:, 2 * F:3 * F]          # reference applies NO tanh here
    outgate = jax.nn.sigmoid(gates[:, 3 * F:4 * F])

    cy = forgetgate * c_ref[...] + ingate * cellgate
    hy = outgate * jnp.tanh(cy)

    c_ref[...] = cy
    hpad_ref[1:H + 1, 1:W + 1, :] = hy.reshape(H, W, F)   # border stays zero
    h_ref[0, 0] = hy.reshape(H, W, F)


# ----------------------------------------------------------------------------
# Wrappers
# ----------------------------------------------------------------------------
def _pick_image_block(N, HW, max_rows=2048):
    """Largest divisor of N with Nb*HW <= max_rows; prefer >=2 blocks (megacore)."""
    nb = max(1, min(N, max_rows // max(HW, 1)))
    if N >= 2:
        nb = min(nb, (N + 1) // 2)
    while N % nb:
        nb -= 1
    return nb


def conv3x3_taps(xp, wk, *, relu):
    """xp: (N, H+2, W+2, C) padded NHWC; wk: (9, C, G). Returns (N, H, W, G) f32."""
    N, Hp2, Wp2, C = xp.shape
    H, W = Hp2 - 2, Wp2 - 2
    G = wk.shape[-1]
    Nb = _pick_image_block(N, H * W)
    kern = functools.partial(_conv3x3_taps_kernel, Nb=Nb, H=H, W=W, G=G, relu=relu)
    return pl.pallas_call(
        kern,
        out_shape=jax.ShapeDtypeStruct((N, H, W, G), jnp.float32),
        grid=(N // Nb,),
        in_specs=[
            pl.BlockSpec((Nb, Hp2, Wp2, C), lambda n: (n, 0, 0, 0)),
            pl.BlockSpec((9, C, G), lambda n: (0, 0, 0)),
        ],
        out_specs=pl.BlockSpec((Nb, H, W, G), lambda n: (n, 0, 0, 0)),
        compiler_params=pltpu.CompilerParams(
            dimension_semantics=("parallel",)),
    )(xp, wk)


def convlstm_block_nhwc(x_nhwc, w, num_features):
    """x_nhwc: (B, S, H, W, C); w: (4F, C+F, 3, 3) torch layout. -> (B, S, H, W, F)."""
    B, S, H, W, C = x_nhwc.shape
    F = num_features
    # (4F, C+F, 3, 3) -> (kh, kw, cin, gate, f) -> (9, C+F, 4F).  Gate blocks keep
    # torch.split order (i, f, g, o) along the fused last dim.
    w_all = (w.reshape(4, F, C + F, 3, 3)
              .transpose(3, 4, 2, 0, 1)
              .reshape(9, C + F, 4 * F))
    wx = w_all[:, :C, :]          # x  -> gates taps  (9, C, 4F)
    wh = w_all[:, C:, :]          # h  -> gates taps  (9, F, 4F)

    # x-path: one large parallel conv over all B*S frames.
    xp = jnp.pad(x_nhwc.reshape(B * S, H, W, C),
                 ((0, 0), (1, 1), (1, 1), (0, 0)))
    xg = conv3x3_taps(xp, wx, relu=False).reshape(B, S, H, W, 4 * F)

    # recurrent path: single pallas_call; h/c stay on-chip across the S axis.
    kern = functools.partial(_convlstm_recur_kernel, H=H, W=W, F=F)
    hy = pl.pallas_call(
        kern,
        out_shape=jax.ShapeDtypeStruct((B, S, H, W, F), jnp.float32),
        grid=(B, S),
        in_specs=[
            pl.BlockSpec((1, 1, H, W, 4 * F), lambda b, t: (b, t, 0, 0, 0)),
            pl.BlockSpec((9, F, 4 * F), lambda b, t: (0, 0, 0)),
        ],
        out_specs=pl.BlockSpec((1, 1, H, W, F), lambda b, t: (b, t, 0, 0, 0)),
        scratch_shapes=[
            pltpu.VMEM((H + 2, W + 2, F), jnp.float32),   # padded h_{t-1}
            pltpu.VMEM((H * W, F), jnp.float32),          # c_{t-1}
        ],
        compiler_params=pltpu.CompilerParams(
            dimension_semantics=("parallel", "arbitrary")),
    )(xg, wh)
    return hy


# ----------------------------------------------------------------------------
# Encoder (Config.encoder = [('convlstm','',7,28,3,1,1),
#                            ('convlstm','',28,28,3,1,1),
#                            ('conv','relu',28,16,3,1,1)])
# ----------------------------------------------------------------------------
ENCODER_CFG = [("convlstm", "", 7, 28, 3, 1, 1),
               ("convlstm", "", 28, 28, 3, 1, 1),
               ("conv", "relu", 28, 16, 3, 1, 1)]


def init_encoder_params(key):
    params = {}
    for idx, (ltype, _act, in_ch, out_ch, k, _p, _s) in enumerate(ENCODER_CFG):
        key, sub = jax.random.split(key)
        if ltype == "convlstm":
            shape = (4 * out_ch, in_ch + out_ch, k, k)     # Conv2d(in+F, 4F), bias=False
        else:
            shape = (out_ch, in_ch, k, k)                  # Conv2d(in, out), bias=False
        fan_in = shape[1] * k * k
        params[f"{ltype}_{idx}"] = (
            jax.random.normal(sub, shape, jnp.float32) * (1.0 / fan_in) ** 0.5)
    return params


def encoder_forward(x, params):
    """x: (B, S, C, H, W) f32 -> list of 4 NCHW tensors, like the torch Encoder."""
    outputs = [x]
    B, S = x.shape[0], x.shape[1]
    x_nhwc = jnp.transpose(x, (0, 1, 3, 4, 2))     # thread NHWC between layers
    for idx, (ltype, _act, _cin, cout, _k, _p, _s) in enumerate(ENCODER_CFG):
        name = f"{ltype}_{idx}"
        if ltype == "convlstm":
            x_nhwc = convlstm_block_nhwc(x_nhwc, params[name], cout)
        else:                                       # 'conv' (+ relu), over B*S frames
            _, _, H, W, C = x_nhwc.shape
            wk = jnp.transpose(params[name], (2, 3, 1, 0)).reshape(9, C, cout)
            xp = jnp.pad(x_nhwc.reshape(B * S, H, W, C),
                         ((0, 0), (1, 1), (1, 1), (0, 0)))
            y = conv3x3_taps(xp, wk, relu=True)
            x_nhwc = y.reshape(B, S, H, W, cout)
        outputs.append(jnp.transpose(x_nhwc, (0, 1, 4, 2, 3)))
    return outputs


if __name__ == "__main__":
    key = jax.random.PRNGKey(0)
    k_in, k_par = jax.random.split(key)

    B, S, C, H, W = 2, 3, 7, 8, 8
    x = jax.random.normal(k_in, (B, S, C, H, W), jnp.float32)
    params = init_encoder_params(k_par)

    fwd = jax.jit(encoder_forward)
    outs = jax.block_until_ready(fwd(x, params))

    assert outs[0].shape == (B, S, 7, H, W)
    assert outs[1].shape == (B, S, 28, H, W)
    assert outs[2].shape == (B, S, 28, H, W)
    assert outs[3].shape == (B, S, 16, H, W)
    print("KERNEL_OK")
</pallas_src>

<mosaic_0001>
module attributes {stable_mosaic.version = 11 : i64} {
  func.func @_conv3x3_taps_kernel(%arg0: i32, %arg1: memref<3x10x10x7xf32, #tpu.memory_space<vmem>>, %arg2: memref<9x7x112xf32, #tpu.memory_space<vmem>>, %arg3: memref<3x8x8x112xf32, #tpu.memory_space<vmem>>) attributes {dimension_semantics = [#tpu.dimension_semantics<parallel>], iteration_bounds = array<i64: 2>, scalar_prefetch = 0 : i64, scratch_operands = 0 : i64, tpu.core_type = #tpu.core_type<tc>, window_params = [{transform_indices = @transform_0, window_bounds = array<i64: 3, 10, 10, 7>}, {pipeline_mode = #tpu.pipeline_mode<synchronous>, transform_indices = @transform_1, window_bounds = array<i64: 9, 7, 112>}, {transform_indices = @transform_2, window_bounds = array<i64: 3, 8, 8, 112>}]} {
    %c0 = arith.constant 0 : index
    %c0_0 = arith.constant 0 : index
    %c0_1 = arith.constant 0 : index
    %c0_2 = arith.constant 0 : index
    %0 = vector.load %arg1[%c0, %c0_0, %c0_1, %c0_2] : memref<3x10x10x7xf32, #tpu.memory_space<vmem>>, vector<3x10x10x7xf32>
    %cst = arith.constant 0.000000e+00 : f32
    %1 = vector.broadcast %cst : f32 to vector<192x112xf32>
    %2 = vector.extract_strided_slice %0 {offsets = [0, 0, 0, 0], sizes = [3, 8, 8, 7], strides = [1, 1, 1, 1]} : vector<3x10x10x7xf32> to vector<3x8x8x7xf32>
    %3 = vector.shape_cast %2 : vector<3x8x8x7xf32> to vector<192x7xf32>
    %c0_3 = arith.constant 0 : index
    %c0_4 = arith.constant 0 : index
    %c0_5 = arith.constant 0 : index
    %4 = vector.load %arg2[%c0_3, %c0_4, %c0_5] : memref<9x7x112xf32, #tpu.memory_space<vmem>>, vector<1x7x112xf32>
    %5 = vector.shape_cast %4 : vector<1x7x112xf32> to vector<7x112xf32>
    %cst_6 = arith.constant dense<0.000000e+00> : vector<192x112xf32>
    %6 = tpu.matmul %3, %5, %cst_6 {dimension_numbers = #tpu.dot_dimension_numbers<[1], [0], [0], [1], [0, 0, 1, 1], [], []>} : vector<192x7xf32>, vector<7x112xf32>, vector<192x112xf32> -> vector<192x112xf32>
    %7 = arith.addf %1, %6 : vector<192x112xf32>
    %8 = vector.extract_strided_slice %0 {offsets = [0, 0, 1, 0], sizes = [3, 8, 8, 7], strides = [1, 1, 1, 1]} : vector<3x10x10x7xf32> to vector<3x8x8x7xf32>
    %9 = vector.shape_cast %8 : vector<3x8x8x7xf32> to vector<192x7xf32>
    %c1 = arith.constant 1 : index
    %c0_7 = arith.constant 0 : index
    %c0_8 = arith.constant 0 : index
    %10 = vector.load %arg2[%c1, %c0_7, %c0_8] : memref<9x7x112xf32, #tpu.memory_space<vmem>>, vector<1x7x112xf32>
    %11 = vector.shape_cast %10 : vector<1x7x112xf32> to vector<7x112xf32>
    %cst_9 = arith.constant dense<0.000000e+00> : vector<192x112xf32>
    %12 = tpu.matmul %9, %11, %cst_9 {dimension_numbers = #tpu.dot_dimension_numbers<[1], [0], [0], [1], [0, 0, 1, 1], [], []>} : vector<192x7xf32>, vector<7x112xf32>, vector<192x112xf32> -> vector<192x112xf32>
    %13 = arith.addf %7, %12 : vector<192x112xf32>
    %14 = vector.extract_strided_slice %0 {offsets = [0, 0, 2, 0], sizes = [3, 8, 8, 7], strides = [1, 1, 1, 1]} : vector<3x10x10x7xf32> to vector<3x8x8x7xf32>
    %15 = vector.shape_cast %14 : vector<3x8x8x7xf32> to vector<192x7xf32>
    %c2 = arith.constant 2 : index
    %c0_10 = arith.constant 0 : index
    %c0_11 = arith.constant 0 : index
    %16 = vector.load %arg2[%c2, %c0_10, %c0_11] : memref<9x7x112xf32, #tpu.memory_space<vmem>>, vector<1x7x112xf32>
    %17 = vector.shape_cast %16 : vector<1x7x112xf32> to vector<7x112xf32>
    %cst_12 = arith.constant dense<0.000000e+00> : vector<192x112xf32>
    %18 = tpu.matmul %15, %17, %cst_12 {dimension_numbers = #tpu.dot_dimension_numbers<[1], [0], [0], [1], [0, 0, 1, 1], [], []>} : vector<192x7xf32>, vector<7x112xf32>, vector<192x112xf32> -> vector<192x112xf32>
    %19 = arith.addf %13, %18 : vector<192x112xf32>
    %20 = vector.extract_strided_slice %0 {offsets = [0, 1, 0, 0], sizes = [3, 8, 8, 7], strides = [1, 1, 1, 1]} : vector<3x10x10x7xf32> to vector<3x8x8x7xf32>
    %21 = vector.shape_cast %20 : vector<3x8x8x7xf32> to vector<192x7xf32>
    %c3 = arith.constant 3 : index
    %c0_13 = arith.constant 0 : index
    %c0_14 = arith.constant 0 : index
    %22 = vector.load %arg2[%c3, %c0_13, %c0_14] : memref<9x7x112xf32, #tpu.memory_space<vmem>>, vector<1x7x112xf32>
    %23 = vector.shape_cast %22 : vector<1x7x112xf32> to vector<7x112xf32>
    %cst_15 = arith.constant dense<0.000000e+00> : vector<192x112xf32>
    %24 = tpu.matmul %21, %23, %cst_15 {dimension_numbers = #tpu.dot_dimension_numbers<[1], [0], [0], [1], [0, 0, 1, 1], [], []>} : vector<192x7xf32>, vector<7x112xf32>, vector<192x112xf32> -> vector<192x112xf32>
    %25 = arith.addf %19, %24 : vector<192x112xf32>
    %26 = vector.extract_strided_slice %0 {offsets = [0, 1, 1, 0], sizes = [3, 8, 8, 7], strides = [1, 1, 1, 1]} : vector<3x10x10x7xf32> to vector<3x8x8x7xf32>
    %27 = vector.shape_cast %26 : vector<3x8x8x7xf32> to vector<192x7xf32>
    %c4 = arith.constant 4 : index
    %c0_16 = arith.constant 0 : index
    %c0_17 = arith.constant 0 : index
    %28 = vector.load %arg2[%c4, %c0_16, %c0_17] : memref<9x7x112xf32, #tpu.memory_space<vmem>>, vector<1x7x112xf32>
    %29 = vector.shape_cast %28 : vector<1x7x112xf32> to vector<7x112xf32>
    %cst_18 = arith.constant dense<0.000000e+00> : vector<192x112xf32>
    %30 = tpu.matmul %27, %29, %cst_18 {dimension_numbers = #tpu.dot_dimension_numbers<[1], [0], [0], [1], [0, 0, 1, 1], [], []>} : vector<192x7xf32>, vector<7x112xf32>, vector<192x112xf32> -> vector<192x112xf32>
    %31 = arith.addf %25, %30 : vector<192x112xf32>
    %32 = vector.extract_strided_slice %0 {offsets = [0, 1, 2, 0], sizes = [3, 8, 8, 7], strides = [1, 1, 1, 1]} : vector<3x10x10x7xf32> to vector<3x8x8x7xf32>
    %33 = vector.shape_cast %32 : vector<3x8x8x7xf32> to vector<192x7xf32>
    %c5 = arith.constant 5 : index
    %c0_19 = arith.constant 0 : index
    %c0_20 = arith.constant 0 : index
    %34 = vector.load %arg2[%c5, %c0_19, %c0_20] : memref<9x7x112xf32, #tpu.memory_space<vmem>>, vector<1x7x112xf32>
    %35 = vector.shape_cast %34 : vector<1x7x112xf32> to vector<7x112xf32>
    %cst_21 = arith.constant dense<0.000000e+00> : vector<192x112xf32>
    %36 = tpu.matmul %33, %35, %cst_21 {dimension_numbers = #tpu.dot_dimension_numbers<[1], [0], [0], [1], [0, 0, 1, 1], [], []>} : vector<192x7xf32>, vector<7x112xf32>, vector<192x112xf32> -> vector<192x112xf32>
    %37 = arith.addf %31, %36 : vector<192x112xf32>
    %38 = vector.extract_strided_slice %0 {offsets = [0, 2, 0, 0], sizes = [3, 8, 8, 7], strides = [1, 1, 1, 1]} : vector<3x10x10x7xf32> to vector<3x8x8x7xf32>
    %39 = vector.shape_cast %38 : vector<3x8x8x7xf32> to vector<192x7xf32>
    %c6 = arith.constant 6 : index
    %c0_22 = arith.constant 0 : index
    %c0_23 = arith.constant 0 : index
    %40 = vector.load %arg2[%c6, %c0_22, %c0_23] : memref<9x7x112xf32, #tpu.memory_space<vmem>>, vector<1x7x112xf32>
    %41 = vector.shape_cast %40 : vector<1x7x112xf32> to vector<7x112xf32>
    %cst_24 = arith.constant dense<0.000000e+00> : vector<192x112xf32>
    %42 = tpu.matmul %39, %41, %cst_24 {dimension_numbers = #tpu.dot_dimension_numbers<[1], [0], [0], [1], [0, 0, 1, 1], [], []>} : vector<192x7xf32>, vector<7x112xf32>, vector<192x112xf32> -> vector<192x112xf32>
    %43 = arith.addf %37, %42 : vector<192x112xf32>
    %44 = vector.extract_strided_slice %0 {offsets = [0, 2, 1, 0], sizes = [3, 8, 8, 7], strides = [1, 1, 1, 1]} : vector<3x10x10x7xf32> to vector<3x8x8x7xf32>
    %45 = vector.shape_cast %44 : vector<3x8x8x7xf32> to vector<192x7xf32>
    %c7 = arith.constant 7 : index
    %c0_25 = arith.constant 0 : index
    %c0_26 = arith.constant 0 : index
    %46 = vector.load %arg2[%c7, %c0_25, %c0_26] : memref<9x7x112xf32, #tpu.memory_space<vmem>>, vector<1x7x112xf32>
    %47 = vector.shape_cast %46 : vector<1x7x112xf32> to vector<7x112xf32>
    %cst_27 = arith.constant dense<0.000000e+00> : vector<192x112xf32>
    %48 = tpu.matmul %45, %47, %cst_27 {dimension_numbers = #tpu.dot_dimension_numbers<[1], [0], [0], [1], [0, 0, 1, 1], [], []>} : vector<192x7xf32>, vector<7x112xf32>, vector<192x112xf32> -> vector<192x112xf32>
    %49 = arith.addf %43, %48 : vector<192x112xf32>
    %50 = vector.extract_strided_slice %0 {offsets = [0, 2, 2, 0], sizes = [3, 8, 8, 7], strides = [1, 1, 1, 1]} : vector<3x10x10x7xf32> to vector<3x8x8x7xf32>
    %51 = vector.shape_cast %50 : vector<3x8x8x7xf32> to vector<192x7xf32>
    %c8 = arith.constant 8 : index
    %c0_28 = arith.constant 0 : index
    %c0_29 = arith.constant 0 : index
    %52 = vector.load %arg2[%c8, %c0_28, %c0_29] : memref<9x7x112xf32, #tpu.memory_space<vmem>>, vector<1x7x112xf32>
    %53 = vector.shape_cast %52 : vector<1x7x112xf32> to vector<7x112xf32>
    %cst_30 = arith.constant dense<0.000000e+00> : vector<192x112xf32>
    %54 = tpu.matmul %51, %53, %cst_30 {dimension_numbers = #tpu.dot_dimension_numbers<[1], [0], [0], [1], [0, 0, 1, 1], [], []>} : vector<192x7xf32>, vector<7x112xf32>, vector<192x112xf32> -> vector<192x112xf32>
    %55 = arith.addf %49, %54 : vector<192x112xf32>
    %56 = vector.shape_cast %55 : vector<192x112xf32> to vector<3x8x8x112xf32>
    %c0_31 = arith.constant 0 : index
    %c0_32 = arith.constant 0 : index
    %c0_33 = arith.constant 0 : index
    %c0_34 = arith.constant 0 : index
    %57 = vector.load %arg3[%c0_31, %c0_32, %c0_33, %c0_34] : memref<3x8x8x112xf32, #tpu.memory_space<vmem>>, vector<3x8x8x112xf32>
    tpu.vector_store %arg3[%c0_31, %c0_32, %c0_33, %c0_34], %56 {strides = array<i32>} : memref<3x8x8x112xf32, #tpu.memory_space<vmem>>, vector<3x8x8x112xf32>,
    return
  }
  func.func @transform_0(%arg0: i32) -> (i32, i32, i32, i32) {
    %c0_i32 = arith.constant 0 : i32
    %c0_i32_0 = arith.constant 0 : i32
    %c0_i32_1 = arith.constant 0 : i32
    %c0_i32_2 = arith.constant 0 : i32
    return %arg0, %c0_i32, %c0_i32_0, %c0_i32_1 : i32, i32, i32, i32
  }
  func.func @transform_1(%arg0: i32) -> (i32, i32, i32) {
    %c0_i32 = arith.constant 0 : i32
    %c0_i32_0 = arith.constant 0 : i32
    %c0_i32_1 = arith.constant 0 : i32
    %c0_i32_2 = arith.constant 0 : i32
    return %c0_i32, %c0_i32_0, %c0_i32_1 : i32, i32, i32
  }
  func.func @transform_2(%arg0: i32) -> (i32, i32, i32, i32) {
    %c0_i32 = arith.constant 0 : i32
    %c0_i32_0 = arith.constant 0 : i32
    %c0_i32_1 = arith.constant 0 : i32
    %c0_i32_2 = arith.constant 0 : i32
    return %arg0, %c0_i32, %c0_i32_0, %c0_i32_1 : i32, i32, i32, i32
  }
}

module attributes {stable_mosaic.version = 11 : i64} {
  func.func @_convlstm_recur_kernel(%arg0: i32, %arg1: i32, %arg2: memref<1x1x8x8x112xf32, #tpu.memory_space<vmem>>, %arg3: memref<9x28x112xf32, #tpu.memory_space<vmem>>, %arg4: memref<1x1x8x8x28xf32, #tpu.memory_space<vmem>>, %arg5: memref<10x10x28xf32, #tpu.memory_space<vmem>>, %arg6: memref<64x28xf32, #tpu.memory_space<vmem>>) attributes {dimension_semantics = [#tpu.dimension_semantics<parallel>, #tpu.dimension_semantics<arbitrary>], iteration_bounds = array<i64: 2, 3>, scalar_prefetch = 0 : i64, scratch_operands = 2 : i64, tpu.core_type = #tpu.core_type<tc>, window_params = [{transform_indices = @transform_0, window_bounds = array<i64: 1, 1, 8, 8, 112>}, {pipeline_mode = #tpu.pipeline_mode<synchronous>, transform_indices = @transform_1, window_bounds = array<i64: 9, 28, 112>}, {transform_indices = @transform_2, window_bounds = array<i64: 1, 1, 8, 8, 28>}]} {
    %c0_i32 = arith.constant 0 : i32
    %0 = arith.cmpi eq, %arg1, %c0_i32 : i32
    %1 = arith.extui %0 : i1 to i32
    %c0_i32_0 = arith.constant 0 : i32
    %2 = arith.cmpi ne, %1, %c0_i32_0 : i32
    scf.if %2 {
      %cst_50 = arith.constant 0.000000e+00 : f32
      %93 = vector.broadcast %cst_50 : f32 to vector<10x10x28xf32>
      %c0_51 = arith.constant 0 : index
      %c0_52 = arith.constant 0 : index
      %c0_53 = arith.constant 0 : index
      %94 = vector.load %arg5[%c0_51, %c0_52, %c0_53] : memref<10x10x28xf32, #tpu.memory_space<vmem>>, vector<10x10x28xf32>
      tpu.vector_store %arg5[%c0_51, %c0_52, %c0_53], %93 {strides = array<i32>} : memref<10x10x28xf32, #tpu.memory_space<vmem>>, vector<10x10x28xf32>,
      %cst_54 = arith.constant 0.000000e+00 : f32
      %95 = vector.broadcast %cst_54 : f32 to vector<64x28xf32>
      %c0_55 = arith.constant 0 : index
      %c0_56 = arith.constant 0 : index
      %96 = vector.load %arg6[%c0_55, %c0_56] : memref<64x28xf32, #tpu.memory_space<vmem>>, vector<64x28xf32>
      tpu.vector_store %arg6[%c0_55, %c0_56], %95 {strides = array<i32>} : memref<64x28xf32, #tpu.memory_space<vmem>>, vector<64x28xf32>,
    } else {
    }
    %c0 = arith.constant 0 : index
    %c0_1 = arith.constant 0 : index
    %c0_2 = arith.constant 0 : index
    %3 = vector.load %arg5[%c0, %c0_1, %c0_2] : memref<10x10x28xf32, #tpu.memory_space<vmem>>, vector<10x10x28xf32>
    %c0_3 = arith.constant 0 : index
    %c0_4 = arith.constant 0 : index
    %c0_5 = arith.constant 0 : index
    %c0_6 = arith.constant 0 : index
    %c0_7 = arith.constant 0 : index
    %4 = vector.load %arg2[%c0_3, %c0_4, %c0_5, %c0_6, %c0_7] : memref<1x1x8x8x112xf32, #tpu.memory_space<vmem>>, vector<1x1x8x8x112xf32>
    %5 = vector.shape_cast %4 : vector<1x1x8x8x112xf32> to vector<8x8x112xf32>
    %6 = vector.shape_cast %5 : vector<8x8x112xf32> to vector<64x112xf32>
    %7 = vector.extract_strided_slice %3 {offsets = [0, 0, 0], sizes = [8, 8, 28], strides = [1, 1, 1]} : vector<10x10x28xf32> to vector<8x8x28xf32>
    %8 = vector.shape_cast %7 : vector<8x8x28xf32> to vector<64x28xf32>
    %c0_8 = arith.constant 0 : index
    %c0_9 = arith.constant 0 : index
    %c0_10 = arith.constant 0 : index
    %9 = vector.load %arg3[%c0_8, %c0_9, %c0_10] : memref<9x28x112xf32, #tpu.memory_space<vmem>>, vector<1x28x112xf32>
    %10 = vector.shape_cast %9 : vector<1x28x112xf32> to vector<28x112xf32>
    %cst = arith.constant dense<0.000000e+00> : vector<64x112xf32>
    %11 = tpu.matmul %8, %10, %cst {dimension_numbers = #tpu.dot_dimension_numbers<[1], [0], [0], [1], [0, 0, 1, 1], [], []>} : vector<64x28xf32>, vector<28x112xf32>, vector<64x112xf32> -> vector<64x112xf32>
    %12 = arith.addf %6, %11 : vector<64x112xf32>
    %13 = vector.extract_strided_slice %3 {offsets = [0, 1, 0], sizes = [8, 8, 28], strides = [1, 1, 1]} : vector<10x10x28xf32> to vector<8x8x28xf32>
    %14 = vector.shape_cast %13 : vector<8x8x28xf32> to vector<64x28xf32>
    %c1 = arith.constant 1 : index
    %c0_11 = arith.constant 0 : index
    %c0_12 = arith.constant 0 : index
    %15 = vector.load %arg3[%c1, %c0_11, %c0_12] : memref<9x28x112xf32, #tpu.memory_space<vmem>>, vector<1x28x112xf32>
    %16 = vector.shape_cast %15 : vector<1x28x112xf32> to vector<28x112xf32>
    %cst_13 = arith.constant dense<0.000000e+00> : vector<64x112xf32>
    %17 = tpu.matmul %14, %16, %cst_13 {dimension_numbers = #tpu.dot_dimension_numbers<[1], [0], [0], [1], [0, 0, 1, 1], [], []>} : vector<64x28xf32>, vector<28x112xf32>, vector<64x112xf32> -> vector<64x112xf32>
    %18 = arith.addf %12, %17 : vector<64x112xf32>
    %19 = vector.extract_strided_slice %3 {offsets = [0, 2, 0], sizes = [8, 8, 28], strides = [1, 1, 1]} : vector<10x10x28xf32> to vector<8x8x28xf32>
    %20 = vector.shape_cast %19 : vector<8x8x28xf32> to vector<64x28xf32>
    %c2 = arith.constant 2 : index
    %c0_14 = arith.constant 0 : index
    %c0_15 = arith.constant 0 : index
    %21 = vector.load %arg3[%c2, %c0_14, %c0_15] : memref<9x28x112xf32, #tpu.memory_space<vmem>>, vector<1x28x112xf32>
    %22 = vector.shape_cast %21 : vector<1x28x112xf32> to vector<28x112xf32>
    %cst_16 = arith.constant dense<0.000000e+00> : vector<64x112xf32>
    %23 = tpu.matmul %20, %22, %cst_16 {dimension_numbers = #tpu.dot_dimension_numbers<[1], [0], [0], [1], [0, 0, 1, 1], [], []>} : vector<64x28xf32>, vector<28x112xf32>, vector<64x112xf32> -> vector<64x112xf32>
    %24 = arith.addf %18, %23 : vector<64x112xf32>
    %25 = vector.extract_strided_slice %3 {offsets = [1, 0, 0], sizes = [8, 8, 28], strides = [1, 1, 1]} : vector<10x10x28xf32> to vector<8x8x28xf32>
    %26 = vector.shape_cast %25 : vector<8x8x28xf32> to vector<64x28xf32>
    %c3 = arith.constant 3 : index
    %c0_17 = arith.constant 0 : index
    %c0_18 = arith.constant 0 : index
    %27 = vector.load %arg3[%c3, %c0_17, %c0_18] : memref<9x28x112xf32, #tpu.memory_space<vmem>>, vector<1x28x112xf32>
    %28 = vector.shape_cast %27 : vector<1x28x112xf32> to vector<28x112xf32>
    %cst_19 = arith.constant dense<0.000000e+00> : vector<64x112xf32>
    %29 = tpu.matmul %26, %28, %cst_19 {dimension_numbers = #tpu.dot_dimension_numbers<[1], [0], [0], [1], [0, 0, 1, 1], [], []>} : vector<64x28xf32>, vector<28x112xf32>, vector<64x112xf32> -> vector<64x112xf32>
    %30 = arith.addf %24, %29 : vector<64x112xf32>
    %31 = vector.extract_strided_slice %3 {offsets = [1, 1, 0], sizes = [8, 8, 28], strides = [1, 1, 1]} : vector<10x10x28xf32> to vector<8x8x28xf32>
    %32 = vector.shape_cast %31 : vector<8x8x28xf32> to vector<64x28xf32>
    %c4 = arith.constant 4 : index
    %c0_20 = arith.constant 0 : index
    %c0_21 = arith.constant 0 : index
    %33 = vector.load %arg3[%c4, %c0_20, %c0_21] : memref<9x28x112xf32, #tpu.memory_space<vmem>>, vector<1x28x112xf32>
    %34 = vector.shape_cast %33 : vector<1x28x112xf32> to vector<28x112xf32>
    %cst_22 = arith.constant dense<0.000000e+00> : vector<64x112xf32>
    %35 = tpu.matmul %32, %34, %cst_22 {dimension_numbers = #tpu.dot_dimension_numbers<[1], [0], [0], [1], [0, 0, 1, 1], [], []>} : vector<64x28xf32>, vector<28x112xf32>, vector<64x112xf32> -> vector<64x112xf32>
    %36 = arith.addf %30, %35 : vector<64x112xf32>
    %37 = vector.extract_strided_slice %3 {offsets = [1, 2, 0], sizes = [8, 8, 28], strides = [1, 1, 1]} : vector<10x10x28xf32> to vector<8x8x28xf32>
    %38 = vector.shape_cast %37 : vector<8x8x28xf32> to vector<64x28xf32>
    %c5 = arith.constant 5 : index
    %c0_23 = arith.constant 0 : index
    %c0_24 = arith.constant 0 : index
    %39 = vector.load %arg3[%c5, %c0_23, %c0_24] : memref<9x28x112xf32, #tpu.memory_space<vmem>>, vector<1x28x112xf32>
    %40 = vector.shape_cast %39 : vector<1x28x112xf32> to vector<28x112xf32>
    %cst_25 = arith.constant dense<0.000000e+00> : vector<64x112xf32>
    %41 = tpu.matmul %38, %40, %cst_25 {dimension_numbers = #tpu.dot_dimension_numbers<[1], [0], [0], [1], [0, 0, 1, 1], [], []>} : vector<64x28xf32>, vector<28x112xf32>, vector<64x112xf32> -> vector<64x112xf32>
    %42 = arith.addf %36, %41 : vector<64x112xf32>
    %43 = vector.extract_strided_slice %3 {offsets = [2, 0, 0], sizes = [8, 8, 28], strides = [1, 1, 1]} : vector<10x10x28xf32> to vector<8x8x28xf32>
    %44 = vector.shape_cast %43 : vector<8x8x28xf32> to vector<64x28xf32>
    %c6 = arith.constant 6 : index
    %c0_26 = arith.constant 0 : index
    %c0_27 = arith.constant 0 : index
    %45 = vector.load %arg3[%c6, %c0_26, %c0_27] : memref<9x28x112xf32, #tpu.memory_space<vmem>>, vector<1x28x112xf32>
    %46 = vector.shape_cast %45 : vector<1x28x112xf32> to vector<28x112xf32>
    %cst_28 = arith.constant dense<0.000000e+00> : vector<64x112xf32>
    %47 = tpu.matmul %44, %46, %cst_28 {dimension_numbers = #tpu.dot_dimension_numbers<[1], [0], [0], [1], [0, 0, 1, 1], [], []>} : vector<64x28xf32>, vector<28x112xf32>, vector<64x112xf32> -> vector<64x112xf32>
    %48 = arith.addf %42, %47 : vector<64x112xf32>
    %49 = vector.extract_strided_slice %3 {offsets = [2, 1, 0], sizes = [8, 8, 28], strides = [1, 1, 1]} : vector<10x10x28xf32> to vector<8x8x28xf32>
    %50 = vector.shape_cast %49 : vector<8x8x28xf32> to vector<64x28xf32>
    %c7 = arith.constant 7 : index
    %c0_29 = arith.constant 0 : index
    %c0_30 = arith.constant 0 : index
    %51 = vector.load %arg3[%c7, %c0_29, %c0_30] : memref<9x28x112xf32, #tpu.memory_space<vmem>>, vector<1x28x112xf32>
    %52 = vector.shape_cast %51 : vector<1x28x112xf32> to vector<28x112xf32>
    %cst_31 = arith.constant dense<0.000000e+00> : vector<64x112xf32>
    %53 = tpu.matmul %50, %52, %cst_31 {dimension_numbers = #tpu.dot_dimension_numbers<[1], [0], [0], [1], [0, 0, 1, 1], [], []>} : vector<64x28xf32>, vector<28x112xf32>, vector<64x112xf32> -> vector<64x112xf32>
    %54 = arith.addf %48, %53 : vector<64x112xf32>
    %55 = vector.extract_strided_slice %3 {offsets = [2, 2, 0], sizes = [8, 8, 28], strides = [1, 1, 1]} : vector<10x10x28xf32> to vector<8x8x28xf32>
    %56 = vector.shape_cast %55 : vector<8x8x28xf32> to vector<64x28xf32>
    %c8 = arith.constant 8 : index
    %c0_32 = arith.constant 0 : index
    %c0_33 = arith.constant 0 : index
    %57 = vector.load %arg3[%c8, %c0_32, %c0_33] : memref<9x28x112xf32, #tpu.memory_space<vmem>>, vector<1x28x112xf32>
    %58 = vector.shape_cast %57 : vector<1x28x112xf32> to vector<28x112xf32>
    %cst_34 = arith.constant dense<0.000000e+00> : vector<64x112xf32>
    %59 = tpu.matmul %56, %58, %cst_34 {dimension_numbers = #tpu.dot_dimension_numbers<[1], [0], [0], [1], [0, 0, 1, 1], [], []>} : vector<64x28xf32>, vector<28x112xf32>, vector<64x112xf32> -> vector<64x112xf32>
    %60 = arith.addf %54, %59 : vector<64x112xf32>
    %61 = vector.extract_strided_slice %60 {offsets = [0, 0], sizes = [64, 28], strides = [1, 1]} : vector<64x112xf32> to vector<64x28xf32>
    %62 = arith.negf %61 : vector<64x28xf32>
    %63 = math.exp %62 : vector<64x28xf32>
    %cst_35 = arith.constant 1.000000e+00 : f32
    %64 = vector.broadcast %cst_35 : f32 to vector<64x28xf32>
    %65 = arith.addf %64, %63 : vector<64x28xf32>
    %66 = arith.divf %64, %65 : vector<64x28xf32>
    %67 = vector.extract_strided_slice %60 {offsets = [0, 28], sizes = [64, 28], strides = [1, 1]} : vector<64x112xf32> to vector<64x28xf32>
    %68 = arith.negf %67 : vector<64x28xf32>
    %69 = math.exp %68 : vector<64x28xf32>
    %cst_36 = arith.constant 1.000000e+00 : f32
    %70 = vector.broadcast %cst_36 : f32 to vector<64x28xf32>
    %71 = arith.addf %70, %69 : vector<64x28xf32>
    %72 = arith.divf %70, %71 : vector<64x28xf32>
    %73 = vector.extract_strided_slice %60 {offsets = [0, 56], sizes = [64, 28], strides = [1, 1]} : vector<64x112xf32> to vector<64x28xf32>
    %74 = vector.extract_strided_slice %60 {offsets = [0, 84], sizes = [64, 28], strides = [1, 1]} : vector<64x112xf32> to vector<64x28xf32>
    %75 = arith.negf %74 : vector<64x28xf32>
    %76 = math.exp %75 : vector<64x28xf32>
    %cst_37 = arith.constant 1.000000e+00 : f32
    %77 = vector.broadcast %cst_37 : f32 to vector<64x28xf32>
    %78 = arith.addf %77, %76 : vector<64x28xf32>
    %79 = arith.divf %77, %78 : vector<64x28xf32>
    %c0_38 = arith.constant 0 : index
    %c0_39 = arith.constant 0 : index
    %80 = vector.load %arg6[%c0_38, %c0_39] : memref<64x28xf32, #tpu.memory_space<vmem>>, vector<64x28xf32>
    %81 = arith.mulf %72, %80 : vector<64x28xf32>
    %82 = arith.mulf %66, %73 : vector<64x28xf32>
    %83 = arith.addf %81, %82 : vector<64x28xf32>
    %84 = math.tanh %83 : vector<64x28xf32>
    %85 = arith.mulf %79, %84 : vector<64x28xf32>
    %c0_40 = arith.constant 0 : index
    %c0_41 = arith.constant 0 : index
    %86 = vector.load %arg6[%c0_40, %c0_41] : memref<64x28xf32, #tpu.memory_space<vmem>>, vector<64x28xf32>
    tpu.vector_store %arg6[%c0_40, %c0_41], %83 {strides = array<i32>} : memref<64x28xf32, #tpu.memory_space<vmem>>, vector<64x28xf32>,
    %87 = vector.shape_cast %85 : vector<64x28xf32> to vector<8x8x28xf32>
    %c1_42 = arith.constant 1 : index
    %c1_43 = arith.constant 1 : index
    %c0_44 = arith.constant 0 : index
    %88 = vector.load %arg5[%c1_42, %c1_43, %c0_44] : memref<10x10x28xf32, #tpu.memory_space<vmem>>, vector<8x8x28xf32>
    tpu.vector_store %arg5[%c1_42, %c1_43, %c0_44], %87 {strides = array<i32>} : memref<10x10x28xf32, #tpu.memory_space<vmem>>, vector<8x8x28xf32>,
    %89 = vector.shape_cast %85 : vector<64x28xf32> to vector<8x8x28xf32>
    %c0_45 = arith.constant 0 : index
    %c0_46 = arith.constant 0 : index
    %c0_47 = arith.constant 0 : index
    %c0_48 = arith.constant 0 : index
    %c0_49 = arith.constant 0 : index
    %90 = vector.load %arg4[%c0_45, %c0_46, %c0_47, %c0_48, %c0_49] : memref<1x1x8x8x28xf32, #tpu.memory_space<vmem>>, vector<1x1x8x8x28xf32>
    %91 = vector.shape_cast %90 : vector<1x1x8x8x28xf32> to vector<8x8x28xf32>
    %92 = vector.shape_cast %89 : vector<8x8x28xf32> to vector<1x1x8x8x28xf32>
    tpu.vector_store %arg4[%c0_45, %c0_46, %c0_47, %c0_48, %c0_49], %92 {strides = array<i32>} : memref<1x1x8x8x28xf32, #tpu.memory_space<vmem>>, vector<1x1x8x8x28xf32>,
    return
  }
  func.func @transform_0(%arg0: i32, %arg1: i32) -> (i32, i32, i32, i32, i32) {
    %c0_i32 = arith.constant 0 : i32
    %c0_i32_0 = arith.constant 0 : i32
    %c0_i32_1 = arith.constant 0 : i32
    %c0_i32_2 = arith.constant 0 : i32
    return %arg0, %arg1, %c0_i32, %c0_i32_0, %c0_i32_1 : i32, i32, i32, i32, i32
  }
  func.func @transform_1(%arg0: i32, %arg1: i32) -> (i32, i32, i32) {
    %c0_i32 = arith.constant 0 : i32
    %c0_i32_0 = arith.constant 0 : i32
    %c0_i32_1 = arith.constant 0 : i32
    %c0_i32_2 = arith.constant 0 : i32
    return %c0_i32, %c0_i32_0, %c0_i32_1 : i32, i32, i32
  }
  func.func @transform_2(%arg0: i32, %arg1: i32) -> (i32, i32, i32, i32, i32) {
    %c0_i32 = arith.constant 0 : i32
    %c0_i32_0 = arith.constant 0 : i32
    %c0_i32_1 = arith.constant 0 : i32
    %c0_i32_2 = arith.constant 0 : i32
    return %arg0, %arg1, %c0_i32, %c0_i32_0, %c0_i32_1 : i32, i32, i32, i32, i32
  }
}

module attributes {stable_mosaic.version = 11 : i64} {
  func.func @_conv3x3_taps_kernel(%arg0: i32, %arg1: memref<3x10x10x28xf32, #tpu.memory_space<vmem>>, %arg2: memref<9x28x112xf32, #tpu.memory_space<vmem>>, %arg3: memref<3x8x8x112xf32, #tpu.memory_space<vmem>>) attributes {dimension_semantics = [#tpu.dimension_semantics<parallel>], iteration_bounds = array<i64: 2>, scalar_prefetch = 0 : i64, scratch_operands = 0 : i64, tpu.core_type = #tpu.core_type<tc>, window_params = [{transform_indices = @transform_0, window_bounds = array<i64: 3, 10, 10, 28>}, {pipeline_mode = #tpu.pipeline_mode<synchronous>, transform_indices = @transform_1, window_bounds = array<i64: 9, 28, 112>}, {transform_indices = @transform_2, window_bounds = array<i64: 3, 8, 8, 112>}]} {
    %c0 = arith.constant 0 : index
    %c0_0 = arith.constant 0 : index
    %c0_1 = arith.constant 0 : index
    %c0_2 = arith.constant 0 : index
    %0 = vector.load %arg1[%c0, %c0_0, %c0_1, %c0_2] : memref<3x10x10x28xf32, #tpu.memory_space<vmem>>, vector<3x10x10x28xf32>
    %cst = arith.constant 0.000000e+00 : f32
    %1 = vector.broadcast %cst : f32 to vector<192x112xf32>
    %2 = vector.extract_strided_slice %0 {offsets = [0, 0, 0, 0], sizes = [3, 8, 8, 28], strides = [1, 1, 1, 1]} : vector<3x10x10x28xf32> to vector<3x8x8x28xf32>
    %3 = vector.shape_cast %2 : vector<3x8x8x28xf32> to vector<192x28xf32>
    %c0_3 = arith.constant 0 : index
    %c0_4 = arith.constant 0 : index
    %c0_5 = arith.constant 0 : index
    %4 = vector.load %arg2[%c0_3, %c0_4, %c0_5] : memref<9x28x112xf32, #tpu.memory_space<vmem>>, vector<1x28x112xf32>
    %5 = vector.shape_cast %4 : vector<1x28x112xf32> to vector<28x112xf32>
    %cst_6 = arith.constant dense<0.000000e+00> : vector<192x112xf32>
    %6 = tpu.matmul %3, %5, %cst_6 {dimension_numbers = #tpu.dot_dimension_numbers<[1], [0], [0], [1], [0, 0, 1, 1], [], []>} : vector<192x28xf32>, vector<28x112xf32>, vector<192x112xf32> -> vector<192x112xf32>
    %7 = arith.addf %1, %6 : vector<192x112xf32>
    %8 = vector.extract_strided_slice %0 {offsets = [0, 0, 1, 0], sizes = [3, 8, 8, 28], strides = [1, 1, 1, 1]} : vector<3x10x10x28xf32> to vector<3x8x8x28xf32>
    %9 = vector.shape_cast %8 : vector<3x8x8x28xf32> to vector<192x28xf32>
    %c1 = arith.constant 1 : index
    %c0_7 = arith.constant 0 : index
    %c0_8 = arith.constant 0 : index
    %10 = vector.load %arg2[%c1, %c0_7, %c0_8] : memref<9x28x112xf32, #tpu.memory_space<vmem>>, vector<1x28x112xf32>
    %11 = vector.shape_cast %10 : vector<1x28x112xf32> to vector<28x112xf32>
    %cst_9 = arith.constant dense<0.000000e+00> : vector<192x112xf32>
    %12 = tpu.matmul %9, %11, %cst_9 {dimension_numbers = #tpu.dot_dimension_numbers<[1], [0], [0], [1], [0, 0, 1, 1], [], []>} : vector<192x28xf32>, vector<28x112xf32>, vector<192x112xf32> -> vector<192x112xf32>
    %13 = arith.addf %7, %12 : vector<192x112xf32>
    %14 = vector.extract_strided_slice %0 {offsets = [0, 0, 2, 0], sizes = [3, 8, 8, 28], strides = [1, 1, 1, 1]} : vector<3x10x10x28xf32> to vector<3x8x8x28xf32>
    %15 = vector.shape_cast %14 : vector<3x8x8x28xf32> to vector<192x28xf32>
    %c2 = arith.constant 2 : index
    %c0_10 = arith.constant 0 : index
    %c0_11 = arith.constant 0 : index
    %16 = vector.load %arg2[%c2, %c0_10, %c0_11] : memref<9x28x112xf32, #tpu.memory_space<vmem>>, vector<1x28x112xf32>
    %17 = vector.shape_cast %16 : vector<1x28x112xf32> to vector<28x112xf32>
    %cst_12 = arith.constant dense<0.000000e+00> : vector<192x112xf32>
    %18 = tpu.matmul %15, %17, %cst_12 {dimension_numbers = #tpu.dot_dimension_numbers<[1], [0], [0], [1], [0, 0, 1, 1], [], []>} : vector<192x28xf32>, vector<28x112xf32>, vector<192x112xf32> -> vector<192x112xf32>
    %19 = arith.addf %13, %18 : vector<192x112xf32>
    %20 = vector.extract_strided_slice %0 {offsets = [0, 1, 0, 0], sizes = [3, 8, 8, 28], strides = [1, 1, 1, 1]} : vector<3x10x10x28xf32> to vector<3x8x8x28xf32>
    %21 = vector.shape_cast %20 : vector<3x8x8x28xf32> to vector<192x28xf32>
    %c3 = arith.constant 3 : index
    %c0_13 = arith.constant 0 : index
    %c0_14 = arith.constant 0 : index
    %22 = vector.load %arg2[%c3, %c0_13, %c0_14] : memref<9x28x112xf32, #tpu.memory_space<vmem>>, vector<1x28x112xf32>
    %23 = vector.shape_cast %22 : vector<1x28x112xf32> to vector<28x112xf32>
    %cst_15 = arith.constant dense<0.000000e+00> : vector<192x112xf32>
    %24 = tpu.matmul %21, %23, %cst_15 {dimension_numbers = #tpu.dot_dimension_numbers<[1], [0], [0], [1], [0, 0, 1, 1], [], []>} : vector<192x28xf32>, vector<28x112xf32>, vector<192x112xf32> -> vector<192x112xf32>
    %25 = arith.addf %19, %24 : vector<192x112xf32>
    %26 = vector.extract_strided_slice %0 {offsets = [0, 1, 1, 0], sizes = [3, 8, 8, 28], strides = [1, 1, 1, 1]} : vector<3x10x10x28xf32> to vector<3x8x8x28xf32>
    %27 = vector.shape_cast %26 : vector<3x8x8x28xf32> to vector<192x28xf32>
    %c4 = arith.constant 4 : index
    %c0_16 = arith.constant 0 : index
    %c0_17 = arith.constant 0 : index
    %28 = vector.load %arg2[%c4, %c0_16, %c0_17] : memref<9x28x112xf32, #tpu.memory_space<vmem>>, vector<1x28x112xf32>
    %29 = vector.shape_cast %28 : vector<1x28x112xf32> to vector<28x112xf32>
    %cst_18 = arith.constant dense<0.000000e+00> : vector<192x112xf32>
    %30 = tpu.matmul %27, %29, %cst_18 {dimension_numbers = #tpu.dot_dimension_numbers<[1], [0], [0], [1], [0, 0, 1, 1], [], []>} : vector<192x28xf32>, vector<28x112xf32>, vector<192x112xf32> -> vector<192x112xf32>
    %31 = arith.addf %25, %30 : vector<192x112xf32>
    %32 = vector.extract_strided_slice %0 {offsets = [0, 1, 2, 0], sizes = [3, 8, 8, 28], strides = [1, 1, 1, 1]} : vector<3x10x10x28xf32> to vector<3x8x8x28xf32>
    %33 = vector.shape_cast %32 : vector<3x8x8x28xf32> to vector<192x28xf32>
    %c5 = arith.constant 5 : index
    %c0_19 = arith.constant 0 : index
    %c0_20 = arith.constant 0 : index
    %34 = vector.load %arg2[%c5, %c0_19, %c0_20] : memref<9x28x112xf32, #tpu.memory_space<vmem>>, vector<1x28x112xf32>
    %35 = vector.shape_cast %34 : vector<1x28x112xf32> to vector<28x112xf32>
    %cst_21 = arith.constant dense<0.000000e+00> : vector<192x112xf32>
    %36 = tpu.matmul %33, %35, %cst_21 {dimension_numbers = #tpu.dot_dimension_numbers<[1], [0], [0], [1], [0, 0, 1, 1], [], []>} : vector<192x28xf32>, vector<28x112xf32>, vector<192x112xf32> -> vector<192x112xf32>
    %37 = arith.addf %31, %36 : vector<192x112xf32>
    %38 = vector.extract_strided_slice %0 {offsets = [0, 2, 0, 0], sizes = [3, 8, 8, 28], strides = [1, 1, 1, 1]} : vector<3x10x10x28xf32> to vector<3x8x8x28xf32>
    %39 = vector.shape_cast %38 : vector<3x8x8x28xf32> to vector<192x28xf32>
    %c6 = arith.constant 6 : index
    %c0_22 = arith.constant 0 : index
    %c0_23 = arith.constant 0 : index
    %40 = vector.load %arg2[%c6, %c0_22, %c0_23] : memref<9x28x112xf32, #tpu.memory_space<vmem>>, vector<1x28x112xf32>
    %41 = vector.shape_cast %40 : vector<1x28x112xf32> to vector<28x112xf32>
    %cst_24 = arith.constant dense<0.000000e+00> : vector<192x112xf32>
    %42 = tpu.matmul %39, %41, %cst_24 {dimension_numbers = #tpu.dot_dimension_numbers<[1], [0], [0], [1], [0, 0, 1, 1], [], []>} : vector<192x28xf32>, vector<28x112xf32>, vector<192x112xf32> -> vector<192x112xf32>
    %43 = arith.addf %37, %42 : vector<192x112xf32>
    %44 = vector.extract_strided_slice %0 {offsets = [0, 2, 1, 0], sizes = [3, 8, 8, 28], strides = [1, 1, 1, 1]} : vector<3x10x10x28xf32> to vector<3x8x8x28xf32>
    %45 = vector.shape_cast %44 : vector<3x8x8x28xf32> to vector<192x28xf32>
    %c7 = arith.constant 7 : index
    %c0_25 = arith.constant 0 : index
    %c0_26 = arith.constant 0 : index
    %46 = vector.load %arg2[%c7, %c0_25, %c0_26] : memref<9x28x112xf32, #tpu.memory_space<vmem>>, vector<1x28x112xf32>
    %47 = vector.shape_cast %46 : vector<1x28x112xf32> to vector<28x112xf32>
    %cst_27 = arith.constant dense<0.000000e+00> : vector<192x112xf32>
    %48 = tpu.matmul %45, %47, %cst_27 {dimension_numbers = #tpu.dot_dimension_numbers<[1], [0], [0], [1], [0, 0, 1, 1], [], []>} : vector<192x28xf32>, vector<28x112xf32>, vector<192x112xf32> -> vector<192x112xf32>
    %49 = arith.addf %43, %48 : vector<192x112xf32>
    %50 = vector.extract_strided_slice %0 {offsets = [0, 2, 2, 0], sizes = [3, 8, 8, 28], strides = [1, 1, 1, 1]} : vector<3x10x10x28xf32> to vector<3x8x8x28xf32>
    %51 = vector.shape_cast %50 : vector<3x8x8x28xf32> to vector<192x28xf32>
    %c8 = arith.constant 8 : index
    %c0_28 = arith.constant 0 : index
    %c0_29 = arith.constant 0 : index
    %52 = vector.load %arg2[%c8, %c0_28, %c0_29] : memref<9x28x112xf32, #tpu.memory_space<vmem>>, vector<1x28x112xf32>
    %53 = vector.shape_cast %52 : vector<1x28x112xf32> to vector<28x112xf32>
    %cst_30 = arith.constant dense<0.000000e+00> : vector<192x112xf32>
    %54 = tpu.matmul %51, %53, %cst_30 {dimension_numbers = #tpu.dot_dimension_numbers<[1], [0], [0], [1], [0, 0, 1, 1], [], []>} : vector<192x28xf32>, vector<28x112xf32>, vector<192x112xf32> -> vector<192x112xf32>
    %55 = arith.addf %49, %54 : vector<192x112xf32>
    %56 = vector.shape_cast %55 : vector<192x112xf32> to vector<3x8x8x112xf32>
    %c0_31 = arith.constant 0 : index
    %c0_32 = arith.constant 0 : index
    %c0_33 = arith.constant 0 : index
    %c0_34 = arith.constant 0 : index
    %57 = vector.load %arg3[%c0_31, %c0_32, %c0_33, %c0_34] : memref<3x8x8x112xf32, #tpu.memory_space<vmem>>, vector<3x8x8x112xf32>
    tpu.vector_store %arg3[%c0_31, %c0_32, %c0_33, %c0_34], %56 {strides = array<i32>} : memref<3x8x8x112xf32, #tpu.memory_space<vmem>>, vector<3x8x8x112xf32>,
    return
  }
  func.func @transform_0(%arg0: i32) -> (i32, i32, i32, i32) {
    %c0_i32 = arith.constant 0 : i32
    %c0_i32_0 = arith.constant 0 : i32
    %c0_i32_1 = arith.constant 0 : i32
    %c0_i32_2 = arith.constant 0 : i32
    return %arg0, %c0_i32, %c0_i32_0, %c0_i32_1 : i32, i32, i32, i32
  }
  func.func @transform_1(%arg0: i32) -> (i32, i32, i32) {
    %c0_i32 = arith.constant 0 : i32
    %c0_i32_0 = arith.constant 0 : i32
    %c0_i32_1 = arith.constant 0 : i32
    %c0_i32_2 = arith.constant 0 : i32
    return %c0_i32, %c0_i32_0, %c0_i32_1 : i32, i32, i32
  }
  func.func @transform_2(%arg0: i32) -> (i32, i32, i32, i32) {
    %c0_i32 = arith.constant 0 : i32
    %c0_i32_0 = arith.constant 0 : i32
    %c0_i32_1 = arith.constant 0 : i32
    %c0_i32_2 = arith.constant 0 : i32
    return %arg0, %c0_i32, %c0_i32_0, %c0_i32_1 : i32, i32, i32, i32
  }
}

module attributes {stable_mosaic.version = 11 : i64} {
  func.func @_conv3x3_taps_kernel(%arg0: i32, %arg1: memref<3x10x10x28xf32, #tpu.memory_space<vmem>>, %arg2: memref<9x28x16xf32, #tpu.memory_space<vmem>>, %arg3: memref<3x8x8x16xf32, #tpu.memory_space<vmem>>) attributes {dimension_semantics = [#tpu.dimension_semantics<parallel>], iteration_bounds = array<i64: 2>, scalar_prefetch = 0 : i64, scratch_operands = 0 : i64, tpu.core_type = #tpu.core_type<tc>, window_params = [{transform_indices = @transform_0, window_bounds = array<i64: 3, 10, 10, 28>}, {pipeline_mode = #tpu.pipeline_mode<synchronous>, transform_indices = @transform_1, window_bounds = array<i64: 9, 28, 16>}, {transform_indices = @transform_2, window_bounds = array<i64: 3, 8, 8, 16>}]} {
    %c0 = arith.constant 0 : index
    %c0_0 = arith.constant 0 : index
    %c0_1 = arith.constant 0 : index
    %c0_2 = arith.constant 0 : index
    %0 = vector.load %arg1[%c0, %c0_0, %c0_1, %c0_2] : memref<3x10x10x28xf32, #tpu.memory_space<vmem>>, vector<3x10x10x28xf32>
    %cst = arith.constant 0.000000e+00 : f32
    %1 = vector.broadcast %cst : f32 to vector<192x16xf32>
    %2 = vector.extract_strided_slice %0 {offsets = [0, 0, 0, 0], sizes = [3, 8, 8, 28], strides = [1, 1, 1, 1]} : vector<3x10x10x28xf32> to vector<3x8x8x28xf32>
    %3 = vector.shape_cast %2 : vector<3x8x8x28xf32> to vector<192x28xf32>
    %c0_3 = arith.constant 0 : index
    %c0_4 = arith.constant 0 : index
    %c0_5 = arith.constant 0 : index
    %4 = vector.load %arg2[%c0_3, %c0_4, %c0_5] : memref<9x28x16xf32, #tpu.memory_space<vmem>>, vector<1x28x16xf32>
    %5 = vector.shape_cast %4 : vector<1x28x16xf32> to vector<28x16xf32>
    %cst_6 = arith.constant dense<0.000000e+00> : vector<192x16xf32>
    %6 = tpu.matmul %3, %5, %cst_6 {dimension_numbers = #tpu.dot_dimension_numbers<[1], [0], [0], [1], [0, 0, 1, 1], [], []>} : vector<192x28xf32>, vector<28x16xf32>, vector<192x16xf32> -> vector<192x16xf32>
    %7 = arith.addf %1, %6 : vector<192x16xf32>
    %8 = vector.extract_strided_slice %0 {offsets = [0, 0, 1, 0], sizes = [3, 8, 8, 28], strides = [1, 1, 1, 1]} : vector<3x10x10x28xf32> to vector<3x8x8x28xf32>
    %9 = vector.shape_cast %8 : vector<3x8x8x28xf32> to vector<192x28xf32>
    %c1 = arith.constant 1 : index
    %c0_7 = arith.constant 0 : index
    %c0_8 = arith.constant 0 : index
    %10 = vector.load %arg2[%c1, %c0_7, %c0_8] : memref<9x28x16xf32, #tpu.memory_space<vmem>>, vector<1x28x16xf32>
    %11 = vector.shape_cast %10 : vector<1x28x16xf32> to vector<28x16xf32>
    %cst_9 = arith.constant dense<0.000000e+00> : vector<192x16xf32>
    %12 = tpu.matmul %9, %11, %cst_9 {dimension_numbers = #tpu.dot_dimension_numbers<[1], [0], [0], [1], [0, 0, 1, 1], [], []>} : vector<192x28xf32>, vector<28x16xf32>, vector<192x16xf32> -> vector<192x16xf32>
    %13 = arith.addf %7, %12 : vector<192x16xf32>
    %14 = vector.extract_strided_slice %0 {offsets = [0, 0, 2, 0], sizes = [3, 8, 8, 28], strides = [1, 1, 1, 1]} : vector<3x10x10x28xf32> to vector<3x8x8x28xf32>
    %15 = vector.shape_cast %14 : vector<3x8x8x28xf32> to vector<192x28xf32>
    %c2 = arith.constant 2 : index
    %c0_10 = arith.constant 0 : index
    %c0_11 = arith.constant 0 : index
    %16 = vector.load %arg2[%c2, %c0_10, %c0_11] : memref<9x28x16xf32, #tpu.memory_space<vmem>>, vector<1x28x16xf32>
    %17 = vector.shape_cast %16 : vector<1x28x16xf32> to vector<28x16xf32>
    %cst_12 = arith.constant dense<0.000000e+00> : vector<192x16xf32>
    %18 = tpu.matmul %15, %17, %cst_12 {dimension_numbers = #tpu.dot_dimension_numbers<[1], [0], [0], [1], [0, 0, 1, 1], [], []>} : vector<192x28xf32>, vector<28x16xf32>, vector<192x16xf32> -> vector<192x16xf32>
    %19 = arith.addf %13, %18 : vector<192x16xf32>
    %20 = vector.extract_strided_slice %0 {offsets = [0, 1, 0, 0], sizes = [3, 8, 8, 28], strides = [1, 1, 1, 1]} : vector<3x10x10x28xf32> to vector<3x8x8x28xf32>
    %21 = vector.shape_cast %20 : vector<3x8x8x28xf32> to vector<192x28xf32>
    %c3 = arith.constant 3 : index
    %c0_13 = arith.constant 0 : index
    %c0_14 = arith.constant 0 : index
    %22 = vector.load %arg2[%c3, %c0_13, %c0_14] : memref<9x28x16xf32, #tpu.memory_space<vmem>>, vector<1x28x16xf32>
    %23 = vector.shape_cast %22 : vector<1x28x16xf32> to vector<28x16xf32>
    %cst_15 = arith.constant dense<0.000000e+00> : vector<192x16xf32>
    %24 = tpu.matmul %21, %23, %cst_15 {dimension_numbers = #tpu.dot_dimension_numbers<[1], [0], [0], [1], [0, 0, 1, 1], [], []>} : vector<192x28xf32>, vector<28x16xf32>, vector<192x16xf32> -> vector<192x16xf32>
    %25 = arith.addf %19, %24 : vector<192x16xf32>
    %26 = vector.extract_strided_slice %0 {offsets = [0, 1, 1, 0], sizes = [3, 8, 8, 28], strides = [1, 1, 1, 1]} : vector<3x10x10x28xf32> to vector<3x8x8x28xf32>
    %27 = vector.shape_cast %26 : vector<3x8x8x28xf32> to vector<192x28xf32>
    %c4 = arith.constant 4 : index
    %c0_16 = arith.constant 0 : index
    %c0_17 = arith.constant 0 : index
    %28 = vector.load %arg2[%c4, %c0_16, %c0_17] : memref<9x28x16xf32, #tpu.memory_space<vmem>>, vector<1x28x16xf32>
    %29 = vector.shape_cast %28 : vector<1x28x16xf32> to vector<28x16xf32>
    %cst_18 = arith.constant dense<0.000000e+00> : vector<192x16xf32>
    %30 = tpu.matmul %27, %29, %cst_18 {dimension_numbers = #tpu.dot_dimension_numbers<[1], [0], [0], [1], [0, 0, 1, 1], [], []>} : vector<192x28xf32>, vector<28x16xf32>, vector<192x16xf32> -> vector<192x16xf32>
    %31 = arith.addf %25, %30 : vector<192x16xf32>
    %32 = vector.extract_strided_slice %0 {offsets = [0, 1, 2, 0], sizes = [3, 8, 8, 28], strides = [1, 1, 1, 1]} : vector<3x10x10x28xf32> to vector<3x8x8x28xf32>
    %33 = vector.shape_cast %32 : vector<3x8x8x28xf32> to vector<192x28xf32>
    %c5 = arith.constant 5 : index
    %c0_19 = arith.constant 0 : index
    %c0_20 = arith.constant 0 : index
    %34 = vector.load %arg2[%c5, %c0_19, %c0_20] : memref<9x28x16xf32, #tpu.memory_space<vmem>>, vector<1x28x16xf32>
    %35 = vector.shape_cast %34 : vector<1x28x16xf32> to vector<28x16xf32>
    %cst_21 = arith.constant dense<0.000000e+00> : vector<192x16xf32>
    %36 = tpu.matmul %33, %35, %cst_21 {dimension_numbers = #tpu.dot_dimension_numbers<[1], [0], [0], [1], [0, 0, 1, 1], [], []>} : vector<192x28xf32>, vector<28x16xf32>, vector<192x16xf32> -> vector<192x16xf32>
    %37 = arith.addf %31, %36 : vector<192x16xf32>
    %38 = vector.extract_strided_slice %0 {offsets = [0, 2, 0, 0], sizes = [3, 8, 8, 28], strides = [1, 1, 1, 1]} : vector<3x10x10x28xf32> to vector<3x8x8x28xf32>
    %39 = vector.shape_cast %38 : vector<3x8x8x28xf32> to vector<192x28xf32>
    %c6 = arith.constant 6 : index
    %c0_22 = arith.constant 0 : index
    %c0_23 = arith.constant 0 : index
    %40 = vector.load %arg2[%c6, %c0_22, %c0_23] : memref<9x28x16xf32, #tpu.memory_space<vmem>>, vector<1x28x16xf32>
    %41 = vector.shape_cast %40 : vector<1x28x16xf32> to vector<28x16xf32>
    %cst_24 = arith.constant dense<0.000000e+00> : vector<192x16xf32>
    %42 = tpu.matmul %39, %41, %cst_24 {dimension_numbers = #tpu.dot_dimension_numbers<[1], [0], [0], [1], [0, 0, 1, 1], [], []>} : vector<192x28xf32>, vector<28x16xf32>, vector<192x16xf32> -> vector<192x16xf32>
    %43 = arith.addf %37, %42 : vector<192x16xf32>
    %44 = vector.extract_strided_slice %0 {offsets = [0, 2, 1, 0], sizes = [3, 8, 8, 28], strides = [1, 1, 1, 1]} : vector<3x10x10x28xf32> to vector<3x8x8x28xf32>
    %45 = vector.shape_cast %44 : vector<3x8x8x28xf32> to vector<192x28xf32>
    %c7 = arith.constant 7 : index
    %c0_25 = arith.constant 0 : index
    %c0_26 = arith.constant 0 : index
    %46 = vector.load %arg2[%c7, %c0_25, %c0_26] : memref<9x28x16xf32, #tpu.memory_space<vmem>>, vector<1x28x16xf32>
    %47 = vector.shape_cast %46 : vector<1x28x16xf32> to vector<28x16xf32>
    %cst_27 = arith.constant dense<0.000000e+00> : vector<192x16xf32>
    %48 = tpu.matmul %45, %47, %cst_27 {dimension_numbers = #tpu.dot_dimension_numbers<[1], [0], [0], [1], [0, 0, 1, 1], [], []>} : vector<192x28xf32>, vector<28x16xf32>, vector<192x16xf32> -> vector<192x16xf32>
    %49 = arith.addf %43, %48 : vector<192x16xf32>
    %50 = vector.extract_strided_slice %0 {offsets = [0, 2, 2, 0], sizes = [3, 8, 8, 28], strides = [1, 1, 1, 1]} : vector<3x10x10x28xf32> to vector<3x8x8x28xf32>
    %51 = vector.shape_cast %50 : vector<3x8x8x28xf32> to vector<192x28xf32>
    %c8 = arith.constant 8 : index
    %c0_28 = arith.constant 0 : index
    %c0_29 = arith.constant 0 : index
    %52 = vector.load %arg2[%c8, %c0_28, %c0_29] : memref<9x28x16xf32, #tpu.memory_space<vmem>>, vector<1x28x16xf32>
    %53 = vector.shape_cast %52 : vector<1x28x16xf32> to vector<28x16xf32>
    %cst_30 = arith.constant dense<0.000000e+00> : vector<192x16xf32>
    %54 = tpu.matmul %51, %53, %cst_30 {dimension_numbers = #tpu.dot_dimension_numbers<[1], [0], [0], [1], [0, 0, 1, 1], [], []>} : vector<192x28xf32>, vector<28x16xf32>, vector<192x16xf32> -> vector<192x16xf32>
    %55 = arith.addf %49, %54 : vector<192x16xf32>
    %cst_31 = arith.constant 0.000000e+00 : f32
    %56 = vector.broadcast %cst_31 : f32 to vector<192x16xf32>
    %57 = arith.maximumf %55, %56 : vector<192x16xf32>
    %58 = vector.shape_cast %57 : vector<192x16xf32> to vector<3x8x8x16xf32>
    %c0_32 = arith.constant 0 : index
    %c0_33 = arith.constant 0 : index
    %c0_34 = arith.constant 0 : index
    %c0_35 = arith.constant 0 : index
    %59 = vector.load %arg3[%c0_32, %c0_33, %c0_34, %c0_35] : memref<3x8x8x16xf32, #tpu.memory_space<vmem>>, vector<3x8x8x16xf32>
    tpu.vector_store %arg3[%c0_32, %c0_33, %c0_34, %c0_35], %58 {strides = array<i32>} : memref<3x8x8x16xf32, #tpu.memory_space<vmem>>, vector<3x8x8x16xf32>,
    return
  }
  func.func @transform_0(%arg0: i32) -> (i32, i32, i32, i32) {
    %c0_i32 = arith.constant 0 : i32
    %c0_i32_0 = arith.constant 0 : i32
    %c0_i32_1 = arith.constant 0 : i32
    %c0_i32_2 = arith.constant 0 : i32
    return %arg0, %c0_i32, %c0_i32_0, %c0_i32_1 : i32, i32, i32, i32
  }
  func.func @transform_1(%arg0: i32) -> (i32, i32, i32) {
    %c0_i32 = arith.constant 0 : i32
    %c0_i32_0 = arith.constant 0 : i32
    %c0_i32_1 = arith.constant 0 : i32
    %c0_i32_2 = arith.constant 0 : i32
    return %c0_i32, %c0_i32_0, %c0_i32_1 : i32, i32, i32
  }
  func.func @transform_2(%arg0: i32) -> (i32, i32, i32, i32) {
    %c0_i32 = arith.constant 0 : i32
    %c0_i32_0 = arith.constant 0 : i32
    %c0_i32_1 = arith.constant 0 : i32
    %c0_i32_2 = arith.constant 0 : i32
    return %arg0, %c0_i32, %c0_i32_0, %c0_i32_1 : i32, i32, i32, i32
  }
}

</mosaic_0001>

<bundles_post_ra>
// kernel: encoder_forward.5
= control target key start
LH: loop header
LB: loop body
LE: loop exit
PB: predicated region body
PF: predicated region fallthrough
CT: control target
= control target key end

     0   :  { %s3440_s9 = smov 0   ;;  %s4742_s0 = inlined_call_operand.vmem [shape: f32[6,10,10,7], index: 0, kind: input, shape index: {}]   ;;  %s4743_s1 = inlined_call_operand.vmem [shape: f32[9,7,112], index: 1, kind: input, shape index: {}]   ;;  %s4744_s2 = inlined_call_operand.vmem [shape: f32[6,8,8,112], index: 2, kind: output, shape index: {}]  }
   0x1 LB: > { %s2595_s10 = sadd.s32 4294967295, %s3423_s9   ;;  %p2599_p0 = scmp.ge.s32.totalorder %s3423_s9, 1  ;;  %s3423_s9 = sphi %s3440_s9, %s12_s9  }
   0x2   : > { %p114_p1 = scmp.lt.s32.totalorder %s3423_s9, 3 }
   0x4   : > { %p115_p2 = pnand %p2599_p0, %p114_p1 }
   0x6   : > { %118 = sbr.rel (%p115_p2) target bundleno = 438 (0x1b6), region = 28 }
   0xb   : > { %vm261_vm0 = vcmask 1046528   ;;  %v2603_v0 = vld [vmem:[%s4743_s1 + $0x8] sm:$0x7f]  ;;  %s138_s13 = smul.u32 3, %s2595_s10  ;;  %v212_v1 = vld [vmem:[%s4743_s1] sm:$0x7f] }
   0xc   : > { %3406 = vmatprep.subr.msk.mxu1 %vm261_vm0, %v2603_v0  ;;  %3064 = vmatprep.subr.msk.mxu0 %vm261_vm0, %v2603_v0  ;;  %v2654_v2 = vld [vmem:[%s4743_s1 + $0x10] sm:$0x7f]  ;;  %vm336_vm1 = vcmask 56320   ;;  %v3523_v27 = vld [vmem:[%s4743_s1 + $0x18] sm:$0x7f]  ;;  %vm809_vm2 = vcmask 1045504  }
   0xd   : > { %3407 = vmatpush3.msk.msra.mxu1 %vm261_vm0, %v2603_v0  ;;  %3065 = vmatpush3.msk.msra.mxu0 %vm261_vm0, %v2603_v0  ;;  %p139_p3 = scmp.lt.s32.totalorder %s138_s13, 5  ;;  %v3544_v34 = vld [vmem:[%s4743_s1 + $0x20] sm:$0x7f]  ;;  %vm2512_vm3 = vcmask 916480  }
   0xe   : > { %3102 = vmatprep.subr.msk.mxu1 %vm261_vm0, %v212_v1  ;;  %3140 = vmatprep.subr.msk.mxu0 %vm261_vm0, %v2654_v2 }
   0xf   : > { %s4851_s13 = smov (!%p139_p3, %s138_s13), 5 }
  0x10   : > { %s3408_s18 = smul.u32 160, %s4851_s13  ;;  %s2838_s6 = sshll.u32 %s4851_s13, 6 }
  0x11   : > { %s4631_s10 = scalar_lea.vmem %s4744_s2, %s2838_s6 }
  0x12   : > { %s3469_s21 = scalar_lea.vmem %s4742_s0, %s3408_s18 }
  0x13   : > { %v3472_v3 = vld [vmem:[%s3469_s21] sm:$0xff]  ;;  %v3475_v4 = vld [vmem:[%s3469_s21 + $0x8] sm:$0x3]  ;;  %v3489_v12 = vld [vmem:[%s3469_s21 + $0x10] sm:$0xff] }
  0x14   : > { %v3478_v5 = vld [vmem:[%s3469_s21 + $0xe0] sm:$0xff]  ;;  %v262_v6 = vrot.slane %v3472_v3, 1  ;;  %v263_v7 = vrot.slane %v3475_v4, 1  ;;  %v3483_v8 = vld [vmem:[%s3469_s21 + $0xe8] sm:$0x3]  ;;  %v3495_v14 = vld [vmem:[%s3469_s21 + $0xf0] sm:$0xff] }
  0x15   : > { %v298_v9 = vrot.slane %v3478_v5, 1  ;;  %v299_v11 = vrot.slane %v3483_v8, 1  ;;  %v3492_v13 = vld [vmem:[%s3469_s21 + $0x18] sm:$0x3]  ;;  %v265_v16 = vrot.slane %v3489_v12, 1  ;;  %v3504_v19 = vld [vmem:[%s3469_s21 + $0x20] sm:$0xff] }
  0x16   : > { %v264_v15 = vsel %vm261_vm0, %v262_v6, %v263_v7  ;;  %v266_v17 = vrot.slane %v3492_v13, 1  ;;  %v3501_v18 = vld [vmem:[%s3469_s21 + $0xf8] sm:$0x3]  ;;  %v301_v22 = vrot.slane %v3495_v14, 1  ;;  %v3514_v24 = vld [vmem:[%s3469_s21 + $0x28] sm:$0x3] }
  0x17   : > { %3066 = vmatprep.mubr.msk.f32.mxu0 %vm336_vm1, %v264_v15  ;;  %v3509_v21 = vsel %vm261_vm0, %v298_v9, %v299_v11  ;;  %v302_v23 = vrot.slane %v3501_v18, 1  ;;  %v268_v25 = vrot.slane %v3504_v19, 1  ;;  %v3518_v26 = vld [vmem:[%s3469_s21 + $0x100] sm:$0xff]  ;;  %v269_v29 = vrot.slane %v3514_v24, 1  ;;  %v3532_v30 = vld [vmem:[%s3469_s21 + $0x108] sm:$0x3] }
  0x18   : > { %4775 = vst [vmem:[#allocation2_spill] sm:$0xff] %v3509_v21  ;;  %3084 = vmatprep.mubr.msk.f32.mxu1 %vm336_vm1, %v3509_v21  ;;  %v3528_v28 = vsel %vm261_vm0, %v265_v16, %v266_v17  ;;  %v304_v31 = vrot.slane %v3518_v26, 1  ;;  %v3536_v32 = vld [vmem:[%s3469_s21 + $0x30] sm:$0xff]  ;;  %v305_v36 = vrot.slane %v3532_v30, 1  ;;  %v3553_v37 = vld [vmem:[%s3469_s21 + $0x38] sm:$0x3] }
  0x19   : > { %v3539_v33 = vld [vmem:[%s3469_s21 + $0x110] sm:$0xff]  ;;  %3067 = vmatmul.mubr.msk.f32.vlgmr.msra.gmra.mxu0 %vm336_vm1, %v3528_v28  ;;  %v3549_v35 = vsel %vm261_vm0, %v301_v22, %v302_v23  ;;  %v271_v38 = vrot.slane %v3536_v32, 1  ;;  %v3557_v39 = vld [vmem:[%s3469_s21 + $0x118] sm:$0x3]  ;;  %v3563_v40 = vsel %vm261_vm0, %v268_v25, %v269_v29  ;;  %v272_v41 = vrot.slane %v3553_v37, 1  ;;  %v3569_v44 = vld [vmem:[%s3469_s21 + $0x40] sm:$0xff] }
  0x1a   : > { %4776 = vst [vmem:[#allocation3_spill] sm:$0xff] %v3549_v35  ;;  %3085 = vmatmul.mubr.msk.f32.vlgmr.msra.gmra.mxu1 %vm336_vm1, %v3549_v35  ;;  %3141 = vmatpush3.msk.msra.mxu0 %vm261_vm0, %v2654_v2  ;;  %4777 = vst [vmem:[#allocation4_spill] sm:$0xff] %v3563_v40  ;;  %v307_v42 = vrot.slane %v3539_v33, 1  ;;  %v308_v43 = vrot.slane %v3557_v39, 1  ;;  %v3572_v45 = vld [vmem:[%s3469_s21 + $0x48] sm:$0x3]  ;;  %v3578_v46 = vsel %vm261_vm0, %v304_v31, %v305_v36 }
  0x1b   : > { %3103 = vmatpush3.msk.msra.mxu1 %vm261_vm0, %v212_v1  ;;  %3069 = vmatprep.mubr.msk.f32.mxu0 %vm336_vm1, %v3563_v40  ;;  %4778 = vst [vmem:[#allocation5_spill] sm:$0xff] %v3578_v46  ;;  %v274_v47 = vrot.slane %v3569_v44, 1  ;;  %v275_v48 = vrot.slane %v3572_v45, 1  ;;  %v3583_v49 = vld [vmem:[%s3469_s21 + $0x140] sm:$0xff]  ;;  %v3586_v50 = vld [vmem:[%s3469_s21 + $0x148] sm:$0x3]  ;;  %v3594_v52 = vsel %vm261_vm0, %v271_v38, %v272_v41 }
  0x1c   : > { %v3589_v51 = vld [vmem:[%s3469_s21 + $0x50] sm:$0xff]  ;;  %3087 = vmatprep.mubr.msk.f32.mxu1 %vm336_vm1, %v3578_v46  ;;  %4779 = vst [vmem:[#allocation6_spill] sm:$0xff] %v3594_v52  ;;  %v3597_v53 = vsel %vm261_vm0, %v307_v42, %v308_v43  ;;  %v310_v54 = vrot.slane %v3583_v49, 1  ;;  %v311_v55 = vrot.slane %v3586_v50, 1  ;;  %v3602_v56 = vld [vmem:[%s3469_s21 + $0x58] sm:$0x3]  ;;  %3178 = vmatprep.subr.msk.mxu1 %vm261_vm0, %v3523_v27 }
  0x1d   : > { %4780 = vst [vmem:[#allocation7_spill] sm:$0xff] %v3597_v53  ;;  %v3605_v57 = vld [vmem:[%s3469_s21 + $0x150] sm:$0xff]  ;;  %v3608_v58 = vld [vmem:[%s3469_s21 + $0x60] sm:$0xff]  ;;  %3070 = vmatmul.mubr.msk.f32.gmra.mxu0 %vm336_vm1, %v3594_v52  ;;  %v3615_v59 = vsel %vm261_vm0, %v274_v47, %v275_v48  ;;  %v277_v60 = vrot.slane %v3589_v51, 1  ;;  %v278_v61 = vrot.slane %v3602_v56, 1  ;;  %3216 = vmatprep.subr.msk.mxu0 %vm261_vm0, %v3544_v34 }
  0x1e   : > { %4781 = vst [vmem:[#allocation8_spill] sm:$0xff] %v3615_v59  ;;  %v3620_v62 = vld [vmem:[%s3469_s21 + $0x158] sm:$0x3]  ;;  %v313_v63 = vrot.slane %v3605_v57, 1  ;;  %v3624_v0 = vld [vmem:[%s3469_s21 + $0x160] sm:$0xff]  ;;  %3088 = vmatmul.mubr.msk.f32.gmra.mxu1 %vm336_vm1, %v3597_v53  ;;  %3072 = vmatprep.mubr.msk.f32.mxu0 %vm336_vm1, %v3615_v59  ;;  %v312_v1 = vsel %vm261_vm0, %v310_v54, %v311_v55  ;;  %v280_v7 = vrot.slane %v3608_v58, 1 }
  0x1f   : > { %v314_v2 = vrot.slane %v3620_v62, 1  ;;  %v3635_v6 = vld [vmem:[%s3469_s21 + $0x68] sm:$0x3]  ;;  %3090 = vmatprep.mubr.msk.f32.mxu1 %vm336_vm1, %v312_v1  ;;  %v3643_v11 = vsel %vm261_vm0, %v277_v60, %v278_v61  ;;  %v316_v16 = vrot.slane %v3624_v0, 1  ;;  %v3649_v22 = vld [vmem:[%s3469_s21 + $0x70] sm:$0xff]  ;;  %v3666_v41 = vld [vmem:[%s3469_s21 + $0xa0] sm:$0xff] }
  0x20   : > { %v3639_v9 = vld [vmem:[%s3469_s21 + $0x168] sm:$0x3]  ;;  %4782 = vst [vmem:[#allocation9_spill] sm:$0xff] %v3643_v11  ;;  %v281_v15 = vrot.slane %v3635_v6, 1  ;;  %v3652_v23 = vld [vmem:[%s3469_s21 + $0x78] sm:$0x3] }
  0x21   : > { %v317_v17 = vrot.slane %v3639_v9, 1  ;;  %v3655_v25 = vsel %vm261_vm0, %v313_v63, %v314_v2  ;;  %v283_v29 = vrot.slane %v3649_v22, 1  ;;  %v284_v31 = vrot.slane %v3652_v23, 1  ;;  %v3660_v36 = vld [vmem:[%s3469_s21 + $0x170] sm:$0xff]  ;;  %v3663_v38 = vld [vmem:[%s3469_s21 + $0x178] sm:$0x3]  ;;  %3073 = vmatmul.mubr.msk.f32.gmra.mxu0 %vm336_vm1, %v3643_v11 }
  0x22   : > { %4783 = vst [vmem:[#allocation10_spill] sm:$0xff] %v3655_v25  ;;  %v3671_v42 = vsel %vm261_vm0, %v280_v7, %v281_v15  ;;  %v319_v47 = vrot.slane %v3660_v36, 1  ;;  %v320_v48 = vrot.slane %v3663_v38, 1  ;;  %v3679_v54 = vld [vmem:[%s3469_s21 + $0xa8] sm:$0x3]  ;;  %v3682_v55 = vld [vmem:[%s3469_s21 + $0x180] sm:$0xff]  ;;  %3091 = vmatmul.mubr.msk.f32.gmra.mxu1 %vm336_vm1, %v3655_v25 }
  0x23   : > { %4784 = vst [vmem:[#allocation11_spill] sm:$0xff] %v3671_v42  ;;  %v3674_v43 = vsel %vm261_vm0, %v316_v16, %v317_v17  ;;  %v3685_v60 = vld [vmem:[%s3469_s21 + $0xb0] sm:$0xff]  ;;  %3075 = vmatprep.mubr.msk.f32.mxu0 %vm336_vm1, %v3671_v42  ;;  %v3692_v61 = vsel %vm261_vm0, %v283_v29, %v284_v31  ;;  %v286_v63 = vrot.slane %v3666_v41, 1  ;;  %v287_v1 = vrot.slane %v3679_v54, 1  ;;  %v3697_v2 = vld [vmem:[%s3469_s21 + $0x188] sm:$0x3] }
  0x24   : > { %4785 = vst [vmem:[#allocation12_spill] sm:$0xff] %v3674_v43  ;;  %4786 = vst [vmem:[#allocation13_spill] sm:$0xff] %v3692_v61  ;;  %v322_v7 = vrot.slane %v3682_v55, 1  ;;  %v3701_v15 = vld [vmem:[%s3469_s21 + $0x190] sm:$0xff]  ;;  %3093 = vmatprep.mubr.msk.f32.mxu1 %vm336_vm1, %v3674_v43  ;;  %v3706_v16 = vsel %vm261_vm0, %v319_v47, %v320_v48  ;;  %v323_v17 = vrot.slane %v3697_v2, 1  ;;  %v289_v31 = vrot.slane %v3685_v60, 1 }
  0x25   : > { %4787 = vst [vmem:[#allocation14_spill] sm:$0xff] %v3706_v16  ;;  %v3710_v29 = vld [vmem:[%s3469_s21 + $0xb8] sm:$0x3]  ;;  %v288_v10 = vsel %vm261_vm0, %v286_v63, %v287_v1  ;;  %v325_v43 = vrot.slane %v3701_v15, 1  ;;  %v3721_v47 = vld [vmem:[%s3469_s21 + $0xc0] sm:$0xff]  ;;  %3076 = vmatmul.mubr.msk.f32.gmra.mxu0 %vm336_vm1, %v3692_v61  ;;  %v3740_v42 = vld [vmem:[%s3469_s21 + $0xd0] sm:$0xff] }
  0x26   : > { %v3714_v20 = vld [vmem:[%s3469_s21 + $0x198] sm:$0x3]  ;;  %v290_v25 = vrot.slane %v3710_v29, 1  ;;  %v3724_v48 = vld [vmem:[%s3469_s21 + $0xc8] sm:$0x3]  ;;  %v3729_v46 = vsel %vm261_vm0, %v322_v7, %v323_v17  ;;  %v292_v63 = vrot.slane %v3721_v47, 1  ;;  %3094 = vmatmul.mubr.msk.f32.gmra.mxu1 %vm336_vm1, %v3706_v16  ;;  %3078 = vmatprep.mubr.msk.f32.mxu0 %vm336_vm1, %v288_v10 }
  0x27   : > { %v326_v53 = vrot.slane %v3714_v20, 1  ;;  %4788 = vst [vmem:[#allocation15_spill] sm:$0xff] %v3729_v46  ;;  %v293_v1 = vrot.slane %v3724_v48, 1  ;;  %v3734_v35 = vld [vmem:[%s3469_s21 + $0x1a0] sm:$0xff]  ;;  %v3737_v21 = vld [vmem:[%s3469_s21 + $0x1a8] sm:$0x3]  ;;  %3096 = vmatprep.mubr.msk.f32.mxu1 %vm336_vm1, %v3729_v46 }
  0x28   : > { %v3746_v61 = vsel %vm261_vm0, %v289_v31, %v290_v25  ;;  %v328_v17 = vrot.slane %v3734_v35, 1  ;;  %v329_v11 = vrot.slane %v3737_v21, 1  ;;  %v3754_v59 = vld [vmem:[%s3469_s21 + $0xd8] sm:$0x3]  ;;  %v3757_v52 = vld [vmem:[%s3469_s21 + $0x1b0] sm:$0xff]  ;;  %v295_v10 = vrot.slane %v3740_v42, 1 }
  0x29   : > { %v3749_v7 = vsel %vm261_vm0, %v325_v43, %v326_v53  ;;  %v3762_v16 = vsel %vm261_vm0, %v292_v63, %v293_v1  ;;  %v296_v25 = vrot.slane %v3754_v59, 1  ;;  %v3767_v53 = vld [vmem:[%s3469_s21 + $0x1b8] sm:$0x3]  ;;  %v331_v43 = vrot.slane %v3757_v52, 1  ;;  %3079 = vmatmul.mubr.msk.f32.gmra.mxu0 %vm336_vm1, %v3746_v61 }
  0x2a   : > { %4789 = vst [vmem:[#allocation16_spill] sm:$0xff] %v3749_v7  ;;  %v3771_v31 = vsel %vm261_vm0, %v328_v17, %v329_v11  ;;  %v332_v40 = vrot.slane %v3767_v53, 1  ;;  %v814_v63 = vrot.slane %v3492_v13, 2  ;;  %3097 = vmatmul.mubr.msk.f32.gmra.mxu1 %vm336_vm1, %v3749_v7  ;;  %3081 = vmatprep.mubr.msk.f32.mxu0 %vm336_vm1, %v3762_v16  ;;  %v813_v11 = vrot.slane %v3489_v12, 2 }
  0x2b   : > { %v3782_v1 = vsel %vm261_vm0, %v295_v10, %v296_v25  ;;  %3099 = vmatprep.mubr.msk.f32.mxu1 %vm336_vm1, %v3771_v31  ;;  %v4790_v46 = vrot.slane %v3475_v4, 2  ;;  %v4791_v13 = vrot.slane %v3472_v3, 2  ;;  %v816_v10 = vrot.slane %v3504_v19, 2 }
  0x2c   : > { %v3788_v17 = vsel %vm261_vm0, %v331_v43, %v332_v40  ;;  %v817_v25 = vrot.slane %v3514_v24, 2  ;;  %v3803_v40 = vsel %vm809_vm2, %v813_v11, %v814_v63  ;;  %v819_v4 = vrot.slane %v3536_v32, 2  ;;  %v3833_v63 = vld [vmem:[%s4743_s1 + $0x30] sm:$0x7f] }
  0x2d   : > { %v812_v7 = vsel %vm809_vm2, %v4791_v13, %v4790_v46  ;;  %3082 = vmatmul.mubr.msk.f32.gmra.mxu0 %vm336_vm1, %v3782_v1  ;;  %v820_v43 = vrot.slane %v3553_v37, 2  ;;  %v822_v46 = vrot.slane %v3569_v44, 2  ;;  %v823_v13 = vrot.slane %v3572_v45, 2 }
  0x2e   : > { %3100 = vmatmul.mubr.msk.f32.gmra.mxu1 %vm336_vm1, %v3788_v17  ;;  %3142 = vmatprep.mubr.msk.f32.mxu0 %vm336_vm1, %v812_v7  ;;  %v3814_v24 = vsel %vm809_vm2, %v816_v10, %v817_v25  ;;  %v3819_v7 = vld [vmem:[%s4743_s1 + $0x28] sm:$0x7f]  ;;  %v825_v37 = vrot.slane %v3589_v51, 2  ;;  %v826_v45 = vrot.slane %v3602_v56, 2  ;;  %v828_v11 = vrot.slane %v3608_v58, 2 }
  0x2f   : > { %3104 = vmatprep.mubr.msk.f32.mxu1 %vm336_vm1, %v3472_v3  ;;  %v3826_v3 = vsel %vm809_vm2, %v819_v4, %v820_v43  ;;  %v829_v10 = vrot.slane %v3635_v6, 2  ;;  %v831_v56 = vrot.slane %v3649_v22, 2  ;;  %v832_v6 = vrot.slane %v3652_v23, 2 }
  0x30   : > { %v834_v4 = vrot.slane %v3666_v41, 2  ;;  %v835_v43 = vrot.slane %v3679_v54, 2 }
  0x31   : > { %3143 = vmatmul.mubr.msk.f32.vlgmr.msra.gmra.mxu0 %vm336_vm1, %v3803_v40  ;;  %v3864_v25 = vsel %vm809_vm2, %v828_v11, %v829_v10  ;;  %v3875_v23 = vsel %vm809_vm2, %v831_v56, %v832_v6  ;;  %v844_v10 = vrot.slane %v3754_v59, 2  ;;  %v846_v56 = vrot.slane %v3478_v5, 2 }
  0x32   : > { %3105 = vmatmul.mubr.msk.f32.vlgmr.msra.gmra.mxu1 %vm336_vm1, %v3489_v12  ;;  %3217 = vmatpush3.msk.msra.mxu0 %vm261_vm0, %v3544_v34  ;;  %v3840_v34 = vsel %vm809_vm2, %v822_v46, %v823_v13  ;;  %v837_v46 = vrot.slane %v3685_v60, 2  ;;  %v838_v13 = vrot.slane %v3710_v29, 2  ;;  %v836_v54 = vsel %vm809_vm2, %v834_v4, %v835_v43 }
  0x33   : > { %3179 = vmatpush3.msk.msra.mxu1 %vm261_vm0, %v3523_v27  ;;  %3107 = vmatprep.mubr.msk.f32.mxu1 %vm336_vm1, %v3504_v19  ;;  %v3857_v27 = vsel %vm809_vm2, %v825_v37, %v826_v45  ;;  %v840_v37 = vrot.slane %v3721_v47, 2  ;;  %v841_v45 = vrot.slane %v3724_v48, 2  ;;  %v843_v29 = vrot.slane %v3740_v42, 2 }
  0x34   : > { %3145 = vmatprep.mubr.msk.f32.mxu0 %vm336_vm1, %v3814_v24  ;;  %3254 = vmatprep.subr.msk.mxu1 %vm261_vm0, %v3819_v7  ;;  %v3890_v11 = vsel %vm809_vm2, %v837_v46, %v838_v13  ;;  %v847_v6 = vrot.slane %v3483_v8, 2  ;;  %v850_v4 = vrot.slane %v3501_v18, 2  ;;  %v852_v43 = vrot.slane %v3518_v26, 2 }
  0x35   : > { %3146 = vmatmul.mubr.msk.f32.gmra.mxu0 %vm336_vm1, %v3826_v3  ;;  %3292 = vmatprep.subr.msk.mxu0 %vm261_vm0, %v3833_v63  ;;  %v3897_v48 = vsel %vm809_vm2, %v840_v37, %v841_v45  ;;  %v3908_v59 = vsel %vm809_vm2, %v843_v29, %v844_v10  ;;  %v853_v46 = vrot.slane %v3532_v30, 2  ;;  %v855_v13 = vrot.slane %v3539_v33, 2 }
  0x36   : > { %3108 = vmatmul.mubr.msk.f32.gmra.mxu1 %vm336_vm1, %v3536_v32  ;;  %3148 = vmatprep.mubr.msk.f32.mxu0 %vm336_vm1, %v3840_v34  ;;  %v3915_v8 = vsel %vm809_vm2, %v846_v56, %v847_v6  ;;  %v858_v37 = vrot.slane %v3583_v49, 2  ;;  %v859_v45 = vrot.slane %v3586_v50, 2  ;;  %v861_v29 = vrot.slane %v3605_v57, 2 }
  0x37   : > { %3110 = vmatprep.mubr.msk.f32.mxu1 %vm336_vm1, %v3569_v44  ;;  %v3933_v30 = vsel %vm809_vm2, %v852_v43, %v853_v46  ;;  %v862_v10 = vrot.slane %v3620_v62, 2  ;;  %v864_v56 = vrot.slane %v3624_v0, 2  ;;  %v865_v6 = vrot.slane %v3639_v9, 2 }
  0x38   : > { %v860_v50 = vsel %vm809_vm2, %v858_v37, %v859_v45  ;;  %v867_v62 = vrot.slane %v3660_v36, 2  ;;  %v870_v43 = vrot.slane %v3682_v55, 2  ;;  %v871_v46 = vrot.slane %v3697_v2, 2 }
  0x39   : > { %3149 = vmatmul.mubr.msk.f32.gmra.mxu0 %vm336_vm1, %v3857_v27  ;;  %v3966_v9 = vsel %vm809_vm2, %v864_v56, %v865_v6  ;;  %v877_v37 = vrot.slane %v3737_v21, 2  ;;  %v879_v45 = vrot.slane %v3757_v52, 2  ;;  %v4047_v56 = vld [vmem:[%s3469_s21 + $0x88] sm:$0x3]  ;;  %v4793_v6 = vld [vmem:[#allocation6_spill] sm:$0xff] }
  0x3a   : > { %3111 = vmatmul.mubr.msk.f32.gmra.mxu1 %vm336_vm1, %v3589_v51  ;;  %3151 = vmatprep.mubr.msk.f32.mxu0 %vm336_vm1, %v3864_v25  ;;  %v3984_v2 = vsel %vm809_vm2, %v870_v43, %v871_v46  ;;  %v4796_v43 = vld [vmem:[#allocation11_spill] sm:$0xff]  ;;  %v4797_v46 = vld [vmem:[#allocation13_spill] sm:$0xff] }
  0x3b   : > { %3113 = vmatprep.mubr.msk.f32.mxu1 %vm336_vm1, %v3608_v58 }
  0x3d   : > { %3152 = vmatmul.mubr.msk.f32.gmra.mxu0 %vm336_vm1, %v3875_v23 }
  0x3e   : > { %3114 = vmatmul.mubr.msk.f32.gmra.mxu1 %vm336_vm1, %v3649_v22  ;;  %3154 = vmatprep.mubr.msk.f32.mxu0 %vm336_vm1, %v836_v54  ;;  %v856_v54 = vrot.slane %v3557_v39, 2 }
  0x3f   : > { %3116 = vmatprep.mubr.msk.f32.mxu1 %vm336_vm1, %v3666_v41  ;;  %v849_v41 = vrot.slane %v3495_v14, 2 }
  0x40   : > { %v3944_v39 = vsel %vm809_vm2, %v855_v13, %v856_v54  ;;  %v874_v13 = vrot.slane %v3714_v20, 2  ;;  %v876_v54 = vrot.slane %v3734_v35, 2 }
  0x41   : > { %3155 = vmatmul.mubr.msk.f32.gmra.mxu0 %vm336_vm1, %v3890_v11  ;;  %v3926_v18 = vsel %vm809_vm2, %v849_v41, %v850_v4  ;;  %v3959_v41 = vsel %vm809_vm2, %v861_v29, %v862_v10  ;;  %v868_v4 = vrot.slane %v3663_v38, 2  ;;  %v880_v29 = vrot.slane %v3767_v53, 2  ;;  %v4792_v53 = vld [vmem:[#allocation4_spill] sm:$0xff] }
  0x42   : > { %3117 = vmatmul.mubr.msk.f32.gmra.mxu1 %vm336_vm1, %v3685_v60  ;;  %3157 = vmatprep.mubr.msk.f32.mxu0 %vm336_vm1, %v3897_v48  ;;  %v4002_v21 = vsel %vm809_vm2, %v876_v54, %v877_v37  ;;  %v4096_v54 = vld [vmem:[%s3469_s21 + $0x128] sm:$0x3] }
  0x43   : > { %3119 = vmatprep.mubr.msk.f32.mxu1 %vm336_vm1, %v3721_v47  ;;  %v3977_v38 = vsel %vm809_vm2, %v867_v62, %v868_v4  ;;  %v4011_v10 = vsel %vm809_vm2, %v879_v45, %v880_v29  ;;  %v1371_v4 = vrot.slane %v4047_v56, 1  ;;  %v1374_v45 = vrot.slane %v4096_v54, 1  ;;  %v4800_v29 = vld [vmem:[#allocation5_spill] sm:$0xff] }
  0x45   : > { %3158 = vmatmul.mubr.msk.f32.gmra.mxu0 %vm336_vm1, %v3908_v59 }
  0x46   : > { %3120 = vmatmul.mubr.msk.f32.gmra.mxu1 %vm336_vm1, %v3740_v42  ;;  %3160 = vmatprep.mubr.msk.f32.mxu0 %vm336_vm1, %v3915_v8 }
  0x47   : > { %3122 = vmatprep.mubr.msk.f32.mxu1 %vm336_vm1, %v3478_v5 }
  0x49   : > { %3161 = vmatmul.mubr.msk.f32.gmra.mxu0 %vm336_vm1, %v3926_v18 }
  0x4a   : > { %3123 = vmatmul.mubr.msk.f32.gmra.mxu1 %vm336_vm1, %v3495_v14  ;;  %3163 = vmatprep.mubr.msk.f32.mxu0 %vm336_vm1, %v3933_v30 }
  0x4b   : > { %3125 = vmatprep.mubr.msk.f32.mxu1 %vm336_vm1, %v3518_v26 }
  0x4d   : > { %3164 = vmatmul.mubr.msk.f32.gmra.mxu0 %vm336_vm1, %v3944_v39 }
  0x4e   : > { %3126 = vmatmul.mubr.msk.f32.gmra.mxu1 %vm336_vm1, %v3539_v33  ;;  %3166 = vmatprep.mubr.msk.f32.mxu0 %vm336_vm1, %v860_v50  ;;  %v4028_v50 = vld [vmem:[%s4743_s1 + $0x38] sm:$0x7f] }
  0x4f   : > { %3128 = vmatprep.mubr.msk.f32.mxu1 %vm336_vm1, %v3583_v49  ;;  %v873_v49 = vrot.slane %v3701_v15, 2 }
  0x51   : > { %3167 = vmatmul.mubr.msk.f32.gmra.mxu0 %vm336_vm1, %v3959_v41  ;;  %v3995_v20 = vsel %vm809_vm2, %v873_v49, %v874_v13  ;;  %v4093_v13 = vld [vmem:[%s3469_s21 + $0x120] sm:$0xff] }
  0x52   : > { %3129 = vmatmul.mubr.msk.f32.gmra.mxu1 %vm336_vm1, %v3605_v57  ;;  %3169 = vmatprep.mubr.msk.f32.mxu0 %vm336_vm1, %v3966_v9  ;;  %v1373_v37 = vrot.slane %v4093_v13, 1 }
  0x53   : > { %3131 = vmatprep.mubr.msk.f32.mxu1 %vm336_vm1, %v3624_v0 }
  0x55   : > { %3170 = vmatmul.mubr.msk.f32.gmra.mxu0 %vm336_vm1, %v3977_v38 }
  0x56   : > { %3132 = vmatmul.mubr.msk.f32.gmra.mxu1 %vm336_vm1, %v3660_v36  ;;  %3172 = vmatprep.mubr.msk.f32.mxu0 %vm336_vm1, %v3984_v2 }
  0x57   : > { %3134 = vmatprep.mubr.msk.f32.mxu1 %vm336_vm1, %v3682_v55 }
  0x59   : > { %3173 = vmatmul.mubr.msk.f32.gmra.mxu0 %vm336_vm1, %v3995_v20 }
  0x5a   : > { %3135 = vmatmul.mubr.msk.f32.gmra.mxu1 %vm336_vm1, %v3701_v15  ;;  %3175 = vmatprep.mubr.msk.f32.mxu0 %vm336_vm1, %v4002_v21 }
  0x5b   : > { %3137 = vmatprep.mubr.msk.f32.mxu1 %vm336_vm1, %v3734_v35 }
  0x5d   : > { %3176 = vmatmul.mubr.msk.f32.gmra.mxu0 %vm336_vm1, %v4011_v10 }
  0x5e   : > { %3138 = vmatmul.mubr.msk.f32.gmra.mxu1 %vm336_vm1, %v3757_v52  ;;  %3218 = vmatprep.mubr.msk.f32.mxu0 %vm336_vm1, %v3528_v28  ;;  %v4037_v28 = vld [vmem:[%s4743_s1 + $0x40] sm:$0x7f] }
  0x5f   : > { %3180 = vmatprep.mubr.msk.f32.mxu1 %vm336_vm1, %v3489_v12  ;;  %v4044_v12 = vld [vmem:[%s3469_s21 + $0x80] sm:$0xff] }
  0x60   : > { %v1370_v62 = vrot.slane %v4044_v12, 1 }
  0x61   : > { %3219 = vmatmul.mubr.msk.f32.vlgmr.msra.gmra.mxu0 %vm336_vm1, %v4792_v53 }
  0x62   : > { %3181 = vmatmul.mubr.msk.f32.vlgmr.msra.gmra.mxu1 %vm336_vm1, %v3504_v19  ;;  %3293 = vmatpush3.msk.msra.mxu0 %vm261_vm0, %v3833_v63  ;;  %v4794_v63 = vld [vmem:[#allocation8_spill] sm:$0xff]  ;;  %v4072_v49 = vsel %vm261_vm0, %v1370_v62, %v1371_v4  ;;  %v4801_v62 = vld [vmem:[#allocation7_spill] sm:$0xff]  ;;  %v4115_v4 = vsel %vm261_vm0, %v1373_v37, %v1374_v45  ;;  %v4805_v37 = vld [vmem:[#allocation14_spill] sm:$0xff] }
  0x63   : > { %3255 = vmatpush3.msk.msra.mxu1 %vm261_vm0, %v3819_v7  ;;  %3183 = vmatprep.mubr.msk.f32.mxu1 %vm336_vm1, %v3536_v32  ;;  %v4795_v7 = vld [vmem:[#allocation9_spill] sm:$0xff]  ;;  %4802 = vst [vmem:[#allocation4_spill] sm:$0xff] %v4115_v4  ;;  %v4136_v45 = vld [vmem:[%s3469_s21 + $0x1c0] sm:$0xff] }
  0x64   : > { %3221 = vmatprep.mubr.msk.f32.mxu0 %vm336_vm1, %v4793_v6  ;;  %3330 = vmatprep.subr.msk.mxu1 %vm261_vm0, %v4028_v50 }
  0x65   : > { %3222 = vmatmul.mubr.msk.f32.gmra.mxu0 %vm336_vm1, %v4794_v63  ;;  %3368 = vmatprep.subr.msk.mxu0 %vm261_vm0, %v4037_v28 }
  0x66   : > { %3184 = vmatmul.mubr.msk.f32.gmra.mxu1 %vm336_vm1, %v3569_v44  ;;  %3224 = vmatprep.mubr.msk.f32.mxu0 %vm336_vm1, %v4795_v7 }
  0x67   : > { %3186 = vmatprep.mubr.msk.f32.mxu1 %vm336_vm1, %v3589_v51 }
  0x69   : > { %3225 = vmatmul.mubr.msk.f32.gmra.mxu0 %vm336_vm1, %v4796_v43 }
  0x6a   : > { %3187 = vmatmul.mubr.msk.f32.gmra.mxu1 %vm336_vm1, %v3608_v58  ;;  %3227 = vmatprep.mubr.msk.f32.mxu0 %vm336_vm1, %v4797_v46 }
  0x6b   : > { %3189 = vmatprep.mubr.msk.f32.mxu1 %vm336_vm1, %v3649_v22 }
  0x6d   : > { %3228 = vmatmul.mubr.msk.f32.gmra.mxu0 %vm336_vm1, %v4072_v49 }
  0x6e   : > { %3190 = vmatmul.mubr.msk.f32.gmra.mxu1 %vm336_vm1, %v4044_v12  ;;  %3230 = vmatprep.mubr.msk.f32.mxu0 %vm336_vm1, %v3746_v61  ;;  %v4798_v61 = vld [vmem:[#allocation2_spill] sm:$0xff] }
  0x6f   : > { %3192 = vmatprep.mubr.msk.f32.mxu1 %vm336_vm1, %v3685_v60  ;;  %v4799_v60 = vld [vmem:[#allocation3_spill] sm:$0xff] }
  0x71   : > { %3231 = vmatmul.mubr.msk.f32.gmra.mxu0 %vm336_vm1, %v3762_v16 }
  0x72   : > { %3193 = vmatmul.mubr.msk.f32.gmra.mxu1 %vm336_vm1, %v3721_v47  ;;  %3233 = vmatprep.mubr.msk.f32.mxu0 %vm336_vm1, %v3782_v1 }
  0x73   : > { %3195 = vmatprep.mubr.msk.f32.mxu1 %vm336_vm1, %v3740_v42 }
  0x75   : > { %3234 = vmatmul.mubr.msk.f32.gmra.mxu0 %vm336_vm1, %v4798_v61 }
  0x76   : > { %3196 = vmatmul.mubr.msk.f32.gmra.mxu1 %vm336_vm1, %v3478_v5  ;;  %3236 = vmatprep.mubr.msk.f32.mxu0 %vm336_vm1, %v4799_v60  ;;  %v4803_v60 = vld [vmem:[#allocation10_spill] sm:$0xff] }
  0x77   : > { %3198 = vmatprep.mubr.msk.f32.mxu1 %vm336_vm1, %v3495_v14 }
  0x79   : > { %3237 = vmatmul.mubr.msk.f32.gmra.mxu0 %vm336_vm1, %v4800_v29  ;;  %v4804_v29 = vld [vmem:[#allocation12_spill] sm:$0xff] }
  0x7a   : > { %3199 = vmatmul.mubr.msk.f32.gmra.mxu1 %vm336_vm1, %v3518_v26  ;;  %3239 = vmatprep.mubr.msk.f32.mxu0 %vm336_vm1, %v4801_v62 }
  0x7b   : > { %3201 = vmatprep.mubr.msk.f32.mxu1 %vm336_vm1, %v3539_v33 }
  0x7d   : > { %3240 = vmatmul.mubr.msk.f32.gmra.mxu0 %vm336_vm1, %v4115_v4  ;;  %v4139_v4 = vld [vmem:[%s3469_s21 + $0x1c8] sm:$0x3] }
  0x7e   : > { %3202 = vmatmul.mubr.msk.f32.gmra.mxu1 %vm336_vm1, %v4093_v13  ;;  %3242 = vmatprep.mubr.msk.f32.mxu0 %vm336_vm1, %v4803_v60  ;;  %v4806_v60 = vld [vmem:[#allocation15_spill] sm:$0xff] }
  0x7f   : > { %3204 = vmatprep.mubr.msk.f32.mxu1 %vm336_vm1, %v3605_v57  ;;  %v4807_v57 = vld [vmem:[#allocation16_spill] sm:$0xff] }
  0x81   : > { %3243 = vmatmul.mubr.msk.f32.gmra.mxu0 %vm336_vm1, %v4804_v29  ;;  %v1376_v29 = vrot.slane %v4136_v45, 1 }
  0x82   : > { %3205 = vmatmul.mubr.msk.f32.gmra.mxu1 %vm336_vm1, %v3624_v0  ;;  %3245 = vmatprep.mubr.msk.f32.mxu0 %vm336_vm1, %v4805_v37  ;;  %v1377_v37 = vrot.slane %v4139_v4, 1 }
  0x83   : > { %3207 = vmatprep.mubr.msk.f32.mxu1 %vm336_vm1, %v3660_v36 }
  0x85   : > { %3246 = vmatmul.mubr.msk.f32.gmra.mxu0 %vm336_vm1, %v4806_v60  ;;  %v4158_v60 = vsel %vm261_vm0, %v1376_v29, %v1377_v37 }
  0x86   : > { %3208 = vmatmul.mubr.msk.f32.gmra.mxu1 %vm336_vm1, %v3682_v55  ;;  %3248 = vmatprep.mubr.msk.f32.mxu0 %vm336_vm1, %v4807_v57 }
  0x87   : > { %3210 = vmatprep.mubr.msk.f32.mxu1 %vm336_vm1, %v3701_v15 }
  0x89   : > { %3249 = vmatmul.mubr.msk.f32.gmra.mxu0 %vm336_vm1, %v3771_v31 }
  0x8a   : > { %3211 = vmatmul.mubr.msk.f32.gmra.mxu1 %vm336_vm1, %v3734_v35  ;;  %3251 = vmatprep.mubr.msk.f32.mxu0 %vm336_vm1, %v3788_v17 }
  0x8b   : > { %3213 = vmatprep.mubr.msk.f32.mxu1 %vm336_vm1, %v3757_v52 }
  0x8d   : > { %3252 = vmatmul.mubr.msk.f32.gmra.mxu0 %vm336_vm1, %v4158_v60 }
  0x8e   : > { %3214 = vmatmul.mubr.msk.f32.gmra.mxu1 %vm336_vm1, %v4136_v45  ;;  %3294 = vmatprep.mubr.msk.f32.mxu0 %vm336_vm1, %v3504_v19  ;;  %v1599_v19 = vrot.slane %v4044_v12, 2 }
  0x8f   : > { %3256 = vmatprep.mubr.msk.f32.mxu1 %vm336_vm1, %v3803_v40 }
  0x91   : > { %3295 = vmatmul.mubr.msk.f32.vlgmr.msra.gmra.mxu0 %vm336_vm1, %v3536_v32  ;;  %v1600_v32 = vrot.slane %v4047_v56, 2 }
  0x92   : > { %3257 = vmatmul.mubr.msk.f32.vlgmr.msra.gmra.mxu1 %vm336_vm1, %v3814_v24  ;;  %3369 = vmatpush3.msk.msra.mxu0 %vm261_vm0, %v4037_v28 }
  0x93   : > { %3331 = vmatpush3.msk.msra.mxu1 %vm261_vm0, %v4028_v50  ;;  %3259 = vmatprep.mubr.msk.f32.mxu1 %vm336_vm1, %v3826_v3  ;;  %v4811_v50 = vld [vmem:[#allocation12_spill] sm:$0xff] }
  0x94   : > { %3297 = vmatprep.mubr.msk.f32.mxu0 %vm336_vm1, %v3569_v44  ;;  %v4199_v44 = vld [vmem:[%s3469_s21 + $0x90] sm:$0xff] }
  0x95   : > { %3298 = vmatmul.mubr.msk.f32.gmra.mxu0 %vm336_vm1, %v3589_v51  ;;  %v1601_v51 = vsel %vm809_vm2, %v1599_v19, %v1600_v32 }
  0x96   : > { %3260 = vmatmul.mubr.msk.f32.gmra.mxu1 %vm336_vm1, %v3840_v34  ;;  %3300 = vmatprep.mubr.msk.f32.mxu0 %vm336_vm1, %v3608_v58  ;;  %v1602_v58 = vrot.slane %v4093_v13, 2 }
  0x97   : > { %3262 = vmatprep.mubr.msk.f32.mxu1 %vm336_vm1, %v3857_v27 }
  0x99   : > { %3301 = vmatmul.mubr.msk.f32.gmra.mxu0 %vm336_vm1, %v3649_v22  ;;  %v1603_v22 = vrot.slane %v4096_v54, 2 }
  0x9a   : > { %3263 = vmatmul.mubr.msk.f32.gmra.mxu1 %vm336_vm1, %v3864_v25  ;;  %3303 = vmatprep.mubr.msk.f32.mxu0 %vm336_vm1, %v4044_v12 }
  0x9b   : > { %3265 = vmatprep.mubr.msk.f32.mxu1 %vm336_vm1, %v3875_v23 }
  0x9d   : > { %3304 = vmatmul.mubr.msk.f32.gmra.mxu0 %vm336_vm1, %v4199_v44 }
  0x9e   : > { %3266 = vmatmul.mubr.msk.f32.gmra.mxu1 %vm336_vm1, %v1601_v51  ;;  %3306 = vmatprep.mubr.msk.f32.mxu0 %vm336_vm1, %v3721_v47 }
  0x9f   : > { %3268 = vmatprep.mubr.msk.f32.mxu1 %vm336_vm1, %v3890_v11 }
  0xa1   : > { %3307 = vmatmul.mubr.msk.f32.gmra.mxu0 %vm336_vm1, %v3740_v42 }
  0xa2   : > { %3269 = vmatmul.mubr.msk.f32.gmra.mxu1 %vm336_vm1, %v3897_v48  ;;  %3309 = vmatprep.mubr.msk.f32.mxu0 %vm336_vm1, %v3478_v5  ;;  %v4236_v5 = vld [vmem:[%s3469_s21 + $0x130] sm:$0xff] }
  0xa3   : > { %3271 = vmatprep.mubr.msk.f32.mxu1 %vm336_vm1, %v3908_v59 }
  0xa5   : > { %3310 = vmatmul.mubr.msk.f32.gmra.mxu0 %vm336_vm1, %v3495_v14  ;;  %v4241_v14 = vsel %vm809_vm2, %v1602_v58, %v1603_v22 }
  0xa6   : > { %3272 = vmatmul.mubr.msk.f32.gmra.mxu1 %vm336_vm1, %v3915_v8  ;;  %3312 = vmatprep.mubr.msk.f32.mxu0 %vm336_vm1, %v3518_v26  ;;  %v1605_v26 = vrot.slane %v4136_v45, 2 }
  0xa7   : > { %3274 = vmatprep.mubr.msk.f32.mxu1 %vm336_vm1, %v3926_v18 }
  0xa9   : > { %3313 = vmatmul.mubr.msk.f32.gmra.mxu0 %vm336_vm1, %v3539_v33  ;;  %v1606_v33 = vrot.slane %v4139_v4, 2 }
  0xaa   : > { %3275 = vmatmul.mubr.msk.f32.gmra.mxu1 %vm336_vm1, %v3933_v30  ;;  %3315 = vmatprep.mubr.msk.f32.mxu0 %vm336_vm1, %v4093_v13 }
  0xab   : > { %3277 = vmatprep.mubr.msk.f32.mxu1 %vm336_vm1, %v3944_v39 }
  0xad   : > { %3316 = vmatmul.mubr.msk.f32.gmra.mxu0 %vm336_vm1, %v4236_v5 }
  0xae   : > { %3278 = vmatmul.mubr.msk.f32.gmra.mxu1 %vm336_vm1, %v4241_v14  ;;  %3318 = vmatprep.mubr.msk.f32.mxu0 %vm336_vm1, %v3624_v0  ;;  %v4276_v0 = vld [vmem:[%s3469_s21 + $0x1d0] sm:$0xff] }
  0xaf   : > { %3280 = vmatprep.mubr.msk.f32.mxu1 %vm336_vm1, %v3959_v41  ;;  %v2060_v13 = vrot.slane %v4276_v0, 1 }
  0xb1   : > { %3319 = vmatmul.mubr.msk.f32.gmra.mxu0 %vm336_vm1, %v3660_v36  ;;  %v2283_v36 = vrot.slane %v4199_v44, 2 }
  0xb2   : > { %3281 = vmatmul.mubr.msk.f32.gmra.mxu1 %vm336_vm1, %v3966_v9  ;;  %3321 = vmatprep.mubr.msk.f32.mxu0 %vm336_vm1, %v3682_v55  ;;  %v2054_v55 = vrot.slane %v4199_v44, 1 }
  0xb3   : > { %3283 = vmatprep.mubr.msk.f32.mxu1 %vm336_vm1, %v3977_v38 }
  0xb5   : > { %3322 = vmatmul.mubr.msk.f32.gmra.mxu0 %vm336_vm1, %v3701_v15 }
  0xb6   : > { %3284 = vmatmul.mubr.msk.f32.gmra.mxu1 %vm336_vm1, %v3984_v2  ;;  %3324 = vmatprep.mubr.msk.f32.mxu0 %vm336_vm1, %v3734_v35  ;;  %v4281_v35 = vsel %vm809_vm2, %v1605_v26, %v1606_v33 }
  0xb7   : > { %3286 = vmatprep.mubr.msk.f32.mxu1 %vm336_vm1, %v3995_v20 }
  0xb9   : > { %3325 = vmatmul.mubr.msk.f32.gmra.mxu0 %vm336_vm1, %v3757_v52  ;;  %v171_v52 = vld [vmem:[%s3469_s21 + $0x98] sm:$0x3] }
  0xba   : > { %3287 = vmatmul.mubr.msk.f32.gmra.mxu1 %vm336_vm1, %v4002_v21  ;;  %3327 = vmatprep.mubr.msk.f32.mxu0 %vm336_vm1, %v4136_v45  ;;  %v2284_v42 = vrot.slane %v171_v52, 2  ;;  %v2055_v15 = vrot.slane %v171_v52, 1 }
  0xbb   : > { %3289 = vmatprep.mubr.msk.f32.mxu1 %vm336_vm1, %v4011_v10 }
  0xbc   : > { %v2285_v47 = vsel %vm809_vm2, %v2283_v36, %v2284_v42  ;;  %v2056_v40 = vsel %vm261_vm0, %v2054_v55, %v2055_v15 }
  0xbd   : > { %3328 = vmatmul.mubr.msk.f32.gmra.mxu0 %vm336_vm1, %v4276_v0 }
  0xbe   : > { %3290 = vmatmul.mubr.msk.f32.gmra.mxu1 %vm336_vm1, %v4281_v35  ;;  %3370 = vmatprep.mubr.msk.f32.mxu0 %vm336_vm1, %v3814_v24  ;;  %v191_v24 = vld [vmem:[%s3469_s21 + $0x138] sm:$0x3] }
  0xbf   : > { %3332 = vmatprep.mubr.msk.f32.mxu1 %vm336_vm1, %v4792_v53 }
  0xc1   : > { %3371 = vmatmul.mubr.msk.f32.vlgmr.msra.gmra.mxu0 %vm336_vm1, %v3826_v3  ;;  %v2286_v3 = vrot.slane %v4236_v5, 2 }
  0xc2   : > { %3333 = vmatmul.mubr.msk.f32.vlgmr.msra.gmra.mxu1 %vm336_vm1, %v4793_v6  ;;  %3373 = vmatprep.mubr.msk.f32.mxu0 %vm336_vm1, %v3840_v34  ;;  %v4808_v34 = vld [vmem:[#allocation3_spill] sm:$0xff]  ;;  %v4812_v6 = vld [vmem:[#allocation14_spill] sm:$0xff] }
  0xc3   : > { %3335 = vmatprep.mubr.msk.f32.mxu1 %vm336_vm1, %v4794_v63 }
  0xc5   : > { %3374 = vmatmul.mubr.msk.f32.gmra.mxu0 %vm336_vm1, %v3857_v27  ;;  %v4809_v27 = vld [vmem:[#allocation5_spill] sm:$0xff] }
  0xc6   : > { %3336 = vmatmul.mubr.msk.f32.gmra.mxu1 %vm336_vm1, %v4795_v7  ;;  %3376 = vmatprep.mubr.msk.f32.mxu0 %vm336_vm1, %v3864_v25  ;;  %v2058_v25 = vrot.slane %v191_v24, 1  ;;  %v211_v7 = vld [vmem:[%s3469_s21 + $0x1d8] sm:$0x3] }
  0xc7   : > { %3338 = vmatprep.mubr.msk.f32.mxu1 %vm336_vm1, %v4796_v43 }
  0xc9   : > { %3377 = vmatmul.mubr.msk.f32.gmra.mxu0 %vm336_vm1, %v3875_v23 }
  0xca   : > { %3339 = vmatmul.mubr.msk.f32.gmra.mxu1 %vm336_vm1, %v4797_v46  ;;  %3379 = vmatprep.mubr.msk.f32.mxu0 %vm336_vm1, %v1601_v51 }
  0xcb   : > { %3341 = vmatprep.mubr.msk.f32.mxu1 %vm336_vm1, %v4072_v49 }
  0xcd   : > { %3380 = vmatmul.mubr.msk.f32.gmra.mxu0 %vm336_vm1, %v2285_v47 }
  0xce   : > { %3342 = vmatmul.mubr.msk.f32.gmra.mxu1 %vm336_vm1, %v2056_v40  ;;  %3382 = vmatprep.mubr.msk.f32.mxu0 %vm336_vm1, %v3897_v48 }
  0xcf   : > { %3344 = vmatprep.mubr.msk.f32.mxu1 %vm336_vm1, %v3762_v16  ;;  %v2287_v16 = vrot.slane %v191_v24, 2 }
  0xd1   : > { %3383 = vmatmul.mubr.msk.f32.gmra.mxu0 %vm336_vm1, %v3908_v59  ;;  %v2288_v48 = vsel %vm809_vm2, %v2286_v3, %v2287_v16 }
  0xd2   : > { %3345 = vmatmul.mubr.msk.f32.gmra.mxu1 %vm336_vm1, %v3782_v1  ;;  %3385 = vmatprep.mubr.msk.f32.mxu0 %vm336_vm1, %v3915_v8  ;;  %v2057_v1 = vrot.slane %v4236_v5, 1  ;;  %v4810_v8 = vld [vmem:[#allocation4_spill] sm:$0xff] }
  0xd3   : > { %3347 = vmatprep.mubr.msk.f32.mxu1 %vm336_vm1, %v4798_v61  ;;  %v2061_v61 = vrot.slane %v211_v7, 1 }
  0xd5   : > { %3386 = vmatmul.mubr.msk.f32.gmra.mxu0 %vm336_vm1, %v3926_v18  ;;  %v2059_v18 = vsel %vm261_vm0, %v2057_v1, %v2058_v25 }
  0xd6   : > { %3348 = vmatmul.mubr.msk.f32.gmra.mxu1 %vm336_vm1, %v4808_v34  ;;  %3388 = vmatprep.mubr.msk.f32.mxu0 %vm336_vm1, %v3933_v30 }
  0xd7   : > { %3350 = vmatprep.mubr.msk.f32.mxu1 %vm336_vm1, %v4809_v27 }
  0xd9   : > { %v3068_v23 = vpop.f32.mrf.mxu0  ;;  %3389 = vmatmul.mubr.msk.f32.gmra.mxu0 %vm336_vm1, %v3944_v39 }
  0xda   : > { %v4346_v11 = vpop.f32.mrf.mxu1  ;;  %3351 = vmatmul.mubr.msk.f32.gmra.mxu1 %vm336_vm1, %v4801_v62  ;;  %3391 = vmatprep.mubr.msk.f32.mxu0 %vm336_vm1, %v4241_v14 }
  0xdb   : > { %v454_v59 = vpop.f32.mrf.mxu0  ;;  %3353 = vmatprep.mubr.msk.f32.mxu1 %vm336_vm1, %v4810_v8 }
  0xdc   : > { %v4356_v30 = vpop.f32.mrf.mxu1 }
  0xdd   : > { %v3071_v39 = vpop.f32.mrf.mxu0  ;;  %3392 = vmatmul.mubr.msk.f32.gmra.mxu0 %vm336_vm1, %v2288_v48 }
  0xde   : > { %v4359_v41 = vpop.f32.mrf.mxu1  ;;  %3354 = vmatmul.mubr.msk.f32.gmra.mxu1 %vm336_vm1, %v2059_v18  ;;  %3394 = vmatprep.mubr.msk.f32.mxu0 %vm336_vm1, %v3966_v9  ;;  %v4813_v9 = vld [vmem:[#allocation15_spill] sm:$0xff] }
  0xdf   : > { %v464_v53 = vpop.f32.mrf.mxu0  ;;  %3356 = vmatprep.mubr.msk.f32.mxu1 %vm336_vm1, %v4811_v50 }
  0xe0   : > { %v4366_v28 = vpop.f32.mrf.mxu1 }
  0xe1   : > { %v3074_v12 = vpop.f32.mrf.mxu0  ;;  %3395 = vmatmul.mubr.msk.f32.gmra.mxu0 %vm336_vm1, %v3977_v38  ;;  %v2289_v38 = vrot.slane %v4276_v0, 2 }
  0xe2   : > { %v4370_v56 = vpop.f32.mrf.mxu1  ;;  %3357 = vmatmul.mubr.msk.f32.gmra.mxu1 %vm336_vm1, %v4812_v6  ;;  %3397 = vmatprep.mubr.msk.f32.mxu0 %vm336_vm1, %v3984_v2  ;;  %v2290_v2 = vrot.slane %v211_v7, 2 }
  0xe3   : > { %v474_v63 = vpop.f32.mrf.mxu0  ;;  %3359 = vmatprep.mubr.msk.f32.mxu1 %vm336_vm1, %v4813_v9 }
  0xe4   : > { %v4379_v43 = vpop.f32.mrf.mxu1 }
  0xe5   : > { %v3077_v46 = vpop.f32.mrf.mxu0  ;;  %3398 = vmatmul.mubr.msk.f32.gmra.mxu0 %vm336_vm1, %v3995_v20 }
  0xe6   : > { %v4384_v49 = vpop.f32.mrf.mxu1  ;;  %3360 = vmatmul.mubr.msk.f32.gmra.mxu1 %vm336_vm1, %v4807_v57  ;;  %3400 = vmatprep.mubr.msk.f32.mxu0 %vm336_vm1, %v4002_v21  ;;  %v2291_v21 = vsel %vm809_vm2, %v2289_v38, %v2290_v2 }
  0xe7   : > { %v484_v54 = vpop.f32.mrf.mxu0  ;;  %3362 = vmatprep.mubr.msk.f32.mxu1 %vm336_vm1, %v3771_v31  ;;  %v2062_v31 = vsel %vm261_vm0, %v2060_v13, %v2061_v61 }
  0xe8   : > { %v4393_v29 = vpop.f32.mrf.mxu1 }
  0xe9   : > { %v3080_v20 = vpop.f32.mrf.mxu0  ;;  %3401 = vmatmul.mubr.msk.f32.gmra.mxu0 %vm336_vm1, %v4011_v10 }
  0xea   : > { %v4397_v62 = vpop.f32.mrf.mxu1  ;;  %3363 = vmatmul.mubr.msk.f32.gmra.mxu1 %vm336_vm1, %v3788_v17  ;;  %3403 = vmatprep.mubr.msk.f32.mxu0 %vm336_vm1, %v4281_v35 }
  0xeb   : > { %v494_v4 = vpop.f32.mrf.mxu0  ;;  %3365 = vmatprep.mubr.msk.f32.mxu1 %vm336_vm1, %v4158_v60 }
  0xec   : > { %v4407_v37 = vpop.f32.mrf.mxu1 }
  0xed   : > { %v3083_v45 = vpop.f32.mrf.mxu0  ;;  %3404 = vmatmul.mubr.msk.f32.gmra.mxu0 %vm336_vm1, %v2291_v21 }
  0xee   : > { %v4410_v10 = vpop.f32.mrf.mxu1  ;;  %3366 = vmatmul.mubr.msk.f32.gmra.mxu1 %vm336_vm1, %v2062_v31 }
  0xef   : > { %v504_v17 = vpop.f32.mrf.mxu0 }
  0xf0   : > { %v4413_v57 = vpop.f32.mrf.mxu1 }
  0xf1   : > { %v3144_v19 = vpop.f32.mrf.mxu0 }
  0xf2   : > { %v3106_v32 = vpop.f32.mrf.mxu1 }
  0xf3   : > { %v696_v44 = vadd.f32 %v3106_v32, %v3068_v23  ;;  %v1001_v51 = vpop.f32.mrf.mxu0 }
  0xf4   : > { %v690_v58 = vpop.f32.mrf.mxu1 }
  0xf5   : > { %v4415_v60 = vadd.f32 %v3144_v19, %v696_v44  ;;  %v691_v22 = vadd.f32 %v690_v58, %v454_v59  ;;  %v3147_v5 = vpop.f32.mrf.mxu0 }
  0xf6   : > { %v3109_v14 = vpop.f32.mrf.mxu1 }
  0xf7   : > { %v4417_v26 = vadd.f32 %v1001_v51, %v691_v22  ;;  %v706_v33 = vadd.f32 %v3109_v14, %v3071_v39  ;;  %v1011_v0 = vpop.f32.mrf.mxu0 }
  0xf8   : > { %v700_v35 = vpop.f32.mrf.mxu1 }
  0xf9   : > { %v4419_v52 = vadd.f32 %v3147_v5, %v706_v33  ;;  %v701_v36 = vadd.f32 %v700_v35, %v464_v53  ;;  %v3150_v42 = vpop.f32.mrf.mxu0 }
  0xfa   : > { %v3112_v55 = vpop.f32.mrf.mxu1 }
  0xfb   : > { %v4421_v15 = vadd.f32 %v1011_v0, %v701_v36  ;;  %v716_v47 = vadd.f32 %v3112_v55, %v3074_v12  ;;  %v1021_v40 = vpop.f32.mrf.mxu0 }
  0xfc   : > { %v710_v24 = vpop.f32.mrf.mxu1 }
  0xfd   : > { %v4423_v3 = vadd.f32 %v3150_v42, %v716_v47  ;;  %v711_v34 = vadd.f32 %v710_v24, %v474_v63  ;;  %v3153_v16 = vpop.f32.mrf.mxu0 }
  0xfe   : > { %v3115_v1 = vpop.f32.mrf.mxu1 }
  0xff   : > { %v4425_v27 = vadd.f32 %v1021_v40, %v711_v34  ;;  %v726_v25 = vadd.f32 %v3115_v1, %v3077_v46  ;;  %v1031_v23 = vpop.f32.mrf.mxu0 }
 0x100   : > { %v720_v48 = vpop.f32.mrf.mxu1 }
 0x101   : > { %v4427_v59 = vadd.f32 %v3153_v16, %v726_v25  ;;  %v721_v8 = vadd.f32 %v720_v48, %v484_v54  ;;  %v3156_v18 = vpop.f32.mrf.mxu0 }
 0x102   : > { %v3118_v39 = vpop.f32.mrf.mxu1 }
 0x103   : > { %v4429_v53 = vadd.f32 %v1031_v23, %v721_v8  ;;  %v736_v50 = vadd.f32 %v3118_v39, %v3080_v20  ;;  %v1041_v12 = vpop.f32.mrf.mxu0 }
 0x104   : > { %v730_v6 = vpop.f32.mrf.mxu1 }
 0x105   : > { %v4431_v9 = vadd.f32 %v3156_v18, %v736_v50  ;;  %v731_v63 = vadd.f32 %v730_v6, %v494_v4  ;;  %v3159_v7 = vpop.f32.mrf.mxu0 }
 0x106   : > { %v3121_v38 = vpop.f32.mrf.mxu1 }
 0x107   : > { %v4433_v2 = vadd.f32 %v1041_v12, %v731_v63  ;;  %v746_v46 = vadd.f32 %v3121_v38, %v3083_v45  ;;  %v1051_v13 = vpop.f32.mrf.mxu0 }
 0x108   : > { %v740_v61 = vpop.f32.mrf.mxu1 }
 0x109   : > { %v4435_v21 = vadd.f32 %v3159_v7, %v746_v46  ;;  %v741_v54 = vadd.f32 %v740_v61, %v504_v17  ;;  %v3162_v31 = vpop.f32.mrf.mxu0 }
 0x10a   : > { %v3124_v19 = vpop.f32.mrf.mxu1 }
 0x10b   : > { %v4437_v32 = vadd.f32 %v1051_v13, %v741_v54  ;;  %v756_v20 = vadd.f32 %v3124_v19, %v4346_v11  ;;  %v1061_v44 = vpop.f32.mrf.mxu0 }
 0x10c   : > { %v750_v51 = vpop.f32.mrf.mxu1 }
 0x10d   : > { %v4440_v58 = vadd.f32 %v3162_v31, %v756_v20  ;;  %v751_v4 = vadd.f32 %v750_v51, %v4356_v30  ;;  %v3165_v22 = vpop.f32.mrf.mxu0 }
 0x10e   : > { %v3127_v5 = vpop.f32.mrf.mxu1 }
 0x10f   : > { %v4443_v45 = vadd.f32 %v1061_v44, %v751_v4  ;;  %v766_v14 = vadd.f32 %v3127_v5, %v4359_v41  ;;  %v1071_v33 = vpop.f32.mrf.mxu0 }
 0x110   : > { %v760_v17 = vpop.f32.mrf.mxu1 }
 0x111   : > { %v4446_v0 = vadd.f32 %v3165_v22, %v766_v14  ;;  %v761_v35 = vadd.f32 %v760_v17, %v4366_v28  ;;  %v3168_v36 = vpop.f32.mrf.mxu0 }
 0x112   : > { %v3130_v11 = vpop.f32.mrf.mxu1 }
 0x113   : > { %v4449_v42 = vadd.f32 %v1071_v33, %v761_v35  ;;  %v776_v55 = vadd.f32 %v3130_v11, %v4370_v56  ;;  %v1081_v47 = vpop.f32.mrf.mxu0 }
 0x114   : > { %v770_v30 = vpop.f32.mrf.mxu1 }
 0x115   : > { %v4452_v40 = vadd.f32 %v3168_v36, %v776_v55  ;;  %v771_v24 = vadd.f32 %v770_v30, %v4379_v43  ;;  %v3171_v34 = vpop.f32.mrf.mxu0 }
 0x116   : > { %v3133_v41 = vpop.f32.mrf.mxu1 }
 0x117   : > { %v4455_v16 = vadd.f32 %v1081_v47, %v771_v24  ;;  %v786_v1 = vadd.f32 %v3133_v41, %v4384_v49  ;;  %v1091_v25 = vpop.f32.mrf.mxu0 }
 0x118   : > { %v780_v28 = vpop.f32.mrf.mxu1 }
 0x119   : > { %v4458_v23 = vadd.f32 %v3171_v34, %v786_v1  ;;  %v781_v48 = vadd.f32 %v780_v28, %v4393_v29  ;;  %v3174_v8 = vpop.f32.mrf.mxu0 }
 0x11a   : > { %v3136_v56 = vpop.f32.mrf.mxu1 }
 0x11b   : > { %v4461_v18 = vadd.f32 %v1091_v25, %v781_v48  ;;  %v796_v39 = vadd.f32 %v3136_v56, %v4397_v62  ;;  %v1101_v50 = vpop.f32.mrf.mxu0 }
 0x11c   : > { %v790_v43 = vpop.f32.mrf.mxu1 }
 0x11d   : > { %v4464_v12 = vadd.f32 %v3174_v8, %v796_v39  ;;  %v791_v6 = vadd.f32 %v790_v43, %v4407_v37  ;;  %v3177_v63 = vpop.f32.mrf.mxu0 }
 0x11e   : > { %v3139_v49 = vpop.f32.mrf.mxu1 }
 0x11f   : > { %v4467_v7 = vadd.f32 %v1101_v50, %v791_v6  ;;  %v806_v38 = vadd.f32 %v3139_v49, %v4410_v10  ;;  %v1111_v46 = vpop.f32.mrf.mxu0 }
 0x120   : > { %v800_v29 = vpop.f32.mrf.mxu1 }
 0x121   : > { %v4470_v13 = vadd.f32 %v3177_v63, %v806_v38  ;;  %v801_v61 = vadd.f32 %v800_v29, %v4413_v57  ;;  %v3220_v54 = vpop.f32.mrf.mxu0 }
 0x122   : > { %v3182_v62 = vpop.f32.mrf.mxu1 }
 0x123   : > { %v4473_v31 = vadd.f32 %v1111_v46, %v801_v61  ;;  %v1344_v19 = vadd.f32 %v3182_v62, %v4415_v60  ;;  %v1456_v20 = vpop.f32.mrf.mxu0 }
 0x124   : > { %v1224_v37 = vpop.f32.mrf.mxu1 }
 0x125   : > { %v4476_v44 = vadd.f32 %v3220_v54, %v1344_v19  ;;  %v1343_v51 = vadd.f32 %v1224_v37, %v4417_v26  ;;  %v3223_v4 = vpop.f32.mrf.mxu0 }
 0x126   : > { %v3185_v10 = vpop.f32.mrf.mxu1 }
 0x127   : > { %v4479_v22 = vadd.f32 %v1456_v20, %v1343_v51  ;;  %v1346_v5 = vadd.f32 %v3185_v10, %v4419_v52  ;;  %v1466_v14 = vpop.f32.mrf.mxu0 }
 0x128   : > { %v1234_v57 = vpop.f32.mrf.mxu1 }
 0x129   : > { %v4482_v33 = vadd.f32 %v3223_v4, %v1346_v5  ;;  %v1345_v17 = vadd.f32 %v1234_v57, %v4421_v15  ;;  %v3226_v35 = vpop.f32.mrf.mxu0 }
 0x12a   : > { %v3188_v60 = vpop.f32.mrf.mxu1 }
 0x12b   : > { %v4485_v36 = vadd.f32 %v1466_v14, %v1345_v17  ;;  %v1348_v11 = vadd.f32 %v3188_v60, %v4423_v3  ;;  %v1476_v55 = vpop.f32.mrf.mxu0 }
 0x12c   : > { %v1244_v26 = vpop.f32.mrf.mxu1 }
 0x12d   : > { %v4488_v47 = vadd.f32 %v3226_v35, %v1348_v11  ;;  %v1347_v30 = vadd.f32 %v1244_v26, %v4425_v27  ;;  %v3229_v24 = vpop.f32.mrf.mxu0 }
 0x12e   : > { %v3191_v52 = vpop.f32.mrf.mxu1 }
 0x12f   : > { %v4491_v34 = vadd.f32 %v1476_v55, %v1347_v30  ;;  %v1350_v41 = vadd.f32 %v3191_v52, %v4427_v59  ;;  %v1486_v1 = vpop.f32.mrf.mxu0 }
 0x130   : > { %v1254_v15 = vpop.f32.mrf.mxu1 }
 0x131   : > { %v4494_v25 = vadd.f32 %v3229_v24, %v1350_v41  ;;  %v1349_v28 = vadd.f32 %v1254_v15, %v4429_v53  ;;  %v3232_v48 = vpop.f32.mrf.mxu0 }
 0x132   : > { %v3194_v3 = vpop.f32.mrf.mxu1 }
 0x133   : > { %v4497_v8 = vadd.f32 %v1486_v1, %v1349_v28  ;;  %v1352_v56 = vadd.f32 %v3194_v3, %v4431_v9  ;;  %v1496_v39 = vpop.f32.mrf.mxu0 }
 0x134   : > { %v1264_v27 = vpop.f32.mrf.mxu1 }
 0x135   : > { %v4500_v50 = vadd.f32 %v3232_v48, %v1352_v56  ;;  %v1351_v43 = vadd.f32 %v1264_v27, %v4433_v2  ;;  %v3235_v6 = vpop.f32.mrf.mxu0 }
 0x136   : > { %v3197_v59 = vpop.f32.mrf.mxu1 }
 0x137   : > { %v4503_v63 = vadd.f32 %v1496_v39, %v1351_v43  ;;  %v1354_v49 = vadd.f32 %v3197_v59, %v4435_v21  ;;  %v1506_v38 = vpop.f32.mrf.mxu0 }
 0x138   : > { %v1274_v53 = vpop.f32.mrf.mxu1 }
 0x139   : > { %v4506_v46 = vadd.f32 %v3235_v6, %v1354_v49  ;;  %v1353_v29 = vadd.f32 %v1274_v53, %v4437_v32  ;;  %v3238_v61 = vpop.f32.mrf.mxu0 }
 0x13a   : > { %v3200_v9 = vpop.f32.mrf.mxu1 }
 0x13b   : > { %v4509_v54 = vadd.f32 %v1506_v38, %v1353_v29  ;;  %v1356_v62 = vadd.f32 %v3200_v9, %v4440_v58  ;;  %v1516_v19 = vpop.f32.mrf.mxu0 }
 0x13c   : > { %v1284_v2 = vpop.f32.mrf.mxu1 }
 0x13d   : > { %v4512_v20 = vadd.f32 %v3238_v61, %v1356_v62  ;;  %v1355_v37 = vadd.f32 %v1284_v2, %v4443_v45  ;;  %v3241_v51 = vpop.f32.mrf.mxu0 }
 0x13e   : > { %v3203_v21 = vpop.f32.mrf.mxu1 }
 0x13f   : > { %v4515_v4 = vadd.f32 %v1516_v19, %v1355_v37  ;;  %v1358_v10 = vadd.f32 %v3203_v21, %v4446_v0  ;;  %v1526_v5 = vpop.f32.mrf.mxu0 }
 0x140   : > { %v1294_v32 = vpop.f32.mrf.mxu1 }
 0x141   : > { %v4518_v14 = vadd.f32 %v3241_v51, %v1358_v10  ;;  %v1357_v57 = vadd.f32 %v1294_v32, %v4449_v42  ;;  %v3244_v17 = vpop.f32.mrf.mxu0 }
 0x142   : > { %v3206_v58 = vpop.f32.mrf.mxu1 }
 0x143   : > { %v4521_v35 = vadd.f32 %v1526_v5, %v1357_v57  ;;  %v1360_v60 = vadd.f32 %v3206_v58, %v4452_v40  ;;  %v1536_v11 = vpop.f32.mrf.mxu0 }
 0x144   : > { %v1304_v45 = vpop.f32.mrf.mxu1 }
 0x145   : > { %v4524_v55 = vadd.f32 %v3244_v17, %v1360_v60  ;;  %v1359_v26 = vadd.f32 %v1304_v45, %v4455_v16  ;;  %v3247_v30 = vpop.f32.mrf.mxu0 }
 0x146   : > { %v3209_v0 = vpop.f32.mrf.mxu1 }
 0x147   : > { %v4527_v24 = vadd.f32 %v1536_v11, %v1359_v26  ;;  %v1362_v52 = vadd.f32 %v3209_v0, %v4458_v23  ;;  %v1546_v41 = vpop.f32.mrf.mxu0 }
 0x148   : > { %v1314_v42 = vpop.f32.mrf.mxu1 }
 0x149   : > { %v4530_v1 = vadd.f32 %v3247_v30, %v1362_v52  ;;  %v1361_v15 = vadd.f32 %v1314_v42, %v4461_v18  ;;  %v3250_v28 = vpop.f32.mrf.mxu0 }
 0x14a   : > { %v3212_v40 = vpop.f32.mrf.mxu1 }
 0x14b   : > { %4814 = vst [vmem:[#allocation6_spill] sm:$0xff] %v4530_v1  ;;  %v4533_v48 = vadd.f32 %v1546_v41, %v1361_v15  ;;  %v1364_v3 = vadd.f32 %v3212_v40, %v4464_v12  ;;  %v1556_v56 = vpop.f32.mrf.mxu0 }
 0x14c   : > { %v1324_v16 = vpop.f32.mrf.mxu1 }
 0x14d   : > { %4815 = vst [vmem:[#allocation8_spill] sm:$0xff] %v4533_v48  ;;  %v4536_v39 = vadd.f32 %v3250_v28, %v1364_v3  ;;  %v1363_v27 = vadd.f32 %v1324_v16, %v4467_v7  ;;  %v3253_v43 = vpop.f32.mrf.mxu0 }
 0x14e   : > { %v3215_v23 = vpop.f32.mrf.mxu1 }
 0x14f   : > { %4816 = vst [vmem:[#allocation9_spill] sm:$0xff] %v4536_v39  ;;  %v4539_v6 = vadd.f32 %v1556_v56, %v1363_v27  ;;  %v1366_v59 = vadd.f32 %v3215_v23, %v4470_v13  ;;  %v1566_v49 = vpop.f32.mrf.mxu0 }
 0x150   : > { %v1334_v18 = vpop.f32.mrf.mxu1 }
 0x151   : > { %4817 = vst [vmem:[#allocation11_spill] sm:$0xff] %v4539_v6  ;;  %v4542_v38 = vadd.f32 %v3253_v43, %v1366_v59  ;;  %v1365_v53 = vadd.f32 %v1334_v18, %v4473_v31  ;;  %v3296_v29 = vpop.f32.mrf.mxu0 }
 0x152   : > { %v3258_v12 = vpop.f32.mrf.mxu1 }
 0x153   : > { %4818 = vst [vmem:[#allocation13_spill] sm:$0xff] %v4542_v38  ;;  %v4545_v61 = vadd.f32 %v1566_v49, %v1365_v53  ;;  %v1908_v9 = vpop.f32.mrf.mxu0  ;;  %v1805_v48 = vadd.f32 %v3258_v12, %v4476_v44 }
 0x154   : > { %v1685_v62 = vpop.f32.mrf.mxu1 }
 0x155   : > { %4819 = vst [vmem:[#allocation2_spill] sm:$0xff] %v4545_v61  ;;  %v3299_v19 = vpop.f32.mrf.mxu0 }
 0x156   : > { %v3261_v7 = vpop.f32.mrf.mxu1 }
 0x157   : > { %v1918_v2 = vpop.f32.mrf.mxu0 }
 0x158   : > { %v1695_v37 = vpop.f32.mrf.mxu1 }
 0x159   : > { %v4547_v51 = vpop.f32.mrf.mxu0 }
 0x15a   : > { %v3264_v21 = vpop.f32.mrf.mxu1 }
 0x15b   : > { %v4549_v13 = vpop.f32.mrf.mxu0 }
 0x15c   : > { %v1705_v10 = vpop.f32.mrf.mxu1 }
 0x15d   : > { %v4551_v5 = vpop.f32.mrf.mxu0 }
 0x15e   : > { %v4553_v32 = vpop.f32.mrf.mxu1 }
 0x15f   : > { %v4555_v31 = vpop.f32.mrf.mxu0 }
 0x160   : > { %v4557_v57 = vpop.f32.mrf.mxu1 }
 0x161   : > { %v4559_v17 = vpop.f32.mrf.mxu0 }
 0x162   : > { %v4561_v58 = vpop.f32.mrf.mxu1 }
 0x163   : > { %v4563_v60 = vpop.f32.mrf.mxu0 }
 0x164   : > { %v4565_v11 = vpop.f32.mrf.mxu1 }
 0x165   : > { %v4567_v45 = vpop.f32.mrf.mxu0 }
 0x166   : > { %v4569_v26 = vpop.f32.mrf.mxu1 }
 0x167   : > { %v4571_v30 = vpop.f32.mrf.mxu0 }
 0x168   : > { %v4573_v0 = vpop.f32.mrf.mxu1 }
 0x169   : > { %v4575_v52 = vpop.f32.mrf.mxu0 }
 0x16a   : > { %v4577_v41 = vpop.f32.mrf.mxu1 }
 0x16b   : > { %v4579_v42 = vpop.f32.mrf.mxu0 }
 0x16c   : > { %v4581_v15 = vpop.f32.mrf.mxu1 }
 0x16d   : > { %v4583_v28 = vpop.f32.mrf.mxu0 }
 0x16e   : > { %v4585_v40 = vpop.f32.mrf.mxu1 }
 0x16f   : > { %v4587_v3 = vpop.f32.mrf.mxu0 }
 0x170   : > { %v4589_v56 = vpop.f32.mrf.mxu1 }
 0x171   : > { %v4591_v16 = vpop.f32.mrf.mxu0 }
 0x172   : > { %4820 = vst [vmem:[#allocation7_spill] sm:$0xff] %v4591_v16  ;;  %v4593_v27 = vpop.f32.mrf.mxu1 }
 0x173   : > { %v4595_v43 = vpop.f32.mrf.mxu0 }
 0x174   : > { %4821 = vst [vmem:[#allocation10_spill] sm:$0xff] %v4595_v43  ;;  %v4597_v23 = vpop.f32.mrf.mxu1 }
 0x175   : > { %v4599_v59 = vpop.f32.mrf.mxu0 }
 0x176   : > { %4822 = vst [vmem:[#allocation16_spill] sm:$0xff] %v4599_v59  ;;  %v4601_v49 = vpop.f32.mrf.mxu1 }
 0x177   : > { %4823 = vst [vmem:[#allocation3_spill] sm:$0xff] %v4601_v49  ;;  %v4603_v18 = vpop.f32.mrf.mxu0  ;;  %v1804_v49 = vadd.f32 %v1685_v62, %v4479_v22 }
 0x178   : > { %4824 = vst [vmem:[#allocation5_spill] sm:$0xff] %v4603_v18  ;;  %v4605_v53 = vpop.f32.mrf.mxu1 }
 0x179   : > { %4825 = vst [vmem:[#allocation4_spill] sm:$0xff] %v4605_v53  ;;  %v4607_v61 = vpop.f32.mrf.mxu0  ;;  %v2028_v53 = vadd.f32 %v3296_v29, %v1805_v48  ;;  %v2027_v16 = vadd.f32 %v1908_v9, %v1804_v49 }
 0x17a   : > { %4826 = vst [vmem:[#allocation12_spill] sm:$0xff] %v4607_v61  ;;  %v4609_v38 = vpop.f32.mrf.mxu1  ;;  %v1807_v61 = vadd.f32 %v3261_v7, %v4482_v33  ;;  %v1809_v33 = vadd.f32 %v3264_v21, %v4488_v47  ;;  %v1811_v47 = vadd.f32 %v4553_v32, %v4494_v25 }
 0x17b   : > { %4827 = vst [vmem:[#allocation14_spill] sm:$0xff] %v4609_v38  ;;  %v4611_v6 = vpop.f32.mrf.mxu0 }
 0x17c   : > { %4828 = vst [vmem:[#allocation15_spill] sm:$0xff] %v4611_v6  ;;  %v4613_v39 = vpop.f32.mrf.mxu1  ;;  %v2030_v48 = vadd.f32 %v3299_v19, %v1807_v61  ;;  %v2034_v25 = vadd.f32 %v4551_v5, %v1811_v47 }
 0x17d   : > { %4829 = vst [vmem:[#allocation17_spill] sm:$0xff] %v4613_v39  ;;  %v4616_v43 = vpop.f32.mrf.mxu0  ;;  %v1806_v39 = vadd.f32 %v1695_v37, %v4485_v36  ;;  %v1808_v36 = vadd.f32 %v1705_v10, %v4491_v34 }
 0x17e   : > { %4830 = vst [vmem:[#allocation18_spill] sm:$0xff] %v4616_v43  ;;  %v4618_v59 = vpop.f32.mrf.mxu1  ;;  %v2032_v43 = vadd.f32 %v4547_v51, %v1809_v33 }
 0x17f   : > { %v4621_v1 = vpop.f32.mrf.mxu0  ;;  %v2029_v49 = vadd.f32 %v1918_v2, %v1806_v39  ;;  %v2031_v34 = vadd.f32 %v4549_v13, %v1808_v36  ;;  %v1810_v2 = vadd.f32 %v4557_v57, %v4497_v8  ;;  %v1812_v57 = vadd.f32 %v4565_v11, %v4503_v63 }
 0x180   : > { %4831 = vst [vmem:[#allocation19_spill] sm:$0xff] %v4621_v1  ;;  %v4623_v18 = vpop.f32.mrf.mxu1  ;;  %v1814_v11 = vadd.f32 %v4573_v0, %v4509_v54  ;;  %v1816_v0 = vadd.f32 %v4581_v15, %v4515_v4  ;;  %v1818_v15 = vadd.f32 %v4589_v56, %v4521_v35  ;;  %v1820_v56 = vadd.f32 %v4597_v23, %v4527_v24  ;;  %v4836_v23 = vld [vmem:[#allocation8_spill] sm:$0xff] }
 0x181   : > { %v3372_v38 = vpop.f32.mrf.mxu0  ;;  %v2033_v8 = vadd.f32 %v4555_v31, %v1810_v2  ;;  %v2035_v63 = vadd.f32 %v4563_v60, %v1812_v57 }
 0x182   : > { %v3334_v6 = vpop.f32.mrf.mxu1  ;;  %v2037_v54 = vadd.f32 %v4571_v30, %v1814_v11  ;;  %v2039_v4 = vadd.f32 %v4579_v42, %v1816_v0  ;;  %v2041_v35 = vadd.f32 %v4587_v3, %v1818_v15  ;;  %v4840_v11 = vld [vmem:[#allocation14_spill] sm:$0xff] }
 0x183   : > { %v2260_v44 = vadd.f32 %v3334_v6, %v2028_v53  ;;  %v2369_v12 = vpop.f32.mrf.mxu0 }
 0x184   : > { %v2140_v22 = vpop.f32.mrf.mxu1 }
 0x185   : > { %v2489_v29 = vadd.f32 %v3372_v38, %v2260_v44  ;;  %v2259_v62 = vadd.f32 %v2140_v22, %v2027_v16  ;;  %v3375_v7 = vpop.f32.mrf.mxu0 }
 0x186   : > { %v3337_v9 = vpop.f32.mrf.mxu1 }
 0x187   : > { %2514 = vst.msk [vmem:[%s4631_s10 + $0x8] sm:$0xff] %vm2512_vm3, %v2489_v29  ;;  %v2488_v6 = vadd.f32 %v2369_v12, %v2259_v62  ;;  %v2262_v37 = vadd.f32 %v3337_v9, %v2030_v48  ;;  %v2379_v53 = vpop.f32.mrf.mxu0 }
 0x188   : > { %v2150_v1 = vpop.f32.mrf.mxu1 }
 0x189   : > { %2513 = vst.msk [vmem:[%s4631_s10] sm:$0xff] %vm2512_vm3, %v2488_v6  ;;  %v2491_v38 = vadd.f32 %v3375_v7, %v2262_v37  ;;  %v2261_v61 = vadd.f32 %v2150_v1, %v2029_v49  ;;  %v3378_v39 = vpop.f32.mrf.mxu0  ;;  %v1813_v1 = vadd.f32 %v4561_v58, %v4500_v50  ;;  %v1815_v58 = vadd.f32 %v4569_v26, %v4506_v46 }
 0x18a   : > { %v3340_v19 = vpop.f32.mrf.mxu1  ;;  %v1817_v26 = vadd.f32 %v4577_v41, %v4512_v20  ;;  %v1819_v41 = vadd.f32 %v4585_v40, %v4518_v14  ;;  %v1821_v40 = vadd.f32 %v4593_v27, %v4524_v55  ;;  %v4833_v27 = vld [vmem:[#allocation6_spill] sm:$0xff] }
 0x18b   : > { %2516 = vst.msk [vmem:[%s4631_s10 + $0x18] sm:$0xff] %vm2512_vm3, %v2491_v38  ;;  %v2490_v21 = vadd.f32 %v2379_v53, %v2261_v61  ;;  %v2264_v51 = vadd.f32 %v3340_v19, %v2032_v43  ;;  %v2389_v10 = vpop.f32.mrf.mxu0  ;;  %v2036_v50 = vadd.f32 %v4559_v17, %v1813_v1  ;;  %v2038_v46 = vadd.f32 %v4567_v45, %v1815_v58 }
 0x18c   : > { %v2160_v16 = vpop.f32.mrf.mxu1  ;;  %v2040_v20 = vadd.f32 %v4575_v52, %v1817_v26  ;;  %v2042_v14 = vadd.f32 %v4583_v28, %v1819_v41  ;;  %v4841_v26 = vld [vmem:[#allocation5_spill] sm:$0xff] }
 0x18d   : > { %2515 = vst.msk [vmem:[%s4631_s10 + $0x10] sm:$0xff] %vm2512_vm3, %v2490_v21  ;;  %v2493_v32 = vadd.f32 %v3378_v39, %v2264_v51  ;;  %v2263_v13 = vadd.f32 %v2160_v16, %v2031_v34  ;;  %v3381_v44 = vpop.f32.mrf.mxu0 }
 0x18e   : > { %v3343_v12 = vpop.f32.mrf.mxu1 }
 0x18f   : > { %2518 = vst.msk [vmem:[%s4631_s10 + $0x28] sm:$0xff] %vm2512_vm3, %v2493_v32  ;;  %v2492_v43 = vadd.f32 %v2389_v10, %v2263_v13  ;;  %v2266_v5 = vadd.f32 %v3343_v12, %v2034_v25  ;;  %v2399_v22 = vpop.f32.mrf.mxu0  ;;  %v4832_v13 = vld [vmem:[#allocation7_spill] sm:$0xff] }
 0x190   : > { %v2170_v48 = vpop.f32.mrf.mxu1  ;;  %v2044_v55 = vadd.f32 %v4832_v13, %v1821_v40 }
 0x191   : > { %2517 = vst.msk [vmem:[%s4631_s10 + $0x20] sm:$0xff] %vm2512_vm3, %v2492_v43  ;;  %v2495_v33 = vadd.f32 %v3381_v44, %v2266_v5  ;;  %v2265_v31 = vadd.f32 %v2170_v48, %v2033_v8  ;;  %v3384_v29 = vpop.f32.mrf.mxu0  ;;  %v4834_v44 = vld [vmem:[#allocation3_spill] sm:$0xff]  ;;  %v4835_v5 = vld [vmem:[#allocation10_spill] sm:$0xff] }
 0x192   : > { %v3346_v62 = vpop.f32.mrf.mxu1  ;;  %v1823_v12 = vadd.f32 %v4834_v44, %v4833_v27  ;;  %v2043_v24 = vadd.f32 %v4835_v5, %v1820_v56  ;;  %v4849_v56 = vld [vmem:[#allocation19_spill] sm:$0xff] }
 0x193   : > { %2520 = vst.msk [vmem:[%s4631_s10 + $0x38] sm:$0xff] %vm2512_vm3, %v2495_v33  ;;  %v2494_v7 = vadd.f32 %v2399_v22, %v2265_v31  ;;  %v2268_v17 = vadd.f32 %v3346_v62, %v2036_v50  ;;  %v2409_v9 = vpop.f32.mrf.mxu0  ;;  %v4837_v22 = vld [vmem:[#allocation4_spill] sm:$0xff] }
 0x194   : > { %v2180_v49 = vpop.f32.mrf.mxu1  ;;  %v1822_v48 = vadd.f32 %v4837_v22, %v4836_v23 }
 0x195   : > { %2519 = vst.msk [vmem:[%s4631_s10 + $0x30] sm:$0xff] %vm2512_vm3, %v2494_v7  ;;  %v2497_v36 = vadd.f32 %v3384_v29, %v2268_v17  ;;  %v2267_v60 = vadd.f32 %v2180_v49, %v2035_v63  ;;  %v3387_v6 = vpop.f32.mrf.mxu0  ;;  %v4838_v29 = vld [vmem:[#allocation16_spill] sm:$0xff]  ;;  %v4839_v63 = vld [vmem:[#allocation9_spill] sm:$0xff] }
 0x196   : > { %v3349_v37 = vpop.f32.mrf.mxu1  ;;  %v2046_v62 = vadd.f32 %v4838_v29, %v1823_v12  ;;  %v1825_v7 = vadd.f32 %v4840_v11, %v4839_v63 }
 0x197   : > { %2522 = vst.msk [vmem:[%s4631_s10 + $0x48] sm:$0xff] %vm2512_vm3, %v2497_v36  ;;  %v2496_v53 = vadd.f32 %v2409_v9, %v2267_v60  ;;  %v2270_v45 = vadd.f32 %v3349_v37, %v2038_v46  ;;  %v2419_v47 = vpop.f32.mrf.mxu0  ;;  %v2045_v36 = vadd.f32 %v4841_v26, %v1822_v48  ;;  %v4842_v60 = vld [vmem:[#allocation11_spill] sm:$0xff] }
 0x198   : > { %v2190_v38 = vpop.f32.mrf.mxu1 }
 0x199   : > { %2521 = vst.msk [vmem:[%s4631_s10 + $0x40] sm:$0xff] %vm2512_vm3, %v2496_v53  ;;  %v2499_v61 = vadd.f32 %v3387_v6, %v2270_v45  ;;  %v2269_v30 = vadd.f32 %v2190_v38, %v2037_v54  ;;  %v3390_v39 = vpop.f32.mrf.mxu0  ;;  %v4843_v6 = vld [vmem:[#allocation17_spill] sm:$0xff] }
 0x19a   : > { %v3352_v19 = vpop.f32.mrf.mxu1  ;;  %v1824_v37 = vadd.f32 %v4843_v6, %v4842_v60 }
 0x19b   : > { %2524 = vst.msk [vmem:[%s4631_s10 + $0x58] sm:$0xff] %vm2512_vm3, %v2499_v61  ;;  %v2498_v34 = vadd.f32 %v2419_v47, %v2269_v30  ;;  %v2272_v52 = vadd.f32 %v3352_v19, %v2040_v20  ;;  %v2429_v2 = vpop.f32.mrf.mxu0  ;;  %v4844_v47 = vld [vmem:[#allocation12_spill] sm:$0xff]  ;;  %v4845_v20 = vld [vmem:[#allocation13_spill] sm:$0xff] }
 0x19c   : > { %v2200_v21 = vpop.f32.mrf.mxu1  ;;  %v2048_v38 = vadd.f32 %v4844_v47, %v1825_v7  ;;  %v1827_v41 = vadd.f32 %v4618_v59, %v4845_v20  ;;  %v4848_v59 = vld [vmem:[#allocation18_spill] sm:$0xff] }
 0x19d   : > { %2523 = vst.msk [vmem:[%s4631_s10 + $0x50] sm:$0xff] %vm2512_vm3, %v2498_v34  ;;  %v2501_v51 = vadd.f32 %v3390_v39, %v2272_v52  ;;  %v2271_v42 = vadd.f32 %v2200_v21, %v2039_v4  ;;  %v3393_v10 = vpop.f32.mrf.mxu0  ;;  %v4846_v4 = vld [vmem:[#allocation15_spill] sm:$0xff]  ;;  %v4847_v34 = vld [vmem:[#allocation2_spill] sm:$0xff] }
 0x19e   : > { %v3355_v16 = vpop.f32.mrf.mxu1  ;;  %v2047_v15 = vadd.f32 %v4846_v4, %v1824_v37  ;;  %v1826_v52 = vadd.f32 %v4623_v18, %v4847_v34 }
 0x19f   : > { %2526 = vst.msk [vmem:[%s4631_s10 + $0x68] sm:$0xff] %vm2512_vm3, %v2501_v51  ;;  %v2500_v25 = vadd.f32 %v2429_v2, %v2271_v42  ;;  %v2274_v28 = vadd.f32 %v3355_v16, %v2042_v14  ;;  %v2439_v1 = vpop.f32.mrf.mxu0  ;;  %v2050_v51 = vadd.f32 %v4848_v59, %v1827_v41 }
 0x1a0   : > { %v2210_v32 = vpop.f32.mrf.mxu1 }
 0x1a1   : > { %2525 = vst.msk [vmem:[%s4631_s10 + $0x60] sm:$0xff] %vm2512_vm3, %v2500_v25  ;;  %v2503_v8 = vadd.f32 %v3393_v10, %v2274_v28  ;;  %v2273_v3 = vadd.f32 %v2210_v32, %v2041_v35  ;;  %v3396_v57 = vpop.f32.mrf.mxu0  ;;  %v2049_v25 = vadd.f32 %v4849_v56, %v1826_v52 }
 0x1a2   : > { %v3358_v43 = vpop.f32.mrf.mxu1 }
 0x1a3   : > { %2528 = vst.msk [vmem:[%s4631_s10 + $0x78] sm:$0xff] %vm2512_vm3, %v2503_v8  ;;  %v2502_v50 = vadd.f32 %v2439_v1, %v2273_v3  ;;  %v2276_v58 = vadd.f32 %v3358_v43, %v2044_v55  ;;  %v2449_v33 = vpop.f32.mrf.mxu0 }
 0x1a4   : > { %v2220_v31 = vpop.f32.mrf.mxu1 }
 0x1a5   : > { %2527 = vst.msk [vmem:[%s4631_s10 + $0x70] sm:$0xff] %vm2512_vm3, %v2502_v50  ;;  %v2505_v17 = vadd.f32 %v3396_v57, %v2276_v58  ;;  %v2275_v9 = vadd.f32 %v2220_v31, %v2043_v24  ;;  %v3399_v49 = vpop.f32.mrf.mxu0 }
 0x1a6   : > { %v3361_v46 = vpop.f32.mrf.mxu1 }
 0x1a7   : > { %2530 = vst.msk [vmem:[%s4631_s10 + $0x88] sm:$0xff] %vm2512_vm3, %v2505_v17  ;;  %v2504_v54 = vadd.f32 %v2449_v33, %v2275_v9  ;;  %v2278_v0 = vadd.f32 %v3361_v46, %v2046_v62  ;;  %v2459_v53 = vpop.f32.mrf.mxu0 }
 0x1a8   : > { %v2230_v45 = vpop.f32.mrf.mxu1 }
 0x1a9   : > { %2529 = vst.msk [vmem:[%s4631_s10 + $0x80] sm:$0xff] %vm2512_vm3, %v2504_v54  ;;  %v2507_v61 = vadd.f32 %v3399_v49, %v2278_v0  ;;  %v2277_v30 = vadd.f32 %v2230_v45, %v2045_v36  ;;  %v3402_v39 = vpop.f32.mrf.mxu0 }
 0x1aa   : > { %v3364_v19 = vpop.f32.mrf.mxu1 }
 0x1ab   : > { %2532 = vst.msk [vmem:[%s4631_s10 + $0x98] sm:$0xff] %vm2512_vm3, %v2507_v61  ;;  %v2506_v2 = vadd.f32 %v2459_v53, %v2277_v30  ;;  %v2280_v21 = vadd.f32 %v3364_v19, %v2048_v38  ;;  %v2469_v14 = vpop.f32.mrf.mxu0 }
 0x1ac   : > { %v2240_v40 = vpop.f32.mrf.mxu1 }
 0x1ad   : > { %2531 = vst.msk [vmem:[%s4631_s10 + $0x90] sm:$0xff] %vm2512_vm3, %v2506_v2  ;;  %v2509_v42 = vadd.f32 %v3402_v39, %v2280_v21  ;;  %v2279_v10 = vadd.f32 %v2240_v40, %v2047_v15  ;;  %v3405_v35 = vpop.f32.mrf.mxu0 }
 0x1ae   : > { %v3367_v16 = vpop.f32.mrf.mxu1 }
 0x1af   : > { %2534 = vst.msk [vmem:[%s4631_s10 + $0xa8] sm:$0xff] %vm2512_vm3, %v2509_v42  ;;  %v2508_v18 = vadd.f32 %v2469_v14, %v2279_v10  ;;  %v2282_v28 = vadd.f32 %v3367_v16, %v2050_v51  ;;  %v2479_v55 = vpop.f32.mrf.mxu0 }
 0x1b0   : > { %v2250_v1 = vpop.f32.mrf.mxu1 }
 0x1b1   : > { %2533 = vst.msk [vmem:[%s4631_s10 + $0xa0] sm:$0xff] %vm2512_vm3, %v2508_v18  ;;  %v2511_v32 = vadd.f32 %v3405_v35, %v2282_v28  ;;  %v2281_v13 = vadd.f32 %v2250_v1, %v2049_v25 }
 0x1b3   : > { %2536 = vst.msk [vmem:[%s4631_s10 + $0xb8] sm:$0xff] %vm2512_vm3, %v2511_v32  ;;  %v2510_v27 = vadd.f32 %v2479_v55, %v2281_v13 }
 0x1b5   : > { %2535 = vst.msk [vmem:[%s4631_s10 + $0xb0] sm:$0xff] %vm2512_vm3, %v2510_v27 }
 0x1b6 PF: > { %s12_s9 = sadd.s32 1, %s3423_s9  }
 0x1b7   : > { %p9_p4 = scmp.ge.s32.totalorder %s12_s9, 4  }
 0x1b9   :  { %11 = sbr.rel (!%p9_p4) target bundleno = 1 (0x1), region = 66 }

// kernel: encoder_forward.6
= control target key start
LH: loop header
LB: loop body
LE: loop exit
PB: predicated region body
PF: predicated region fallthrough
CT: control target
= control target key end

     0   :  { %s2467_s9 = smov 0   ;;  %s2469_s10 = smov 0   ;;  %s3054_s0 = inlined_call_operand.vmem [shape: f32[2,3,8,8,112], index: 0, kind: input, shape index: {}]   ;;  %s3055_s1 = inlined_call_operand.vmem [shape: f32[9,28,112], index: 1, kind: input, shape index: {}]   ;;  %s3056_s2 = inlined_call_operand.vmem [shape: f32[2,3,8,8,28], index: 2, kind: output, shape index: {}]  }
   0x1   :  { %s2471_s11 = smov 0   ;;  %s2473_s12 = smov 0  }
   0x2   :  { %s2475_s13 = smov 0  }
   0x3 LB: > { %s21_s14 = sadd.s32 1, %s2436_s11  ;;  %s24_s15 = sadd.s32 1, %s2440_s12  ;;  %s2444_s13 = sphi %s2475_s13, %s12_s13   ;;  %s2440_s12 = sphi %s2473_s12, %s3060_s12   ;;  %s2436_s11 = sphi %s2471_s11, %s3059_s11   ;;  %s2432_s10 = sphi %s2469_s10, %s3058_s10   ;;  %s2428_s9 = sphi %s2467_s9, %s3057_s9  }
   0x4   : > { %p22_p0 = scmp.ge.s32.totalorder %s21_s14, 3  ;;  %p1886_p1 = scmp.ge.s32.totalorder %s2444_s13, 1 }
   0x5   : > { %p132_p2 = scmp.lt.s32.totalorder %s2444_s13, 7 }
   0x6   : > { %s3062_s14 = smov (%p22_p0, %s21_s14), 0  ;;  %s3064_s15 = smov (!%p22_p0, %s24_s15), %s2440_s12 }
   0x7   : > { %p133_p3 = pnand %p1886_p1, %p132_p2  ;;  %p26_p4 = scmp.ge.s32.totalorder %s3064_s15, 2 }
   0x8   : > { %p162_p5 = scmp.lt.s32.totalorder (!%p133_p3), %s2432_s10, 1  ;;  %p164_p6 = scmp.lt.s32.totalorder (!%p133_p3), %s2428_s9, 2 }
   0x9   : > { %s3066_s15 = smov (%p26_p4, %s3064_s15), 0  ;;  %136 = sbr.rel (%p133_p3) target bundleno = 801 (0x321), region = 28 }
   0xa   : > { %p1891_p7 = scmp.ne.s32.totalorder (!%p133_p3), %s2428_s9, 0 }
   0xe   : > { %s3068_s10 = smov (!%p162_p5, %s2432_s10), 1 }
   0xf   : > { %s165_s16 = scalar_select %p164_p6, %s2428_s9, 2 }
  0x10   : > { %s2311_s17 = smul.u32 24, %s3068_s10 }
  0x11   : > { %s1887_s18 = sshll.u32 %s165_s16, 3  ;;  %183 = sbr.rel (%p1891_p7) target bundleno = 37 (0x25), region = 32 }
  0x12   : > { %s168_s19 = sadd.s32 %s2311_s17, %s1887_s18 }
  0x13   : > { %s1888_s20 = sshll.u32 %s168_s19, 3 }
  0x14   : > { %s2500_s23 = scalar_lea.vmem %s3054_s0, %s1888_s20  ;;  %s2505_s26 = scalar_lea.vmem %s3056_s2, %s1888_s20 }
  0x16   : > { %vm184_vm0 = vcmask 228352   ;;  %vm186_vm1 = vcmask 222208   ;;  %v2446_v0 = vmov 0.0  }
  0x17   : > { %185 = vst.msk [vmem:[#allocation2] sm:$0xff] %vm184_vm0, %v2446_v0  ;;  %188 = vst.msk [vmem:[#allocation2 + $0x10] sm:$0xff] %vm184_vm0, %v2446_v0 }
  0x18   : > { %190 = vst.msk [vmem:[#allocation2 + $0x20] sm:$0xff] %vm184_vm0, %v2446_v0  ;;  %192 = vst.msk [vmem:[#allocation2 + $0x30] sm:$0xff] %vm184_vm0, %v2446_v0 }
  0x19   : > { %194 = vst.msk [vmem:[#allocation2 + $0x40] sm:$0xff] %vm184_vm0, %v2446_v0  ;;  %196 = vst.msk [vmem:[#allocation2 + $0x50] sm:$0xff] %vm184_vm0, %v2446_v0 }
  0x1a   : > { %198 = vst.msk [vmem:[#allocation2 + $0x60] sm:$0xff] %vm184_vm0, %v2446_v0  ;;  %200 = vst.msk [vmem:[#allocation2 + $0x70] sm:$0xff] %vm184_vm0, %v2446_v0 }
  0x1b   : > { %202 = vst.msk [vmem:[#allocation2 + $0x80] sm:$0xff] %vm184_vm0, %v2446_v0  ;;  %204 = vst.msk [vmem:[#allocation2 + $0x90] sm:$0xff] %vm184_vm0, %v2446_v0 }
  0x1c   : > { %206 = vst.msk [vmem:[#allocation3] sm:$0xff] %vm184_vm0, %v2446_v0  ;;  %207 = vst.msk [vmem:[#allocation3 + $0x8] sm:$0xff] %vm184_vm0, %v2446_v0 }
  0x1d   : > { %208 = vst.msk [vmem:[#allocation3 + $0x10] sm:$0xff] %vm184_vm0, %v2446_v0  ;;  %209 = vst.msk [vmem:[#allocation3 + $0x18] sm:$0xff] %vm184_vm0, %v2446_v0 }
  0x1e   : > { %210 = vst.msk [vmem:[#allocation3 + $0x20] sm:$0xff] %vm184_vm0, %v2446_v0  ;;  %211 = vst.msk [vmem:[#allocation3 + $0x28] sm:$0xff] %vm184_vm0, %v2446_v0 }
  0x1f   : > { %212 = vst.msk [vmem:[#allocation3 + $0x30] sm:$0xff] %vm184_vm0, %v2446_v0  ;;  %213 = vst.msk [vmem:[#allocation3 + $0x38] sm:$0xff] %vm184_vm0, %v2446_v0 }
  0x20   : > { %187 = vst.msk [vmem:[#allocation2 + $0x8] sm:$0x3] %vm186_vm1, %v2446_v0  ;;  %189 = vst.msk [vmem:[#allocation2 + $0x18] sm:$0x3] %vm186_vm1, %v2446_v0 }
  0x21   : > { %191 = vst.msk [vmem:[#allocation2 + $0x28] sm:$0x3] %vm186_vm1, %v2446_v0  ;;  %193 = vst.msk [vmem:[#allocation2 + $0x38] sm:$0x3] %vm186_vm1, %v2446_v0 }
  0x22   : > { %195 = vst.msk [vmem:[#allocation2 + $0x48] sm:$0x3] %vm186_vm1, %v2446_v0  ;;  %197 = vst.msk [vmem:[#allocation2 + $0x58] sm:$0x3] %vm186_vm1, %v2446_v0 }
  0x23   : > { %199 = vst.msk [vmem:[#allocation2 + $0x68] sm:$0x3] %vm186_vm1, %v2446_v0  ;;  %201 = vst.msk [vmem:[#allocation2 + $0x78] sm:$0x3] %vm186_vm1, %v2446_v0 }
  0x24   : > { %203 = vst.msk [vmem:[#allocation2 + $0x88] sm:$0x3] %vm186_vm1, %v2446_v0  ;;  %205 = vst.msk [vmem:[#allocation2 + $0x98] sm:$0x3] %vm186_vm1, %v2446_v0 }
  0x25 PF: > { %v245_v1 = vld [vmem:[%s3055_s1 + $0x18] sm:$0xf]  ;;  %vm271_vm2 = vcmask 1043456   ;;  %v244_v2 = vld [vmem:[%s3055_s1 + $0x10] sm:$0xff]  ;;  %v243_v3 = vld [vmem:[%s3055_s1 + $0x8] sm:$0xff]  ;;  %vm246_vm3 = vcmask 228352  }
  0x26   : > { %2303 = vmatprep.subr.msk.mxu1 %vm271_vm2, %v245_v1  ;;  %2123 = vmatprep.subr.msk.mxu0 %vm271_vm2, %v245_v1  ;;  %v242_v4 = vld [vmem:[%s3055_s1] sm:$0xff]  ;;  %v2555_v7 = vld [vmem:[#allocation2 + $0x50] sm:$0xff]  ;;  %v1904_v8 = vld [vmem:[%s3055_s1 + $0x38] sm:$0xf]  ;;  %vm396_vm4 = vcmask 1046528   ;;  %vm558_vm5 = vcmask 1045504  }
  0x27   : > { %2307 = vmatpush3.msk.msra.mxu1 %vm271_vm2, %v245_v1  ;;  %2124 = vmatpush3.msk.msra.mxu0 %vm271_vm2, %v245_v1  ;;  %v2551_v5 = vld [vmem:[#allocation2 + $0x40] sm:$0xff]  ;;  %v2562_v9 = vld [vmem:[#allocation2 + $0x10] sm:$0xff]  ;;  %v1917_v10 = vld [vmem:[%s3055_s1 + $0x58] sm:$0xf]  ;;  %v412_v53 = vrot.slane %v2555_v7, 1  ;;  %v574_v62 = vrot.slane %v2555_v7, 2 }
  0x28   : > { %2304 = vmatprep.subr.mxu1 %v244_v2  ;;  %2125 = vmatprep.subr.mxu0 %v244_v2  ;;  %v2553_v6 = vld [vmem:[#allocation2] sm:$0xff]  ;;  %v1903_v11 = vld [vmem:[%s3055_s1 + $0x30] sm:$0xff]  ;;  %v215_v13 = vld [vmem:[#allocation2 + $0x8] sm:$0x3]  ;;  %v400_v21 = vrot.slane %v2562_v9, 1  ;;  %v562_v30 = vrot.slane %v2562_v9, 2 }
  0x29   : > { %2308 = vmatpush3.msra.mxu1 %v244_v2  ;;  %2126 = vmatpush3.msra.mxu0 %v244_v2  ;;  %v2575_v12 = vld [vmem:[#allocation2 + $0x60] sm:$0xff]  ;;  %v1916_v14 = vld [vmem:[%s3055_s1 + $0x50] sm:$0xff]  ;;  %v217_v15 = vld [vmem:[#allocation2 + $0x18] sm:$0x3]  ;;  %v397_v18 = vrot.slane %v2553_v6, 1  ;;  %v398_v20 = vrot.slane %v215_v13, 1 }
  0x2a   : > { %2305 = vmatprep.subr.mxu1 %v243_v3  ;;  %2127 = vmatprep.subr.mxu0 %v243_v3  ;;  %v2584_v16 = vld [vmem:[#allocation2 + $0x20] sm:$0xff]  ;;  %v2586_v17 = vld [vmem:[#allocation2 + $0x70] sm:$0xff]  ;;  %v1902_v19 = vld [vmem:[%s3055_s1 + $0x28] sm:$0xff]  ;;  %v401_v23 = vrot.slane %v217_v15, 1  ;;  %v559_v25 = vrot.slane %v2553_v6, 2  ;;  %v560_v28 = vrot.slane %v215_v13, 2 }
  0x2b   : > { %2309 = vmatpush3.msra.mxu1 %v243_v3  ;;  %2128 = vmatpush3.msra.mxu0 %v243_v3  ;;  %v2596_v22 = vld [vmem:[#allocation2 + $0x30] sm:$0xff]  ;;  %v219_v24 = vld [vmem:[#allocation2 + $0x28] sm:$0x3]  ;;  %v1901_v27 = vld [vmem:[%s3055_s1 + $0x20] sm:$0xff]  ;;  %v563_v31 = vrot.slane %v217_v15, 2  ;;  %v399_v32 = vsel %vm396_vm4, %v397_v18, %v398_v20  ;;  %v403_v34 = vrot.slane %v2584_v16, 1 }
  0x2c   : > { %2306 = vmatprep.subr.mxu1 %v242_v4  ;;  %2129 = vmatprep.subr.mxu0 %v242_v4  ;;  %v1915_v26 = vld [vmem:[%s3055_s1 + $0x48] sm:$0xff]  ;;  %v221_v29 = vld [vmem:[#allocation2 + $0x38] sm:$0x3]  ;;  %v1914_v33 = vld [vmem:[%s3055_s1 + $0x40] sm:$0xff]  ;;  %v404_v35 = vrot.slane %v219_v24, 1  ;;  %v2618_v36 = vsel %vm396_vm4, %v400_v21, %v401_v23  ;;  %v406_v37 = vrot.slane %v2596_v22, 1  ;;  %v561_v40 = vsel %vm558_vm5, %v559_v25, %v560_v28 }
  0x2d   : > { %2310 = vmatpush3.msra.mxu1 %v242_v4  ;;  %2137 = vmatprep.mubr.msk.f32.mxu1 %vm246_vm3, %v2551_v5  ;;  %v407_v38 = vrot.slane %v221_v29, 1  ;;  %v223_v39 = vld [vmem:[#allocation2 + $0x48] sm:$0x3]  ;;  %v1930_v41 = vld [vmem:[%s3055_s1 + $0x78] sm:$0xf]  ;;  %v565_v42 = vrot.slane %v2584_v16, 2  ;;  %v2628_v45 = vsel %vm558_vm5, %v562_v30, %v563_v31 }
  0x2e   : > { %2130 = vmatpush3.msra.mxu0 %v242_v4  ;;  %2131 = vmatprep.mubr.msk.f32.mxu0 %vm246_vm3, %v2553_v6  ;;  %v566_v43 = vrot.slane %v219_v24, 2  ;;  %v225_v44 = vld [vmem:[#allocation2 + $0x58] sm:$0x3]  ;;  %v568_v46 = vrot.slane %v2596_v22, 2  ;;  %v569_v47 = vrot.slane %v221_v29, 2  ;;  %v2637_v49 = vsel %vm396_vm4, %v403_v34, %v404_v35  ;;  %v1929_v57 = vld [vmem:[%s3055_s1 + $0x70] sm:$0xff] }
  0x2f   : > { %2138 = vmatmul.mubr.msk.f32.vlgmr.msra.gmra.mxu1 %vm246_vm3, %v2555_v7  ;;  %2143 = vmatprep.subr.msk.mxu1 %vm271_vm2, %v1904_v8  ;;  %v1943_v48 = vld [vmem:[%s3055_s1 + $0x98] sm:$0xf]  ;;  %v409_v50 = vrot.slane %v2551_v5, 1  ;;  %v410_v51 = vrot.slane %v223_v39, 1  ;;  %v2643_v52 = vsel %vm396_vm4, %v406_v37, %v407_v38  ;;  %v413_v54 = vrot.slane %v225_v44, 1  ;;  %v1942_v0 = vld [vmem:[%s3055_s1 + $0x90] sm:$0xff] }
  0x30   : > { %2132 = vmatmul.mubr.msk.f32.vlgmr.msra.gmra.mxu0 %vm246_vm3, %v2562_v9  ;;  %2144 = vmatpush3.msk.msra.mxu1 %vm271_vm2, %v1904_v8  ;;  %v227_v55 = vld [vmem:[#allocation2 + $0x68] sm:$0x3]  ;;  %v2650_v56 = vsel %vm558_vm5, %v565_v42, %v566_v43  ;;  %v571_v58 = vrot.slane %v2551_v5, 2  ;;  %v572_v59 = vrot.slane %v223_v39, 2  ;;  %v229_v60 = vld [vmem:[#allocation2 + $0x78] sm:$0x3]  ;;  %v2660_v61 = vsel %vm558_vm5, %v568_v46, %v569_v47 }
  0x31   : > { %2163 = vmatprep.subr.msk.mxu0 %vm271_vm2, %v1917_v10  ;;  %2145 = vmatprep.subr.mxu1 %v1903_v11  ;;  %v575_v63 = vrot.slane %v225_v44, 2  ;;  %v2670_v1 = vsel %vm396_vm4, %v409_v50, %v410_v51  ;;  %v415_v2 = vrot.slane %v2575_v12, 1  ;;  %v416_v3 = vrot.slane %v227_v55, 1  ;;  %v1941_v20 = vld [vmem:[%s3055_s1 + $0x88] sm:$0xff]  ;;  %v1927_v25 = vld [vmem:[%s3055_s1 + $0x60] sm:$0xff]  ;;  %v1968_v30 = vld [vmem:[%s3055_s1 + $0xd0] sm:$0xff] }
  0x32   : > { %2164 = vmatpush3.msk.msra.mxu0 %vm271_vm2, %v1917_v10  ;;  %2140 = vmatprep.mubr.msk.f32.mxu1 %vm246_vm3, %v2575_v12  ;;  %v2676_v4 = vsel %vm396_vm4, %v412_v53, %v413_v54  ;;  %v418_v6 = vrot.slane %v2586_v17, 1  ;;  %v419_v8 = vrot.slane %v229_v60, 1  ;;  %v2682_v10 = vsel %vm558_vm5, %v571_v58, %v572_v59  ;;  %v1956_v28 = vld [vmem:[%s3055_s1 + $0xb8] sm:$0xf]  ;;  %v2757_v31 = vld [vmem:[#allocation2 + $0x80] sm:$0xff]  ;;  %v1981_v42 = vld [vmem:[%s3055_s1 + $0xf0] sm:$0xff] }
  0x33   : > { %2146 = vmatpush3.msra.mxu1 %v1903_v11  ;;  %2165 = vmatprep.subr.mxu0 %v1916_v14  ;;  %v1928_v11 = vld [vmem:[%s3055_s1 + $0x68] sm:$0xff]  ;;  %v577_v13 = vrot.slane %v2575_v12, 2  ;;  %v2691_v15 = vsel %vm558_vm5, %v574_v62, %v575_v63  ;;  %v580_v18 = vrot.slane %v2586_v17, 2  ;;  %v2700_v21 = vsel %vm396_vm4, %v415_v2, %v416_v3  ;;  %v1969_v29 = vld [vmem:[%s3055_s1 + $0xd8] sm:$0xf]  ;;  %v1953_v37 = vld [vmem:[%s3055_s1 + $0xa0] sm:$0xff] }
  0x34   : > { %2134 = vmatprep.mubr.msk.f32.mxu0 %vm246_vm3, %v2584_v16  ;;  %2141 = vmatmul.mubr.msk.f32.gmra.mxu1 %vm246_vm3, %v2586_v17  ;;  %v2705_v23 = vsel %vm396_vm4, %v418_v6, %v419_v8  ;;  %v845_v34 = vrot.slane %v2757_v31, 1  ;;  %v1966_v39 = vld [vmem:[%s3055_s1 + $0xc0] sm:$0xff]  ;;  %v1980_v44 = vld [vmem:[%s3055_s1 + $0xe8] sm:$0xff]  ;;  %v232_v46 = vld [vmem:[#allocation2 + $0x90] sm:$0xff]  ;;  %s2448_s8 = smov 28   ;;  %s2449_s9 = smov 56  }
  0x35   : > { %2147 = vmatprep.subr.mxu1 %v1902_v19  ;;  %2166 = vmatpush3.msra.mxu0 %v1916_v14  ;;  %v578_v14 = vrot.slane %v227_v55, 2  ;;  %v1222_v47 = vrot.slane %v232_v46, 1  ;;  %s2450_s10 = smov 100   ;;  %s2451_s16 = smov 44  }
  0x36   : > { %2135 = vmatmul.mubr.msk.f32.gmra.mxu0 %vm246_vm3, %v2596_v22  ;;  %2148 = vmatpush3.msra.mxu1 %v1902_v19  ;;  %v581_v19 = vrot.slane %v229_v60, 2 }
  0x37   : > { %2167 = vmatprep.subr.mxu0 %v1915_v26  ;;  %2149 = vmatprep.subr.mxu1 %v1901_v27  ;;  %v2710_v24 = vsel %vm558_vm5, %v577_v13, %v578_v14 }
  0x38   : > { %2168 = vmatpush3.msra.mxu0 %v1915_v26  ;;  %2150 = vmatpush3.msra.mxu1 %v1901_v27  ;;  %v2718_v26 = vsel %vm558_vm5, %v580_v18, %v581_v19  ;;  %v1940_v27 = vld [vmem:[%s3055_s1 + $0x80] sm:$0xff] }
  0x39   : > { %2151 = vmatprep.mubr.msk.f32.mxu1 %vm246_vm3, %v399_v32  ;;  %2169 = vmatprep.subr.mxu0 %v1914_v33  ;;  %v231_v32 = vld [vmem:[#allocation2 + $0x88] sm:$0x3] }
  0x3a   : > { %2152 = vmatmul.mubr.msk.f32.vlgmr.msra.gmra.mxu1 %vm246_vm3, %v2618_v36  ;;  %2170 = vmatpush3.msra.mxu0 %v1914_v33  ;;  %v1954_v33 = vld [vmem:[%s3055_s1 + $0xa8] sm:$0xff]  ;;  %v846_v35 = vrot.slane %v231_v32, 1  ;;  %v972_v43 = vrot.slane %v231_v32, 2 }
  0x3b   : > { %2171 = vmatprep.mubr.msk.f32.mxu0 %vm246_vm3, %v561_v40  ;;  %2183 = vmatprep.subr.msk.mxu1 %vm271_vm2, %v1930_v41  ;;  %v1982_v40 = vld [vmem:[%s3055_s1 + $0xf8] sm:$0xf] }
  0x3c   : > { %2172 = vmatmul.mubr.msk.f32.vlgmr.msra.gmra.mxu0 %vm246_vm3, %v2628_v45  ;;  %2184 = vmatpush3.msk.msra.mxu1 %vm271_vm2, %v1930_v41  ;;  %v2784_v38 = vsel %vm396_vm4, %v845_v34, %v846_v35  ;;  %v1995_v41 = vld [vmem:[%s3055_s1 + $0x118] sm:$0xf] }
  0x3d   : > { %2203 = vmatprep.subr.msk.mxu0 %vm271_vm2, %v1943_v48  ;;  %2154 = vmatprep.mubr.msk.f32.mxu1 %vm246_vm3, %v2637_v49  ;;  %v237_v35 = vld [vmem:[%s2500_s23 + $0x18] sm:$0xff] }
  0x3e   : > { %2204 = vmatpush3.msk.msra.mxu0 %vm271_vm2, %v1943_v48  ;;  %2155 = vmatmul.mubr.msk.f32.gmra.mxu1 %vm246_vm3, %v2643_v52 }
  0x3f   : > { %2174 = vmatprep.mubr.msk.f32.mxu0 %vm246_vm3, %v2650_v56  ;;  %2185 = vmatprep.subr.mxu1 %v1929_v57 }
  0x40   : > { %2175 = vmatmul.mubr.msk.f32.gmra.mxu0 %vm246_vm3, %v2660_v61  ;;  %2186 = vmatpush3.msra.mxu1 %v1929_v57 }
  0x41   : > { %2205 = vmatprep.subr.mxu0 %v1942_v0  ;;  %2157 = vmatprep.mubr.msk.f32.mxu1 %vm246_vm3, %v2670_v1 }
  0x42   : > { %2206 = vmatpush3.msra.mxu0 %v1942_v0  ;;  %2158 = vmatmul.mubr.msk.f32.gmra.mxu1 %vm246_vm3, %v2676_v4 }
  0x43   : > { %2177 = vmatprep.mubr.msk.f32.mxu0 %vm246_vm3, %v2682_v10  ;;  %2187 = vmatprep.subr.mxu1 %v1928_v11 }
  0x44   : > { %2178 = vmatmul.mubr.msk.f32.gmra.mxu0 %vm246_vm3, %v2691_v15  ;;  %2188 = vmatpush3.msra.mxu1 %v1928_v11 }
  0x45   : > { %2207 = vmatprep.subr.mxu0 %v1941_v20  ;;  %2160 = vmatprep.mubr.msk.f32.mxu1 %vm246_vm3, %v2700_v21 }
  0x46   : > { %2208 = vmatpush3.msra.mxu0 %v1941_v20  ;;  %2161 = vmatmul.mubr.msk.f32.gmra.mxu1 %vm246_vm3, %v2705_v23 }
  0x47   : > { %2180 = vmatprep.mubr.msk.f32.mxu0 %vm246_vm3, %v2710_v24  ;;  %2189 = vmatprep.subr.mxu1 %v1927_v25 }
  0x48   : > { %2181 = vmatmul.mubr.msk.f32.gmra.mxu0 %vm246_vm3, %v2718_v26  ;;  %2190 = vmatpush3.msra.mxu1 %v1927_v25 }
  0x49   : > { %2209 = vmatprep.subr.mxu0 %v1940_v27  ;;  %2191 = vmatprep.mubr.msk.f32.mxu1 %vm246_vm3, %v2562_v9  ;;  %v1955_v9 = vld [vmem:[%s3055_s1 + $0xb0] sm:$0xff] }
  0x4a   : > { %2210 = vmatpush3.msra.mxu0 %v1940_v27  ;;  %2192 = vmatmul.mubr.msk.f32.vlgmr.msra.gmra.mxu1 %vm246_vm3, %v2584_v16 }
  0x4b   : > { %2211 = vmatprep.mubr.msk.f32.mxu0 %vm246_vm3, %v2618_v36  ;;  %2223 = vmatprep.subr.msk.mxu1 %vm271_vm2, %v1956_v28  ;;  %v1967_v36 = vld [vmem:[%s3055_s1 + $0xc8] sm:$0xff] }
  0x4c   : > { %2212 = vmatmul.mubr.msk.f32.vlgmr.msra.gmra.mxu0 %vm246_vm3, %v2637_v49  ;;  %2224 = vmatpush3.msk.msra.mxu1 %vm271_vm2, %v1956_v28 }
  0x4d   : > { %2243 = vmatprep.subr.msk.mxu0 %vm271_vm2, %v1969_v29  ;;  %2194 = vmatprep.mubr.msk.f32.mxu1 %vm246_vm3, %v2596_v22 }
  0x4e   : > { %2244 = vmatpush3.msk.msra.mxu0 %vm271_vm2, %v1969_v29  ;;  %2195 = vmatmul.mubr.msk.f32.gmra.mxu1 %vm246_vm3, %v2551_v5  ;;  %v235_v29 = vld [vmem:[%s2500_s23 + $0x8] sm:$0xff] }
  0x4f   : > { %2214 = vmatprep.mubr.msk.f32.mxu0 %vm246_vm3, %v2643_v52  ;;  %2225 = vmatprep.subr.mxu1 %v1955_v9 }
  0x50   : > { %2215 = vmatmul.mubr.msk.f32.gmra.mxu0 %vm246_vm3, %v2670_v1  ;;  %2226 = vmatpush3.msra.mxu1 %v1955_v9 }
  0x51   : > { %2245 = vmatprep.subr.mxu0 %v1968_v30  ;;  %2197 = vmatprep.mubr.msk.f32.mxu1 %vm246_vm3, %v2555_v7 }
  0x52   : > { %2246 = vmatpush3.msra.mxu0 %v1968_v30  ;;  %2198 = vmatmul.mubr.msk.f32.gmra.mxu1 %vm246_vm3, %v2575_v12 }
  0x53   : > { %2217 = vmatprep.mubr.msk.f32.mxu0 %vm246_vm3, %v2676_v4  ;;  %2227 = vmatprep.subr.mxu1 %v1954_v33 }
  0x54   : > { %2218 = vmatmul.mubr.msk.f32.gmra.mxu0 %vm246_vm3, %v2700_v21  ;;  %2228 = vmatpush3.msra.mxu1 %v1954_v33 }
  0x55   : > { %2247 = vmatprep.subr.mxu0 %v1967_v36  ;;  %2200 = vmatprep.mubr.msk.f32.mxu1 %vm246_vm3, %v2586_v17 }
  0x56   : > { %2248 = vmatpush3.msra.mxu0 %v1967_v36  ;;  %2201 = vmatmul.mubr.msk.f32.gmra.mxu1 %vm246_vm3, %v2757_v31 }
  0x57   : > { %2220 = vmatprep.mubr.msk.f32.mxu0 %vm246_vm3, %v2705_v23  ;;  %2229 = vmatprep.subr.mxu1 %v1953_v37 }
  0x58   : > { %2221 = vmatmul.mubr.msk.f32.gmra.mxu0 %vm246_vm3, %v2784_v38  ;;  %2230 = vmatpush3.msra.mxu1 %v1953_v37 }
  0x59   : > { %2249 = vmatprep.subr.mxu0 %v1966_v39  ;;  %2231 = vmatprep.mubr.msk.f32.mxu1 %vm246_vm3, %v2628_v45  ;;  %v1979_v45 = vld [vmem:[%s3055_s1 + $0xe0] sm:$0xff] }
  0x5a   : > { %2250 = vmatpush3.msra.mxu0 %v1966_v39  ;;  %2232 = vmatmul.mubr.msk.f32.vlgmr.msra.gmra.mxu1 %vm246_vm3, %v2650_v56 }
  0x5b   : > { %2251 = vmatprep.mubr.msk.f32.mxu0 %vm246_vm3, %v2584_v16  ;;  %2263 = vmatprep.subr.msk.mxu1 %vm271_vm2, %v1982_v40  ;;  %v1994_v16 = vld [vmem:[%s3055_s1 + $0x110] sm:$0xff] }
  0x5c   : > { %2252 = vmatmul.mubr.msk.f32.vlgmr.msra.gmra.mxu0 %vm246_vm3, %v2596_v22  ;;  %2264 = vmatpush3.msk.msra.mxu1 %vm271_vm2, %v1982_v40  ;;  %v971_v22 = vrot.slane %v2757_v31, 2  ;;  %v236_v40 = vld [vmem:[%s2500_s23 + $0x10] sm:$0xff] }
  0x5d   : > { %2283 = vmatprep.subr.msk.mxu0 %vm271_vm2, %v1995_v41  ;;  %2234 = vmatprep.mubr.msk.f32.mxu1 %vm246_vm3, %v2660_v61 }
  0x5e   : > { %2284 = vmatpush3.msk.msra.mxu0 %vm271_vm2, %v1995_v41  ;;  %2235 = vmatmul.mubr.msk.f32.gmra.mxu1 %vm246_vm3, %v2682_v10 }
  0x5f   : > { %2254 = vmatprep.mubr.msk.f32.mxu0 %vm246_vm3, %v2551_v5  ;;  %2265 = vmatprep.subr.mxu1 %v1981_v42  ;;  %v1993_v5 = vld [vmem:[%s3055_s1 + $0x108] sm:$0xff] }
  0x60   : > { %2255 = vmatmul.mubr.msk.f32.gmra.mxu0 %vm246_vm3, %v2555_v7  ;;  %2266 = vmatpush3.msra.mxu1 %v1981_v42  ;;  %v973_v7 = vsel %vm558_vm5, %v971_v22, %v972_v43 }
  0x61   : > { %2285 = vmatprep.subr.mxu0 %v1994_v16  ;;  %2237 = vmatprep.mubr.msk.f32.mxu1 %vm246_vm3, %v2691_v15 }
  0x62   : > { %2286 = vmatpush3.msra.mxu0 %v1994_v16  ;;  %2238 = vmatmul.mubr.msk.f32.gmra.mxu1 %vm246_vm3, %v2710_v24 }
  0x63   : > { %2257 = vmatprep.mubr.msk.f32.mxu0 %vm246_vm3, %v2575_v12  ;;  %2267 = vmatprep.subr.mxu1 %v1980_v44  ;;  %v1992_v12 = vld [vmem:[%s3055_s1 + $0x100] sm:$0xff] }
  0x64   : > { %2258 = vmatmul.mubr.msk.f32.gmra.mxu0 %vm246_vm3, %v2586_v17  ;;  %2268 = vmatpush3.msra.mxu1 %v1980_v44  ;;  %v233_v17 = vld [vmem:[#allocation2 + $0x98] sm:$0x3] }
  0x65   : > { %2287 = vmatprep.subr.mxu0 %v1993_v5  ;;  %2240 = vmatprep.mubr.msk.f32.mxu1 %vm246_vm3, %v2718_v26  ;;  %v1223_v48 = vrot.slane %v233_v17, 1  ;;  %v1349_v50 = vrot.slane %v233_v17, 2 }
  0x66   : > { %2288 = vmatpush3.msra.mxu0 %v1993_v5  ;;  %2241 = vmatmul.mubr.msk.f32.gmra.mxu1 %vm246_vm3, %v973_v7  ;;  %v239_v5 = vld [vmem:[%s2500_s23 + $0x28] sm:$0xff] }
  0x67   : > { %2260 = vmatprep.mubr.msk.f32.mxu0 %vm246_vm3, %v2757_v31  ;;  %2269 = vmatprep.subr.mxu1 %v1979_v45  ;;  %v1224_v51 = vsel %vm396_vm4, %v1222_v47, %v1223_v48  ;;  %v234_v31 = vld [vmem:[%s2500_s23] sm:$0xff] }
  0x68   : > { %2261 = vmatmul.mubr.msk.f32.gmra.mxu0 %vm246_vm3, %v232_v46  ;;  %2270 = vmatpush3.msra.mxu1 %v1979_v45 }
  0x69   : > { %2289 = vmatprep.subr.mxu0 %v1992_v12  ;;  %2271 = vmatprep.mubr.msk.f32.mxu1 %vm246_vm3, %v2637_v49  ;;  %v1348_v49 = vrot.slane %v232_v46, 2 }
  0x6a   : > { %2290 = vmatpush3.msra.mxu0 %v1992_v12  ;;  %2272 = vmatmul.mubr.msk.f32.vlgmr.msra.gmra.mxu1 %vm246_vm3, %v2643_v52 }
  0x6b   : > { %2291 = vmatprep.mubr.msk.f32.mxu0 %vm246_vm3, %v2650_v56  ;;  %2274 = vmatprep.mubr.msk.f32.mxu1 %vm246_vm3, %v2670_v1  ;;  %v1350_v52 = vsel %vm558_vm5, %v1348_v49, %v1349_v50 }
  0x6c   : > { %2292 = vmatmul.mubr.msk.f32.vlgmr.msra.gmra.mxu0 %vm246_vm3, %v2660_v61 }
  0x6d   : > { %2294 = vmatprep.mubr.msk.f32.mxu0 %vm246_vm3, %v2682_v10 }
  0x6e   : > { %2275 = vmatmul.mubr.msk.f32.gmra.mxu1 %vm246_vm3, %v2676_v4 }
  0x6f   : > { %2277 = vmatprep.mubr.msk.f32.mxu1 %vm246_vm3, %v2700_v21 }
  0x70   : > { %2295 = vmatmul.mubr.msk.f32.gmra.mxu0 %vm246_vm3, %v2691_v15 }
  0x71   : > { %2297 = vmatprep.mubr.msk.f32.mxu0 %vm246_vm3, %v2710_v24 }
  0x72   : > { %2278 = vmatmul.mubr.msk.f32.gmra.mxu1 %vm246_vm3, %v2705_v23 }
  0x73   : > { %2280 = vmatprep.mubr.msk.f32.mxu1 %vm246_vm3, %v2784_v38 }
  0x74   : > { %2298 = vmatmul.mubr.msk.f32.gmra.mxu0 %vm246_vm3, %v2718_v26 }
  0x75   : > { %2300 = vmatprep.mubr.msk.f32.mxu0 %vm246_vm3, %v973_v7  ;;  %v238_v7 = vld [vmem:[%s2500_s23 + $0x20] sm:$0xff] }
  0x76   : > { %2281 = vmatmul.mubr.msk.f32.gmra.mxu1 %vm246_vm3, %v1224_v51 }
  0x78   : > { %2301 = vmatmul.mubr.msk.f32.gmra.mxu0 %vm246_vm3, %v1350_v52 }
  0xef   : > { %v2139_v53 = vpop.f32.mrf.mxu1 }
  0xf0   : > { %v2133_v54 = vpop.f32.mrf.mxu0  ;;  %v385_v51 = vadd.f32 %v2139_v53, %v239_v5 }
  0xf1   : > { %v361_v55 = vpop.f32.mrf.mxu1  ;;  %v381_v34 = vadd.f32 %v2133_v54, %v235_v29  ;;  %v240_v29 = vld [vmem:[%s2500_s23 + $0x30] sm:$0xff] }
  0xf2   : > { %v341_v56 = vpop.f32.mrf.mxu0  ;;  %v384_v52 = vadd.f32 %v361_v55, %v238_v7 }
  0xf3   : > { %v380_v38 = vadd.f32 %v341_v56, %v234_v31 }
  0xf4   : > { %v2886_v57 = vpop.f32.mrf.mxu1 }
  0xf6   : > { %v2136_v58 = vpop.f32.mrf.mxu0  ;;  %v2888_v59 = vpop.f32.mrf.mxu1 }
  0xf7   : > { %v383_v16 = vadd.f32 %v2136_v58, %v237_v35  ;;  %v241_v58 = vld [vmem:[%s2500_s23 + $0x38] sm:$0xff]  ;;  %v386_v53 = vadd.f32 %v2888_v59, %v240_v29  ;;  %s2447_s23 = smov 72  }
  0xf8   : > { %v351_v60 = vpop.f32.mrf.mxu0 }
  0xf9   : > { %v382_v45 = vadd.f32 %v351_v60, %v236_v40 }
  0xfa   : > { %v2153_v61 = vpop.f32.mrf.mxu1 }
  0xfb   : > { %v551_v39 = vadd.f32 %v2153_v61, %v381_v34 }
  0xfc   : > { %v2173_v62 = vpop.f32.mrf.mxu0  ;;  %v511_v63 = vpop.f32.mrf.mxu1 }
  0xfd   : > { %v550_v22 = vadd.f32 %v511_v63, %v380_v38  ;;  %v713_v46 = vadd.f32 %v2173_v62, %v551_v39  ;;  %v387_v39 = vadd.f32 %v2886_v57, %v241_v58 }
  0xfe   : > { %v673_v0 = vpop.f32.mrf.mxu0  ;;  %v2156_v1 = vpop.f32.mrf.mxu1 }
  0xff   : > { %v553_v12 = vadd.f32 %v2156_v1, %v383_v16  ;;  %v712_v48 = vadd.f32 %v673_v0, %v550_v22 }
 0x100   : > { %v2176_v2 = vpop.f32.mrf.mxu0  ;;  %v521_v3 = vpop.f32.mrf.mxu1 }
 0x101   : > { %v552_v49 = vadd.f32 %v521_v3, %v382_v45  ;;  %v715_v61 = vadd.f32 %v2176_v2, %v553_v12 }
 0x102   : > { %v683_v4 = vpop.f32.mrf.mxu0  ;;  %v2159_v6 = vpop.f32.mrf.mxu1 }
 0x103   : > { %v555_v31 = vadd.f32 %v2159_v6, %v385_v51  ;;  %v714_v60 = vadd.f32 %v683_v4, %v552_v49 }
 0x104   : > { %v2890_v8 = vpop.f32.mrf.mxu0  ;;  %v531_v10 = vpop.f32.mrf.mxu1 }
 0x105   : > { %v554_v34 = vadd.f32 %v531_v10, %v384_v52  ;;  %v717_v2 = vadd.f32 %v2890_v8, %v555_v31 }
 0x106   : > { %v2892_v11 = vpop.f32.mrf.mxu0  ;;  %v2894_v13 = vpop.f32.mrf.mxu1 }
 0x107   : > { %v557_v6 = vadd.f32 %v2894_v13, %v387_v39 }
 0x108   : > { %v2896_v14 = vpop.f32.mrf.mxu0  ;;  %v2898_v15 = vpop.f32.mrf.mxu1 }
 0x109   : > { %v556_v4 = vadd.f32 %v2898_v15, %v386_v53  ;;  %v719_v8 = vadd.f32 %v2896_v14, %v557_v6 }
 0x10a   : > { %v2900_v18 = vpop.f32.mrf.mxu0  ;;  %v2193_v19 = vpop.f32.mrf.mxu1 }
 0x10b   : > { %v837_v50 = vadd.f32 %v2193_v19, %v713_v46  ;;  %v718_v13 = vadd.f32 %v2900_v18, %v556_v4  ;;  %v1523_v4 = vld [vmem:[#allocation3 + $0x8] sm:$0xff] }
 0x10c   : > { %v2213_v20 = vpop.f32.mrf.mxu0  ;;  %v797_v21 = vpop.f32.mrf.mxu1 }
 0x10d   : > { %v836_v63 = vadd.f32 %v797_v21, %v712_v48  ;;  %v964_v62 = vadd.f32 %v2213_v20, %v837_v50  ;;  %v716_v21 = vadd.f32 %v2892_v11, %v554_v34 }
 0x10e   : > { %v924_v23 = vpop.f32.mrf.mxu0  ;;  %v2196_v24 = vpop.f32.mrf.mxu1 }
 0x10f   : > { %v839_v1 = vadd.f32 %v2196_v24, %v715_v61  ;;  %v963_v55 = vadd.f32 %v924_v23, %v836_v63 }
 0x110   : > { %v2216_v25 = vpop.f32.mrf.mxu0  ;;  %v807_v26 = vpop.f32.mrf.mxu1 }
 0x111   : > { %v838_v19 = vadd.f32 %v807_v26, %v714_v60  ;;  %v966_v20 = vadd.f32 %v2216_v25, %v839_v1 }
 0x112   : > { %v2902_v27 = vpop.f32.mrf.mxu0  ;;  %v2199_v28 = vpop.f32.mrf.mxu1 }
 0x113   : > { %v841_v57 = vadd.f32 %v2199_v28, %v717_v2  ;;  %v965_v59 = vadd.f32 %v2902_v27, %v838_v19 }
 0x114   : > { %v2905_v9 = vpop.f32.mrf.mxu0  ;;  %v817_v30 = vpop.f32.mrf.mxu1 }
 0x115   : > { %v840_v22 = vadd.f32 %v817_v30, %v716_v21  ;;  %v968_v15 = vadd.f32 %v2905_v9, %v841_v57  ;;  %v1526_v57 = vld [vmem:[#allocation3 + $0x20] sm:$0xff] }
 0x116   : > { %v2908_v32 = vpop.f32.mrf.mxu0  ;;  %v2910_v33 = vpop.f32.mrf.mxu1 }
 0x117   : > { %v967_v25 = vadd.f32 %v2908_v32, %v840_v22  ;;  %v843_v28 = vadd.f32 %v2910_v33, %v719_v8  ;;  %v1527_v22 = vld [vmem:[#allocation3 + $0x28] sm:$0xff] }
 0x118   : > { %v2913_v36 = vpop.f32.mrf.mxu0  ;;  %v2915_v37 = vpop.f32.mrf.mxu1 }
 0x119   : > { %v842_v27 = vadd.f32 %v2915_v37, %v718_v13  ;;  %v970_v9 = vadd.f32 %v2913_v36, %v843_v28 }
 0x11a   : > { %v2918_v41 = vpop.f32.mrf.mxu0  ;;  %v2233_v42 = vpop.f32.mrf.mxu1 }
 0x11b   : > { %v1090_v40 = vadd.f32 %v2233_v42, %v964_v62  ;;  %v969_v37 = vadd.f32 %v2918_v41, %v842_v27 }
 0x11c   : > { %v2253_v43 = vpop.f32.mrf.mxu0  ;;  %v1050_v44 = vpop.f32.mrf.mxu1 }
 0x11d   : > { %v1089_v24 = vadd.f32 %v1050_v44, %v963_v55  ;;  %v1214_v23 = vadd.f32 %v2253_v43, %v1090_v40 }
 0x11e   : > { %v1174_v17 = vpop.f32.mrf.mxu0  ;;  %v2236_v47 = vpop.f32.mrf.mxu1 }
 0x11f   : > { %v1092_v26 = vadd.f32 %v2236_v47, %v966_v20  ;;  %v1213_v45 = vadd.f32 %v1174_v17, %v1089_v24  ;;  %v1524_v20 = vld [vmem:[#allocation3 + $0x10] sm:$0xff]  ;;  %v1525_v24 = vld [vmem:[#allocation3 + $0x18] sm:$0xff] }
 0x120   : > { %v2256_v54 = vpop.f32.mrf.mxu0  ;;  %v1060_v56 = vpop.f32.mrf.mxu1 }
 0x121   : > { %v1091_v46 = vadd.f32 %v1060_v56, %v965_v59  ;;  %v1216_v43 = vadd.f32 %v2256_v54, %v1092_v26 }
 0x122   : > { %v1184_v35 = vpop.f32.mrf.mxu0  ;;  %v2239_v38 = vpop.f32.mrf.mxu1 }
 0x123   : > { %v1094_v48 = vadd.f32 %v2239_v38, %v968_v15  ;;  %v1215_v17 = vadd.f32 %v1184_v35, %v1091_v46 }
 0x124   : > { %v2259_v0 = vpop.f32.mrf.mxu0  ;;  %v1070_v3 = vpop.f32.mrf.mxu1 }
 0x125   : > { %v1093_v50 = vadd.f32 %v1070_v3, %v967_v25  ;;  %v1218_v58 = vadd.f32 %v2259_v0, %v1094_v48 }
 0x126   : > { %v1194_v10 = vpop.f32.mrf.mxu0  ;;  %v2242_v16 = vpop.f32.mrf.mxu1 }
 0x127   : > { %v1217_v29 = vadd.f32 %v1194_v10, %v1093_v50  ;;  %v1096_v31 = vadd.f32 %v2242_v16, %v970_v9  ;;  %v1522_v16 = vld [vmem:[#allocation3] sm:$0xff] }
 0x128   : > { %v2262_v5 = vpop.f32.mrf.mxu0  ;;  %v1080_v7 = vpop.f32.mrf.mxu1 }
 0x129   : > { %v1095_v34 = vadd.f32 %v1080_v7, %v969_v37  ;;  %v1220_v39 = vadd.f32 %v2262_v5, %v1096_v31  ;;  %v1528_v5 = vld [vmem:[#allocation3 + $0x30] sm:$0xff]  ;;  %v1529_v7 = vld [vmem:[#allocation3 + $0x38] sm:$0xff] }
 0x12a   : > { %v1204_v42 = vpop.f32.mrf.mxu0  ;;  %v2273_v11 = vpop.f32.mrf.mxu1 }
 0x12b   : > { %v1341_v12 = vadd.f32 %v2273_v11, %v1214_v23  ;;  %v1219_v3 = vadd.f32 %v1204_v42, %v1095_v34 }
 0x12c   : > { %v2293_v30 = vpop.f32.mrf.mxu0  ;;  %v1301_v44 = vpop.f32.mrf.mxu1 }
 0x12d   : > { %v2937_v47 = vadd.f32 %v2293_v30, %v1341_v12  ;;  %v1340_v14 = vadd.f32 %v1301_v44, %v1213_v45 }
 0x12e   : > { %v1427_v49 = vpop.f32.mrf.mxu0  ;;  %v2276_v18 = vpop.f32.mrf.mxu1 }
 0x12f   : > { %v1343_v51 = vadd.f32 %v2276_v18, %v1216_v43  ;;  %1580 = vrot.lane.b32.xlu0 %v2937_v47, %s2447_s23  ;;  %v1466_v52 = vadd.f32 %v1427_v49, %v1340_v14  ;;  %v2006_v59 = vmul.f32 -1.442695, %v2937_v47 }
 0x130   : > { %v2296_v32 = vpop.f32.mrf.mxu0  ;;  %v1311_v33 = vpop.f32.mrf.mxu1 }
 0x131   : > { %v1469_v54 = vadd.f32 %v2296_v32, %v1343_v51  ;;  %v1342_v56 = vadd.f32 %v1311_v33, %v1215_v17  ;;  %v2005_v23 = vmul.f32 -1.442695, %v1466_v52  ;;  %2358 = vpow2.f32 %v2006_v59 }
 0x132   : > { %v1437_v61 = vpop.f32.mrf.mxu0  ;;  %v2279_v63 = vpop.f32.mrf.mxu1 }
 0x133   : > { %1578 = vrot.lane.b32.xlu0 %v1466_v52, %s2447_s23  ;;  %1584 = vrot.lane.b32.xlu1 %v1469_v54, %s2447_s23  ;;  %v1468_v36 = vadd.f32 %v1437_v61, %v1342_v56  ;;  %v1345_v60 = vadd.f32 %v2279_v63, %v1218_v58  ;;  %v2008_v26 = vmul.f32 -1.442695, %v1469_v54  ;;  %2360 = vpow2.f32 %v2005_v23 }
 0x134   : > { %v1321_v35 = vpop.f32.mrf.mxu1  ;;  %v2299_v38 = vpop.f32.mrf.mxu0 }
 0x135   : > { %v1344_v62 = vadd.f32 %v1321_v35, %v1217_v29  ;;  %v1471_v19 = vadd.f32 %v2299_v38, %v1345_v60  ;;  %2362 = vpow2.f32 %v2008_v26  ;;  %v2007_v8 = vmul.f32 -1.442695, %v1468_v36 }
 0x136   : > { %v2282_v1 = vpop.f32.mrf.mxu1  ;;  %v1447_v41 = vpop.f32.mrf.mxu0 }
 0x137   : > { %v1470_v53 = vadd.f32 %v1447_v41, %v1344_v62  ;;  %1582 = vrot.lane.b32.xlu1 %v1468_v36, %s2447_s23  ;;  %v1347_v40 = vadd.f32 %v2282_v1, %v1220_v39  ;;  %v2010_v42 = vmul.f32 -1.442695, %v1471_v19  ;;  %2364 = vpow2.f32 %v2007_v8 }
 0x138   : > { %v1331_v0 = vpop.f32.mrf.mxu1  ;;  %v2302_v55 = vpop.f32.mrf.mxu0 }
 0x139   : > { %v1346_v2 = vadd.f32 %v1331_v0, %v1219_v3  ;;  %1586 = vrot.lane.b32.xlu0 %v1470_v53, %s2447_s23  ;;  %v1473_v10 = vadd.f32 %v2302_v55, %v1347_v40  ;;  %v2009_v11 = vmul.f32 -1.442695, %v1470_v53  ;;  %2366 = vpow2.f32 %v2010_v42 }
 0x13a   : > { %v1457_v21 = vpop.f32.mrf.mxu0 }
 0x13b   : > { %v1472_v6 = vadd.f32 %v1457_v21, %v1346_v2  ;;  %1588 = vrot.lane.b32.xlu1 %v1471_v19, %s2447_s23  ;;  %v2012_v13 = vmul.f32 -1.442695, %v1473_v10  ;;  %2368 = vpow2.f32 %v2009_v11 }
 0x13d   : > { %1590 = vrot.lane.b32.xlu0 %v1472_v6, %s2447_s23  ;;  %v2011_v45 = vmul.f32 -1.442695, %v1472_v6  ;;  %2370 = vpow2.f32 %v2012_v13 }
 0x13e   : > { %v2359_v46 = vpop.eup %2358 }
 0x13f   : > { %1592 = vrot.lane.b32.xlu1 %v1473_v10, %s2447_s23  ;;  %v1499_v15 = vadd.f32 1.0, %v2359_v46  ;;  %2372 = vpow2.f32 %v2011_v45 }
 0x140   : > { %v2361_v12 = vpop.eup %2360 }
 0x141   : > { %1538 = vrot.lane.b32.xlu0 %v1522_v16, %s2448_s8  ;;  %v1498_v28 = vadd.f32 1.0, %v2361_v12  ;;  %2374 = vrcp.f32 %v1499_v15 }
 0x142   : > { %v2363_v25 = vpop.eup %2362 }
 0x143   : > { %1540 = vrot.lane.b32.xlu1 %v1523_v4, %s2448_s8  ;;  %v1501_v30 = vadd.f32 1.0, %v2363_v25  ;;  %2376 = vrcp.f32 %v1498_v28 }
 0x144   : > { %v2365_v44 = vpop.eup %2364 }
 0x145   : > { %1542 = vrot.lane.b32.xlu0 %v1524_v20, %s2448_s8  ;;  %2378 = vrcp.f32 %v1501_v30  ;;  %v1500_v43 = vadd.f32 1.0, %v2365_v44 }
 0x146   : > { %v2367_v27 = vpop.eup %2366 }
 0x147   : > { %1544 = vrot.lane.b32.xlu1 %v1525_v24, %s2448_s8  ;;  %v1503_v14 = vadd.f32 1.0, %v2367_v27  ;;  %2380 = vrcp.f32 %v1500_v43 }
 0x148   : > { %v2369_v47 = vpop.eup %2368 }
 0x149   : > { %1546 = vrot.lane.b32.xlu0 %v1526_v57, %s2448_s8  ;;  %v1502_v49 = vadd.f32 1.0, %v2369_v47  ;;  %2382 = vrcp.f32 %v1503_v14 }
 0x14a   : > { %v2371_v48 = vpop.eup %2370 }
 0x14b   : > { %1548 = vrot.lane.b32.xlu1 %v1527_v22, %s2448_s8  ;;  %v1505_v17 = vadd.f32 1.0, %v2371_v48  ;;  %2384 = vrcp.f32 %v1502_v49 }
 0x14c   : > { %v2373_v18 = vpop.eup %2372 }
 0x14d   : > { %1550 = vrot.lane.b32.xlu0 %v1528_v5, %s2448_s8  ;;  %v1504_v50 = vadd.f32 1.0, %v2373_v18  ;;  %2386 = vrcp.f32 %v1505_v17 }
 0x14e   : > { %v2959_v51 = vpop.eup %2374 }
 0x14f   : > { %1552 = vrot.lane.b32.xlu1 %v1529_v7, %s2448_s8  ;;  %2388 = vrcp.f32 %v1504_v50 }
 0x150   : > { %v2962_v33 = vpop.eup %2376 }
 0x152   : > { %v2965_v37 = vpop.eup %2378 }
 0x154   : > { %v2971_v61 = vpop.eup %2380 }
 0x156   : > { %v2974_v34 = vpop.eup %2382 }
 0x158   : > { %v2977_v35 = vpop.eup %2384 }
 0x15a   : > { %v2981_v1 = vpop.eup %2386 }
 0x15c   : > { %v2985_v41 = vpop.eup %2388 }
 0x1a1   : > { %v1581_v9 = vpop.permute.xlu0 %1580 }
 0x1a2   : > { %v1603_v32 = vmul.f32 %v2959_v51, %v1581_v9 }
 0x1a4   : > { %1620 = vrot.lane.b32.xlu1 %v1603_v32, %s2448_s8 }
 0x1a5   : > { %v1579_v52 = vpop.permute.xlu0 %1578  ;;  %v1585_v54 = vpop.permute.xlu1 %1584 }
 0x1a6   : > { %v1602_v56 = vmul.f32 %v2962_v33, %v1579_v52  ;;  %v1605_v58 = vmul.f32 %v2965_v37, %v1585_v54 }
 0x1a8   : > { %1618 = vrot.lane.b32.xlu0 %v1602_v56, %s2448_s8  ;;  %1624 = vrot.lane.b32.xlu1 %v1605_v58, %s2448_s8 }
 0x1a9   : > { %v1583_v63 = vpop.permute.xlu1 %1582 }
 0x1aa   : > { %v1604_v29 = vmul.f32 %v2971_v61, %v1583_v63 }
 0x1ab   : > { %v1587_v31 = vpop.permute.xlu0 %1586 }
 0x1ac   : > { %1622 = vrot.lane.b32.xlu0 %v1604_v29, %s2448_s8  ;;  %v1606_v36 = vmul.f32 %v2977_v35, %v1587_v31 }
 0x1ad   : > { %v1589_v38 = vpop.permute.xlu1 %1588 }
 0x1ae   : > { %v1607_v60 = vmul.f32 %v2974_v34, %v1589_v38 }
 0x1af   : > { %v1591_v62 = vpop.permute.xlu0 %1590 }
 0x1b0   : > { %1628 = vrot.lane.b32.xlu1 %v1607_v60, %s2448_s8  ;;  %1626 = vrot.lane.b32.xlu0 %v1606_v36, %s2448_s8  ;;  %v1608_v3 = vmul.f32 %v2985_v41, %v1591_v62 }
 0x1b1   : > { %v1593_v39 = vpop.permute.xlu1 %1592 }
 0x1b2   : > { %v1609_v53 = vmul.f32 %v2981_v1, %v1593_v39 }
 0x1b3   : > { %v1539_v55 = vpop.permute.xlu0 %1538 }
 0x1b4   : > { %1632 = vrot.lane.b32.xlu1 %v1609_v53, %s2448_s8  ;;  %1630 = vrot.lane.b32.xlu0 %v1608_v3, %s2448_s8  ;;  %v1562_v24 = vmul.f32 %v2962_v33, %v1539_v55 }
 0x1b5   : > { %v1541_v0 = vpop.permute.xlu1 %1540 }
 0x1b6   : > { %v1563_v10 = vmul.f32 %v2959_v51, %v1541_v0 }
 0x1b7   : > { %v1543_v40 = vpop.permute.xlu0 %1542 }
 0x1b8   : > { %v1564_v23 = vmul.f32 %v2971_v61, %v1543_v40 }
 0x1b9   : > { %v1545_v19 = vpop.permute.xlu1 %1544 }
 0x1ba   : > { %v1565_v57 = vmul.f32 %v2965_v37, %v1545_v19 }
 0x1bb   : > { %v1547_v21 = vpop.permute.xlu0 %1546 }
 0x1bc   : > { %v1566_v42 = vmul.f32 %v2977_v35, %v1547_v21 }
 0x1bd   : > { %v1549_v2 = vpop.permute.xlu1 %1548 }
 0x1be   : > { %v1567_v11 = vmul.f32 %v2974_v34, %v1549_v2 }
 0x1bf   : > { %v1551_v16 = vpop.permute.xlu0 %1550 }
 0x1c0   : > { %v1568_v15 = vmul.f32 %v2985_v41, %v1551_v16 }
 0x1c1   : > { %v1553_v6 = vpop.permute.xlu1 %1552 }
 0x1c2   : > { %v1569_v25 = vmul.f32 %v2981_v1, %v1553_v6 }
 0x216   : > { %v1621_v4 = vpop.permute.xlu1 %1620 }
 0x217   : > { %v1643_v20 = vadd.f32 %v1621_v4, %v1563_v10 }
 0x219   : > { %2390 = vtanh.f32 %v1643_v20 }
 0x21a   : > { %v1619_v22 = vpop.permute.xlu0 %1618  ;;  %v1625_v5 = vpop.permute.xlu1 %1624 }
 0x21b   : > { %v1642_v7 = vadd.f32 %v1619_v22, %v1562_v24  ;;  %v1645_v59 = vadd.f32 %v1625_v5, %v1565_v57 }
 0x21d   : > { %2392 = vtanh.f32 %v1642_v7 }
 0x21e   : > { %2394 = vtanh.f32 %v1645_v59  ;;  %v1623_v26 = vpop.permute.xlu0 %1622 }
 0x21f   : > { %v1644_v8 = vadd.f32 %v1623_v26, %v1564_v23 }
 0x221   : > { %2396 = vtanh.f32 %v1644_v8 }
 0x222   : > { %v1629_v13 = vpop.permute.xlu1 %1628  ;;  %v1627_v45 = vpop.permute.xlu0 %1626 }
 0x223   : > { %v1647_v46 = vadd.f32 %v1629_v13, %v1567_v11  ;;  %v1646_v12 = vadd.f32 %v1627_v45, %v1566_v42 }
 0x225   : > { %2398 = vtanh.f32 %v1647_v46 }
 0x226   : > { %v2391_v28 = vpop.eup %2390  ;;  %2400 = vtanh.f32 %v1646_v12  ;;  %v1633_v30 = vpop.permute.xlu1 %1632 }
 0x227   : > { %v1631_v44 = vpop.permute.xlu0 %1630  ;;  %v1649_v27 = vadd.f32 %v1633_v30, %v1569_v25  ;;  %1668 = vrot.lane.b32.xlu1 %v2391_v28, %s2449_s9 }
 0x228   : > { %v1648_v43 = vadd.f32 %v1631_v44, %v1568_v15 }
 0x229   : > { %2402 = vtanh.f32 %v1649_v27 }
 0x22a   : > { %v2393_v47 = vpop.eup %2392  ;;  %2404 = vtanh.f32 %v1648_v43 }
 0x22b   : > { %v2395_v14 = vpop.eup %2394  ;;  %1666 = vrot.lane.b32.xlu0 %v2393_v47, %s2449_s9 }
 0x22c   : > { %1672 = vrot.lane.b32.xlu1 %v2395_v14, %s2449_s9 }
 0x22e   : > { %v2397_v48 = vpop.eup %2396 }
 0x22f   : > { %1670 = vrot.lane.b32.xlu0 %v2397_v48, %s2449_s9 }
 0x232   : > { %v2399_v49 = vpop.eup %2398 }
 0x233   : > { %v2401_v18 = vpop.eup %2400  ;;  %1676 = vrot.lane.b32.xlu1 %v2399_v49, %s2449_s9 }
 0x234   : > { %1674 = vrot.lane.b32.xlu0 %v2401_v18, %s2449_s9 }
 0x236   : > { %v2403_v17 = vpop.eup %2402 }
 0x237   : > { %v2405_v50 = vpop.eup %2404  ;;  %1680 = vrot.lane.b32.xlu1 %v2403_v17, %s2449_s9 }
 0x238   : > { %1678 = vrot.lane.b32.xlu0 %v2405_v50, %s2449_s9 }
 0x23b   : > { %1708 = vrot.lane.b32.xlu1 %v1643_v20, %s2450_s10 }
 0x23c   : > { %1706 = vrot.lane.b32.xlu0 %v1642_v7, %s2450_s10 }
 0x23f   : > { %1712 = vrot.lane.b32.xlu1 %v1645_v59, %s2450_s10 }
 0x240   : > { %1710 = vrot.lane.b32.xlu0 %v1644_v8, %s2450_s10 }
 0x243   : > { %1716 = vrot.lane.b32.xlu1 %v1647_v46, %s2450_s10 }
 0x244   : > { %1714 = vrot.lane.b32.xlu0 %v1646_v12, %s2450_s10 }
 0x247   : > { %1720 = vrot.lane.b32.xlu1 %v1649_v27, %s2450_s10 }
 0x248   : > { %1718 = vrot.lane.b32.xlu0 %v1648_v43, %s2450_s10 }
 0x299   : > { %v1669_v9 = vpop.permute.xlu1 %1668 }
 0x29a   : > { %v1691_v32 = vmul.f32 %v2959_v51, %v1669_v9 }
 0x29c   : > { %1748 = vrot.lane.b32.xlu1 %v1691_v32, %s2451_s16 }
 0x29d   : > { %v1667_v52 = vpop.permute.xlu0 %1666 }
 0x29e   : > { %v1673_v54 = vpop.permute.xlu1 %1672  ;;  %v1690_v56 = vmul.f32 %v2962_v33, %v1667_v52 }
 0x29f   : > { %v1693_v58 = vmul.f32 %v2965_v37, %v1673_v54 }
 0x2a0   : > { %1746 = vrot.lane.b32.xlu0 %v1690_v56, %s2451_s16 }
 0x2a1   : > { %1752 = vrot.lane.b32.xlu1 %v1693_v58, %s2451_s16  ;;  %v1671_v63 = vpop.permute.xlu0 %1670 }
 0x2a2   : > { %v1692_v29 = vmul.f32 %v2971_v61, %v1671_v63 }
 0x2a4   : > { %1750 = vrot.lane.b32.xlu0 %v1692_v29, %s2451_s16 }
 0x2a5   : > { %v1677_v31 = vpop.permute.xlu1 %1676 }
 0x2a6   : > { %v1695_v38 = vmul.f32 %v2974_v34, %v1677_v31  ;;  %v1675_v36 = vpop.permute.xlu0 %1674 }
 0x2a7   : > { %v1694_v51 = vmul.f32 %v2977_v35, %v1675_v36 }
 0x2a8   : > { %1756 = vrot.lane.b32.xlu1 %v1695_v38, %s2451_s16 }
 0x2a9   : > { %1754 = vrot.lane.b32.xlu0 %v1694_v51, %s2451_s16  ;;  %v1681_v60 = vpop.permute.xlu1 %1680 }
 0x2aa   : > { %v1697_v62 = vmul.f32 %v2981_v1, %v1681_v60  ;;  %v1679_v33 = vpop.permute.xlu0 %1678 }
 0x2ab   : > { %v1696_v37 = vmul.f32 %v2985_v41, %v1679_v33 }
 0x2ac   : > { %1760 = vrot.lane.b32.xlu1 %v1697_v62, %s2451_s16 }
 0x2ad   : > { %1758 = vrot.lane.b32.xlu0 %v1696_v37, %s2451_s16  ;;  %v1709_v39 = vpop.permute.xlu1 %1708 }
 0x2ae   : > { %1731 = vst.msk [vmem:[#allocation3 + $0x8] sm:$0xff] %vm246_vm3, %v1709_v39  ;;  %v1707_v61 = vpop.permute.xlu0 %1706 }
 0x2af   : > { %1730 = vst.msk [vmem:[#allocation3] sm:$0xff] %vm246_vm3, %v1707_v61 }
 0x2b1   : > { %v1713_v34 = vpop.permute.xlu1 %1712 }
 0x2b2   : > { %1733 = vst.msk [vmem:[#allocation3 + $0x18] sm:$0xff] %vm246_vm3, %v1713_v34  ;;  %v1711_v35 = vpop.permute.xlu0 %1710 }
 0x2b3   : > { %1732 = vst.msk [vmem:[#allocation3 + $0x10] sm:$0xff] %vm246_vm3, %v1711_v35 }
 0x2b5   : > { %v1717_v1 = vpop.permute.xlu1 %1716 }
 0x2b6   : > { %1735 = vst.msk [vmem:[#allocation3 + $0x28] sm:$0xff] %vm246_vm3, %v1717_v1  ;;  %v1715_v41 = vpop.permute.xlu0 %1714 }
 0x2b7   : > { %1734 = vst.msk [vmem:[#allocation3 + $0x20] sm:$0xff] %vm246_vm3, %v1715_v41 }
 0x2b9   : > { %v1721_v3 = vpop.permute.xlu1 %1720 }
 0x2ba   : > { %1737 = vst.msk [vmem:[#allocation3 + $0x38] sm:$0xff] %vm246_vm3, %v1721_v3  ;;  %v1719_v53 = vpop.permute.xlu0 %1718 }
 0x2bb   : > { %1736 = vst.msk [vmem:[#allocation3 + $0x30] sm:$0xff] %vm246_vm3, %v1719_v53 }
 0x30e   : > { %v1749_v0 = vpop.permute.xlu1 %1748 }
 0x30f   : > { %1772 = vst.msk [vmem:[#allocation2 + $0x21] sm:$0xff] %vm246_vm3, %v1749_v0  ;;  %1780 = vst.msk [vmem:[%s2505_s26 + $0x8] sm:$0xff] %vm246_vm3, %v1749_v0 }
 0x312   : > { %v1747_v55 = vpop.permute.xlu0 %1746 }
 0x313   : > { %v1753_v19 = vpop.permute.xlu1 %1752  ;;  %1771 = vst.msk [vmem:[#allocation2 + $0x11] sm:$0xff] %vm246_vm3, %v1747_v55  ;;  %1779 = vst.msk [vmem:[%s2505_s26] sm:$0xff] %vm246_vm3, %v1747_v55 }
 0x314   : > { %1774 = vst.msk [vmem:[#allocation2 + $0x41] sm:$0xff] %vm246_vm3, %v1753_v19  ;;  %1782 = vst.msk [vmem:[%s2505_s26 + $0x18] sm:$0xff] %vm246_vm3, %v1753_v19 }
 0x316   : > { %v1751_v40 = vpop.permute.xlu0 %1750 }
 0x317   : > { %1773 = vst.msk [vmem:[#allocation2 + $0x31] sm:$0xff] %vm246_vm3, %v1751_v40  ;;  %1781 = vst.msk [vmem:[%s2505_s26 + $0x10] sm:$0xff] %vm246_vm3, %v1751_v40 }
 0x31a   : > { %v1757_v2 = vpop.permute.xlu1 %1756 }
 0x31b   : > { %1776 = vst.msk [vmem:[#allocation2 + $0x61] sm:$0xff] %vm246_vm3, %v1757_v2  ;;  %1784 = vst.msk [vmem:[%s2505_s26 + $0x28] sm:$0xff] %vm246_vm3, %v1757_v2  ;;  %v1755_v21 = vpop.permute.xlu0 %1754 }
 0x31c   : > { %1775 = vst.msk [vmem:[#allocation2 + $0x51] sm:$0xff] %vm246_vm3, %v1755_v21  ;;  %1783 = vst.msk [vmem:[%s2505_s26 + $0x20] sm:$0xff] %vm246_vm3, %v1755_v21 }
 0x31e   : > { %v1761_v6 = vpop.permute.xlu1 %1760 }
 0x31f   : > { %1778 = vst.msk [vmem:[#allocation2 + $0x81] sm:$0xff] %vm246_vm3, %v1761_v6  ;;  %1786 = vst.msk [vmem:[%s2505_s26 + $0x38] sm:$0xff] %vm246_vm3, %v1761_v6  ;;  %v1759_v10 = vpop.permute.xlu0 %1758 }
 0x320   : > { %1777 = vst.msk [vmem:[#allocation2 + $0x71] sm:$0xff] %vm246_vm3, %v1759_v10  ;;  %1785 = vst.msk [vmem:[%s2505_s26 + $0x30] sm:$0xff] %vm246_vm3, %v1759_v10 }
 0x321 PF: > { %s12_s13 = sadd.s32 1, %s2444_s13   ;;  %s3057_s9 = smov %s2436_s11 }
 0x322   : > { %p9_p8 = scmp.ge.s32.totalorder %s12_s13, 8   ;;  %s3058_s10 = smov %s2440_s12 }
 0x323   : > { %s3059_s11 = smov %s3062_s14  ;;  %s3060_s12 = smov %s3066_s15 }
 0x324   :  { %11 = sbr.rel (!%p9_p8) target bundleno = 3 (0x3), region = 71 }

// kernel: encoder_forward.7
= control target key start
LH: loop header
LB: loop body
LE: loop exit
PB: predicated region body
PF: predicated region fallthrough
CT: control target
= control target key end

     0   :  { %s3579_s9 = smov 0   ;;  %s4954_s0 = inlined_call_operand.vmem [shape: f32[6,10,10,28], index: 0, kind: input, shape index: {}]   ;;  %s4955_s1 = inlined_call_operand.vmem [shape: f32[9,28,112], index: 1, kind: input, shape index: {}]   ;;  %s4956_s2 = inlined_call_operand.vmem [shape: f32[6,8,8,112], index: 2, kind: output, shape index: {}]  }
   0x1 LB: > { %s2623_s10 = sadd.s32 4294967295, %s3562_s9   ;;  %p2627_p0 = scmp.ge.s32.totalorder %s3562_s9, 1  ;;  %s3562_s9 = sphi %s3579_s9, %s12_s9  }
   0x2   : > { %p114_p1 = scmp.lt.s32.totalorder %s3562_s9, 3 }
   0x4   : > { %p115_p2 = pnand %p2627_p0, %p114_p1 }
   0x6   : > { %118 = sbr.rel (%p115_p2) target bundleno = 438 (0x1b6), region = 28 }
   0xb   : > { %v2634_v0 = vld [vmem:[%s4955_s1 + $0x38] sm:$0xf]  ;;  %vm391_vm0 = vcmask 1043456   ;;  %v2633_v1 = vld [vmem:[%s4955_s1 + $0x30] sm:$0xff]  ;;  %s138_s15 = smul.u32 3, %s2623_s10  ;;  %v2632_v2 = vld [vmem:[%s4955_s1 + $0x28] sm:$0xff] }
   0xc   : > { %3539 = vmatprep.subr.msk.mxu1 %vm391_vm0, %v2634_v0  ;;  %3143 = vmatprep.subr.msk.mxu0 %vm391_vm0, %v2634_v0  ;;  %v2631_v3 = vld [vmem:[%s4955_s1 + $0x20] sm:$0xff]  ;;  %v215_v4 = vld [vmem:[%s4955_s1 + $0x18] sm:$0xf]  ;;  %vm264_vm1 = vcmask 1046528   ;;  %vm342_vm2 = vcmask 228352   ;;  %v214_v30 = vld [vmem:[%s4955_s1 + $0x10] sm:$0xff] }
   0xd   : > { %3543 = vmatpush3.msk.msra.mxu1 %vm391_vm0, %v2634_v0  ;;  %3144 = vmatpush3.msk.msra.mxu0 %vm391_vm0, %v2634_v0  ;;  %p139_p3 = scmp.lt.s32.totalorder %s138_s15, 5  ;;  %v2688_v5 = vld [vmem:[%s4955_s1 + $0x58] sm:$0xf]  ;;  %v2687_v48 = vld [vmem:[%s4955_s1 + $0x50] sm:$0xff]  ;;  %v213_v55 = vld [vmem:[%s4955_s1 + $0x8] sm:$0xff]  ;;  %vm816_vm3 = vcmask 1045504  }
   0xe   : > { %3540 = vmatprep.subr.mxu1 %v2633_v1  ;;  %3145 = vmatprep.subr.mxu0 %v2633_v1  ;;  %vm2540_vm4 = vcmask 916480  }
   0xf   : > { %3544 = vmatpush3.msra.mxu1 %v2633_v1  ;;  %3146 = vmatpush3.msra.mxu0 %v2633_v1  ;;  %s5064_s15 = smov (!%p139_p3, %s138_s15), 5 }
  0x10   : > { %3541 = vmatprep.subr.mxu1 %v2632_v2  ;;  %3147 = vmatprep.subr.mxu0 %v2632_v2  ;;  %s3547_s20 = smul.u32 160, %s5064_s15 }
  0x11   : > { %3545 = vmatpush3.msra.mxu1 %v2632_v2  ;;  %3148 = vmatpush3.msra.mxu0 %v2632_v2 }
  0x12   : > { %3542 = vmatprep.subr.mxu1 %v2631_v3  ;;  %3149 = vmatprep.subr.mxu0 %v2631_v3  ;;  %s3615_s27 = scalar_lea.vmem %s4954_s0, %s3547_s20 }
  0x13   : > { %3546 = vmatpush3.msra.mxu1 %v2631_v3  ;;  %3150 = vmatpush3.msra.mxu0 %v2631_v3  ;;  %v3618_v6 = vld [vmem:[%s3615_s27] sm:$0xff]  ;;  %v3621_v7 = vld [vmem:[%s3615_s27 + $0x8] sm:$0x3]  ;;  %v3637_v15 = vld [vmem:[%s3615_s27 + $0x10] sm:$0xff] }
  0x14   : > { %v3624_v8 = vld [vmem:[%s3615_s27 + $0xe0] sm:$0xff]  ;;  %3187 = vmatprep.subr.msk.mxu1 %vm391_vm0, %v215_v4  ;;  %3231 = vmatprep.subr.msk.mxu0 %vm391_vm0, %v2688_v5  ;;  %v265_v9 = vrot.slane %v3618_v6, 1  ;;  %v266_v10 = vrot.slane %v3621_v7, 1  ;;  %v3631_v11 = vld [vmem:[%s3615_s27 + $0xe8] sm:$0x3]  ;;  %v3643_v17 = vld [vmem:[%s3615_s27 + $0xf0] sm:$0xff] }
  0x15   : > { %v301_v12 = vrot.slane %v3624_v8, 1  ;;  %v302_v14 = vrot.slane %v3631_v11, 1  ;;  %v3640_v16 = vld [vmem:[%s3615_s27 + $0x18] sm:$0x3]  ;;  %v268_v19 = vrot.slane %v3637_v15, 1  ;;  %v3652_v22 = vld [vmem:[%s3615_s27 + $0x20] sm:$0xff] }
  0x16   : > { %v267_v18 = vsel %vm264_vm1, %v265_v9, %v266_v10  ;;  %v269_v20 = vrot.slane %v3640_v16, 1  ;;  %v3649_v21 = vld [vmem:[%s3615_s27 + $0xf8] sm:$0x3]  ;;  %v304_v25 = vrot.slane %v3643_v17, 1  ;;  %v3662_v27 = vld [vmem:[%s3615_s27 + $0x28] sm:$0x3] }
  0x17   : > { %3151 = vmatprep.mubr.msk.f32.mxu0 %vm342_vm2, %v267_v18  ;;  %v3657_v24 = vsel %vm264_vm1, %v301_v12, %v302_v14  ;;  %v305_v26 = vrot.slane %v3649_v21, 1  ;;  %v271_v28 = vrot.slane %v3652_v22, 1  ;;  %v3666_v29 = vld [vmem:[%s3615_s27 + $0x100] sm:$0xff]  ;;  %v272_v32 = vrot.slane %v3662_v27, 1  ;;  %v3678_v33 = vld [vmem:[%s3615_s27 + $0x108] sm:$0x3] }
  0x18   : > { %4987 = vst [vmem:[#allocation2_spill] sm:$0xff] %v3657_v24  ;;  %3169 = vmatprep.mubr.msk.f32.mxu1 %vm342_vm2, %v3657_v24  ;;  %v3674_v31 = vsel %vm264_vm1, %v268_v19, %v269_v20  ;;  %v307_v34 = vrot.slane %v3666_v29, 1  ;;  %v3682_v35 = vld [vmem:[%s3615_s27 + $0x30] sm:$0xff]  ;;  %v308_v38 = vrot.slane %v3678_v33, 1  ;;  %v3694_v39 = vld [vmem:[%s3615_s27 + $0x38] sm:$0x3] }
  0x19   : > { %4988 = vst [vmem:[#allocation3_spill] sm:$0xff] %v3674_v31  ;;  %v3685_v36 = vld [vmem:[%s3615_s27 + $0x110] sm:$0xff]  ;;  %3152 = vmatmul.mubr.msk.f32.vlgmr.msra.gmra.mxu0 %vm342_vm2, %v3674_v31  ;;  %v3690_v37 = vsel %vm264_vm1, %v304_v25, %v305_v26  ;;  %v274_v40 = vrot.slane %v3682_v35, 1  ;;  %v3698_v41 = vld [vmem:[%s3615_s27 + $0x118] sm:$0x3]  ;;  %v3704_v42 = vsel %vm264_vm1, %v271_v28, %v272_v32  ;;  %v275_v43 = vrot.slane %v3694_v39, 1 }
  0x1a   : > { %4989 = vst [vmem:[#allocation4_spill] sm:$0xff] %v3690_v37  ;;  %3170 = vmatmul.mubr.msk.f32.vlgmr.msra.gmra.mxu1 %vm342_vm2, %v3690_v37  ;;  %3232 = vmatpush3.msk.msra.mxu0 %vm391_vm0, %v2688_v5  ;;  %4990 = vst [vmem:[#allocation5_spill] sm:$0xff] %v3704_v42  ;;  %v310_v44 = vrot.slane %v3685_v36, 1  ;;  %v311_v45 = vrot.slane %v3698_v41, 1  ;;  %v3710_v46 = vld [vmem:[%s3615_s27 + $0x40] sm:$0xff]  ;;  %v3722_v49 = vsel %vm264_vm1, %v307_v34, %v308_v38  ;;  %v3733_v54 = vld [vmem:[%s3615_s27 + $0x50] sm:$0xff] }
  0x1b   : > { %v3713_v47 = vld [vmem:[%s3615_s27 + $0x48] sm:$0x3]  ;;  %3188 = vmatpush3.msk.msra.mxu1 %vm391_vm0, %v215_v4  ;;  %3154 = vmatprep.mubr.msk.f32.mxu0 %vm342_vm2, %v3704_v42  ;;  %4991 = vst [vmem:[#allocation6_spill] sm:$0xff] %v3722_v49  ;;  %v277_v50 = vrot.slane %v3710_v46, 1  ;;  %v3727_v52 = vld [vmem:[%s3615_s27 + $0x140] sm:$0xff]  ;;  %v3741_v56 = vsel %vm264_vm1, %v274_v40, %v275_v43  ;;  %v3752_v61 = vld [vmem:[%s3615_s27 + $0x150] sm:$0xff] }
  0x1c   : > { %v278_v51 = vrot.slane %v3713_v47, 1  ;;  %v3730_v53 = vld [vmem:[%s3615_s27 + $0x148] sm:$0x3]  ;;  %3172 = vmatprep.mubr.msk.f32.mxu1 %vm342_vm2, %v3722_v49  ;;  %4992 = vst [vmem:[#allocation7_spill] sm:$0xff] %v3741_v56  ;;  %v3744_v57 = vsel %vm264_vm1, %v310_v44, %v311_v45  ;;  %3189 = vmatprep.subr.mxu1 %v214_v30  ;;  %v313_v58 = vrot.slane %v3727_v52, 1  ;;  %v3755_v62 = vld [vmem:[%s3615_s27 + $0x60] sm:$0xff] }
  0x1d   : > { %4993 = vst [vmem:[#allocation8_spill] sm:$0xff] %v3744_v57  ;;  %v314_v59 = vrot.slane %v3730_v53, 1  ;;  %v3749_v60 = vld [vmem:[%s3615_s27 + $0x58] sm:$0x3]  ;;  %3155 = vmatmul.mubr.msk.f32.gmra.mxu0 %vm342_vm2, %v3741_v56  ;;  %3190 = vmatpush3.msra.mxu1 %v214_v30  ;;  %v280_v0 = vrot.slane %v3733_v54, 1  ;;  %v316_v3 = vrot.slane %v3752_v61, 1 }
  0x1e   : > { %v3760_v63 = vsel %vm264_vm1, %v277_v50, %v278_v51  ;;  %v281_v1 = vrot.slane %v3749_v60, 1  ;;  %v3765_v2 = vld [vmem:[%s3615_s27 + $0x158] sm:$0x3]  ;;  %v3769_v4 = vld [vmem:[%s3615_s27 + $0x160] sm:$0xff]  ;;  %3173 = vmatmul.mubr.msk.f32.gmra.mxu1 %vm342_vm2, %v3744_v57  ;;  %v3778_v10 = vld [vmem:[%s3615_s27 + $0x68] sm:$0x3]  ;;  %3233 = vmatprep.subr.mxu0 %v2687_v48 }
  0x1f   : > { %4994 = vst [vmem:[#allocation9_spill] sm:$0xff] %v3760_v63  ;;  %3157 = vmatprep.mubr.msk.f32.mxu0 %vm342_vm2, %v3760_v63  ;;  %v315_v5 = vsel %vm264_vm1, %v313_v58, %v314_v59  ;;  %v317_v9 = vrot.slane %v3765_v2, 1  ;;  %v283_v12 = vrot.slane %v3755_v62, 1  ;;  %v3782_v14 = vld [vmem:[%s3615_s27 + $0x168] sm:$0x3]  ;;  %v284_v20 = vrot.slane %v3778_v10, 1  ;;  %3234 = vmatpush3.msra.mxu0 %v2687_v48 }
  0x20   : > { %v2686_v18 = vld [vmem:[%s4955_s1 + $0x48] sm:$0xff]  ;;  %3175 = vmatprep.mubr.msk.f32.mxu1 %vm342_vm2, %v315_v5  ;;  %v3789_v19 = vsel %vm264_vm1, %v280_v0, %v281_v1  ;;  %v319_v25 = vrot.slane %v3769_v4, 1  ;;  %v320_v26 = vrot.slane %v3782_v14, 1  ;;  %v3795_v28 = vld [vmem:[%s3615_s27 + $0x70] sm:$0xff]  ;;  %v3798_v30 = vld [vmem:[%s3615_s27 + $0x78] sm:$0x3]  ;;  %3191 = vmatprep.subr.mxu1 %v213_v55 }
  0x21   : > { %4995 = vst [vmem:[#allocation10_spill] sm:$0xff] %v3789_v19  ;;  %v212_v32 = vld [vmem:[%s4955_s1] sm:$0xff]  ;;  %v3804_v34 = vsel %vm264_vm1, %v316_v3, %v317_v9  ;;  %v286_v38 = vrot.slane %v3795_v28, 1  ;;  %v287_v40 = vrot.slane %v3798_v30, 1  ;;  %v3809_v43 = vld [vmem:[%s3615_s27 + $0x170] sm:$0xff]  ;;  %3158 = vmatmul.mubr.msk.f32.gmra.mxu0 %vm342_vm2, %v3789_v19  ;;  %v3820_v50 = vsel %vm264_vm1, %v283_v12, %v284_v20  ;;  %3192 = vmatpush3.msra.mxu1 %v213_v55 }
  0x22   : > { %4996 = vst [vmem:[#allocation11_spill] sm:$0xff] %v3804_v34  ;;  %v3812_v44 = vld [vmem:[%s3615_s27 + $0x178] sm:$0x3]  ;;  %v3815_v45 = vld [vmem:[%s3615_s27 + $0xa0] sm:$0xff]  ;;  %4997 = vst [vmem:[#allocation12_spill] sm:$0xff] %v3820_v50  ;;  %v3823_v48 = vsel %vm264_vm1, %v319_v25, %v320_v26  ;;  %v322_v51 = vrot.slane %v3809_v43, 1  ;;  %3176 = vmatmul.mubr.msk.f32.gmra.mxu1 %vm342_vm2, %v3804_v34  ;;  %3160 = vmatprep.mubr.msk.f32.mxu0 %vm342_vm2, %v3820_v50 }
  0x23   : > { %4998 = vst [vmem:[#allocation13_spill] sm:$0xff] %v3823_v48  ;;  %v323_v58 = vrot.slane %v3812_v44, 1  ;;  %v3828_v59 = vld [vmem:[%s3615_s27 + $0xa8] sm:$0x3]  ;;  %v3831_v0 = vld [vmem:[%s3615_s27 + $0x180] sm:$0xff]  ;;  %v3834_v1 = vld [vmem:[%s3615_s27 + $0xb0] sm:$0xff]  ;;  %v3841_v3 = vsel %vm264_vm1, %v286_v38, %v287_v40  ;;  %3178 = vmatprep.mubr.msk.f32.mxu1 %vm342_vm2, %v3823_v48  ;;  %3235 = vmatprep.subr.mxu0 %v2686_v18 }
  0x24   : > { %4999 = vst [vmem:[#allocation14_spill] sm:$0xff] %v3841_v3  ;;  %v289_v5 = vrot.slane %v3815_v45, 1  ;;  %v290_v55 = vrot.slane %v3828_v59, 1  ;;  %v3846_v9 = vld [vmem:[%s3615_s27 + $0x188] sm:$0x3]  ;;  %v325_v12 = vrot.slane %v3831_v0, 1  ;;  %3236 = vmatpush3.msra.mxu0 %v2686_v18  ;;  %3193 = vmatprep.subr.mxu1 %v212_v32 }
  0x25   : > { %v3850_v20 = vld [vmem:[%s3615_s27 + $0x190] sm:$0xff]  ;;  %v2685_v25 = vld [vmem:[%s4955_s1 + $0x40] sm:$0xff]  ;;  %v3858_v26 = vsel %vm264_vm1, %v322_v51, %v323_v58  ;;  %v326_v38 = vrot.slane %v3846_v9, 1  ;;  %v3862_v40 = vld [vmem:[%s3615_s27 + $0xb8] sm:$0x3]  ;;  %v292_v23 = vrot.slane %v3834_v1, 1  ;;  %3161 = vmatmul.mubr.msk.f32.gmra.mxu0 %vm342_vm2, %v3841_v3  ;;  %3194 = vmatpush3.msra.mxu1 %v212_v32 }
  0x26   : > { %5000 = vst [vmem:[#allocation15_spill] sm:$0xff] %v3858_v26  ;;  %v3866_v13 = vld [vmem:[%s3615_s27 + $0x198] sm:$0x3]  ;;  %v291_v51 = vsel %vm264_vm1, %v289_v5, %v290_v55  ;;  %v293_v58 = vrot.slane %v3862_v40, 1  ;;  %v328_v48 = vrot.slane %v3850_v20, 1  ;;  %v3878_v49 = vld [vmem:[%s3615_s27 + $0xc0] sm:$0xff]  ;;  %3179 = vmatmul.mubr.msk.f32.gmra.mxu1 %vm342_vm2, %v3858_v26  ;;  %3237 = vmatprep.subr.mxu0 %v2685_v25 }
  0x27   : > { %v3871_v34 = vld [vmem:[%s4955_s1 + $0x78] sm:$0xf]  ;;  %v329_v57 = vrot.slane %v3866_v13, 1  ;;  %v3881_v37 = vld [vmem:[%s3615_s27 + $0xc8] sm:$0x3]  ;;  %v3889_v18 = vsel %vm264_vm1, %v325_v12, %v326_v38  ;;  %v295_v5 = vrot.slane %v3878_v49, 1  ;;  %3163 = vmatprep.mubr.msk.f32.mxu0 %vm342_vm2, %v291_v51  ;;  %3238 = vmatpush3.msra.mxu0 %v2685_v25 }
  0x28   : > { %v2746_v24 = vld [vmem:[%s4955_s1 + $0x98] sm:$0xf]  ;;  %5001 = vst [vmem:[#allocation16_spill] sm:$0xff] %v3889_v18  ;;  %v296_v55 = vrot.slane %v3881_v37, 1  ;;  %v3894_v50 = vld [vmem:[%s3615_s27 + $0x1a0] sm:$0xff]  ;;  %v3900_v63 = vld [vmem:[%s3615_s27 + $0xd0] sm:$0xff]  ;;  %v3906_v12 = vsel %vm264_vm1, %v292_v23, %v293_v58  ;;  %3181 = vmatprep.mubr.msk.f32.mxu1 %vm342_vm2, %v3889_v18  ;;  %3275 = vmatprep.subr.msk.mxu1 %vm391_vm0, %v3871_v34 }
  0x29   : > { %v3897_v19 = vld [vmem:[%s3615_s27 + $0x1a8] sm:$0x3]  ;;  %v3909_v32 = vsel %vm264_vm1, %v328_v48, %v329_v57  ;;  %v331_v38 = vrot.slane %v3894_v50, 1  ;;  %v3914_v56 = vld [vmem:[%s3615_s27 + $0xd8] sm:$0x3]  ;;  %v3917_v42 = vld [vmem:[%s3615_s27 + $0x1b0] sm:$0xff]  ;;  %3164 = vmatmul.mubr.msk.f32.gmra.mxu0 %vm342_vm2, %v3906_v12  ;;  %3319 = vmatprep.subr.msk.mxu0 %vm391_vm0, %v2746_v24 }
  0x2a   : > { %5002 = vst [vmem:[#allocation17_spill] sm:$0xff] %v3909_v32  ;;  %v332_v3 = vrot.slane %v3897_v19, 1  ;;  %v3922_v26 = vsel %vm264_vm1, %v295_v5, %v296_v55  ;;  %v298_v23 = vrot.slane %v3900_v63, 1  ;;  %v299_v57 = vrot.slane %v3914_v56, 1  ;;  %v3927_v48 = vld [vmem:[%s3615_s27 + $0x1b8] sm:$0x3]  ;;  %3182 = vmatmul.mubr.msk.f32.gmra.mxu1 %vm342_vm2, %v3909_v32 }
  0x2b   : > { %v334_v51 = vrot.slane %v3917_v42, 1  ;;  %v335_v31 = vrot.slane %v3927_v48, 1  ;;  %v821_v5 = vrot.slane %v3640_v16, 2  ;;  %3166 = vmatprep.mubr.msk.f32.mxu0 %vm342_vm2, %v3922_v26  ;;  %v820_v25 = vrot.slane %v3637_v15, 2 }
  0x2c   : > { %v3931_v58 = vsel %vm264_vm1, %v331_v38, %v332_v3  ;;  %v3945_v3 = vsel %vm264_vm1, %v298_v23, %v299_v57  ;;  %v5003_v38 = vrot.slane %v3621_v7, 2  ;;  %v5004_v16 = vrot.slane %v3618_v6, 2 }
  0x2d   : > { %3184 = vmatprep.mubr.msk.f32.mxu1 %vm342_vm2, %v3931_v58  ;;  %v3951_v55 = vsel %vm264_vm1, %v334_v51, %v335_v31  ;;  %3167 = vmatmul.mubr.msk.f32.gmra.mxu0 %vm342_vm2, %v3945_v3  ;;  %v823_v23 = vrot.slane %v3652_v22, 2  ;;  %v824_v57 = vrot.slane %v3662_v27, 2  ;;  %v3966_v31 = vsel %vm816_vm3, %v820_v25, %v821_v5 }
  0x2e   : > { %v819_v32 = vsel %vm816_vm3, %v5004_v16, %v5003_v38  ;;  %3185 = vmatmul.mubr.msk.f32.gmra.mxu1 %vm342_vm2, %v3951_v55  ;;  %v826_v7 = vrot.slane %v3682_v35, 2  ;;  %v827_v51 = vrot.slane %v3694_v39, 2  ;;  %v829_v38 = vrot.slane %v3710_v46, 2 }
  0x2f   : > { %3239 = vmatprep.mubr.msk.f32.mxu0 %vm342_vm2, %v819_v32  ;;  %3195 = vmatprep.mubr.msk.f32.mxu1 %vm342_vm2, %v3618_v6  ;;  %v830_v16 = vrot.slane %v3713_v47, 2  ;;  %v3977_v27 = vsel %vm816_vm3, %v823_v23, %v824_v57  ;;  %v2716_v32 = vld [vmem:[%s4955_s1 + $0x70] sm:$0xff]  ;;  %v832_v39 = vrot.slane %v3733_v54, 2  ;;  %v833_v47 = vrot.slane %v3749_v60, 2 }
  0x30   : > { %v3986_v6 = vsel %vm816_vm3, %v826_v7, %v827_v51  ;;  %v835_v25 = vrot.slane %v3755_v62, 2  ;;  %v2745_v60 = vld [vmem:[%s4955_s1 + $0x90] sm:$0xff]  ;;  %v838_v23 = vrot.slane %v3795_v28, 2  ;;  %v839_v57 = vrot.slane %v3798_v30, 2  ;;  %v2714_v30 = vld [vmem:[%s4955_s1 + $0x60] sm:$0xff] }
  0x31   : > { %3240 = vmatmul.mubr.msk.f32.vlgmr.msra.gmra.mxu0 %vm342_vm2, %v3966_v31  ;;  %v3995_v5 = vsel %vm816_vm3, %v829_v38, %v830_v16  ;;  %v841_v51 = vrot.slane %v3815_v45, 2  ;;  %v842_v38 = vrot.slane %v3828_v59, 2  ;;  %v2744_v16 = vld [vmem:[%s4955_s1 + $0x88] sm:$0xff] }
  0x32   : > { %3196 = vmatmul.mubr.msk.f32.vlgmr.msra.gmra.mxu1 %vm342_vm2, %v3637_v15  ;;  %3320 = vmatpush3.msk.msra.mxu0 %vm391_vm0, %v2746_v24  ;;  %v836_v24 = vrot.slane %v3778_v10, 2  ;;  %v4014_v10 = vsel %vm816_vm3, %v832_v39, %v833_v47  ;;  %v4038_v59 = vsel %vm816_vm3, %v838_v23, %v839_v57  ;;  %v845_v39 = vrot.slane %v3862_v40, 2  ;;  %v4055_v40 = vld [vmem:[%s4955_s1 + $0xb8] sm:$0xf] }
  0x33   : > { %3276 = vmatpush3.msk.msra.mxu1 %vm391_vm0, %v3871_v34  ;;  %3198 = vmatprep.mubr.msk.f32.mxu1 %vm342_vm2, %v3652_v22  ;;  %v2715_v34 = vld [vmem:[%s4955_s1 + $0x68] sm:$0xff]  ;;  %v843_v47 = vsel %vm816_vm3, %v841_v51, %v842_v38  ;;  %v851_v23 = vrot.slane %v3914_v56, 2  ;;  %v4068_v57 = vld [vmem:[%s4955_s1 + $0xd8] sm:$0xf]  ;;  %v853_v38 = vrot.slane %v3624_v8, 2 }
  0x34   : > { %3242 = vmatprep.mubr.msk.f32.mxu0 %vm342_vm2, %v3977_v27  ;;  %3277 = vmatprep.subr.mxu1 %v2716_v32  ;;  %v4021_v7 = vsel %vm816_vm3, %v835_v25, %v836_v24  ;;  %v847_v25 = vrot.slane %v3878_v49, 2  ;;  %v848_v24 = vrot.slane %v3881_v37, 2 }
  0x35   : > { %3243 = vmatmul.mubr.msk.f32.gmra.mxu0 %vm342_vm2, %v3986_v6  ;;  %3278 = vmatpush3.msra.mxu1 %v2716_v32  ;;  %v844_v32 = vrot.slane %v3834_v1, 2 }
  0x36   : > { %3199 = vmatmul.mubr.msk.f32.gmra.mxu1 %vm342_vm2, %v3682_v35  ;;  %3245 = vmatprep.mubr.msk.f32.mxu0 %vm342_vm2, %v3995_v5  ;;  %v4073_v51 = vsel %vm816_vm3, %v847_v25, %v848_v24  ;;  %v863_v25 = vrot.slane %v3698_v41, 2  ;;  %v865_v24 = vrot.slane %v3727_v52, 2 }
  0x37   : > { %3201 = vmatprep.mubr.msk.f32.mxu1 %vm342_vm2, %v3710_v46  ;;  %3321 = vmatprep.subr.mxu0 %v2745_v60  ;;  %v4061_v37 = vsel %vm816_vm3, %v844_v32, %v845_v39  ;;  %v859_v32 = vrot.slane %v3666_v29, 2  ;;  %v860_v39 = vrot.slane %v3678_v33, 2 }
  0x38   : > { %3322 = vmatpush3.msra.mxu0 %v2745_v60  ;;  %3279 = vmatprep.subr.mxu1 %v2715_v34  ;;  %v2743_v60 = vld [vmem:[%s4955_s1 + $0x80] sm:$0xff] }
  0x39   : > { %3246 = vmatmul.mubr.msk.f32.gmra.mxu0 %vm342_vm2, %v4014_v10  ;;  %3280 = vmatpush3.msra.mxu1 %v2715_v34  ;;  %v850_v34 = vrot.slane %v3900_v63, 2  ;;  %v4113_v33 = vsel %vm816_vm3, %v859_v32, %v860_v39  ;;  %v877_v32 = vrot.slane %v3831_v0, 2  ;;  %v878_v39 = vrot.slane %v3846_v9, 2 }
  0x3a   : > { %3202 = vmatmul.mubr.msk.f32.gmra.mxu1 %vm342_vm2, %v3733_v54  ;;  %3248 = vmatprep.mubr.msk.f32.mxu0 %vm342_vm2, %v4021_v7 }
  0x3b   : > { %3204 = vmatprep.mubr.msk.f32.mxu1 %vm342_vm2, %v3755_v62  ;;  %3323 = vmatprep.subr.mxu0 %v2744_v16  ;;  %v4088_v56 = vsel %vm816_vm3, %v850_v34, %v851_v23  ;;  %v868_v34 = vrot.slane %v3752_v61, 2  ;;  %v869_v23 = vrot.slane %v3765_v2, 2  ;;  %v874_v2 = vrot.slane %v3809_v43, 2 }
  0x3c   : > { %3324 = vmatpush3.msra.mxu0 %v2744_v16  ;;  %3281 = vmatprep.subr.mxu1 %v2714_v30  ;;  %v854_v16 = vrot.slane %v3631_v11, 2  ;;  %v856_v11 = vrot.slane %v3643_v17, 2  ;;  %v4164_v9 = vsel %vm816_vm3, %v877_v32, %v878_v39  ;;  %v5008_v32 = vld [vmem:[#allocation9_spill] sm:$0xff] }
  0x3d   : > { %3249 = vmatmul.mubr.msk.f32.gmra.mxu0 %vm342_vm2, %v4038_v59  ;;  %3282 = vmatpush3.msra.mxu1 %v2714_v30 }
  0x3e   : > { %3205 = vmatmul.mubr.msk.f32.gmra.mxu1 %vm342_vm2, %v3795_v28  ;;  %3251 = vmatprep.mubr.msk.f32.mxu0 %vm342_vm2, %v843_v47  ;;  %v4095_v30 = vsel %vm816_vm3, %v853_v38, %v854_v16  ;;  %v862_v47 = vrot.slane %v3685_v36, 2  ;;  %v871_v38 = vrot.slane %v3769_v4, 2  ;;  %v872_v16 = vrot.slane %v3782_v14, 2 }
  0x3f   : > { %3207 = vmatprep.mubr.msk.f32.mxu1 %vm342_vm2, %v3815_v45  ;;  %3325 = vmatprep.subr.mxu0 %v2743_v60  ;;  %v857_v45 = vrot.slane %v3649_v21, 2 }
  0x40   : > { %3326 = vmatpush3.msra.mxu0 %v2743_v60  ;;  %3363 = vmatprep.subr.msk.mxu1 %vm391_vm0, %v4055_v40  ;;  %v866_v60 = vrot.slane %v3730_v53, 2  ;;  %v4124_v41 = vsel %vm816_vm3, %v862_v47, %v863_v25  ;;  %v4146_v14 = vsel %vm816_vm3, %v871_v38, %v872_v16  ;;  %v881_v47 = vrot.slane %v3866_v13, 2  ;;  %v2774_v38 = vld [vmem:[%s4955_s1 + $0xb0] sm:$0xff]  ;;  %v4220_v16 = vld [vmem:[%s3615_s27 + $0x88] sm:$0x3] }
  0x41   : > { %3252 = vmatmul.mubr.msk.f32.gmra.mxu0 %vm342_vm2, %v4061_v37  ;;  %3407 = vmatprep.subr.msk.mxu0 %vm391_vm0, %v4068_v57  ;;  %v4106_v21 = vsel %vm816_vm3, %v856_v11, %v857_v45  ;;  %v4139_v11 = vsel %vm816_vm3, %v868_v34, %v869_v23  ;;  %v875_v45 = vrot.slane %v3812_v44, 2  ;;  %v883_v25 = vrot.slane %v3894_v50, 2 }
  0x42   : > { %3208 = vmatmul.mubr.msk.f32.gmra.mxu1 %vm342_vm2, %v3834_v1  ;;  %3254 = vmatprep.mubr.msk.f32.mxu0 %vm342_vm2, %v4073_v51  ;;  %v867_v53 = vsel %vm816_vm3, %v865_v24, %v866_v60  ;;  %v884_v24 = vrot.slane %v3897_v19, 2  ;;  %v886_v60 = vrot.slane %v3917_v42, 2  ;;  %v887_v34 = vrot.slane %v3927_v48, 2  ;;  %v5005_v48 = vld [vmem:[#allocation3_spill] sm:$0xff] }
  0x43   : > { %3210 = vmatprep.mubr.msk.f32.mxu1 %vm342_vm2, %v3878_v49  ;;  %v4157_v44 = vsel %vm816_vm3, %v874_v2, %v875_v45  ;;  %v5007_v2 = vld [vmem:[#allocation7_spill] sm:$0xff]  ;;  %v2803_v45 = vld [vmem:[%s4955_s1 + $0xd0] sm:$0xff] }
  0x44   : > { %v4182_v19 = vsel %vm816_vm3, %v883_v25, %v884_v24  ;;  %v4191_v23 = vsel %vm816_vm3, %v886_v60, %v887_v34  ;;  %v5010_v25 = vld [vmem:[#allocation12_spill] sm:$0xff]  ;;  %v2772_v24 = vld [vmem:[%s4955_s1 + $0xa0] sm:$0xff] }
  0x45   : > { %3255 = vmatmul.mubr.msk.f32.gmra.mxu0 %vm342_vm2, %v4088_v56  ;;  %v5011_v60 = vld [vmem:[#allocation14_spill] sm:$0xff] }
  0x46   : > { %3211 = vmatmul.mubr.msk.f32.gmra.mxu1 %vm342_vm2, %v3900_v63  ;;  %3257 = vmatprep.mubr.msk.f32.mxu0 %vm342_vm2, %v4095_v30 }
  0x47   : > { %3213 = vmatprep.mubr.msk.f32.mxu1 %vm342_vm2, %v3624_v8 }
  0x49   : > { %3258 = vmatmul.mubr.msk.f32.gmra.mxu0 %vm342_vm2, %v4106_v21 }
  0x4a   : > { %3214 = vmatmul.mubr.msk.f32.gmra.mxu1 %vm342_vm2, %v3643_v17  ;;  %3260 = vmatprep.mubr.msk.f32.mxu0 %vm342_vm2, %v4113_v33 }
  0x4b   : > { %3216 = vmatprep.mubr.msk.f32.mxu1 %vm342_vm2, %v3666_v29 }
  0x4d   : > { %3261 = vmatmul.mubr.msk.f32.gmra.mxu0 %vm342_vm2, %v4124_v41 }
  0x4e   : > { %3217 = vmatmul.mubr.msk.f32.gmra.mxu1 %vm342_vm2, %v3685_v36  ;;  %3263 = vmatprep.mubr.msk.f32.mxu0 %vm342_vm2, %v867_v53  ;;  %v5006_v53 = vld [vmem:[#allocation5_spill] sm:$0xff] }
  0x4f   : > { %3219 = vmatprep.mubr.msk.f32.mxu1 %vm342_vm2, %v3727_v52  ;;  %v880_v52 = vrot.slane %v3850_v20, 2 }
  0x51   : > { %3264 = vmatmul.mubr.msk.f32.gmra.mxu0 %vm342_vm2, %v4139_v11  ;;  %v4175_v13 = vsel %vm816_vm3, %v880_v52, %v881_v47  ;;  %v1384_v52 = vrot.slane %v4220_v16, 1  ;;  %v2802_v47 = vld [vmem:[%s4955_s1 + $0xc8] sm:$0xff] }
  0x52   : > { %3220 = vmatmul.mubr.msk.f32.gmra.mxu1 %vm342_vm2, %v3752_v61  ;;  %3266 = vmatprep.mubr.msk.f32.mxu0 %vm342_vm2, %v4146_v14 }
  0x53   : > { %3222 = vmatprep.mubr.msk.f32.mxu1 %vm342_vm2, %v3769_v4 }
  0x55   : > { %3267 = vmatmul.mubr.msk.f32.gmra.mxu0 %vm342_vm2, %v4157_v44 }
  0x56   : > { %3223 = vmatmul.mubr.msk.f32.gmra.mxu1 %vm342_vm2, %v3809_v43  ;;  %3269 = vmatprep.mubr.msk.f32.mxu0 %vm342_vm2, %v4164_v9 }
  0x57   : > { %3225 = vmatprep.mubr.msk.f32.mxu1 %vm342_vm2, %v3831_v0 }
  0x59   : > { %3270 = vmatmul.mubr.msk.f32.gmra.mxu0 %vm342_vm2, %v4175_v13 }
  0x5a   : > { %3226 = vmatmul.mubr.msk.f32.gmra.mxu1 %vm342_vm2, %v3850_v20  ;;  %3272 = vmatprep.mubr.msk.f32.mxu0 %vm342_vm2, %v4182_v19 }
  0x5b   : > { %3228 = vmatprep.mubr.msk.f32.mxu1 %vm342_vm2, %v3894_v50 }
  0x5d   : > { %3273 = vmatmul.mubr.msk.f32.gmra.mxu0 %vm342_vm2, %v4191_v23 }
  0x5e   : > { %3229 = vmatmul.mubr.msk.f32.gmra.mxu1 %vm342_vm2, %v3917_v42  ;;  %3327 = vmatprep.mubr.msk.f32.mxu0 %vm342_vm2, %v5005_v48  ;;  %v2801_v48 = vld [vmem:[%s4955_s1 + $0xc0] sm:$0xff] }
  0x5f   : > { %3283 = vmatprep.mubr.msk.f32.mxu1 %vm342_vm2, %v3637_v15  ;;  %v4217_v15 = vld [vmem:[%s3615_s27 + $0x80] sm:$0xff] }
  0x60   : > { %v1383_v39 = vrot.slane %v4217_v15, 1 }
  0x61   : > { %3328 = vmatmul.mubr.msk.f32.vlgmr.msra.gmra.mxu0 %vm342_vm2, %v5006_v53 }
  0x62   : > { %3284 = vmatmul.mubr.msk.f32.vlgmr.msra.gmra.mxu1 %vm342_vm2, %v3652_v22  ;;  %3408 = vmatpush3.msk.msra.mxu0 %vm391_vm0, %v4068_v57  ;;  %v5009_v57 = vld [vmem:[#allocation10_spill] sm:$0xff]  ;;  %v4253_v34 = vsel %vm264_vm1, %v1383_v39, %v1384_v52  ;;  %v5013_v39 = vld [vmem:[#allocation4_spill] sm:$0xff] }
  0x63   : > { %3364 = vmatpush3.msk.msra.mxu1 %vm391_vm0, %v4055_v40  ;;  %3286 = vmatprep.mubr.msk.f32.mxu1 %vm342_vm2, %v3682_v35  ;;  %v2773_v40 = vld [vmem:[%s4955_s1 + $0xa8] sm:$0xff] }
  0x64   : > { %3330 = vmatprep.mubr.msk.f32.mxu0 %vm342_vm2, %v5007_v2  ;;  %3365 = vmatprep.subr.mxu1 %v2774_v38 }
  0x65   : > { %3331 = vmatmul.mubr.msk.f32.gmra.mxu0 %vm342_vm2, %v5008_v32  ;;  %3366 = vmatpush3.msra.mxu1 %v2774_v38  ;;  %v2833_v38 = vld [vmem:[%s4955_s1 + $0xf8] sm:$0xf] }
  0x66   : > { %3287 = vmatmul.mubr.msk.f32.gmra.mxu1 %vm342_vm2, %v3710_v46  ;;  %3333 = vmatprep.mubr.msk.f32.mxu0 %vm342_vm2, %v5009_v57 }
  0x67   : > { %3289 = vmatprep.mubr.msk.f32.mxu1 %vm342_vm2, %v3733_v54  ;;  %3409 = vmatprep.subr.mxu0 %v2803_v45 }
  0x68   : > { %3410 = vmatpush3.msra.mxu0 %v2803_v45  ;;  %3367 = vmatprep.subr.mxu1 %v2773_v40  ;;  %v2862_v45 = vld [vmem:[%s4955_s1 + $0x118] sm:$0xf] }
  0x69   : > { %3334 = vmatmul.mubr.msk.f32.gmra.mxu0 %vm342_vm2, %v5010_v25  ;;  %3368 = vmatpush3.msra.mxu1 %v2773_v40  ;;  %v5012_v40 = vld [vmem:[#allocation2_spill] sm:$0xff] }
  0x6a   : > { %3290 = vmatmul.mubr.msk.f32.gmra.mxu1 %vm342_vm2, %v3755_v62  ;;  %3336 = vmatprep.mubr.msk.f32.mxu0 %vm342_vm2, %v5011_v60 }
  0x6b   : > { %3292 = vmatprep.mubr.msk.f32.mxu1 %vm342_vm2, %v3795_v28  ;;  %3411 = vmatprep.subr.mxu0 %v2802_v47 }
  0x6c   : > { %3412 = vmatpush3.msra.mxu0 %v2802_v47  ;;  %3369 = vmatprep.subr.mxu1 %v2772_v24 }
  0x6d   : > { %3337 = vmatmul.mubr.msk.f32.gmra.mxu0 %vm342_vm2, %v4253_v34  ;;  %3370 = vmatpush3.msra.mxu1 %v2772_v24  ;;  %v5014_v24 = vld [vmem:[#allocation6_spill] sm:$0xff] }
  0x6e   : > { %3293 = vmatmul.mubr.msk.f32.gmra.mxu1 %vm342_vm2, %v4217_v15  ;;  %3339 = vmatprep.mubr.msk.f32.mxu0 %vm342_vm2, %v3906_v12  ;;  %v4285_v12 = vld [vmem:[%s3615_s27 + $0x120] sm:$0xff] }
  0x6f   : > { %3295 = vmatprep.mubr.msk.f32.mxu1 %vm342_vm2, %v3834_v1  ;;  %3413 = vmatprep.subr.mxu0 %v2801_v48  ;;  %v4288_v1 = vld [vmem:[%s3615_s27 + $0x128] sm:$0x3]  ;;  %v1386_v52 = vrot.slane %v4285_v12, 1 }
  0x70   : > { %3414 = vmatpush3.msra.mxu0 %v2801_v48  ;;  %3451 = vmatprep.subr.msk.mxu1 %vm391_vm0, %v2833_v38  ;;  %v1387_v47 = vrot.slane %v4288_v1, 1  ;;  %v5015_v48 = vld [vmem:[#allocation8_spill] sm:$0xff] }
  0x71   : > { %3340 = vmatmul.mubr.msk.f32.gmra.mxu0 %vm342_vm2, %v3922_v26  ;;  %3495 = vmatprep.subr.msk.mxu0 %vm391_vm0, %v2862_v45 }
  0x72   : > { %3296 = vmatmul.mubr.msk.f32.gmra.mxu1 %vm342_vm2, %v3878_v49  ;;  %3342 = vmatprep.mubr.msk.f32.mxu0 %vm342_vm2, %v3945_v3 }
  0x73   : > { %3298 = vmatprep.mubr.msk.f32.mxu1 %vm342_vm2, %v3900_v63 }
  0x75   : > { %3343 = vmatmul.mubr.msk.f32.gmra.mxu0 %vm342_vm2, %v5012_v40  ;;  %v5017_v40 = vld [vmem:[#allocation11_spill] sm:$0xff] }
  0x76   : > { %3299 = vmatmul.mubr.msk.f32.gmra.mxu1 %vm342_vm2, %v3624_v8  ;;  %3345 = vmatprep.mubr.msk.f32.mxu0 %vm342_vm2, %v5013_v39  ;;  %v4307_v39 = vsel %vm264_vm1, %v1386_v52, %v1387_v47  ;;  %v5019_v52 = vld [vmem:[#allocation15_spill] sm:$0xff]  ;;  %v4328_v47 = vld [vmem:[%s3615_s27 + $0x1c0] sm:$0xff] }
  0x77   : > { %3301 = vmatprep.mubr.msk.f32.mxu1 %vm342_vm2, %v3643_v17  ;;  %5016 = vst [vmem:[#allocation3_spill] sm:$0xff] %v4307_v39 }
  0x79   : > { %3346 = vmatmul.mubr.msk.f32.gmra.mxu0 %vm342_vm2, %v5014_v24  ;;  %v5018_v24 = vld [vmem:[#allocation13_spill] sm:$0xff] }
  0x7a   : > { %3302 = vmatmul.mubr.msk.f32.gmra.mxu1 %vm342_vm2, %v3666_v29  ;;  %3348 = vmatprep.mubr.msk.f32.mxu0 %vm342_vm2, %v5015_v48 }
  0x7b   : > { %3304 = vmatprep.mubr.msk.f32.mxu1 %vm342_vm2, %v3685_v36 }
  0x7d   : > { %3349 = vmatmul.mubr.msk.f32.gmra.mxu0 %vm342_vm2, %v4307_v39  ;;  %v4331_v39 = vld [vmem:[%s3615_s27 + $0x1c8] sm:$0x3] }
  0x7e   : > { %3305 = vmatmul.mubr.msk.f32.gmra.mxu1 %vm342_vm2, %v4285_v12  ;;  %3351 = vmatprep.mubr.msk.f32.mxu0 %vm342_vm2, %v5017_v40  ;;  %v1389_v40 = vrot.slane %v4328_v47, 1 }
  0x7f   : > { %3307 = vmatprep.mubr.msk.f32.mxu1 %vm342_vm2, %v3752_v61  ;;  %v5020_v61 = vld [vmem:[#allocation17_spill] sm:$0xff] }
  0x81   : > { %3352 = vmatmul.mubr.msk.f32.gmra.mxu0 %vm342_vm2, %v5018_v24 }
  0x82   : > { %3308 = vmatmul.mubr.msk.f32.gmra.mxu1 %vm342_vm2, %v3769_v4  ;;  %3354 = vmatprep.mubr.msk.f32.mxu0 %vm342_vm2, %v5019_v52  ;;  %v1390_v52 = vrot.slane %v4331_v39, 1 }
  0x83   : > { %3310 = vmatprep.mubr.msk.f32.mxu1 %vm342_vm2, %v3809_v43 }
  0x85   : > { %3355 = vmatmul.mubr.msk.f32.gmra.mxu0 %vm342_vm2, %v3889_v18  ;;  %v4350_v18 = vsel %vm264_vm1, %v1389_v40, %v1390_v52  ;;  %v2832_v52 = vld [vmem:[%s4955_s1 + $0xf0] sm:$0xff] }
  0x86   : > { %3311 = vmatmul.mubr.msk.f32.gmra.mxu1 %vm342_vm2, %v3831_v0  ;;  %3357 = vmatprep.mubr.msk.f32.mxu0 %vm342_vm2, %v5020_v61 }
  0x87   : > { %3313 = vmatprep.mubr.msk.f32.mxu1 %vm342_vm2, %v3850_v20 }
  0x89   : > { %3358 = vmatmul.mubr.msk.f32.gmra.mxu0 %vm342_vm2, %v3931_v58 }
  0x8a   : > { %3314 = vmatmul.mubr.msk.f32.gmra.mxu1 %vm342_vm2, %v3894_v50  ;;  %3360 = vmatprep.mubr.msk.f32.mxu0 %vm342_vm2, %v3951_v55 }
  0x8b   : > { %3316 = vmatprep.mubr.msk.f32.mxu1 %vm342_vm2, %v3917_v42 }
  0x8d   : > { %3361 = vmatmul.mubr.msk.f32.gmra.mxu0 %vm342_vm2, %v4350_v18 }
  0x8e   : > { %3317 = vmatmul.mubr.msk.f32.gmra.mxu1 %vm342_vm2, %v4328_v47  ;;  %3415 = vmatprep.mubr.msk.f32.mxu0 %vm342_vm2, %v3652_v22  ;;  %v2861_v22 = vld [vmem:[%s4955_s1 + $0x110] sm:$0xff] }
  0x8f   : > { %3371 = vmatprep.mubr.msk.f32.mxu1 %vm342_vm2, %v3966_v31  ;;  %v1616_v31 = vrot.slane %v4220_v16, 2  ;;  %v4404_v16 = vld [vmem:[%s3615_s27 + $0x90] sm:$0xff] }
  0x91   : > { %3416 = vmatmul.mubr.msk.f32.vlgmr.msra.gmra.mxu0 %vm342_vm2, %v3682_v35  ;;  %v2831_v35 = vld [vmem:[%s4955_s1 + $0xe8] sm:$0xff] }
  0x92   : > { %3372 = vmatmul.mubr.msk.f32.vlgmr.msra.gmra.mxu1 %vm342_vm2, %v3977_v27  ;;  %3496 = vmatpush3.msk.msra.mxu0 %vm391_vm0, %v2862_v45  ;;  %v5025_v45 = vld [vmem:[#allocation15_spill] sm:$0xff] }
  0x93   : > { %3452 = vmatpush3.msk.msra.mxu1 %vm391_vm0, %v2833_v38  ;;  %3374 = vmatprep.mubr.msk.f32.mxu1 %vm342_vm2, %v3986_v6 }
  0x94   : > { %3418 = vmatprep.mubr.msk.f32.mxu0 %vm342_vm2, %v3710_v46  ;;  %3453 = vmatprep.subr.mxu1 %v2832_v52  ;;  %v1615_v46 = vrot.slane %v4217_v15, 2 }
  0x95   : > { %3419 = vmatmul.mubr.msk.f32.gmra.mxu0 %vm342_vm2, %v3733_v54  ;;  %3454 = vmatpush3.msra.mxu1 %v2832_v52  ;;  %v2860_v54 = vld [vmem:[%s4955_s1 + $0x108] sm:$0xff] }
  0x96   : > { %3375 = vmatmul.mubr.msk.f32.gmra.mxu1 %vm342_vm2, %v3995_v5  ;;  %3421 = vmatprep.mubr.msk.f32.mxu0 %vm342_vm2, %v3755_v62  ;;  %v2830_v62 = vld [vmem:[%s4955_s1 + $0xe0] sm:$0xff]  ;;  %v4409_v38 = vsel %vm816_vm3, %v1615_v46, %v1616_v31 }
  0x97   : > { %3377 = vmatprep.mubr.msk.f32.mxu1 %vm342_vm2, %v4014_v10  ;;  %3497 = vmatprep.subr.mxu0 %v2861_v22 }
  0x98   : > { %3498 = vmatpush3.msra.mxu0 %v2861_v22  ;;  %3455 = vmatprep.subr.mxu1 %v2831_v35 }
  0x99   : > { %3422 = vmatmul.mubr.msk.f32.gmra.mxu0 %vm342_vm2, %v3795_v28  ;;  %3456 = vmatpush3.msra.mxu1 %v2831_v35  ;;  %v2859_v28 = vld [vmem:[%s4955_s1 + $0x100] sm:$0xff] }
  0x9a   : > { %3378 = vmatmul.mubr.msk.f32.gmra.mxu1 %vm342_vm2, %v4021_v7  ;;  %3424 = vmatprep.mubr.msk.f32.mxu0 %vm342_vm2, %v4217_v15 }
  0x9b   : > { %3380 = vmatprep.mubr.msk.f32.mxu1 %vm342_vm2, %v4038_v59  ;;  %3499 = vmatprep.subr.mxu0 %v2860_v54 }
  0x9c   : > { %3500 = vmatpush3.msra.mxu0 %v2860_v54  ;;  %3457 = vmatprep.subr.mxu1 %v2830_v62 }
  0x9d   : > { %3425 = vmatmul.mubr.msk.f32.gmra.mxu0 %vm342_vm2, %v4404_v16  ;;  %3458 = vmatpush3.msra.mxu1 %v2830_v62 }
  0x9e   : > { %3381 = vmatmul.mubr.msk.f32.gmra.mxu1 %vm342_vm2, %v4409_v38  ;;  %3427 = vmatprep.mubr.msk.f32.mxu0 %vm342_vm2, %v3878_v49  ;;  %v1618_v49 = vrot.slane %v4285_v12, 2 }
  0x9f   : > { %3383 = vmatprep.mubr.msk.f32.mxu1 %vm342_vm2, %v4061_v37  ;;  %3501 = vmatprep.subr.mxu0 %v2859_v28  ;;  %v5022_v37 = vld [vmem:[#allocation4_spill] sm:$0xff] }
  0xa0   : > { %3502 = vmatpush3.msra.mxu0 %v2859_v28 }
  0xa1   : > { %3428 = vmatmul.mubr.msk.f32.gmra.mxu0 %vm342_vm2, %v3900_v63  ;;  %v1619_v63 = vrot.slane %v4288_v1, 2  ;;  %v211_v1 = vld [vmem:[%s3615_s27 + $0x1d8] sm:$0x3] }
  0xa2   : > { %3384 = vmatmul.mubr.msk.f32.gmra.mxu1 %vm342_vm2, %v4073_v51  ;;  %3430 = vmatprep.mubr.msk.f32.mxu0 %vm342_vm2, %v3624_v8  ;;  %v4447_v8 = vld [vmem:[%s3615_s27 + $0x130] sm:$0xff]  ;;  %v2083_v52 = vrot.slane %v211_v1, 1 }
  0xa3   : > { %3386 = vmatprep.mubr.msk.f32.mxu1 %vm342_vm2, %v4088_v56 }
  0xa5   : > { %3431 = vmatmul.mubr.msk.f32.gmra.mxu0 %vm342_vm2, %v3643_v17  ;;  %v4452_v17 = vsel %vm816_vm3, %v1618_v49, %v1619_v63 }
  0xa6   : > { %3387 = vmatmul.mubr.msk.f32.gmra.mxu1 %vm342_vm2, %v4095_v30  ;;  %3433 = vmatprep.mubr.msk.f32.mxu0 %vm342_vm2, %v3666_v29  ;;  %v1621_v29 = vrot.slane %v4328_v47, 2 }
  0xa7   : > { %3389 = vmatprep.mubr.msk.f32.mxu1 %vm342_vm2, %v4106_v21 }
  0xa9   : > { %3434 = vmatmul.mubr.msk.f32.gmra.mxu0 %vm342_vm2, %v3685_v36  ;;  %v1622_v36 = vrot.slane %v4331_v39, 2 }
  0xaa   : > { %3390 = vmatmul.mubr.msk.f32.gmra.mxu1 %vm342_vm2, %v4113_v33  ;;  %3436 = vmatprep.mubr.msk.f32.mxu0 %vm342_vm2, %v4285_v12 }
  0xab   : > { %3392 = vmatprep.mubr.msk.f32.mxu1 %vm342_vm2, %v4124_v41 }
  0xad   : > { %3437 = vmatmul.mubr.msk.f32.gmra.mxu0 %vm342_vm2, %v4447_v8 }
  0xae   : > { %3393 = vmatmul.mubr.msk.f32.gmra.mxu1 %vm342_vm2, %v4452_v17  ;;  %3439 = vmatprep.mubr.msk.f32.mxu0 %vm342_vm2, %v3769_v4  ;;  %v4487_v4 = vld [vmem:[%s3615_s27 + $0x1d0] sm:$0xff] }
  0xaf   : > { %3395 = vmatprep.mubr.msk.f32.mxu1 %vm342_vm2, %v4139_v11 }
  0xb1   : > { %3440 = vmatmul.mubr.msk.f32.gmra.mxu0 %vm342_vm2, %v3809_v43  ;;  %v4492_v43 = vsel %vm816_vm3, %v1621_v29, %v1622_v36 }
  0xb2   : > { %3396 = vmatmul.mubr.msk.f32.gmra.mxu1 %vm342_vm2, %v4146_v14  ;;  %3442 = vmatprep.mubr.msk.f32.mxu0 %vm342_vm2, %v3831_v0 }
  0xb3   : > { %3398 = vmatprep.mubr.msk.f32.mxu1 %vm342_vm2, %v4157_v44 }
  0xb5   : > { %3443 = vmatmul.mubr.msk.f32.gmra.mxu0 %vm342_vm2, %v3850_v20  ;;  %v2076_v20 = vrot.slane %v4404_v16, 1 }
  0xb6   : > { %3399 = vmatmul.mubr.msk.f32.gmra.mxu1 %vm342_vm2, %v4164_v9  ;;  %3445 = vmatprep.mubr.msk.f32.mxu0 %vm342_vm2, %v3894_v50  ;;  %v2308_v50 = vrot.slane %v4404_v16, 2 }
  0xb7   : > { %3401 = vmatprep.mubr.msk.f32.mxu1 %vm342_vm2, %v4175_v13 }
  0xb9   : > { %3446 = vmatmul.mubr.msk.f32.gmra.mxu0 %vm342_vm2, %v3917_v42  ;;  %v171_v42 = vld [vmem:[%s3615_s27 + $0x98] sm:$0x3] }
  0xba   : > { %3402 = vmatmul.mubr.msk.f32.gmra.mxu1 %vm342_vm2, %v4182_v19  ;;  %3448 = vmatprep.mubr.msk.f32.mxu0 %vm342_vm2, %v4328_v47  ;;  %v2309_v0 = vrot.slane %v171_v42, 2  ;;  %v2082_v47 = vrot.slane %v4487_v4, 1 }
  0xbb   : > { %3404 = vmatprep.mubr.msk.f32.mxu1 %vm342_vm2, %v4191_v23 }
  0xbd   : > { %3449 = vmatmul.mubr.msk.f32.gmra.mxu0 %vm342_vm2, %v4487_v4 }
  0xbe   : > { %3405 = vmatmul.mubr.msk.f32.gmra.mxu1 %vm342_vm2, %v4492_v43  ;;  %3503 = vmatprep.mubr.msk.f32.mxu0 %vm342_vm2, %v3977_v27  ;;  %v2077_v27 = vrot.slane %v171_v42, 1 }
  0xbf   : > { %3459 = vmatprep.mubr.msk.f32.mxu1 %vm342_vm2, %v5006_v53  ;;  %v5024_v53 = vld [vmem:[#allocation3_spill] sm:$0xff] }
  0xc1   : > { %3504 = vmatmul.mubr.msk.f32.vlgmr.msra.gmra.mxu0 %vm342_vm2, %v3986_v6  ;;  %v2310_v6 = vsel %vm816_vm3, %v2308_v50, %v2309_v0 }
  0xc2   : > { %3460 = vmatmul.mubr.msk.f32.vlgmr.msra.gmra.mxu1 %vm342_vm2, %v5007_v2  ;;  %3506 = vmatprep.mubr.msk.f32.mxu0 %vm342_vm2, %v3995_v5  ;;  %v2078_v5 = vsel %vm264_vm1, %v2076_v20, %v2077_v27 }
  0xc3   : > { %3462 = vmatprep.mubr.msk.f32.mxu1 %vm342_vm2, %v5008_v32 }
  0xc5   : > { %3507 = vmatmul.mubr.msk.f32.gmra.mxu0 %vm342_vm2, %v4014_v10  ;;  %v5021_v10 = vld [vmem:[#allocation2_spill] sm:$0xff] }
  0xc6   : > { %3463 = vmatmul.mubr.msk.f32.gmra.mxu1 %vm342_vm2, %v5009_v57  ;;  %3509 = vmatprep.mubr.msk.f32.mxu0 %vm342_vm2, %v4021_v7  ;;  %v191_v7 = vld [vmem:[%s3615_s27 + $0x138] sm:$0x3]  ;;  %s2890_s27 = sshll.u32 %s5064_s15, 6 }
  0xc7   : > { %3465 = vmatprep.mubr.msk.f32.mxu1 %vm342_vm2, %v5010_v25  ;;  %s4843_s13 = scalar_lea.vmem %s4956_s2, %s2890_s27 }
  0xc9   : > { %3510 = vmatmul.mubr.msk.f32.gmra.mxu0 %vm342_vm2, %v4038_v59  ;;  %v2311_v59 = vrot.slane %v4447_v8, 2 }
  0xca   : > { %3466 = vmatmul.mubr.msk.f32.gmra.mxu1 %vm342_vm2, %v5011_v60  ;;  %3512 = vmatprep.mubr.msk.f32.mxu0 %vm342_vm2, %v4409_v38 }
  0xcb   : > { %3468 = vmatprep.mubr.msk.f32.mxu1 %vm342_vm2, %v4253_v34 }
  0xcd   : > { %3513 = vmatmul.mubr.msk.f32.gmra.mxu0 %vm342_vm2, %v2310_v6 }
  0xce   : > { %3469 = vmatmul.mubr.msk.f32.gmra.mxu1 %vm342_vm2, %v2078_v5  ;;  %3515 = vmatprep.mubr.msk.f32.mxu0 %vm342_vm2, %v4073_v51  ;;  %v5023_v51 = vld [vmem:[#allocation6_spill] sm:$0xff] }
  0xcf   : > { %3471 = vmatprep.mubr.msk.f32.mxu1 %vm342_vm2, %v3922_v26  ;;  %v2312_v26 = vrot.slane %v191_v7, 2 }
  0xd1   : > { %3516 = vmatmul.mubr.msk.f32.gmra.mxu0 %vm342_vm2, %v4088_v56  ;;  %v2080_v56 = vrot.slane %v191_v7, 1 }
  0xd2   : > { %3472 = vmatmul.mubr.msk.f32.gmra.mxu1 %vm342_vm2, %v3945_v3  ;;  %3518 = vmatprep.mubr.msk.f32.mxu0 %vm342_vm2, %v4095_v30  ;;  %v2079_v3 = vrot.slane %v4447_v8, 1 }
  0xd3   : > { %3474 = vmatprep.mubr.msk.f32.mxu1 %vm342_vm2, %v5021_v10 }
  0xd4   : > { %v2081_v15 = vsel %vm264_vm1, %v2079_v3, %v2080_v56 }
  0xd5   : > { %3519 = vmatmul.mubr.msk.f32.gmra.mxu0 %vm342_vm2, %v4106_v21 }
  0xd6   : > { %3475 = vmatmul.mubr.msk.f32.gmra.mxu1 %vm342_vm2, %v5022_v37  ;;  %3521 = vmatprep.mubr.msk.f32.mxu0 %vm342_vm2, %v4113_v33  ;;  %v2313_v33 = vsel %vm816_vm3, %v2311_v59, %v2312_v26 }
  0xd7   : > { %3477 = vmatprep.mubr.msk.f32.mxu1 %vm342_vm2, %v5023_v51 }
  0xd9   : > { %v3153_v30 = vpop.f32.mrf.mxu0  ;;  %3522 = vmatmul.mubr.msk.f32.gmra.mxu0 %vm342_vm2, %v4124_v41 }
  0xda   : > { %v4558_v21 = vpop.f32.mrf.mxu1  ;;  %3478 = vmatmul.mubr.msk.f32.gmra.mxu1 %vm342_vm2, %v5015_v48  ;;  %3524 = vmatprep.mubr.msk.f32.mxu0 %vm342_vm2, %v4452_v17 }
  0xdb   : > { %v461_v11 = vpop.f32.mrf.mxu0  ;;  %3480 = vmatprep.mubr.msk.f32.mxu1 %vm342_vm2, %v5024_v53 }
  0xdc   : > { %v4568_v2 = vpop.f32.mrf.mxu1 }
  0xdd   : > { %v3156_v41 = vpop.f32.mrf.mxu0  ;;  %3525 = vmatmul.mubr.msk.f32.gmra.mxu0 %vm342_vm2, %v2313_v33 }
  0xde   : > { %v4571_v32 = vpop.f32.mrf.mxu1  ;;  %3481 = vmatmul.mubr.msk.f32.gmra.mxu1 %vm342_vm2, %v2081_v15  ;;  %3527 = vmatprep.mubr.msk.f32.mxu0 %vm342_vm2, %v4146_v14  ;;  %v5026_v14 = vld [vmem:[#allocation16_spill] sm:$0xff] }
  0xdf   : > { %v471_v57 = vpop.f32.mrf.mxu0  ;;  %3483 = vmatprep.mubr.msk.f32.mxu1 %vm342_vm2, %v5018_v24 }
  0xe0   : > { %v4578_v25 = vpop.f32.mrf.mxu1 }
  0xe1   : > { %v3159_v60 = vpop.f32.mrf.mxu0  ;;  %3528 = vmatmul.mubr.msk.f32.gmra.mxu0 %vm342_vm2, %v4157_v44  ;;  %v2314_v44 = vrot.slane %v4487_v4, 2 }
  0xe2   : > { %v4582_v34 = vpop.f32.mrf.mxu1  ;;  %3484 = vmatmul.mubr.msk.f32.gmra.mxu1 %vm342_vm2, %v5025_v45  ;;  %3530 = vmatprep.mubr.msk.f32.mxu0 %vm342_vm2, %v4164_v9  ;;  %v2315_v9 = vrot.slane %v211_v1, 2 }
  0xe3   : > { %v481_v12 = vpop.f32.mrf.mxu0  ;;  %3486 = vmatprep.mubr.msk.f32.mxu1 %vm342_vm2, %v5026_v14 }
  0xe4   : > { %v4591_v39 = vpop.f32.mrf.mxu1 }
  0xe5   : > { %v3162_v24 = vpop.f32.mrf.mxu0  ;;  %3531 = vmatmul.mubr.msk.f32.gmra.mxu0 %vm342_vm2, %v4175_v13 }
  0xe6   : > { %v4596_v48 = vpop.f32.mrf.mxu1  ;;  %3487 = vmatmul.mubr.msk.f32.gmra.mxu1 %vm342_vm2, %v5020_v61  ;;  %3533 = vmatprep.mubr.msk.f32.mxu0 %vm342_vm2, %v4182_v19  ;;  %v2316_v19 = vsel %vm816_vm3, %v2314_v44, %v2315_v9 }
  0xe7   : > { %v491_v40 = vpop.f32.mrf.mxu0  ;;  %3489 = vmatprep.mubr.msk.f32.mxu1 %vm342_vm2, %v3931_v58  ;;  %v2084_v58 = vsel %vm264_vm1, %v2082_v47, %v2083_v52 }
  0xe8   : > { %v4605_v22 = vpop.f32.mrf.mxu1 }
  0xe9   : > { %v3165_v13 = vpop.f32.mrf.mxu0  ;;  %3534 = vmatmul.mubr.msk.f32.gmra.mxu0 %vm342_vm2, %v4191_v23 }
  0xea   : > { %v4609_v35 = vpop.f32.mrf.mxu1  ;;  %3490 = vmatmul.mubr.msk.f32.gmra.mxu1 %vm342_vm2, %v3951_v55  ;;  %3536 = vmatprep.mubr.msk.f32.mxu0 %vm342_vm2, %v4492_v43 }
  0xeb   : > { %v501_v61 = vpop.f32.mrf.mxu0  ;;  %3492 = vmatprep.mubr.msk.f32.mxu1 %vm342_vm2, %v4350_v18 }
  0xec   : > { %v4619_v46 = vpop.f32.mrf.mxu1 }
  0xed   : > { %v3168_v31 = vpop.f32.mrf.mxu0  ;;  %3537 = vmatmul.mubr.msk.f32.gmra.mxu0 %vm342_vm2, %v2316_v19 }
  0xee   : > { %v4622_v23 = vpop.f32.mrf.mxu1  ;;  %3493 = vmatmul.mubr.msk.f32.gmra.mxu1 %vm342_vm2, %v2084_v58 }
  0xef   : > { %v511_v55 = vpop.f32.mrf.mxu0 }
  0xf0   : > { %v4625_v54 = vpop.f32.mrf.mxu1 }
  0xf1   : > { %v3241_v62 = vpop.f32.mrf.mxu0 }
  0xf2   : > { %v3197_v16 = vpop.f32.mrf.mxu1 }
  0xf3   : > { %v703_v38 = vadd.f32 %v3197_v16, %v3153_v30  ;;  %v1011_v28 = vpop.f32.mrf.mxu0 }
  0xf4   : > { %v697_v49 = vpop.f32.mrf.mxu1 }
  0xf5   : > { %v4627_v18 = vadd.f32 %v3241_v62, %v703_v38  ;;  %v698_v63 = vadd.f32 %v697_v49, %v461_v11  ;;  %v3244_v8 = vpop.f32.mrf.mxu0 }
  0xf6   : > { %v3200_v17 = vpop.f32.mrf.mxu1 }
  0xf7   : > { %v4629_v29 = vadd.f32 %v1011_v28, %v698_v63  ;;  %v713_v36 = vadd.f32 %v3200_v17, %v3156_v41  ;;  %v1021_v4 = vpop.f32.mrf.mxu0 }
  0xf8   : > { %v707_v43 = vpop.f32.mrf.mxu1 }
  0xf9   : > { %v4631_v42 = vadd.f32 %v3244_v8, %v713_v36  ;;  %v708_v50 = vadd.f32 %v707_v43, %v471_v57  ;;  %v3247_v0 = vpop.f32.mrf.mxu0 }
  0xfa   : > { %v3203_v20 = vpop.f32.mrf.mxu1 }
  0xfb   : > { %v4633_v27 = vadd.f32 %v1021_v4, %v708_v50  ;;  %v723_v6 = vadd.f32 %v3203_v20, %v3159_v60  ;;  %v1031_v5 = vpop.f32.mrf.mxu0 }
  0xfc   : > { %v717_v10 = vpop.f32.mrf.mxu1 }
  0xfd   : > { %v4635_v7 = vadd.f32 %v3247_v0, %v723_v6  ;;  %v718_v59 = vadd.f32 %v717_v10, %v481_v12  ;;  %v3250_v37 = vpop.f32.mrf.mxu0 }
  0xfe   : > { %v3206_v26 = vpop.f32.mrf.mxu1 }
  0xff   : > { %v4637_v3 = vadd.f32 %v1031_v5, %v718_v59  ;;  %v733_v51 = vadd.f32 %v3206_v26, %v3162_v24  ;;  %v1041_v56 = vpop.f32.mrf.mxu0 }
 0x100   : > { %v727_v30 = vpop.f32.mrf.mxu1 }
 0x101   : > { %v4639_v33 = vadd.f32 %v3250_v37, %v733_v51  ;;  %v728_v11 = vadd.f32 %v727_v30, %v491_v40  ;;  %v3253_v53 = vpop.f32.mrf.mxu0 }
 0x102   : > { %v3209_v15 = vpop.f32.mrf.mxu1 }
 0x103   : > { %v4641_v41 = vadd.f32 %v1041_v56, %v728_v11  ;;  %v743_v57 = vadd.f32 %v3209_v15, %v3165_v13  ;;  %v1051_v60 = vpop.f32.mrf.mxu0 }
 0x104   : > { %v737_v45 = vpop.f32.mrf.mxu1 }
 0x105   : > { %v4643_v14 = vadd.f32 %v3253_v53, %v743_v57  ;;  %v738_v12 = vadd.f32 %v737_v45, %v501_v61  ;;  %v3256_v1 = vpop.f32.mrf.mxu0 }
 0x106   : > { %v3212_v44 = vpop.f32.mrf.mxu1 }
 0x107   : > { %v4645_v9 = vadd.f32 %v1051_v60, %v738_v12  ;;  %v753_v24 = vadd.f32 %v3212_v44, %v3168_v31  ;;  %v1061_v47 = vpop.f32.mrf.mxu0 }
 0x108   : > { %v747_v52 = vpop.f32.mrf.mxu1 }
 0x109   : > { %v4647_v19 = vadd.f32 %v3256_v1, %v753_v24  ;;  %v748_v40 = vadd.f32 %v747_v52, %v511_v55  ;;  %v3259_v58 = vpop.f32.mrf.mxu0 }
 0x10a   : > { %v3215_v62 = vpop.f32.mrf.mxu1 }
 0x10b   : > { %v4649_v16 = vadd.f32 %v1061_v47, %v748_v40  ;;  %v763_v13 = vadd.f32 %v3215_v62, %v4558_v21  ;;  %v1071_v38 = vpop.f32.mrf.mxu0 }
 0x10c   : > { %v757_v28 = vpop.f32.mrf.mxu1 }
 0x10d   : > { %v4652_v49 = vadd.f32 %v3259_v58, %v763_v13  ;;  %v758_v61 = vadd.f32 %v757_v28, %v4568_v2  ;;  %v3262_v63 = vpop.f32.mrf.mxu0 }
 0x10e   : > { %v3218_v8 = vpop.f32.mrf.mxu1 }
 0x10f   : > { %v4655_v31 = vadd.f32 %v1071_v38, %v758_v61  ;;  %v773_v17 = vadd.f32 %v3218_v8, %v4571_v32  ;;  %v1081_v36 = vpop.f32.mrf.mxu0 }
 0x110   : > { %v767_v55 = vpop.f32.mrf.mxu1 }
 0x111   : > { %v4658_v4 = vadd.f32 %v3262_v63, %v773_v17  ;;  %v768_v43 = vadd.f32 %v767_v55, %v4578_v25  ;;  %v3265_v50 = vpop.f32.mrf.mxu0 }
 0x112   : > { %v3221_v21 = vpop.f32.mrf.mxu1 }
 0x113   : > { %v4661_v0 = vadd.f32 %v1081_v36, %v768_v43  ;;  %v783_v20 = vadd.f32 %v3221_v21, %v4582_v34  ;;  %v1091_v6 = vpop.f32.mrf.mxu0 }
 0x114   : > { %v777_v2 = vpop.f32.mrf.mxu1 }
 0x115   : > { %v4664_v5 = vadd.f32 %v3265_v50, %v783_v20  ;;  %v778_v10 = vadd.f32 %v777_v2, %v4591_v39  ;;  %v3268_v59 = vpop.f32.mrf.mxu0 }
 0x116   : > { %v3224_v32 = vpop.f32.mrf.mxu1 }
 0x117   : > { %v4667_v37 = vadd.f32 %v1091_v6, %v778_v10  ;;  %v793_v26 = vadd.f32 %v3224_v32, %v4596_v48  ;;  %v1101_v51 = vpop.f32.mrf.mxu0 }
 0x118   : > { %v787_v25 = vpop.f32.mrf.mxu1 }
 0x119   : > { %v4670_v56 = vadd.f32 %v3268_v59, %v793_v26  ;;  %v788_v30 = vadd.f32 %v787_v25, %v4605_v22  ;;  %v3271_v11 = vpop.f32.mrf.mxu0 }
 0x11a   : > { %v3227_v34 = vpop.f32.mrf.mxu1 }
 0x11b   : > { %v4673_v53 = vadd.f32 %v1101_v51, %v788_v30  ;;  %v803_v15 = vadd.f32 %v3227_v34, %v4609_v35  ;;  %v1111_v57 = vpop.f32.mrf.mxu0 }
 0x11c   : > { %v797_v39 = vpop.f32.mrf.mxu1 }
 0x11d   : > { %v4676_v60 = vadd.f32 %v3271_v11, %v803_v15  ;;  %v798_v45 = vadd.f32 %v797_v39, %v4619_v46  ;;  %v3274_v12 = vpop.f32.mrf.mxu0 }
 0x11e   : > { %v3230_v48 = vpop.f32.mrf.mxu1 }
 0x11f   : > { %v4679_v1 = vadd.f32 %v1111_v57, %v798_v45  ;;  %v813_v44 = vadd.f32 %v3230_v48, %v4622_v23  ;;  %v1121_v24 = vpop.f32.mrf.mxu0 }
 0x120   : > { %v807_v22 = vpop.f32.mrf.mxu1 }
 0x121   : > { %v4682_v47 = vadd.f32 %v3274_v12, %v813_v44  ;;  %v808_v52 = vadd.f32 %v807_v22, %v4625_v54  ;;  %v3329_v40 = vpop.f32.mrf.mxu0 }
 0x122   : > { %v3285_v35 = vpop.f32.mrf.mxu1 }
 0x123   : > { %v4685_v58 = vadd.f32 %v1121_v24, %v808_v52  ;;  %v1357_v62 = vadd.f32 %v3285_v35, %v4627_v18  ;;  %v1472_v13 = vpop.f32.mrf.mxu0 }
 0x124   : > { %v1237_v46 = vpop.f32.mrf.mxu1 }
 0x125   : > { %v4688_v38 = vadd.f32 %v3329_v40, %v1357_v62  ;;  %v1356_v28 = vadd.f32 %v1237_v46, %v4629_v29  ;;  %v3332_v61 = vpop.f32.mrf.mxu0 }
 0x126   : > { %v3288_v23 = vpop.f32.mrf.mxu1 }
 0x127   : > { %v4691_v63 = vadd.f32 %v1472_v13, %v1356_v28  ;;  %v1359_v8 = vadd.f32 %v3288_v23, %v4631_v42  ;;  %v1482_v17 = vpop.f32.mrf.mxu0 }
 0x128   : > { %v1247_v54 = vpop.f32.mrf.mxu1 }
 0x129   : > { %v4694_v36 = vadd.f32 %v3332_v61, %v1359_v8  ;;  %v1358_v55 = vadd.f32 %v1247_v54, %v4633_v27  ;;  %v3335_v43 = vpop.f32.mrf.mxu0 }
 0x12a   : > { %v3291_v18 = vpop.f32.mrf.mxu1 }
 0x12b   : > { %v4697_v50 = vadd.f32 %v1482_v17, %v1358_v55  ;;  %v1361_v21 = vadd.f32 %v3291_v18, %v4635_v7  ;;  %v1492_v20 = vpop.f32.mrf.mxu0 }
 0x12c   : > { %v1257_v29 = vpop.f32.mrf.mxu1 }
 0x12d   : > { %v4700_v6 = vadd.f32 %v3335_v43, %v1361_v21  ;;  %v1360_v2 = vadd.f32 %v1257_v29, %v4637_v3  ;;  %v3338_v10 = vpop.f32.mrf.mxu0 }
 0x12e   : > { %v3294_v42 = vpop.f32.mrf.mxu1 }
 0x12f   : > { %v4703_v59 = vadd.f32 %v1492_v20, %v1360_v2  ;;  %v1363_v32 = vadd.f32 %v3294_v42, %v4639_v33  ;;  %v1502_v26 = vpop.f32.mrf.mxu0 }
 0x130   : > { %v1267_v27 = vpop.f32.mrf.mxu1 }
 0x131   : > { %v4706_v51 = vadd.f32 %v3338_v10, %v1363_v32  ;;  %v1362_v25 = vadd.f32 %v1267_v27, %v4641_v41  ;;  %v3341_v30 = vpop.f32.mrf.mxu0 }
 0x132   : > { %v3297_v7 = vpop.f32.mrf.mxu1 }
 0x133   : > { %v4709_v11 = vadd.f32 %v1502_v26, %v1362_v25  ;;  %v1365_v34 = vadd.f32 %v3297_v7, %v4643_v14  ;;  %v1512_v15 = vpop.f32.mrf.mxu0 }
 0x134   : > { %v1277_v3 = vpop.f32.mrf.mxu1 }
 0x135   : > { %v4712_v57 = vadd.f32 %v3341_v30, %v1365_v34  ;;  %v1364_v39 = vadd.f32 %v1277_v3, %v4645_v9  ;;  %v3344_v45 = vpop.f32.mrf.mxu0 }
 0x136   : > { %v3300_v33 = vpop.f32.mrf.mxu1 }
 0x137   : > { %v4715_v12 = vadd.f32 %v1512_v15, %v1364_v39  ;;  %v1367_v48 = vadd.f32 %v3300_v33, %v4647_v19  ;;  %v1522_v44 = vpop.f32.mrf.mxu0 }
 0x138   : > { %v1287_v41 = vpop.f32.mrf.mxu1 }
 0x139   : > { %v4718_v24 = vadd.f32 %v3344_v45, %v1367_v48  ;;  %v1366_v22 = vadd.f32 %v1287_v41, %v4649_v16  ;;  %v3347_v52 = vpop.f32.mrf.mxu0 }
 0x13a   : > { %v3303_v14 = vpop.f32.mrf.mxu1 }
 0x13b   : > { %v4721_v40 = vadd.f32 %v1522_v44, %v1366_v22  ;;  %v1369_v35 = vadd.f32 %v3303_v14, %v4652_v49  ;;  %v1532_v62 = vpop.f32.mrf.mxu0 }
 0x13c   : > { %v1297_v9 = vpop.f32.mrf.mxu1 }
 0x13d   : > { %v4724_v13 = vadd.f32 %v3347_v52, %v1369_v35  ;;  %v1368_v46 = vadd.f32 %v1297_v9, %v4655_v31  ;;  %v3350_v28 = vpop.f32.mrf.mxu0 }
 0x13e   : > { %v3306_v19 = vpop.f32.mrf.mxu1 }
 0x13f   : > { %v4727_v61 = vadd.f32 %v1532_v62, %v1368_v46  ;;  %v1371_v23 = vadd.f32 %v3306_v19, %v4658_v4  ;;  %v1542_v8 = vpop.f32.mrf.mxu0 }
 0x140   : > { %v1307_v16 = vpop.f32.mrf.mxu1 }
 0x141   : > { %v4730_v17 = vadd.f32 %v3350_v28, %v1371_v23  ;;  %v1370_v54 = vadd.f32 %v1307_v16, %v4661_v0  ;;  %v3353_v55 = vpop.f32.mrf.mxu0 }
 0x142   : > { %v3309_v49 = vpop.f32.mrf.mxu1 }
 0x143   : > { %v4733_v43 = vadd.f32 %v1542_v8, %v1370_v54  ;;  %v1373_v18 = vadd.f32 %v3309_v49, %v4664_v5  ;;  %v1552_v21 = vpop.f32.mrf.mxu0 }
 0x144   : > { %v1317_v31 = vpop.f32.mrf.mxu1 }
 0x145   : > { %v4736_v20 = vadd.f32 %v3353_v55, %v1373_v18  ;;  %v1372_v29 = vadd.f32 %v1317_v31, %v4667_v37  ;;  %v3356_v2 = vpop.f32.mrf.mxu0 }
 0x146   : > { %v3312_v4 = vpop.f32.mrf.mxu1 }
 0x147   : > { %v4739_v10 = vadd.f32 %v1552_v21, %v1372_v29  ;;  %v1375_v42 = vadd.f32 %v3312_v4, %v4670_v56  ;;  %v1562_v32 = vpop.f32.mrf.mxu0 }
 0x148   : > { %v1327_v0 = vpop.f32.mrf.mxu1 }
 0x149   : > { %v4742_v26 = vadd.f32 %v3356_v2, %v1375_v42  ;;  %v1374_v27 = vadd.f32 %v1327_v0, %v4673_v53  ;;  %v3359_v25 = vpop.f32.mrf.mxu0 }
 0x14a   : > { %v3315_v5 = vpop.f32.mrf.mxu1 }
 0x14b   : > { %5027 = vst [vmem:[#allocation5_spill] sm:$0xff] %v4742_v26  ;;  %v4745_v30 = vadd.f32 %v1562_v32, %v1374_v27  ;;  %v1377_v7 = vadd.f32 %v3315_v5, %v4676_v60  ;;  %v1572_v34 = vpop.f32.mrf.mxu0 }
 0x14c   : > { %v1337_v37 = vpop.f32.mrf.mxu1 }
 0x14d   : > { %5028 = vst [vmem:[#allocation7_spill] sm:$0xff] %v4745_v30  ;;  %v4748_v15 = vadd.f32 %v3359_v25, %v1377_v7  ;;  %v1376_v3 = vadd.f32 %v1337_v37, %v4679_v1  ;;  %v3362_v39 = vpop.f32.mrf.mxu0 }
 0x14e   : > { %v3318_v56 = vpop.f32.mrf.mxu1 }
 0x14f   : > { %5029 = vst [vmem:[#allocation9_spill] sm:$0xff] %v4748_v15  ;;  %v4751_v45 = vadd.f32 %v1572_v34, %v1376_v3  ;;  %v1379_v33 = vadd.f32 %v3318_v56, %v4682_v47  ;;  %v1582_v48 = vpop.f32.mrf.mxu0 }
 0x150   : > { %v1347_v53 = vpop.f32.mrf.mxu1 }
 0x151   : > { %5030 = vst [vmem:[#allocation10_spill] sm:$0xff] %v4751_v45  ;;  %v4754_v44 = vadd.f32 %v3362_v39, %v1379_v33  ;;  %v1378_v41 = vadd.f32 %v1347_v53, %v4685_v58  ;;  %v3417_v22 = vpop.f32.mrf.mxu0 }
 0x152   : > { %v3373_v60 = vpop.f32.mrf.mxu1 }
 0x153   : > { %5031 = vst [vmem:[#allocation12_spill] sm:$0xff] %v4754_v44  ;;  %v4757_v52 = vadd.f32 %v1582_v48, %v1378_v41  ;;  %v1930_v14 = vpop.f32.mrf.mxu0  ;;  %v1824_v30 = vadd.f32 %v3373_v60, %v4688_v38 }
 0x154   : > { %v1704_v35 = vpop.f32.mrf.mxu1 }
 0x155   : > { %5032 = vst [vmem:[#allocation14_spill] sm:$0xff] %v4757_v52  ;;  %v3420_v62 = vpop.f32.mrf.mxu0 }
 0x156   : > { %v3376_v1 = vpop.f32.mrf.mxu1 }
 0x157   : > { %v1940_v9 = vpop.f32.mrf.mxu0 }
 0x158   : > { %v1714_v46 = vpop.f32.mrf.mxu1 }
 0x159   : > { %v4759_v28 = vpop.f32.mrf.mxu0 }
 0x15a   : > { %v3379_v19 = vpop.f32.mrf.mxu1 }
 0x15b   : > { %v4761_v47 = vpop.f32.mrf.mxu0 }
 0x15c   : > { %v1724_v23 = vpop.f32.mrf.mxu1 }
 0x15d   : > { %v4763_v8 = vpop.f32.mrf.mxu0 }
 0x15e   : > { %v4765_v16 = vpop.f32.mrf.mxu1 }
 0x15f   : > { %v4767_v58 = vpop.f32.mrf.mxu0 }
 0x160   : > { %v4769_v54 = vpop.f32.mrf.mxu1 }
 0x161   : > { %v4771_v55 = vpop.f32.mrf.mxu0 }
 0x162   : > { %v4773_v49 = vpop.f32.mrf.mxu1 }
 0x163   : > { %v4775_v18 = vpop.f32.mrf.mxu0 }
 0x164   : > { %v4777_v21 = vpop.f32.mrf.mxu1 }
 0x165   : > { %v4779_v31 = vpop.f32.mrf.mxu0 }
 0x166   : > { %v4781_v29 = vpop.f32.mrf.mxu1 }
 0x167   : > { %v4783_v2 = vpop.f32.mrf.mxu0 }
 0x168   : > { %v4785_v4 = vpop.f32.mrf.mxu1 }
 0x169   : > { %v4787_v42 = vpop.f32.mrf.mxu0 }
 0x16a   : > { %v4789_v32 = vpop.f32.mrf.mxu1 }
 0x16b   : > { %v4791_v0 = vpop.f32.mrf.mxu0 }
 0x16c   : > { %v4793_v27 = vpop.f32.mrf.mxu1 }
 0x16d   : > { %v4795_v25 = vpop.f32.mrf.mxu0 }
 0x16e   : > { %v4797_v5 = vpop.f32.mrf.mxu1 }
 0x16f   : > { %v4799_v7 = vpop.f32.mrf.mxu0 }
 0x170   : > { %v4801_v34 = vpop.f32.mrf.mxu1 }
 0x171   : > { %v4803_v37 = vpop.f32.mrf.mxu0 }
 0x172   : > { %5033 = vst [vmem:[#allocation8_spill] sm:$0xff] %v4803_v37  ;;  %v4805_v3 = vpop.f32.mrf.mxu1 }
 0x173   : > { %v4807_v39 = vpop.f32.mrf.mxu0 }
 0x174   : > { %5034 = vst [vmem:[#allocation11_spill] sm:$0xff] %v4807_v39  ;;  %v4809_v56 = vpop.f32.mrf.mxu1 }
 0x175   : > { %v4811_v33 = vpop.f32.mrf.mxu0 }
 0x176   : > { %5035 = vst [vmem:[#allocation13_spill] sm:$0xff] %v4811_v33  ;;  %v4813_v48 = vpop.f32.mrf.mxu1 }
 0x177   : > { %5036 = vst [vmem:[#allocation17_spill] sm:$0xff] %v4813_v48  ;;  %v4815_v53 = vpop.f32.mrf.mxu0  ;;  %v1823_v48 = vadd.f32 %v1704_v35, %v4691_v63 }
 0x178   : > { %5037 = vst [vmem:[#allocation2_spill] sm:$0xff] %v4815_v53  ;;  %v4817_v41 = vpop.f32.mrf.mxu1 }
 0x179   : > { %5038 = vst [vmem:[#allocation4_spill] sm:$0xff] %v4817_v41  ;;  %v4819_v52 = vpop.f32.mrf.mxu0  ;;  %v2050_v41 = vadd.f32 %v3417_v22, %v1824_v30  ;;  %v2049_v37 = vadd.f32 %v1930_v14, %v1823_v48 }
 0x17a   : > { %5039 = vst [vmem:[#allocation6_spill] sm:$0xff] %v4819_v52  ;;  %v4821_v44 = vpop.f32.mrf.mxu1  ;;  %v1826_v52 = vadd.f32 %v3376_v1, %v4694_v36  ;;  %v1828_v36 = vadd.f32 %v3379_v19, %v4700_v6  ;;  %v1830_v6 = vadd.f32 %v4765_v16, %v4706_v51 }
 0x17b   : > { %5040 = vst [vmem:[#allocation3_spill] sm:$0xff] %v4821_v44  ;;  %v4823_v45 = vpop.f32.mrf.mxu0 }
 0x17c   : > { %5041 = vst [vmem:[#allocation15_spill] sm:$0xff] %v4823_v45  ;;  %v4825_v15 = vpop.f32.mrf.mxu1  ;;  %v2052_v30 = vadd.f32 %v3420_v62, %v1826_v52  ;;  %v2056_v51 = vadd.f32 %v4763_v8, %v1830_v6 }
 0x17d   : > { %5042 = vst [vmem:[#allocation16_spill] sm:$0xff] %v4825_v15  ;;  %v4828_v39 = vpop.f32.mrf.mxu0  ;;  %v1825_v15 = vadd.f32 %v1714_v46, %v4697_v50  ;;  %v1827_v50 = vadd.f32 %v1724_v23, %v4703_v59 }
 0x17e   : > { %5043 = vst [vmem:[#allocation18_spill] sm:$0xff] %v4828_v39  ;;  %v4830_v33 = vpop.f32.mrf.mxu1  ;;  %v2054_v39 = vadd.f32 %v4759_v28, %v1828_v36 }
 0x17f   : > { %v4833_v26 = vpop.f32.mrf.mxu0  ;;  %v2051_v48 = vadd.f32 %v1940_v9, %v1825_v15  ;;  %v2053_v59 = vadd.f32 %v4761_v47, %v1827_v50  ;;  %v1829_v9 = vadd.f32 %v4769_v54, %v4709_v11  ;;  %v1831_v54 = vadd.f32 %v4777_v21, %v4715_v12 }
 0x180   : > { %5044 = vst [vmem:[#allocation19_spill] sm:$0xff] %v4833_v26  ;;  %v4835_v53 = vpop.f32.mrf.mxu1  ;;  %v1833_v21 = vadd.f32 %v4785_v4, %v4721_v40  ;;  %v1835_v4 = vadd.f32 %v4793_v27, %v4727_v61  ;;  %v1837_v27 = vadd.f32 %v4801_v34, %v4733_v43  ;;  %v1839_v34 = vadd.f32 %v4809_v56, %v4739_v10  ;;  %v5049_v56 = vld [vmem:[#allocation7_spill] sm:$0xff] }
 0x181   : > { %v3505_v44 = vpop.f32.mrf.mxu0  ;;  %v2055_v11 = vadd.f32 %v4767_v58, %v1829_v9  ;;  %v2057_v12 = vadd.f32 %v4775_v18, %v1831_v54 }
 0x182   : > { %v3461_v45 = vpop.f32.mrf.mxu1  ;;  %v2059_v40 = vadd.f32 %v4783_v2, %v1833_v21  ;;  %v2061_v61 = vadd.f32 %v4791_v0, %v1835_v4  ;;  %v2063_v43 = vadd.f32 %v4799_v7, %v1837_v27  ;;  %v5053_v21 = vld [vmem:[#allocation3_spill] sm:$0xff] }
 0x183   : > { %v2285_v38 = vadd.f32 %v3461_v45, %v2050_v41  ;;  %v2397_v60 = vpop.f32.mrf.mxu0 }
 0x184   : > { %v2165_v63 = vpop.f32.mrf.mxu1 }
 0x185   : > { %v2517_v22 = vadd.f32 %v3505_v44, %v2285_v38  ;;  %v2284_v35 = vadd.f32 %v2165_v63, %v2049_v37  ;;  %v3508_v1 = vpop.f32.mrf.mxu0 }
 0x186   : > { %v3464_v14 = vpop.f32.mrf.mxu1 }
 0x187   : > { %2542 = vst.msk [vmem:[%s4843_s13 + $0x8] sm:$0xff] %vm2540_vm4, %v2517_v22  ;;  %v2516_v45 = vadd.f32 %v2397_v60, %v2284_v35  ;;  %v2287_v46 = vadd.f32 %v3464_v14, %v2052_v30  ;;  %v2407_v41 = vpop.f32.mrf.mxu0 }
 0x188   : > { %v2175_v26 = vpop.f32.mrf.mxu1 }
 0x189   : > { %2541 = vst.msk [vmem:[%s4843_s13] sm:$0xff] %vm2540_vm4, %v2516_v45  ;;  %v2519_v44 = vadd.f32 %v3508_v1, %v2287_v46  ;;  %v2286_v52 = vadd.f32 %v2175_v26, %v2051_v48  ;;  %v3511_v15 = vpop.f32.mrf.mxu0  ;;  %v1832_v26 = vadd.f32 %v4773_v49, %v4712_v57  ;;  %v1834_v49 = vadd.f32 %v4781_v29, %v4718_v24 }
 0x18a   : > { %v3467_v62 = vpop.f32.mrf.mxu1  ;;  %v1836_v29 = vadd.f32 %v4789_v32, %v4724_v13  ;;  %v1838_v32 = vadd.f32 %v4797_v5, %v4730_v17  ;;  %v1840_v5 = vadd.f32 %v4805_v3, %v4736_v20  ;;  %v5046_v3 = vld [vmem:[#allocation5_spill] sm:$0xff] }
 0x18b   : > { %2544 = vst.msk [vmem:[%s4843_s13 + $0x18] sm:$0xff] %vm2540_vm4, %v2519_v44  ;;  %v2518_v19 = vadd.f32 %v2407_v41, %v2286_v52  ;;  %v2289_v28 = vadd.f32 %v3467_v62, %v2054_v39  ;;  %v2417_v23 = vpop.f32.mrf.mxu0  ;;  %v2058_v57 = vadd.f32 %v4771_v55, %v1832_v26  ;;  %v2060_v24 = vadd.f32 %v4779_v31, %v1834_v49 }
 0x18c   : > { %v2185_v37 = vpop.f32.mrf.mxu1  ;;  %v2062_v13 = vadd.f32 %v4787_v42, %v1836_v29  ;;  %v2064_v17 = vadd.f32 %v4795_v25, %v1838_v32  ;;  %v5054_v29 = vld [vmem:[#allocation2_spill] sm:$0xff] }
 0x18d   : > { %2543 = vst.msk [vmem:[%s4843_s13 + $0x10] sm:$0xff] %vm2540_vm4, %v2518_v19  ;;  %v2521_v16 = vadd.f32 %v3511_v15, %v2289_v28  ;;  %v2288_v47 = vadd.f32 %v2185_v37, %v2053_v59  ;;  %v3514_v38 = vpop.f32.mrf.mxu0 }
 0x18e   : > { %v3470_v60 = vpop.f32.mrf.mxu1 }
 0x18f   : > { %2546 = vst.msk [vmem:[%s4843_s13 + $0x28] sm:$0xff] %vm2540_vm4, %v2521_v16  ;;  %v2520_v39 = vadd.f32 %v2417_v23, %v2288_v47  ;;  %v2291_v8 = vadd.f32 %v3470_v60, %v2056_v51  ;;  %v2427_v63 = vpop.f32.mrf.mxu0  ;;  %v5045_v47 = vld [vmem:[#allocation8_spill] sm:$0xff] }
 0x190   : > { %v2195_v30 = vpop.f32.mrf.mxu1  ;;  %v2066_v20 = vadd.f32 %v5045_v47, %v1840_v5 }
 0x191   : > { %2545 = vst.msk [vmem:[%s4843_s13 + $0x20] sm:$0xff] %vm2540_vm4, %v2520_v39  ;;  %v2523_v36 = vadd.f32 %v3514_v38, %v2291_v8  ;;  %v2290_v58 = vadd.f32 %v2195_v30, %v2055_v11  ;;  %v3517_v22 = vpop.f32.mrf.mxu0  ;;  %v5047_v38 = vld [vmem:[#allocation17_spill] sm:$0xff]  ;;  %v5048_v8 = vld [vmem:[#allocation11_spill] sm:$0xff] }
 0x192   : > { %v3473_v35 = vpop.f32.mrf.mxu1  ;;  %v1842_v60 = vadd.f32 %v5047_v38, %v5046_v3  ;;  %v2065_v10 = vadd.f32 %v5048_v8, %v1839_v34  ;;  %v5062_v34 = vld [vmem:[#allocation19_spill] sm:$0xff] }
 0x193   : > { %2548 = vst.msk [vmem:[%s4843_s13 + $0x38] sm:$0xff] %vm2540_vm4, %v2523_v36  ;;  %v2522_v1 = vadd.f32 %v2427_v63, %v2290_v58  ;;  %v2293_v55 = vadd.f32 %v3473_v35, %v2058_v57  ;;  %v2437_v14 = vpop.f32.mrf.mxu0  ;;  %v5050_v63 = vld [vmem:[#allocation4_spill] sm:$0xff] }
 0x194   : > { %v2205_v48 = vpop.f32.mrf.mxu1  ;;  %v1841_v30 = vadd.f32 %v5050_v63, %v5049_v56 }
 0x195   : > { %2547 = vst.msk [vmem:[%s4843_s13 + $0x30] sm:$0xff] %vm2540_vm4, %v2522_v1  ;;  %v2525_v50 = vadd.f32 %v3517_v22, %v2293_v55  ;;  %v2292_v18 = vadd.f32 %v2205_v48, %v2057_v12  ;;  %v3520_v45 = vpop.f32.mrf.mxu0  ;;  %v5051_v22 = vld [vmem:[#allocation13_spill] sm:$0xff] }
 0x196   : > { %v3476_v46 = vpop.f32.mrf.mxu1  ;;  %v2068_v35 = vadd.f32 %v5051_v22, %v1842_v60  ;;  %v5052_v12 = vld [vmem:[#allocation9_spill] sm:$0xff] }
 0x197   : > { %2550 = vst.msk [vmem:[%s4843_s13 + $0x48] sm:$0xff] %vm2540_vm4, %v2525_v50  ;;  %v2524_v41 = vadd.f32 %v2437_v14, %v2292_v18  ;;  %v2295_v31 = vadd.f32 %v3476_v46, %v2060_v24  ;;  %v2447_v6 = vpop.f32.mrf.mxu0  ;;  %v1844_v1 = vadd.f32 %v5053_v21, %v5052_v12  ;;  %v2067_v50 = vadd.f32 %v5054_v29, %v1841_v30  ;;  %v5055_v18 = vld [vmem:[#allocation10_spill] sm:$0xff] }
 0x198   : > { %v2215_v44 = vpop.f32.mrf.mxu1 }
 0x199   : > { %2549 = vst.msk [vmem:[%s4843_s13 + $0x40] sm:$0xff] %vm2540_vm4, %v2524_v41  ;;  %v2527_v52 = vadd.f32 %v3520_v45, %v2295_v31  ;;  %v2294_v2 = vadd.f32 %v2215_v44, %v2059_v40  ;;  %v3523_v15 = vpop.f32.mrf.mxu0  ;;  %v5056_v45 = vld [vmem:[#allocation16_spill] sm:$0xff] }
 0x19a   : > { %v3479_v62 = vpop.f32.mrf.mxu1  ;;  %v1843_v46 = vadd.f32 %v5056_v45, %v5055_v18 }
 0x19b   : > { %2552 = vst.msk [vmem:[%s4843_s13 + $0x58] sm:$0xff] %vm2540_vm4, %v2527_v52  ;;  %v2526_v59 = vadd.f32 %v2447_v6, %v2294_v2  ;;  %v2297_v42 = vadd.f32 %v3479_v62, %v2062_v13  ;;  %v2457_v9 = vpop.f32.mrf.mxu0  ;;  %v5057_v6 = vld [vmem:[#allocation6_spill] sm:$0xff]  ;;  %v5058_v13 = vld [vmem:[#allocation12_spill] sm:$0xff] }
 0x19c   : > { %v2225_v19 = vpop.f32.mrf.mxu1  ;;  %v2070_v44 = vadd.f32 %v5057_v6, %v1844_v1  ;;  %v1846_v32 = vadd.f32 %v4830_v33, %v5058_v13  ;;  %v5061_v33 = vld [vmem:[#allocation18_spill] sm:$0xff] }
 0x19d   : > { %2551 = vst.msk [vmem:[%s4843_s13 + $0x50] sm:$0xff] %vm2540_vm4, %v2526_v59  ;;  %v2529_v28 = vadd.f32 %v3523_v15, %v2297_v42  ;;  %v2296_v0 = vadd.f32 %v2225_v19, %v2061_v61  ;;  %v3526_v23 = vpop.f32.mrf.mxu0  ;;  %v5059_v61 = vld [vmem:[#allocation15_spill] sm:$0xff]  ;;  %v5060_v59 = vld [vmem:[#allocation14_spill] sm:$0xff] }
 0x19e   : > { %v3482_v37 = vpop.f32.mrf.mxu1  ;;  %v2069_v27 = vadd.f32 %v5059_v61, %v1843_v46  ;;  %v1845_v42 = vadd.f32 %v4835_v53, %v5060_v59 }
 0x19f   : > { %2554 = vst.msk [vmem:[%s4843_s13 + $0x68] sm:$0xff] %vm2540_vm4, %v2529_v28  ;;  %v2528_v51 = vadd.f32 %v2457_v9, %v2296_v0  ;;  %v2299_v25 = vadd.f32 %v3482_v37, %v2064_v17  ;;  %v2467_v26 = vpop.f32.mrf.mxu0  ;;  %v2072_v28 = vadd.f32 %v5061_v33, %v1846_v32 }
 0x1a0   : > { %v2235_v16 = vpop.f32.mrf.mxu1 }
 0x1a1   : > { %2553 = vst.msk [vmem:[%s4843_s13 + $0x60] sm:$0xff] %vm2540_vm4, %v2528_v51  ;;  %v2531_v11 = vadd.f32 %v3526_v23, %v2299_v25  ;;  %v2298_v7 = vadd.f32 %v2235_v16, %v2063_v43  ;;  %v3529_v54 = vpop.f32.mrf.mxu0  ;;  %v2071_v51 = vadd.f32 %v5062_v34, %v1845_v42 }
 0x1a2   : > { %v3485_v39 = vpop.f32.mrf.mxu1 }
 0x1a3   : > { %2556 = vst.msk [vmem:[%s4843_s13 + $0x78] sm:$0xff] %vm2540_vm4, %v2531_v11  ;;  %v2530_v57 = vadd.f32 %v2467_v26, %v2298_v7  ;;  %v2301_v49 = vadd.f32 %v3485_v39, %v2066_v20  ;;  %v2477_v36 = vpop.f32.mrf.mxu0 }
 0x1a4   : > { %v2245_v58 = vpop.f32.mrf.mxu1 }
 0x1a5   : > { %2555 = vst.msk [vmem:[%s4843_s13 + $0x70] sm:$0xff] %vm2540_vm4, %v2530_v57  ;;  %v2533_v55 = vadd.f32 %v3529_v54, %v2301_v49  ;;  %v2300_v14 = vadd.f32 %v2245_v58, %v2065_v10  ;;  %v3532_v48 = vpop.f32.mrf.mxu0 }
 0x1a6   : > { %v3488_v24 = vpop.f32.mrf.mxu1 }
 0x1a7   : > { %2558 = vst.msk [vmem:[%s4843_s13 + $0x88] sm:$0xff] %vm2540_vm4, %v2533_v55  ;;  %v2532_v40 = vadd.f32 %v2477_v36, %v2300_v14  ;;  %v2303_v4 = vadd.f32 %v3488_v24, %v2068_v35  ;;  %v2487_v41 = vpop.f32.mrf.mxu0 }
 0x1a8   : > { %v2255_v31 = vpop.f32.mrf.mxu1 }
 0x1a9   : > { %2557 = vst.msk [vmem:[%s4843_s13 + $0x80] sm:$0xff] %vm2540_vm4, %v2532_v40  ;;  %v2535_v52 = vadd.f32 %v3532_v48, %v2303_v4  ;;  %v2302_v2 = vadd.f32 %v2255_v31, %v2067_v50  ;;  %v3535_v15 = vpop.f32.mrf.mxu0 }
 0x1aa   : > { %v3491_v62 = vpop.f32.mrf.mxu1 }
 0x1ab   : > { %2560 = vst.msk [vmem:[%s4843_s13 + $0x98] sm:$0xff] %vm2540_vm4, %v2535_v52  ;;  %v2534_v9 = vadd.f32 %v2487_v41, %v2302_v2  ;;  %v2305_v19 = vadd.f32 %v3491_v62, %v2070_v44  ;;  %v2497_v17 = vpop.f32.mrf.mxu0 }
 0x1ac   : > { %v2265_v5 = vpop.f32.mrf.mxu1 }
 0x1ad   : > { %2559 = vst.msk [vmem:[%s4843_s13 + $0x90] sm:$0xff] %vm2540_vm4, %v2534_v9  ;;  %v2537_v0 = vadd.f32 %v3535_v15, %v2305_v19  ;;  %v2304_v23 = vadd.f32 %v2265_v5, %v2069_v27  ;;  %v3538_v43 = vpop.f32.mrf.mxu0 }
 0x1ae   : > { %v3494_v37 = vpop.f32.mrf.mxu1 }
 0x1af   : > { %2562 = vst.msk [vmem:[%s4843_s13 + $0xa8] sm:$0xff] %vm2540_vm4, %v2537_v0  ;;  %v2536_v53 = vadd.f32 %v2497_v17, %v2304_v23  ;;  %v2307_v25 = vadd.f32 %v3494_v37, %v2072_v28  ;;  %v2507_v20 = vpop.f32.mrf.mxu0 }
 0x1b0   : > { %v2275_v26 = vpop.f32.mrf.mxu1 }
 0x1b1   : > { %2561 = vst.msk [vmem:[%s4843_s13 + $0xa0] sm:$0xff] %vm2540_vm4, %v2536_v53  ;;  %v2539_v16 = vadd.f32 %v3538_v43, %v2307_v25  ;;  %v2306_v47 = vadd.f32 %v2275_v26, %v2071_v51 }
 0x1b3   : > { %2564 = vst.msk [vmem:[%s4843_s13 + $0xb8] sm:$0xff] %vm2540_vm4, %v2539_v16  ;;  %v2538_v3 = vadd.f32 %v2507_v20, %v2306_v47 }
 0x1b5   : > { %2563 = vst.msk [vmem:[%s4843_s13 + $0xb0] sm:$0xff] %vm2540_vm4, %v2538_v3 }
 0x1b6 PF: > { %s12_s9 = sadd.s32 1, %s3562_s9  }
 0x1b7   : > { %p9_p4 = scmp.ge.s32.totalorder %s12_s9, 4  }
 0x1b9   :  { %11 = sbr.rel (!%p9_p4) target bundleno = 1 (0x1), region = 66 }

// kernel: encoder_forward.9
= control target key start
LH: loop header
LB: loop body
LE: loop exit
PB: predicated region body
PF: predicated region fallthrough
CT: control target
= control target key end

     0   :  { %7 = vsyncpa [#allocation3], 0  ;;  %s5173_s0 = inlined_call_operand.vmem [shape: f32[6,10,10,28], index: 0, kind: input, shape index: {}]   ;;  %s5174_s1 = inlined_call_operand.vmem [shape: f32[9,28,16], index: 1, kind: input, shape index: {}]   ;;  %s5175_s2 = inlined_call_operand.hbm [shape: f32[6,8,8,16], index: 2, kind: output, shape index: {}]  }
   0x1   :  { %9 = vsyncpa [#allocation3 + $0x1], 0  ;;  %s3710_s9 = smov 0   ;;  %s3712_s10 = smov 0  }
   0x2   :  { %s3714_s11 = smov 0   ;;  %s3716_s12 = smov 0  }
   0x3 LB: > { %s3731_s13 = sadd.s32 4294967295, %s3690_s12   ;;  %s2662_s14 = sadd.s32 4294967294, %s3690_s12   ;;  %s3690_s12 = sphi %s3716_s12, %s5293_s12   ;;  %s3686_s11 = sphi %s3714_s11, %s5292_s11   ;;  %s3682_s10 = sphi %s3712_s10, %s5291_s10   ;;  %s3678_s9 = sphi %s3710_s9, %s5290_s9  }
   0x4   : > { %s3735_s15 = sadd.s32 1, %s3690_s12   ;;  %s69_s16 = sadd.s32 1, %s3686_s11 }
   0x5   : > { %s66_s17 = ssub.s32 %s3690_s12, %s3735_s15  ;;  %p79_p0 = scmp.ne.s32.totalorder %s3686_s11, %s3682_s10 }
   0x6   : > { %p67_p1 = scmp.eq.s32.totalorder %s66_s17, 0  ;;  %p80_p2 = scmp.eq.s32.totalorder %s3731_s13, 1 }
   0x7   : > { %p85_p3 = scmp.ne.s32.totalorder %s3682_s10, %s3678_s9  ;;  %p86_p4 = scmp.eq.s32.totalorder %s2662_s14, 1 }
   0x8   : > { %s3746_s18 = scalar_select %p67_p1, %s3686_s11, %s69_s16  }
   0x9   : > { %p3748_p5 = por %p80_p2, %p79_p0  ;;  %p3752_p6 = por %p86_p4, %p85_p3 }
   0xa   : > { %p2665_p7 = scmp.ge.s32.totalorder %s3690_s12, 1  ;;  %p117_p8 = scmp.lt.s32.totalorder %s3690_s12, 3 }
   0xc   : > { %p118_p9 = pnand %p2665_p7, %p117_p8 }
   0xe   : > { %121 = sbr.rel (%p118_p9) target bundleno = 461 (0x1cd), region = 28 }
  0x13   : > { %v2670_v0 = vld [vmem:[%s5174_s1 + $0x38] sm:$0xf]  ;;  %vm387_vm0 = vcmask 1043456   ;;  %v2669_v1 = vld [vmem:[%s5174_s1 + $0x30] sm:$0xff]  ;;  %s140_s25 = smul.u32 3, %s3731_s13  ;;  %v2668_v2 = vld [vmem:[%s5174_s1 + $0x28] sm:$0xff] }
  0x14   : > { %3579 = vmatprep.subr.msk.mxu1 %vm387_vm0, %v2670_v0  ;;  %3183 = vmatprep.subr.msk.mxu0 %vm387_vm0, %v2670_v0  ;;  %v2667_v3 = vld [vmem:[%s5174_s1 + $0x20] sm:$0xff]  ;;  %v211_v4 = vld [vmem:[%s5174_s1 + $0x18] sm:$0xf]  ;;  %vm260_vm1 = vcmask 1046528   ;;  %vm338_vm2 = vcmask 228352   ;;  %v210_v30 = vld [vmem:[%s5174_s1 + $0x10] sm:$0xff] }
  0x15   : > { %3583 = vmatpush3.msk.msra.mxu1 %vm387_vm0, %v2670_v0  ;;  %3184 = vmatpush3.msk.msra.mxu0 %vm387_vm0, %v2670_v0  ;;  %p141_p10 = scmp.lt.s32.totalorder %s140_s25, 5  ;;  %v2724_v5 = vld [vmem:[%s5174_s1 + $0x58] sm:$0xf]  ;;  %v2723_v48 = vld [vmem:[%s5174_s1 + $0x50] sm:$0xff]  ;;  %v209_v55 = vld [vmem:[%s5174_s1 + $0x8] sm:$0xff]  ;;  %vm812_vm3 = vcmask 1045504  }
  0x16   : > { %3580 = vmatprep.subr.mxu1 %v2669_v1  ;;  %3185 = vmatprep.subr.mxu0 %v2669_v1  ;;  %vm2560_vm4 = vcmask 130048   ;;  %s2930_s27 = smul.u32 3072, %s3731_s13  ;;  %s3692_s5 = smov [#allocation2]  }
  0x17   : > { %3584 = vmatpush3.msra.mxu1 %v2669_v1  ;;  %3186 = vmatpush3.msra.mxu0 %v2669_v1  ;;  %s5295_s25 = smov (!%p141_p10, %s140_s25), 5  ;;  %s3634_s6 = sshll.u32 %s3692_s5, 4  ;;  %s3635_s6 = int_to_ptr.vmem [resolvable:$false] %s3634_s6 }
  0x18   : > { %3581 = vmatprep.subr.mxu1 %v2668_v2  ;;  %3187 = vmatprep.subr.mxu0 %v2668_v2  ;;  %s3588_s30 = smul.u32 160, %s5295_s25  ;;  %s5123_s3 = scalar_lea.hbm %s5175_s2, %s2930_s27 }
  0x19   : > { %3585 = vmatpush3.msra.mxu1 %v2668_v2  ;;  %3188 = vmatpush3.msra.mxu0 %v2668_v2  ;;  %s3636_s7 = scalar_lea.vmem %s3635_s6, 6144 }
  0x1a   : > { %3582 = vmatprep.subr.mxu1 %v2667_v3  ;;  %3189 = vmatprep.subr.mxu0 %v2667_v3  ;;  %s3784_s14 = scalar_lea.vmem %s5173_s0, %s3588_s30 }
  0x1b   : > { %3586 = vmatpush3.msra.mxu1 %v2667_v3  ;;  %3190 = vmatpush3.msra.mxu0 %v2667_v3  ;;  %v3787_v6 = vld [vmem:[%s3784_s14] sm:$0xff]  ;;  %v3790_v7 = vld [vmem:[%s3784_s14 + $0x8] sm:$0x3]  ;;  %v3806_v15 = vld [vmem:[%s3784_s14 + $0x10] sm:$0xff] }
  0x1c   : > { %v3793_v8 = vld [vmem:[%s3784_s14 + $0xe0] sm:$0xff]  ;;  %3227 = vmatprep.subr.msk.mxu1 %vm387_vm0, %v211_v4  ;;  %3271 = vmatprep.subr.msk.mxu0 %vm387_vm0, %v2724_v5  ;;  %v261_v9 = vrot.slane %v3787_v6, 1  ;;  %v262_v10 = vrot.slane %v3790_v7, 1  ;;  %v3800_v11 = vld [vmem:[%s3784_s14 + $0xe8] sm:$0x3]  ;;  %v3812_v17 = vld [vmem:[%s3784_s14 + $0xf0] sm:$0xff] }
  0x1d   : > { %v297_v12 = vrot.slane %v3793_v8, 1  ;;  %v298_v14 = vrot.slane %v3800_v11, 1  ;;  %v3809_v16 = vld [vmem:[%s3784_s14 + $0x18] sm:$0x3]  ;;  %v264_v19 = vrot.slane %v3806_v15, 1  ;;  %v3821_v22 = vld [vmem:[%s3784_s14 + $0x20] sm:$0xff] }
  0x1e   : > { %v263_v18 = vsel %vm260_vm1, %v261_v9, %v262_v10  ;;  %v265_v20 = vrot.slane %v3809_v16, 1  ;;  %v3818_v21 = vld [vmem:[%s3784_s14 + $0xf8] sm:$0x3]  ;;  %v300_v25 = vrot.slane %v3812_v17, 1  ;;  %v3831_v27 = vld [vmem:[%s3784_s14 + $0x28] sm:$0x3] }
  0x1f   : > { %3191 = vmatprep.mubr.msk.f32.mxu0 %vm338_vm2, %v263_v18  ;;  %v3826_v24 = vsel %vm260_vm1, %v297_v12, %v298_v14  ;;  %v301_v26 = vrot.slane %v3818_v21, 1  ;;  %v267_v28 = vrot.slane %v3821_v22, 1  ;;  %v3835_v29 = vld [vmem:[%s3784_s14 + $0x100] sm:$0xff]  ;;  %v268_v32 = vrot.slane %v3831_v27, 1  ;;  %v3847_v33 = vld [vmem:[%s3784_s14 + $0x108] sm:$0x3] }
  0x20   : > { %5208 = vst [vmem:[#allocation5_spill] sm:$0xff] %v3826_v24  ;;  %3209 = vmatprep.mubr.msk.f32.mxu1 %vm338_vm2, %v3826_v24  ;;  %v3843_v31 = vsel %vm260_vm1, %v264_v19, %v265_v20  ;;  %v303_v34 = vrot.slane %v3835_v29, 1  ;;  %v3851_v35 = vld [vmem:[%s3784_s14 + $0x30] sm:$0xff]  ;;  %v304_v38 = vrot.slane %v3847_v33, 1  ;;  %v3863_v39 = vld [vmem:[%s3784_s14 + $0x38] sm:$0x3] }
  0x21   : > { %5209 = vst [vmem:[#allocation6_spill] sm:$0xff] %v3843_v31  ;;  %v3854_v36 = vld [vmem:[%s3784_s14 + $0x110] sm:$0xff]  ;;  %3192 = vmatmul.mubr.msk.f32.vlgmr.msra.gmra.mxu0 %vm338_vm2, %v3843_v31  ;;  %v3859_v37 = vsel %vm260_vm1, %v300_v25, %v301_v26  ;;  %v270_v40 = vrot.slane %v3851_v35, 1  ;;  %v3867_v41 = vld [vmem:[%s3784_s14 + $0x118] sm:$0x3]  ;;  %v3873_v42 = vsel %vm260_vm1, %v267_v28, %v268_v32  ;;  %v271_v43 = vrot.slane %v3863_v39, 1 }
  0x22   : > { %5210 = vst [vmem:[#allocation7_spill] sm:$0xff] %v3859_v37  ;;  %3210 = vmatmul.mubr.msk.f32.vlgmr.msra.gmra.mxu1 %vm338_vm2, %v3859_v37  ;;  %3272 = vmatpush3.msk.msra.mxu0 %vm387_vm0, %v2724_v5  ;;  %5211 = vst [vmem:[#allocation8_spill] sm:$0xff] %v3873_v42  ;;  %v306_v44 = vrot.slane %v3854_v36, 1  ;;  %v307_v45 = vrot.slane %v3867_v41, 1  ;;  %v3879_v46 = vld [vmem:[%s3784_s14 + $0x40] sm:$0xff]  ;;  %v3891_v49 = vsel %vm260_vm1, %v303_v34, %v304_v38  ;;  %v3902_v54 = vld [vmem:[%s3784_s14 + $0x50] sm:$0xff] }
  0x23   : > { %v3882_v47 = vld [vmem:[%s3784_s14 + $0x48] sm:$0x3]  ;;  %3228 = vmatpush3.msk.msra.mxu1 %vm387_vm0, %v211_v4  ;;  %3194 = vmatprep.mubr.msk.f32.mxu0 %vm338_vm2, %v3873_v42  ;;  %5212 = vst [vmem:[#allocation9_spill] sm:$0xff] %v3891_v49  ;;  %v273_v50 = vrot.slane %v3879_v46, 1  ;;  %v3896_v52 = vld [vmem:[%s3784_s14 + $0x140] sm:$0xff]  ;;  %v3910_v56 = vsel %vm260_vm1, %v270_v40, %v271_v43  ;;  %v3921_v61 = vld [vmem:[%s3784_s14 + $0x150] sm:$0xff] }
  0x24   : > { %v274_v51 = vrot.slane %v3882_v47, 1  ;;  %v3899_v53 = vld [vmem:[%s3784_s14 + $0x148] sm:$0x3]  ;;  %3212 = vmatprep.mubr.msk.f32.mxu1 %vm338_vm2, %v3891_v49  ;;  %5213 = vst [vmem:[#allocation10_spill] sm:$0xff] %v3910_v56  ;;  %v3913_v57 = vsel %vm260_vm1, %v306_v44, %v307_v45  ;;  %3229 = vmatprep.subr.mxu1 %v210_v30  ;;  %v309_v58 = vrot.slane %v3896_v52, 1  ;;  %v3924_v62 = vld [vmem:[%s3784_s14 + $0x60] sm:$0xff] }
  0x25   : > { %5214 = vst [vmem:[#allocation11_spill] sm:$0xff] %v3913_v57  ;;  %v310_v59 = vrot.slane %v3899_v53, 1  ;;  %v3918_v60 = vld [vmem:[%s3784_s14 + $0x58] sm:$0x3]  ;;  %3195 = vmatmul.mubr.msk.f32.gmra.mxu0 %vm338_vm2, %v3910_v56  ;;  %3230 = vmatpush3.msra.mxu1 %v210_v30  ;;  %v276_v0 = vrot.slane %v3902_v54, 1  ;;  %v312_v3 = vrot.slane %v3921_v61, 1 }
  0x26   : > { %v3929_v63 = vsel %vm260_vm1, %v273_v50, %v274_v51  ;;  %v277_v1 = vrot.slane %v3918_v60, 1  ;;  %v3934_v2 = vld [vmem:[%s3784_s14 + $0x158] sm:$0x3]  ;;  %v3938_v4 = vld [vmem:[%s3784_s14 + $0x160] sm:$0xff]  ;;  %3213 = vmatmul.mubr.msk.f32.gmra.mxu1 %vm338_vm2, %v3913_v57  ;;  %v3947_v10 = vld [vmem:[%s3784_s14 + $0x68] sm:$0x3]  ;;  %3273 = vmatprep.subr.mxu0 %v2723_v48 }
  0x27   : > { %5215 = vst [vmem:[#allocation12_spill] sm:$0xff] %v3929_v63  ;;  %3197 = vmatprep.mubr.msk.f32.mxu0 %vm338_vm2, %v3929_v63  ;;  %v311_v5 = vsel %vm260_vm1, %v309_v58, %v310_v59  ;;  %v313_v9 = vrot.slane %v3934_v2, 1  ;;  %v279_v12 = vrot.slane %v3924_v62, 1  ;;  %v3951_v14 = vld [vmem:[%s3784_s14 + $0x168] sm:$0x3]  ;;  %v280_v20 = vrot.slane %v3947_v10, 1  ;;  %3274 = vmatpush3.msra.mxu0 %v2723_v48 }
  0x28   : > { %v2722_v18 = vld [vmem:[%s5174_s1 + $0x48] sm:$0xff]  ;;  %3215 = vmatprep.mubr.msk.f32.mxu1 %vm338_vm2, %v311_v5  ;;  %v3958_v19 = vsel %vm260_vm1, %v276_v0, %v277_v1  ;;  %v315_v25 = vrot.slane %v3938_v4, 1  ;;  %v316_v26 = vrot.slane %v3951_v14, 1  ;;  %v3964_v28 = vld [vmem:[%s3784_s14 + $0x70] sm:$0xff]  ;;  %v3967_v30 = vld [vmem:[%s3784_s14 + $0x78] sm:$0x3]  ;;  %3231 = vmatprep.subr.mxu1 %v209_v55 }
  0x29   : > { %5216 = vst [vmem:[#allocation13_spill] sm:$0xff] %v3958_v19  ;;  %v208_v32 = vld [vmem:[%s5174_s1] sm:$0xff]  ;;  %v3973_v34 = vsel %vm260_vm1, %v312_v3, %v313_v9  ;;  %v282_v38 = vrot.slane %v3964_v28, 1  ;;  %v283_v40 = vrot.slane %v3967_v30, 1  ;;  %v3978_v43 = vld [vmem:[%s3784_s14 + $0x170] sm:$0xff]  ;;  %3198 = vmatmul.mubr.msk.f32.gmra.mxu0 %vm338_vm2, %v3958_v19  ;;  %v3989_v50 = vsel %vm260_vm1, %v279_v12, %v280_v20  ;;  %3232 = vmatpush3.msra.mxu1 %v209_v55 }
  0x2a   : > { %5217 = vst [vmem:[#allocation14_spill] sm:$0xff] %v3973_v34  ;;  %v3981_v44 = vld [vmem:[%s3784_s14 + $0x178] sm:$0x3]  ;;  %v3984_v45 = vld [vmem:[%s3784_s14 + $0xa0] sm:$0xff]  ;;  %5218 = vst [vmem:[#allocation15_spill] sm:$0xff] %v3989_v50  ;;  %v3992_v48 = vsel %vm260_vm1, %v315_v25, %v316_v26  ;;  %v318_v51 = vrot.slane %v3978_v43, 1  ;;  %3216 = vmatmul.mubr.msk.f32.gmra.mxu1 %vm338_vm2, %v3973_v34  ;;  %3200 = vmatprep.mubr.msk.f32.mxu0 %vm338_vm2, %v3989_v50 }
  0x2b   : > { %5219 = vst [vmem:[#allocation16_spill] sm:$0xff] %v3992_v48  ;;  %v319_v58 = vrot.slane %v3981_v44, 1  ;;  %v3997_v59 = vld [vmem:[%s3784_s14 + $0xa8] sm:$0x3]  ;;  %v4000_v0 = vld [vmem:[%s3784_s14 + $0x180] sm:$0xff]  ;;  %v4003_v1 = vld [vmem:[%s3784_s14 + $0xb0] sm:$0xff]  ;;  %v4010_v3 = vsel %vm260_vm1, %v282_v38, %v283_v40  ;;  %3218 = vmatprep.mubr.msk.f32.mxu1 %vm338_vm2, %v3992_v48  ;;  %3275 = vmatprep.subr.mxu0 %v2722_v18 }
  0x2c   : > { %5220 = vst [vmem:[#allocation17_spill] sm:$0xff] %v4010_v3  ;;  %v285_v5 = vrot.slane %v3984_v45, 1  ;;  %v286_v55 = vrot.slane %v3997_v59, 1  ;;  %v4015_v9 = vld [vmem:[%s3784_s14 + $0x188] sm:$0x3]  ;;  %v321_v12 = vrot.slane %v4000_v0, 1  ;;  %3276 = vmatpush3.msra.mxu0 %v2722_v18  ;;  %3233 = vmatprep.subr.mxu1 %v208_v32 }
  0x2d   : > { %v4019_v20 = vld [vmem:[%s3784_s14 + $0x190] sm:$0xff]  ;;  %v2721_v25 = vld [vmem:[%s5174_s1 + $0x40] sm:$0xff]  ;;  %v4027_v26 = vsel %vm260_vm1, %v318_v51, %v319_v58  ;;  %v322_v38 = vrot.slane %v4015_v9, 1  ;;  %v4031_v40 = vld [vmem:[%s3784_s14 + $0xb8] sm:$0x3]  ;;  %v288_v23 = vrot.slane %v4003_v1, 1  ;;  %3201 = vmatmul.mubr.msk.f32.gmra.mxu0 %vm338_vm2, %v4010_v3  ;;  %3234 = vmatpush3.msra.mxu1 %v208_v32 }
  0x2e   : > { %5221 = vst [vmem:[#allocation18_spill] sm:$0xff] %v4027_v26  ;;  %v4035_v13 = vld [vmem:[%s3784_s14 + $0x198] sm:$0x3]  ;;  %v287_v51 = vsel %vm260_vm1, %v285_v5, %v286_v55  ;;  %v289_v58 = vrot.slane %v4031_v40, 1  ;;  %v324_v48 = vrot.slane %v4019_v20, 1  ;;  %v4047_v49 = vld [vmem:[%s3784_s14 + $0xc0] sm:$0xff]  ;;  %3219 = vmatmul.mubr.msk.f32.gmra.mxu1 %vm338_vm2, %v4027_v26  ;;  %3277 = vmatprep.subr.mxu0 %v2721_v25 }
  0x2f   : > { %v4040_v34 = vld [vmem:[%s5174_s1 + $0x78] sm:$0xf]  ;;  %v325_v57 = vrot.slane %v4035_v13, 1  ;;  %v4050_v37 = vld [vmem:[%s3784_s14 + $0xc8] sm:$0x3]  ;;  %v4058_v18 = vsel %vm260_vm1, %v321_v12, %v322_v38  ;;  %v291_v5 = vrot.slane %v4047_v49, 1  ;;  %3203 = vmatprep.mubr.msk.f32.mxu0 %vm338_vm2, %v287_v51  ;;  %3278 = vmatpush3.msra.mxu0 %v2721_v25 }
  0x30   : > { %v2782_v24 = vld [vmem:[%s5174_s1 + $0x98] sm:$0xf]  ;;  %5222 = vst [vmem:[#allocation19_spill] sm:$0xff] %v4058_v18  ;;  %v292_v55 = vrot.slane %v4050_v37, 1  ;;  %v4063_v50 = vld [vmem:[%s3784_s14 + $0x1a0] sm:$0xff]  ;;  %v4069_v63 = vld [vmem:[%s3784_s14 + $0xd0] sm:$0xff]  ;;  %v4075_v12 = vsel %vm260_vm1, %v288_v23, %v289_v58  ;;  %3221 = vmatprep.mubr.msk.f32.mxu1 %vm338_vm2, %v4058_v18  ;;  %3315 = vmatprep.subr.msk.mxu1 %vm387_vm0, %v4040_v34 }
  0x31   : > { %v4066_v19 = vld [vmem:[%s3784_s14 + $0x1a8] sm:$0x3]  ;;  %v4078_v32 = vsel %vm260_vm1, %v324_v48, %v325_v57  ;;  %v327_v38 = vrot.slane %v4063_v50, 1  ;;  %v4083_v56 = vld [vmem:[%s3784_s14 + $0xd8] sm:$0x3]  ;;  %v4086_v42 = vld [vmem:[%s3784_s14 + $0x1b0] sm:$0xff]  ;;  %3204 = vmatmul.mubr.msk.f32.gmra.mxu0 %vm338_vm2, %v4075_v12  ;;  %3359 = vmatprep.subr.msk.mxu0 %vm387_vm0, %v2782_v24 }
  0x32   : > { %5223 = vst [vmem:[#allocation20_spill] sm:$0xff] %v4078_v32  ;;  %v328_v3 = vrot.slane %v4066_v19, 1  ;;  %v4091_v26 = vsel %vm260_vm1, %v291_v5, %v292_v55  ;;  %v294_v23 = vrot.slane %v4069_v63, 1  ;;  %v295_v57 = vrot.slane %v4083_v56, 1  ;;  %v4096_v48 = vld [vmem:[%s3784_s14 + $0x1b8] sm:$0x3]  ;;  %3222 = vmatmul.mubr.msk.f32.gmra.mxu1 %vm338_vm2, %v4078_v32 }
  0x33   : > { %v330_v51 = vrot.slane %v4086_v42, 1  ;;  %v331_v31 = vrot.slane %v4096_v48, 1  ;;  %v817_v5 = vrot.slane %v3809_v16, 2  ;;  %3206 = vmatprep.mubr.msk.f32.mxu0 %vm338_vm2, %v4091_v26  ;;  %v816_v25 = vrot.slane %v3806_v15, 2 }
  0x34   : > { %v4100_v58 = vsel %vm260_vm1, %v327_v38, %v328_v3  ;;  %v4114_v3 = vsel %vm260_vm1, %v294_v23, %v295_v57  ;;  %v5224_v38 = vrot.slane %v3790_v7, 2  ;;  %v5225_v16 = vrot.slane %v3787_v6, 2 }
  0x35   : > { %3224 = vmatprep.mubr.msk.f32.mxu1 %vm338_vm2, %v4100_v58  ;;  %v4120_v55 = vsel %vm260_vm1, %v330_v51, %v331_v31  ;;  %3207 = vmatmul.mubr.msk.f32.gmra.mxu0 %vm338_vm2, %v4114_v3  ;;  %v819_v23 = vrot.slane %v3821_v22, 2  ;;  %v820_v57 = vrot.slane %v3831_v27, 2  ;;  %v4135_v31 = vsel %vm812_vm3, %v816_v25, %v817_v5 }
  0x36   : > { %v815_v32 = vsel %vm812_vm3, %v5225_v16, %v5224_v38  ;;  %3225 = vmatmul.mubr.msk.f32.gmra.mxu1 %vm338_vm2, %v4120_v55  ;;  %v822_v7 = vrot.slane %v3851_v35, 2  ;;  %v823_v51 = vrot.slane %v3863_v39, 2  ;;  %v825_v38 = vrot.slane %v3879_v46, 2 }
  0x37   : > { %3279 = vmatprep.mubr.msk.f32.mxu0 %vm338_vm2, %v815_v32  ;;  %3235 = vmatprep.mubr.msk.f32.mxu1 %vm338_vm2, %v3787_v6  ;;  %v826_v16 = vrot.slane %v3882_v47, 2  ;;  %v4146_v27 = vsel %vm812_vm3, %v819_v23, %v820_v57  ;;  %v2752_v32 = vld [vmem:[%s5174_s1 + $0x70] sm:$0xff]  ;;  %v828_v39 = vrot.slane %v3902_v54, 2  ;;  %v829_v47 = vrot.slane %v3918_v60, 2 }
  0x38   : > { %v4155_v6 = vsel %vm812_vm3, %v822_v7, %v823_v51  ;;  %v831_v25 = vrot.slane %v3924_v62, 2  ;;  %v2781_v60 = vld [vmem:[%s5174_s1 + $0x90] sm:$0xff]  ;;  %v834_v23 = vrot.slane %v3964_v28, 2  ;;  %v835_v57 = vrot.slane %v3967_v30, 2  ;;  %v2750_v30 = vld [vmem:[%s5174_s1 + $0x60] sm:$0xff] }
  0x39   : > { %3280 = vmatmul.mubr.msk.f32.vlgmr.msra.gmra.mxu0 %vm338_vm2, %v4135_v31  ;;  %v4164_v5 = vsel %vm812_vm3, %v825_v38, %v826_v16  ;;  %v837_v51 = vrot.slane %v3984_v45, 2  ;;  %v838_v38 = vrot.slane %v3997_v59, 2  ;;  %v2780_v16 = vld [vmem:[%s5174_s1 + $0x88] sm:$0xff] }
  0x3a   : > { %3236 = vmatmul.mubr.msk.f32.vlgmr.msra.gmra.mxu1 %vm338_vm2, %v3806_v15  ;;  %3360 = vmatpush3.msk.msra.mxu0 %vm387_vm0, %v2782_v24  ;;  %v832_v24 = vrot.slane %v3947_v10, 2  ;;  %v4183_v10 = vsel %vm812_vm3, %v828_v39, %v829_v47  ;;  %v4207_v59 = vsel %vm812_vm3, %v834_v23, %v835_v57  ;;  %v841_v39 = vrot.slane %v4031_v40, 2  ;;  %v4224_v40 = vld [vmem:[%s5174_s1 + $0xb8] sm:$0xf] }
  0x3b   : > { %3316 = vmatpush3.msk.msra.mxu1 %vm387_vm0, %v4040_v34  ;;  %3238 = vmatprep.mubr.msk.f32.mxu1 %vm338_vm2, %v3821_v22  ;;  %v2751_v34 = vld [vmem:[%s5174_s1 + $0x68] sm:$0xff]  ;;  %v839_v47 = vsel %vm812_vm3, %v837_v51, %v838_v38  ;;  %v847_v23 = vrot.slane %v4083_v56, 2  ;;  %v4237_v57 = vld [vmem:[%s5174_s1 + $0xd8] sm:$0xf]  ;;  %v849_v38 = vrot.slane %v3793_v8, 2 }
  0x3c   : > { %3282 = vmatprep.mubr.msk.f32.mxu0 %vm338_vm2, %v4146_v27  ;;  %3317 = vmatprep.subr.mxu1 %v2752_v32  ;;  %v4190_v7 = vsel %vm812_vm3, %v831_v25, %v832_v24  ;;  %v843_v25 = vrot.slane %v4047_v49, 2  ;;  %v844_v24 = vrot.slane %v4050_v37, 2 }
  0x3d   : > { %3283 = vmatmul.mubr.msk.f32.gmra.mxu0 %vm338_vm2, %v4155_v6  ;;  %3318 = vmatpush3.msra.mxu1 %v2752_v32  ;;  %v840_v32 = vrot.slane %v4003_v1, 2 }
  0x3e   : > { %3239 = vmatmul.mubr.msk.f32.gmra.mxu1 %vm338_vm2, %v3851_v35  ;;  %3285 = vmatprep.mubr.msk.f32.mxu0 %vm338_vm2, %v4164_v5  ;;  %v4242_v51 = vsel %vm812_vm3, %v843_v25, %v844_v24  ;;  %v859_v25 = vrot.slane %v3867_v41, 2  ;;  %v861_v24 = vrot.slane %v3896_v52, 2 }
  0x3f   : > { %3241 = vmatprep.mubr.msk.f32.mxu1 %vm338_vm2, %v3879_v46  ;;  %3361 = vmatprep.subr.mxu0 %v2781_v60  ;;  %v4230_v37 = vsel %vm812_vm3, %v840_v32, %v841_v39  ;;  %v855_v32 = vrot.slane %v3835_v29, 2  ;;  %v856_v39 = vrot.slane %v3847_v33, 2 }
  0x40   : > { %3362 = vmatpush3.msra.mxu0 %v2781_v60  ;;  %3319 = vmatprep.subr.mxu1 %v2751_v34  ;;  %v2779_v60 = vld [vmem:[%s5174_s1 + $0x80] sm:$0xff] }
  0x41   : > { %3286 = vmatmul.mubr.msk.f32.gmra.mxu0 %vm338_vm2, %v4183_v10  ;;  %3320 = vmatpush3.msra.mxu1 %v2751_v34  ;;  %v846_v34 = vrot.slane %v4069_v63, 2  ;;  %v4282_v33 = vsel %vm812_vm3, %v855_v32, %v856_v39  ;;  %v873_v32 = vrot.slane %v4000_v0, 2  ;;  %v874_v39 = vrot.slane %v4015_v9, 2 }
  0x42   : > { %3242 = vmatmul.mubr.msk.f32.gmra.mxu1 %vm338_vm2, %v3902_v54  ;;  %3288 = vmatprep.mubr.msk.f32.mxu0 %vm338_vm2, %v4190_v7 }
  0x43   : > { %3244 = vmatprep.mubr.msk.f32.mxu1 %vm338_vm2, %v3924_v62  ;;  %3363 = vmatprep.subr.mxu0 %v2780_v16  ;;  %v4257_v56 = vsel %vm812_vm3, %v846_v34, %v847_v23  ;;  %v864_v34 = vrot.slane %v3921_v61, 2  ;;  %v865_v23 = vrot.slane %v3934_v2, 2  ;;  %v870_v2 = vrot.slane %v3978_v43, 2 }
  0x44   : > { %3364 = vmatpush3.msra.mxu0 %v2780_v16  ;;  %3321 = vmatprep.subr.mxu1 %v2750_v30  ;;  %v850_v16 = vrot.slane %v3800_v11, 2  ;;  %v852_v11 = vrot.slane %v3812_v17, 2  ;;  %v4333_v9 = vsel %vm812_vm3, %v873_v32, %v874_v39  ;;  %v5229_v32 = vld [vmem:[#allocation12_spill] sm:$0xff] }
  0x45   : > { %3289 = vmatmul.mubr.msk.f32.gmra.mxu0 %vm338_vm2, %v4207_v59  ;;  %3322 = vmatpush3.msra.mxu1 %v2750_v30 }
  0x46   : > { %3245 = vmatmul.mubr.msk.f32.gmra.mxu1 %vm338_vm2, %v3964_v28  ;;  %3291 = vmatprep.mubr.msk.f32.mxu0 %vm338_vm2, %v839_v47  ;;  %v4264_v30 = vsel %vm812_vm3, %v849_v38, %v850_v16  ;;  %v858_v47 = vrot.slane %v3854_v36, 2  ;;  %v867_v38 = vrot.slane %v3938_v4, 2  ;;  %v868_v16 = vrot.slane %v3951_v14, 2 }
  0x47   : > { %3247 = vmatprep.mubr.msk.f32.mxu1 %vm338_vm2, %v3984_v45  ;;  %3365 = vmatprep.subr.mxu0 %v2779_v60  ;;  %v853_v45 = vrot.slane %v3818_v21, 2 }
  0x48   : > { %3366 = vmatpush3.msra.mxu0 %v2779_v60  ;;  %3403 = vmatprep.subr.msk.mxu1 %vm387_vm0, %v4224_v40  ;;  %v862_v60 = vrot.slane %v3899_v53, 2  ;;  %v4293_v41 = vsel %vm812_vm3, %v858_v47, %v859_v25  ;;  %v4315_v14 = vsel %vm812_vm3, %v867_v38, %v868_v16  ;;  %v877_v47 = vrot.slane %v4035_v13, 2  ;;  %v2810_v38 = vld [vmem:[%s5174_s1 + $0xb0] sm:$0xff]  ;;  %v4389_v16 = vld [vmem:[%s3784_s14 + $0x88] sm:$0x3] }
  0x49   : > { %3292 = vmatmul.mubr.msk.f32.gmra.mxu0 %vm338_vm2, %v4230_v37  ;;  %3447 = vmatprep.subr.msk.mxu0 %vm387_vm0, %v4237_v57  ;;  %v4275_v21 = vsel %vm812_vm3, %v852_v11, %v853_v45  ;;  %v4308_v11 = vsel %vm812_vm3, %v864_v34, %v865_v23  ;;  %v871_v45 = vrot.slane %v3981_v44, 2  ;;  %v879_v25 = vrot.slane %v4063_v50, 2 }
  0x4a   : > { %3248 = vmatmul.mubr.msk.f32.gmra.mxu1 %vm338_vm2, %v4003_v1  ;;  %3294 = vmatprep.mubr.msk.f32.mxu0 %vm338_vm2, %v4242_v51  ;;  %v863_v53 = vsel %vm812_vm3, %v861_v24, %v862_v60  ;;  %v880_v24 = vrot.slane %v4066_v19, 2  ;;  %v882_v60 = vrot.slane %v4086_v42, 2  ;;  %v883_v34 = vrot.slane %v4096_v48, 2  ;;  %v5226_v48 = vld [vmem:[#allocation6_spill] sm:$0xff] }
  0x4b   : > { %3250 = vmatprep.mubr.msk.f32.mxu1 %vm338_vm2, %v4047_v49  ;;  %v4326_v44 = vsel %vm812_vm3, %v870_v2, %v871_v45  ;;  %v5228_v2 = vld [vmem:[#allocation10_spill] sm:$0xff]  ;;  %v2839_v45 = vld [vmem:[%s5174_s1 + $0xd0] sm:$0xff] }
  0x4c   : > { %v4351_v19 = vsel %vm812_vm3, %v879_v25, %v880_v24  ;;  %v4360_v23 = vsel %vm812_vm3, %v882_v60, %v883_v34  ;;  %v5231_v25 = vld [vmem:[#allocation15_spill] sm:$0xff]  ;;  %v2808_v24 = vld [vmem:[%s5174_s1 + $0xa0] sm:$0xff] }
  0x4d   : > { %3295 = vmatmul.mubr.msk.f32.gmra.mxu0 %vm338_vm2, %v4257_v56  ;;  %v5232_v60 = vld [vmem:[#allocation17_spill] sm:$0xff] }
  0x4e   : > { %3251 = vmatmul.mubr.msk.f32.gmra.mxu1 %vm338_vm2, %v4069_v63  ;;  %3297 = vmatprep.mubr.msk.f32.mxu0 %vm338_vm2, %v4264_v30 }
  0x4f   : > { %3253 = vmatprep.mubr.msk.f32.mxu1 %vm338_vm2, %v3793_v8 }
  0x51   : > { %3298 = vmatmul.mubr.msk.f32.gmra.mxu0 %vm338_vm2, %v4275_v21 }
  0x52   : > { %3254 = vmatmul.mubr.msk.f32.gmra.mxu1 %vm338_vm2, %v3812_v17  ;;  %3300 = vmatprep.mubr.msk.f32.mxu0 %vm338_vm2, %v4282_v33 }
  0x53   : > { %3256 = vmatprep.mubr.msk.f32.mxu1 %vm338_vm2, %v3835_v29 }
  0x55   : > { %3301 = vmatmul.mubr.msk.f32.gmra.mxu0 %vm338_vm2, %v4293_v41 }
  0x56   : > { %3257 = vmatmul.mubr.msk.f32.gmra.mxu1 %vm338_vm2, %v3854_v36  ;;  %3303 = vmatprep.mubr.msk.f32.mxu0 %vm338_vm2, %v863_v53  ;;  %v5227_v53 = vld [vmem:[#allocation8_spill] sm:$0xff] }
  0x57   : > { %3259 = vmatprep.mubr.msk.f32.mxu1 %vm338_vm2, %v3896_v52  ;;  %v876_v52 = vrot.slane %v4019_v20, 2 }
  0x59   : > { %3304 = vmatmul.mubr.msk.f32.gmra.mxu0 %vm338_vm2, %v4308_v11  ;;  %v4344_v13 = vsel %vm812_vm3, %v876_v52, %v877_v47  ;;  %v1380_v52 = vrot.slane %v4389_v16, 1  ;;  %v2838_v47 = vld [vmem:[%s5174_s1 + $0xc8] sm:$0xff] }
  0x5a   : > { %3260 = vmatmul.mubr.msk.f32.gmra.mxu1 %vm338_vm2, %v3921_v61  ;;  %3306 = vmatprep.mubr.msk.f32.mxu0 %vm338_vm2, %v4315_v14 }
  0x5b   : > { %3262 = vmatprep.mubr.msk.f32.mxu1 %vm338_vm2, %v3938_v4 }
  0x5d   : > { %3307 = vmatmul.mubr.msk.f32.gmra.mxu0 %vm338_vm2, %v4326_v44 }
  0x5e   : > { %3263 = vmatmul.mubr.msk.f32.gmra.mxu1 %vm338_vm2, %v3978_v43  ;;  %3309 = vmatprep.mubr.msk.f32.mxu0 %vm338_vm2, %v4333_v9 }
  0x5f   : > { %3265 = vmatprep.mubr.msk.f32.mxu1 %vm338_vm2, %v4000_v0 }
  0x61   : > { %3310 = vmatmul.mubr.msk.f32.gmra.mxu0 %vm338_vm2, %v4344_v13 }
  0x62   : > { %3266 = vmatmul.mubr.msk.f32.gmra.mxu1 %vm338_vm2, %v4019_v20  ;;  %3312 = vmatprep.mubr.msk.f32.mxu0 %vm338_vm2, %v4351_v19 }
  0x63   : > { %3268 = vmatprep.mubr.msk.f32.mxu1 %vm338_vm2, %v4063_v50 }
  0x65   : > { %3313 = vmatmul.mubr.msk.f32.gmra.mxu0 %vm338_vm2, %v4360_v23 }
  0x66   : > { %3269 = vmatmul.mubr.msk.f32.gmra.mxu1 %vm338_vm2, %v4086_v42  ;;  %3367 = vmatprep.mubr.msk.f32.mxu0 %vm338_vm2, %v5226_v48  ;;  %v2837_v48 = vld [vmem:[%s5174_s1 + $0xc0] sm:$0xff] }
  0x67   : > { %3323 = vmatprep.mubr.msk.f32.mxu1 %vm338_vm2, %v3806_v15  ;;  %v4386_v15 = vld [vmem:[%s3784_s14 + $0x80] sm:$0xff] }
  0x68   : > { %v1379_v39 = vrot.slane %v4386_v15, 1 }
  0x69   : > { %3368 = vmatmul.mubr.msk.f32.vlgmr.msra.gmra.mxu0 %vm338_vm2, %v5227_v53 }
  0x6a   : > { %3324 = vmatmul.mubr.msk.f32.vlgmr.msra.gmra.mxu1 %vm338_vm2, %v3821_v22  ;;  %3448 = vmatpush3.msk.msra.mxu0 %vm387_vm0, %v4237_v57  ;;  %v5230_v57 = vld [vmem:[#allocation13_spill] sm:$0xff]  ;;  %v4422_v34 = vsel %vm260_vm1, %v1379_v39, %v1380_v52  ;;  %v5234_v39 = vld [vmem:[#allocation7_spill] sm:$0xff] }
  0x6b   : > { %3404 = vmatpush3.msk.msra.mxu1 %vm387_vm0, %v4224_v40  ;;  %3326 = vmatprep.mubr.msk.f32.mxu1 %vm338_vm2, %v3851_v35  ;;  %v2809_v40 = vld [vmem:[%s5174_s1 + $0xa8] sm:$0xff] }
  0x6c   : > { %3370 = vmatprep.mubr.msk.f32.mxu0 %vm338_vm2, %v5228_v2  ;;  %3405 = vmatprep.subr.mxu1 %v2810_v38 }
  0x6d   : > { %3371 = vmatmul.mubr.msk.f32.gmra.mxu0 %vm338_vm2, %v5229_v32  ;;  %3406 = vmatpush3.msra.mxu1 %v2810_v38  ;;  %v2869_v38 = vld [vmem:[%s5174_s1 + $0xf8] sm:$0xf] }
  0x6e   : > { %3327 = vmatmul.mubr.msk.f32.gmra.mxu1 %vm338_vm2, %v3879_v46  ;;  %3373 = vmatprep.mubr.msk.f32.mxu0 %vm338_vm2, %v5230_v57 }
  0x6f   : > { %3329 = vmatprep.mubr.msk.f32.mxu1 %vm338_vm2, %v3902_v54  ;;  %3449 = vmatprep.subr.mxu0 %v2839_v45 }
  0x70   : > { %3450 = vmatpush3.msra.mxu0 %v2839_v45  ;;  %3407 = vmatprep.subr.mxu1 %v2809_v40  ;;  %v2898_v45 = vld [vmem:[%s5174_s1 + $0x118] sm:$0xf] }
  0x71   : > { %3374 = vmatmul.mubr.msk.f32.gmra.mxu0 %vm338_vm2, %v5231_v25  ;;  %3408 = vmatpush3.msra.mxu1 %v2809_v40  ;;  %v5233_v40 = vld [vmem:[#allocation5_spill] sm:$0xff] }
  0x72   : > { %3330 = vmatmul.mubr.msk.f32.gmra.mxu1 %vm338_vm2, %v3924_v62  ;;  %3376 = vmatprep.mubr.msk.f32.mxu0 %vm338_vm2, %v5232_v60 }
  0x73   : > { %3332 = vmatprep.mubr.msk.f32.mxu1 %vm338_vm2, %v3964_v28  ;;  %3451 = vmatprep.subr.mxu0 %v2838_v47 }
  0x74   : > { %3452 = vmatpush3.msra.mxu0 %v2838_v47  ;;  %3409 = vmatprep.subr.mxu1 %v2808_v24 }
  0x75   : > { %3377 = vmatmul.mubr.msk.f32.gmra.mxu0 %vm338_vm2, %v4422_v34  ;;  %3410 = vmatpush3.msra.mxu1 %v2808_v24  ;;  %v5235_v24 = vld [vmem:[#allocation9_spill] sm:$0xff] }
  0x76   : > { %3333 = vmatmul.mubr.msk.f32.gmra.mxu1 %vm338_vm2, %v4386_v15  ;;  %3379 = vmatprep.mubr.msk.f32.mxu0 %vm338_vm2, %v4075_v12  ;;  %v4454_v12 = vld [vmem:[%s3784_s14 + $0x120] sm:$0xff] }
  0x77   : > { %3335 = vmatprep.mubr.msk.f32.mxu1 %vm338_vm2, %v4003_v1  ;;  %3453 = vmatprep.subr.mxu0 %v2837_v48  ;;  %v4457_v1 = vld [vmem:[%s3784_s14 + $0x128] sm:$0x3]  ;;  %v1382_v52 = vrot.slane %v4454_v12, 1 }
  0x78   : > { %3454 = vmatpush3.msra.mxu0 %v2837_v48  ;;  %3491 = vmatprep.subr.msk.mxu1 %vm387_vm0, %v2869_v38  ;;  %v1383_v47 = vrot.slane %v4457_v1, 1  ;;  %v5236_v48 = vld [vmem:[#allocation11_spill] sm:$0xff] }
  0x79   : > { %3380 = vmatmul.mubr.msk.f32.gmra.mxu0 %vm338_vm2, %v4091_v26  ;;  %3535 = vmatprep.subr.msk.mxu0 %vm387_vm0, %v2898_v45 }
  0x7a   : > { %3336 = vmatmul.mubr.msk.f32.gmra.mxu1 %vm338_vm2, %v4047_v49  ;;  %3382 = vmatprep.mubr.msk.f32.mxu0 %vm338_vm2, %v4114_v3 }
  0x7b   : > { %3338 = vmatprep.mubr.msk.f32.mxu1 %vm338_vm2, %v4069_v63 }
  0x7d   : > { %3383 = vmatmul.mubr.msk.f32.gmra.mxu0 %vm338_vm2, %v5233_v40  ;;  %v5238_v40 = vld [vmem:[#allocation14_spill] sm:$0xff] }
  0x7e   : > { %3339 = vmatmul.mubr.msk.f32.gmra.mxu1 %vm338_vm2, %v3793_v8  ;;  %3385 = vmatprep.mubr.msk.f32.mxu0 %vm338_vm2, %v5234_v39  ;;  %v4476_v39 = vsel %vm260_vm1, %v1382_v52, %v1383_v47  ;;  %v5240_v52 = vld [vmem:[#allocation18_spill] sm:$0xff]  ;;  %v4497_v47 = vld [vmem:[%s3784_s14 + $0x1c0] sm:$0xff] }
  0x7f   : > { %3341 = vmatprep.mubr.msk.f32.mxu1 %vm338_vm2, %v3812_v17  ;;  %5237 = vst [vmem:[#allocation6_spill] sm:$0xff] %v4476_v39 }
  0x81   : > { %3386 = vmatmul.mubr.msk.f32.gmra.mxu0 %vm338_vm2, %v5235_v24  ;;  %v5239_v24 = vld [vmem:[#allocation16_spill] sm:$0xff] }
  0x82   : > { %3342 = vmatmul.mubr.msk.f32.gmra.mxu1 %vm338_vm2, %v3835_v29  ;;  %3388 = vmatprep.mubr.msk.f32.mxu0 %vm338_vm2, %v5236_v48 }
  0x83   : > { %3344 = vmatprep.mubr.msk.f32.mxu1 %vm338_vm2, %v3854_v36 }
  0x85   : > { %3389 = vmatmul.mubr.msk.f32.gmra.mxu0 %vm338_vm2, %v4476_v39  ;;  %v4500_v39 = vld [vmem:[%s3784_s14 + $0x1c8] sm:$0x3] }
  0x86   : > { %3345 = vmatmul.mubr.msk.f32.gmra.mxu1 %vm338_vm2, %v4454_v12  ;;  %3391 = vmatprep.mubr.msk.f32.mxu0 %vm338_vm2, %v5238_v40  ;;  %v1385_v40 = vrot.slane %v4497_v47, 1 }
  0x87   : > { %3347 = vmatprep.mubr.msk.f32.mxu1 %vm338_vm2, %v3921_v61  ;;  %v5241_v61 = vld [vmem:[#allocation20_spill] sm:$0xff] }
  0x89   : > { %3392 = vmatmul.mubr.msk.f32.gmra.mxu0 %vm338_vm2, %v5239_v24 }
  0x8a   : > { %3348 = vmatmul.mubr.msk.f32.gmra.mxu1 %vm338_vm2, %v3938_v4  ;;  %3394 = vmatprep.mubr.msk.f32.mxu0 %vm338_vm2, %v5240_v52  ;;  %v1386_v52 = vrot.slane %v4500_v39, 1 }
  0x8b   : > { %3350 = vmatprep.mubr.msk.f32.mxu1 %vm338_vm2, %v3978_v43 }
  0x8d   : > { %3395 = vmatmul.mubr.msk.f32.gmra.mxu0 %vm338_vm2, %v4058_v18  ;;  %v4519_v18 = vsel %vm260_vm1, %v1385_v40, %v1386_v52  ;;  %v2868_v52 = vld [vmem:[%s5174_s1 + $0xf0] sm:$0xff] }
  0x8e   : > { %3351 = vmatmul.mubr.msk.f32.gmra.mxu1 %vm338_vm2, %v4000_v0  ;;  %3397 = vmatprep.mubr.msk.f32.mxu0 %vm338_vm2, %v5241_v61 }
  0x8f   : > { %3353 = vmatprep.mubr.msk.f32.mxu1 %vm338_vm2, %v4019_v20 }
  0x91   : > { %3398 = vmatmul.mubr.msk.f32.gmra.mxu0 %vm338_vm2, %v4100_v58 }
  0x92   : > { %3354 = vmatmul.mubr.msk.f32.gmra.mxu1 %vm338_vm2, %v4063_v50  ;;  %3400 = vmatprep.mubr.msk.f32.mxu0 %vm338_vm2, %v4120_v55 }
  0x93   : > { %3356 = vmatprep.mubr.msk.f32.mxu1 %vm338_vm2, %v4086_v42 }
  0x95   : > { %3401 = vmatmul.mubr.msk.f32.gmra.mxu0 %vm338_vm2, %v4519_v18 }
  0x96   : > { %3357 = vmatmul.mubr.msk.f32.gmra.mxu1 %vm338_vm2, %v4497_v47  ;;  %3455 = vmatprep.mubr.msk.f32.mxu0 %vm338_vm2, %v3821_v22  ;;  %v2897_v22 = vld [vmem:[%s5174_s1 + $0x110] sm:$0xff] }
  0x97   : > { %3411 = vmatprep.mubr.msk.f32.mxu1 %vm338_vm2, %v4135_v31  ;;  %v1612_v31 = vrot.slane %v4389_v16, 2  ;;  %v4573_v16 = vld [vmem:[%s3784_s14 + $0x90] sm:$0xff] }
  0x99   : > { %3456 = vmatmul.mubr.msk.f32.vlgmr.msra.gmra.mxu0 %vm338_vm2, %v3851_v35  ;;  %v2867_v35 = vld [vmem:[%s5174_s1 + $0xe8] sm:$0xff] }
  0x9a   : > { %3412 = vmatmul.mubr.msk.f32.vlgmr.msra.gmra.mxu1 %vm338_vm2, %v4146_v27  ;;  %3536 = vmatpush3.msk.msra.mxu0 %vm387_vm0, %v2898_v45  ;;  %v5246_v45 = vld [vmem:[#allocation18_spill] sm:$0xff] }
  0x9b   : > { %3492 = vmatpush3.msk.msra.mxu1 %vm387_vm0, %v2869_v38  ;;  %3414 = vmatprep.mubr.msk.f32.mxu1 %vm338_vm2, %v4155_v6 }
  0x9c   : > { %3458 = vmatprep.mubr.msk.f32.mxu0 %vm338_vm2, %v3879_v46  ;;  %3493 = vmatprep.subr.mxu1 %v2868_v52  ;;  %v1611_v46 = vrot.slane %v4386_v15, 2 }
  0x9d   : > { %3459 = vmatmul.mubr.msk.f32.gmra.mxu0 %vm338_vm2, %v3902_v54  ;;  %3494 = vmatpush3.msra.mxu1 %v2868_v52  ;;  %v2896_v54 = vld [vmem:[%s5174_s1 + $0x108] sm:$0xff] }
  0x9e   : > { %3415 = vmatmul.mubr.msk.f32.gmra.mxu1 %vm338_vm2, %v4164_v5  ;;  %3461 = vmatprep.mubr.msk.f32.mxu0 %vm338_vm2, %v3924_v62  ;;  %v2866_v62 = vld [vmem:[%s5174_s1 + $0xe0] sm:$0xff]  ;;  %v4578_v38 = vsel %vm812_vm3, %v1611_v46, %v1612_v31 }
  0x9f   : > { %3417 = vmatprep.mubr.msk.f32.mxu1 %vm338_vm2, %v4183_v10  ;;  %3537 = vmatprep.subr.mxu0 %v2897_v22 }
  0xa0   : > { %3538 = vmatpush3.msra.mxu0 %v2897_v22  ;;  %3495 = vmatprep.subr.mxu1 %v2867_v35 }
  0xa1   : > { %3462 = vmatmul.mubr.msk.f32.gmra.mxu0 %vm338_vm2, %v3964_v28  ;;  %3496 = vmatpush3.msra.mxu1 %v2867_v35  ;;  %v2895_v28 = vld [vmem:[%s5174_s1 + $0x100] sm:$0xff] }
  0xa2   : > { %3418 = vmatmul.mubr.msk.f32.gmra.mxu1 %vm338_vm2, %v4190_v7  ;;  %3464 = vmatprep.mubr.msk.f32.mxu0 %vm338_vm2, %v4386_v15 }
  0xa3   : > { %3420 = vmatprep.mubr.msk.f32.mxu1 %vm338_vm2, %v4207_v59  ;;  %3539 = vmatprep.subr.mxu0 %v2896_v54 }
  0xa4   : > { %3540 = vmatpush3.msra.mxu0 %v2896_v54  ;;  %3497 = vmatprep.subr.mxu1 %v2866_v62 }
  0xa5   : > { %3465 = vmatmul.mubr.msk.f32.gmra.mxu0 %vm338_vm2, %v4573_v16  ;;  %3498 = vmatpush3.msra.mxu1 %v2866_v62 }
  0xa6   : > { %3421 = vmatmul.mubr.msk.f32.gmra.mxu1 %vm338_vm2, %v4578_v38  ;;  %3467 = vmatprep.mubr.msk.f32.mxu0 %vm338_vm2, %v4047_v49  ;;  %v1614_v49 = vrot.slane %v4454_v12, 2 }
  0xa7   : > { %3423 = vmatprep.mubr.msk.f32.mxu1 %vm338_vm2, %v4230_v37  ;;  %3541 = vmatprep.subr.mxu0 %v2895_v28  ;;  %v5243_v37 = vld [vmem:[#allocation7_spill] sm:$0xff] }
  0xa8   : > { %3542 = vmatpush3.msra.mxu0 %v2895_v28 }
  0xa9   : > { %3468 = vmatmul.mubr.msk.f32.gmra.mxu0 %vm338_vm2, %v4069_v63  ;;  %v1615_v63 = vrot.slane %v4457_v1, 2  ;;  %v207_v1 = vld [vmem:[%s3784_s14 + $0x1d8] sm:$0x3] }
  0xaa   : > { %3424 = vmatmul.mubr.msk.f32.gmra.mxu1 %vm338_vm2, %v4242_v51  ;;  %3470 = vmatprep.mubr.msk.f32.mxu0 %vm338_vm2, %v3793_v8  ;;  %v4616_v8 = vld [vmem:[%s3784_s14 + $0x130] sm:$0xff]  ;;  %v2079_v52 = vrot.slane %v207_v1, 1 }
  0xab   : > { %3426 = vmatprep.mubr.msk.f32.mxu1 %vm338_vm2, %v4257_v56 }
  0xad   : > { %3471 = vmatmul.mubr.msk.f32.gmra.mxu0 %vm338_vm2, %v3812_v17  ;;  %v4621_v17 = vsel %vm812_vm3, %v1614_v49, %v1615_v63 }
  0xae   : > { %3427 = vmatmul.mubr.msk.f32.gmra.mxu1 %vm338_vm2, %v4264_v30  ;;  %3473 = vmatprep.mubr.msk.f32.mxu0 %vm338_vm2, %v3835_v29  ;;  %v1617_v29 = vrot.slane %v4497_v47, 2 }
  0xaf   : > { %3429 = vmatprep.mubr.msk.f32.mxu1 %vm338_vm2, %v4275_v21 }
  0xb1   : > { %3474 = vmatmul.mubr.msk.f32.gmra.mxu0 %vm338_vm2, %v3854_v36  ;;  %v1618_v36 = vrot.slane %v4500_v39, 2 }
  0xb2   : > { %3430 = vmatmul.mubr.msk.f32.gmra.mxu1 %vm338_vm2, %v4282_v33  ;;  %3476 = vmatprep.mubr.msk.f32.mxu0 %vm338_vm2, %v4454_v12 }
  0xb3   : > { %3432 = vmatprep.mubr.msk.f32.mxu1 %vm338_vm2, %v4293_v41 }
  0xb5   : > { %3477 = vmatmul.mubr.msk.f32.gmra.mxu0 %vm338_vm2, %v4616_v8 }
  0xb6   : > { %3433 = vmatmul.mubr.msk.f32.gmra.mxu1 %vm338_vm2, %v4621_v17  ;;  %3479 = vmatprep.mubr.msk.f32.mxu0 %vm338_vm2, %v3938_v4  ;;  %v4656_v4 = vld [vmem:[%s3784_s14 + $0x1d0] sm:$0xff] }
  0xb7   : > { %3435 = vmatprep.mubr.msk.f32.mxu1 %vm338_vm2, %v4308_v11 }
  0xb9   : > { %3480 = vmatmul.mubr.msk.f32.gmra.mxu0 %vm338_vm2, %v3978_v43  ;;  %v4661_v43 = vsel %vm812_vm3, %v1617_v29, %v1618_v36 }
  0xba   : > { %3436 = vmatmul.mubr.msk.f32.gmra.mxu1 %vm338_vm2, %v4315_v14  ;;  %3482 = vmatprep.mubr.msk.f32.mxu0 %vm338_vm2, %v4000_v0 }
  0xbb   : > { %3438 = vmatprep.mubr.msk.f32.mxu1 %vm338_vm2, %v4326_v44 }
  0xbd   : > { %3483 = vmatmul.mubr.msk.f32.gmra.mxu0 %vm338_vm2, %v4019_v20  ;;  %v2072_v20 = vrot.slane %v4573_v16, 1 }
  0xbe   : > { %3439 = vmatmul.mubr.msk.f32.gmra.mxu1 %vm338_vm2, %v4333_v9  ;;  %3485 = vmatprep.mubr.msk.f32.mxu0 %vm338_vm2, %v4063_v50  ;;  %v2304_v50 = vrot.slane %v4573_v16, 2 }
  0xbf   : > { %3441 = vmatprep.mubr.msk.f32.mxu1 %vm338_vm2, %v4344_v13 }
  0xc1   : > { %3486 = vmatmul.mubr.msk.f32.gmra.mxu0 %vm338_vm2, %v4086_v42  ;;  %v167_v42 = vld [vmem:[%s3784_s14 + $0x98] sm:$0x3] }
  0xc2   : > { %3442 = vmatmul.mubr.msk.f32.gmra.mxu1 %vm338_vm2, %v4351_v19  ;;  %3488 = vmatprep.mubr.msk.f32.mxu0 %vm338_vm2, %v4497_v47  ;;  %v2305_v0 = vrot.slane %v167_v42, 2  ;;  %v2078_v47 = vrot.slane %v4656_v4, 1 }
  0xc3   : > { %3444 = vmatprep.mubr.msk.f32.mxu1 %vm338_vm2, %v4360_v23 }
  0xc5   : > { %3489 = vmatmul.mubr.msk.f32.gmra.mxu0 %vm338_vm2, %v4656_v4 }
  0xc6   : > { %3445 = vmatmul.mubr.msk.f32.gmra.mxu1 %vm338_vm2, %v4661_v43  ;;  %3543 = vmatprep.mubr.msk.f32.mxu0 %vm338_vm2, %v4146_v27  ;;  %v2073_v27 = vrot.slane %v167_v42, 1 }
  0xc7   : > { %3499 = vmatprep.mubr.msk.f32.mxu1 %vm338_vm2, %v5227_v53  ;;  %v5245_v53 = vld [vmem:[#allocation6_spill] sm:$0xff] }
  0xc9   : > { %3544 = vmatmul.mubr.msk.f32.vlgmr.msra.gmra.mxu0 %vm338_vm2, %v4155_v6  ;;  %v2306_v6 = vsel %vm812_vm3, %v2304_v50, %v2305_v0 }
  0xca   : > { %3500 = vmatmul.mubr.msk.f32.vlgmr.msra.gmra.mxu1 %vm338_vm2, %v5228_v2  ;;  %3546 = vmatprep.mubr.msk.f32.mxu0 %vm338_vm2, %v4164_v5  ;;  %v2074_v5 = vsel %vm260_vm1, %v2072_v20, %v2073_v27 }
  0xcb   : > { %3502 = vmatprep.mubr.msk.f32.mxu1 %vm338_vm2, %v5229_v32 }
  0xcd   : > { %3547 = vmatmul.mubr.msk.f32.gmra.mxu0 %vm338_vm2, %v4183_v10  ;;  %v5242_v10 = vld [vmem:[#allocation5_spill] sm:$0xff] }
  0xce   : > { %3503 = vmatmul.mubr.msk.f32.gmra.mxu1 %vm338_vm2, %v5230_v57  ;;  %3549 = vmatprep.mubr.msk.f32.mxu0 %vm338_vm2, %v4190_v7  ;;  %v187_v7 = vld [vmem:[%s3784_s14 + $0x138] sm:$0x3]  ;;  %s137_s14 = sand.u32 1, %s3682_s10  }
  0xcf   : > { %3505 = vmatprep.mubr.msk.f32.mxu1 %vm338_vm2, %v5231_v25  ;;  %s3587_s25 = smul.u32 192, %s137_s14  ;;  %s5133_s13 = scalar_lea.sflag [#allocation3], %s137_s14 }
  0xd1   : > { %3550 = vmatmul.mubr.msk.f32.gmra.mxu0 %vm338_vm2, %v4207_v59  ;;  %v2307_v59 = vrot.slane %v4616_v8, 2  ;;  %s5019_s26 = scalar_lea.vmem [#allocation2], %s3587_s25 }
  0xd2   : > { %3506 = vmatmul.mubr.msk.f32.gmra.mxu1 %vm338_vm2, %v5232_v60  ;;  %3552 = vmatprep.mubr.msk.f32.mxu0 %vm338_vm2, %v4578_v38  ;;  %s2600_s28 = sshll.u32 %s5019_s26, 4  ;;  %s5125_s28 = int_to_ptr.vmem [resolvable:$true] %s2600_s28 }
  0xd3   : > { %3508 = vmatprep.mubr.msk.f32.mxu1 %vm338_vm2, %v4422_v34  ;;  %s3630_s4 = scalar_lea.vmem %s5125_s28, 3072  ;;  %p3637_p0 = scmp.lt.s32.totalorder %s5125_s28, %s3635_s6 }
  0xd4   : > { %p3631_p11 = scmp.ne.s32.totalorder %s5125_s28, %s3630_s4  ;;  %p3638_p1 = scmp.lt.s32.totalorder %s3636_s7, %s3630_s4 }
  0xd5   : > { %3553 = vmatmul.mubr.msk.f32.gmra.mxu0 %vm338_vm2, %v2306_v6 }
  0xd6   : > { %3509 = vmatmul.mubr.msk.f32.gmra.mxu1 %vm338_vm2, %v2074_v5  ;;  %3555 = vmatprep.mubr.msk.f32.mxu0 %vm338_vm2, %v4242_v51  ;;  %v5244_v51 = vld [vmem:[#allocation9_spill] sm:$0xff]  ;;  %p3632_p12 = pnand %p3631_p11, %p3748_p5  ;;  %p3639_p2 = por %p3638_p1, %p3637_p0 }
  0xd7   : > { %3511 = vmatprep.mubr.msk.f32.mxu1 %vm338_vm2, %v4091_v26  ;;  %v2308_v26 = vrot.slane %v187_v7, 2 }
  0xd8   : > { %p3633_p13 = pneg %p3632_p12 }
  0xd9   : > { %3556 = vmatmul.mubr.msk.f32.gmra.mxu0 %vm338_vm2, %v4257_v56  ;;  %v2076_v56 = vrot.slane %v187_v7, 1 }
  0xda   : > { %3512 = vmatmul.mubr.msk.f32.gmra.mxu1 %vm338_vm2, %v4114_v3  ;;  %3558 = vmatprep.mubr.msk.f32.mxu0 %vm338_vm2, %v4264_v30  ;;  %v2075_v3 = vrot.slane %v4616_v8, 1  ;;  %p3640_p3 = pnand %p3639_p2, %p3633_p13 }
  0xdb   : > { %3514 = vmatprep.mubr.msk.f32.mxu1 %vm338_vm2, %v5242_v10 }
  0xdc   : > { %v2077_v15 = vsel %vm260_vm1, %v2075_v3, %v2076_v56 }
  0xdd   : > { %3559 = vmatmul.mubr.msk.f32.gmra.mxu0 %vm338_vm2, %v4275_v21 }
  0xde   : > { %3515 = vmatmul.mubr.msk.f32.gmra.mxu1 %vm338_vm2, %v5243_v37  ;;  %3561 = vmatprep.mubr.msk.f32.mxu0 %vm338_vm2, %v4282_v33  ;;  %v2309_v33 = vsel %vm812_vm3, %v2307_v59, %v2308_v26 }
  0xdf   : > { %3517 = vmatprep.mubr.msk.f32.mxu1 %vm338_vm2, %v5244_v51 }
  0xe1   : > { %v3193_v30 = vpop.f32.mrf.mxu0  ;;  %3562 = vmatmul.mubr.msk.f32.gmra.mxu0 %vm338_vm2, %v4293_v41 }
  0xe2   : > { %v4727_v21 = vpop.f32.mrf.mxu1  ;;  %3518 = vmatmul.mubr.msk.f32.gmra.mxu1 %vm338_vm2, %v5236_v48  ;;  %3564 = vmatprep.mubr.msk.f32.mxu0 %vm338_vm2, %v4621_v17 }
  0xe3   : > { %v457_v11 = vpop.f32.mrf.mxu0  ;;  %3520 = vmatprep.mubr.msk.f32.mxu1 %vm338_vm2, %v5245_v53 }
  0xe4   : > { %v4737_v2 = vpop.f32.mrf.mxu1 }
  0xe5   : > { %v3196_v41 = vpop.f32.mrf.mxu0  ;;  %3565 = vmatmul.mubr.msk.f32.gmra.mxu0 %vm338_vm2, %v2309_v33 }
  0xe6   : > { %v4740_v32 = vpop.f32.mrf.mxu1  ;;  %3521 = vmatmul.mubr.msk.f32.gmra.mxu1 %vm338_vm2, %v2077_v15  ;;  %3567 = vmatprep.mubr.msk.f32.mxu0 %vm338_vm2, %v4315_v14  ;;  %v5247_v14 = vld [vmem:[#allocation19_spill] sm:$0xff] }
  0xe7   : > { %v467_v57 = vpop.f32.mrf.mxu0  ;;  %3523 = vmatprep.mubr.msk.f32.mxu1 %vm338_vm2, %v5239_v24 }
  0xe8   : > { %v4747_v25 = vpop.f32.mrf.mxu1 }
  0xe9   : > { %v3199_v60 = vpop.f32.mrf.mxu0  ;;  %3568 = vmatmul.mubr.msk.f32.gmra.mxu0 %vm338_vm2, %v4326_v44  ;;  %v2310_v44 = vrot.slane %v4656_v4, 2 }
  0xea   : > { %v4751_v34 = vpop.f32.mrf.mxu1  ;;  %3524 = vmatmul.mubr.msk.f32.gmra.mxu1 %vm338_vm2, %v5246_v45  ;;  %3570 = vmatprep.mubr.msk.f32.mxu0 %vm338_vm2, %v4333_v9  ;;  %v2311_v9 = vrot.slane %v207_v1, 2 }
  0xeb   : > { %v477_v12 = vpop.f32.mrf.mxu0  ;;  %3526 = vmatprep.mubr.msk.f32.mxu1 %vm338_vm2, %v5247_v14 }
  0xec   : > { %v4760_v39 = vpop.f32.mrf.mxu1 }
  0xed   : > { %v3202_v24 = vpop.f32.mrf.mxu0  ;;  %3571 = vmatmul.mubr.msk.f32.gmra.mxu0 %vm338_vm2, %v4344_v13 }
  0xee   : > { %v4765_v48 = vpop.f32.mrf.mxu1  ;;  %3527 = vmatmul.mubr.msk.f32.gmra.mxu1 %vm338_vm2, %v5241_v61  ;;  %3573 = vmatprep.mubr.msk.f32.mxu0 %vm338_vm2, %v4351_v19  ;;  %v2312_v19 = vsel %vm812_vm3, %v2310_v44, %v2311_v9 }
  0xef   : > { %v487_v40 = vpop.f32.mrf.mxu0  ;;  %3529 = vmatprep.mubr.msk.f32.mxu1 %vm338_vm2, %v4100_v58  ;;  %v2080_v58 = vsel %vm260_vm1, %v2078_v47, %v2079_v52 }
  0xf0   : > { %v4774_v22 = vpop.f32.mrf.mxu1 }
  0xf1   : > { %v3205_v13 = vpop.f32.mrf.mxu0  ;;  %3574 = vmatmul.mubr.msk.f32.gmra.mxu0 %vm338_vm2, %v4360_v23 }
  0xf2   : > { %v4778_v35 = vpop.f32.mrf.mxu1  ;;  %3530 = vmatmul.mubr.msk.f32.gmra.mxu1 %vm338_vm2, %v4120_v55  ;;  %3576 = vmatprep.mubr.msk.f32.mxu0 %vm338_vm2, %v4661_v43 }
  0xf3   : > { %v497_v61 = vpop.f32.mrf.mxu0  ;;  %3532 = vmatprep.mubr.msk.f32.mxu1 %vm338_vm2, %v4519_v18 }
  0xf4   : > { %v4788_v46 = vpop.f32.mrf.mxu1 }
  0xf5   : > { %v3208_v31 = vpop.f32.mrf.mxu0  ;;  %3577 = vmatmul.mubr.msk.f32.gmra.mxu0 %vm338_vm2, %v2312_v19 }
  0xf6   : > { %v4791_v23 = vpop.f32.mrf.mxu1  ;;  %3533 = vmatmul.mubr.msk.f32.gmra.mxu1 %vm338_vm2, %v2080_v58 }
  0xf7   : > { %v507_v55 = vpop.f32.mrf.mxu0 }
  0xf8   : > { %v4794_v54 = vpop.f32.mrf.mxu1 }
  0xf9   : > { %v3281_v62 = vpop.f32.mrf.mxu0 }
  0xfa   : > { %v3237_v16 = vpop.f32.mrf.mxu1 }
  0xfb   : > { %v699_v38 = vadd.f32 %v3237_v16, %v3193_v30  ;;  %v1007_v28 = vpop.f32.mrf.mxu0 }
  0xfc   : > { %v693_v49 = vpop.f32.mrf.mxu1 }
  0xfd   : > { %v4796_v18 = vadd.f32 %v3281_v62, %v699_v38  ;;  %v694_v63 = vadd.f32 %v693_v49, %v457_v11  ;;  %v3284_v8 = vpop.f32.mrf.mxu0 }
  0xfe   : > { %v3240_v17 = vpop.f32.mrf.mxu1 }
  0xff   : > { %v4798_v29 = vadd.f32 %v1007_v28, %v694_v63  ;;  %v709_v36 = vadd.f32 %v3240_v17, %v3196_v41  ;;  %v1017_v4 = vpop.f32.mrf.mxu0 }
 0x100   : > { %v703_v43 = vpop.f32.mrf.mxu1 }
 0x101   : > { %v4800_v42 = vadd.f32 %v3284_v8, %v709_v36  ;;  %v704_v50 = vadd.f32 %v703_v43, %v467_v57  ;;  %v3287_v0 = vpop.f32.mrf.mxu0 }
 0x102   : > { %v3243_v20 = vpop.f32.mrf.mxu1 }
 0x103   : > { %v4802_v27 = vadd.f32 %v1017_v4, %v704_v50  ;;  %v719_v6 = vadd.f32 %v3243_v20, %v3199_v60  ;;  %v1027_v5 = vpop.f32.mrf.mxu0 }
 0x104   : > { %v713_v10 = vpop.f32.mrf.mxu1 }
 0x105   : > { %v4804_v7 = vadd.f32 %v3287_v0, %v719_v6  ;;  %v714_v59 = vadd.f32 %v713_v10, %v477_v12  ;;  %v3290_v37 = vpop.f32.mrf.mxu0 }
 0x106   : > { %v3246_v26 = vpop.f32.mrf.mxu1 }
 0x107   : > { %v4806_v3 = vadd.f32 %v1027_v5, %v714_v59  ;;  %v729_v51 = vadd.f32 %v3246_v26, %v3202_v24  ;;  %v1037_v56 = vpop.f32.mrf.mxu0 }
 0x108   : > { %v723_v30 = vpop.f32.mrf.mxu1 }
 0x109   : > { %v4808_v33 = vadd.f32 %v3290_v37, %v729_v51  ;;  %v724_v11 = vadd.f32 %v723_v30, %v487_v40  ;;  %v3293_v53 = vpop.f32.mrf.mxu0 }
 0x10a   : > { %v3249_v15 = vpop.f32.mrf.mxu1 }
 0x10b   : > { %v4810_v41 = vadd.f32 %v1037_v56, %v724_v11  ;;  %v739_v57 = vadd.f32 %v3249_v15, %v3205_v13  ;;  %v1047_v60 = vpop.f32.mrf.mxu0 }
 0x10c   : > { %v733_v45 = vpop.f32.mrf.mxu1 }
 0x10d   : > { %v4812_v14 = vadd.f32 %v3293_v53, %v739_v57  ;;  %v734_v12 = vadd.f32 %v733_v45, %v497_v61  ;;  %v3296_v1 = vpop.f32.mrf.mxu0 }
 0x10e   : > { %v3252_v44 = vpop.f32.mrf.mxu1 }
 0x10f   : > { %v4814_v9 = vadd.f32 %v1047_v60, %v734_v12  ;;  %v749_v24 = vadd.f32 %v3252_v44, %v3208_v31  ;;  %v1057_v47 = vpop.f32.mrf.mxu0 }
 0x110   : > { %v743_v52 = vpop.f32.mrf.mxu1 }
 0x111   : > { %v4816_v19 = vadd.f32 %v3296_v1, %v749_v24  ;;  %v744_v40 = vadd.f32 %v743_v52, %v507_v55  ;;  %v3299_v58 = vpop.f32.mrf.mxu0 }
 0x112   : > { %v3255_v62 = vpop.f32.mrf.mxu1 }
 0x113   : > { %v4818_v16 = vadd.f32 %v1057_v47, %v744_v40  ;;  %v759_v13 = vadd.f32 %v3255_v62, %v4727_v21  ;;  %v1067_v38 = vpop.f32.mrf.mxu0 }
 0x114   : > { %v753_v28 = vpop.f32.mrf.mxu1 }
 0x115   : > { %v4821_v49 = vadd.f32 %v3299_v58, %v759_v13  ;;  %v754_v61 = vadd.f32 %v753_v28, %v4737_v2  ;;  %v3302_v63 = vpop.f32.mrf.mxu0 }
 0x116   : > { %v3258_v8 = vpop.f32.mrf.mxu1 }
 0x117   : > { %v4824_v31 = vadd.f32 %v1067_v38, %v754_v61  ;;  %v769_v17 = vadd.f32 %v3258_v8, %v4740_v32  ;;  %v1077_v36 = vpop.f32.mrf.mxu0 }
 0x118   : > { %v763_v55 = vpop.f32.mrf.mxu1 }
 0x119   : > { %v4827_v4 = vadd.f32 %v3302_v63, %v769_v17  ;;  %v764_v43 = vadd.f32 %v763_v55, %v4747_v25  ;;  %v3305_v50 = vpop.f32.mrf.mxu0 }
 0x11a   : > { %v3261_v21 = vpop.f32.mrf.mxu1 }
 0x11b   : > { %v4830_v0 = vadd.f32 %v1077_v36, %v764_v43  ;;  %v779_v20 = vadd.f32 %v3261_v21, %v4751_v34  ;;  %v1087_v6 = vpop.f32.mrf.mxu0 }
 0x11c   : > { %v773_v2 = vpop.f32.mrf.mxu1 }
 0x11d   : > { %v4833_v5 = vadd.f32 %v3305_v50, %v779_v20  ;;  %v774_v10 = vadd.f32 %v773_v2, %v4760_v39  ;;  %v3308_v59 = vpop.f32.mrf.mxu0 }
 0x11e   : > { %v3264_v32 = vpop.f32.mrf.mxu1 }
 0x11f   : > { %v4836_v37 = vadd.f32 %v1087_v6, %v774_v10  ;;  %v789_v26 = vadd.f32 %v3264_v32, %v4765_v48  ;;  %v1097_v51 = vpop.f32.mrf.mxu0 }
 0x120   : > { %v783_v25 = vpop.f32.mrf.mxu1 }
 0x121   : > { %v4839_v56 = vadd.f32 %v3308_v59, %v789_v26  ;;  %v784_v30 = vadd.f32 %v783_v25, %v4774_v22  ;;  %v3311_v11 = vpop.f32.mrf.mxu0 }
 0x122   : > { %v3267_v34 = vpop.f32.mrf.mxu1 }
 0x123   : > { %v4842_v53 = vadd.f32 %v1097_v51, %v784_v30  ;;  %v799_v15 = vadd.f32 %v3267_v34, %v4778_v35  ;;  %v1107_v57 = vpop.f32.mrf.mxu0 }
 0x124   : > { %v793_v39 = vpop.f32.mrf.mxu1 }
 0x125   : > { %v4845_v60 = vadd.f32 %v3311_v11, %v799_v15  ;;  %v794_v45 = vadd.f32 %v793_v39, %v4788_v46  ;;  %v3314_v12 = vpop.f32.mrf.mxu0 }
 0x126   : > { %v3270_v48 = vpop.f32.mrf.mxu1 }
 0x127   : > { %v4848_v1 = vadd.f32 %v1107_v57, %v794_v45  ;;  %v809_v44 = vadd.f32 %v3270_v48, %v4791_v23  ;;  %v1117_v24 = vpop.f32.mrf.mxu0 }
 0x128   : > { %v803_v22 = vpop.f32.mrf.mxu1 }
 0x129   : > { %v4851_v47 = vadd.f32 %v3314_v12, %v809_v44  ;;  %v804_v52 = vadd.f32 %v803_v22, %v4794_v54  ;;  %v3369_v40 = vpop.f32.mrf.mxu0 }
 0x12a   : > { %v3325_v35 = vpop.f32.mrf.mxu1 }
 0x12b   : > { %v4854_v58 = vadd.f32 %v1117_v24, %v804_v52  ;;  %v1353_v62 = vadd.f32 %v3325_v35, %v4796_v18  ;;  %v1468_v13 = vpop.f32.mrf.mxu0 }
 0x12c   : > { %v1233_v46 = vpop.f32.mrf.mxu1 }
 0x12d   : > { %v4857_v38 = vadd.f32 %v3369_v40, %v1353_v62  ;;  %v1352_v28 = vadd.f32 %v1233_v46, %v4798_v29  ;;  %v3372_v61 = vpop.f32.mrf.mxu0 }
 0x12e   : > { %v3328_v23 = vpop.f32.mrf.mxu1 }
 0x12f   : > { %v4860_v63 = vadd.f32 %v1468_v13, %v1352_v28  ;;  %v1355_v8 = vadd.f32 %v3328_v23, %v4800_v42  ;;  %v1478_v17 = vpop.f32.mrf.mxu0 }
 0x130   : > { %v1243_v54 = vpop.f32.mrf.mxu1 }
 0x131   : > { %v4863_v36 = vadd.f32 %v3372_v61, %v1355_v8  ;;  %v1354_v55 = vadd.f32 %v1243_v54, %v4802_v27  ;;  %v3375_v43 = vpop.f32.mrf.mxu0 }
 0x132   : > { %v3331_v18 = vpop.f32.mrf.mxu1 }
 0x133   : > { %v4866_v50 = vadd.f32 %v1478_v17, %v1354_v55  ;;  %v1357_v21 = vadd.f32 %v3331_v18, %v4804_v7  ;;  %v1488_v20 = vpop.f32.mrf.mxu0 }
 0x134   : > { %v1253_v29 = vpop.f32.mrf.mxu1 }
 0x135   : > { %v4869_v6 = vadd.f32 %v3375_v43, %v1357_v21  ;;  %v1356_v2 = vadd.f32 %v1253_v29, %v4806_v3  ;;  %v3378_v10 = vpop.f32.mrf.mxu0 }
 0x136   : > { %v3334_v42 = vpop.f32.mrf.mxu1 }
 0x137   : > { %v4872_v59 = vadd.f32 %v1488_v20, %v1356_v2  ;;  %v1359_v32 = vadd.f32 %v3334_v42, %v4808_v33  ;;  %v1498_v26 = vpop.f32.mrf.mxu0 }
 0x138   : > { %v1263_v27 = vpop.f32.mrf.mxu1 }
 0x139   : > { %v4875_v51 = vadd.f32 %v3378_v10, %v1359_v32  ;;  %v1358_v25 = vadd.f32 %v1263_v27, %v4810_v41  ;;  %v3381_v30 = vpop.f32.mrf.mxu0 }
 0x13a   : > { %v3337_v7 = vpop.f32.mrf.mxu1 }
 0x13b   : > { %v4878_v11 = vadd.f32 %v1498_v26, %v1358_v25  ;;  %v1361_v34 = vadd.f32 %v3337_v7, %v4812_v14  ;;  %v1508_v15 = vpop.f32.mrf.mxu0 }
 0x13c   : > { %v1273_v3 = vpop.f32.mrf.mxu1 }
 0x13d   : > { %v4881_v57 = vadd.f32 %v3381_v30, %v1361_v34  ;;  %v1360_v39 = vadd.f32 %v1273_v3, %v4814_v9  ;;  %v3384_v45 = vpop.f32.mrf.mxu0 }
 0x13e   : > { %v3340_v33 = vpop.f32.mrf.mxu1 }
 0x13f   : > { %v4884_v12 = vadd.f32 %v1508_v15, %v1360_v39  ;;  %v1363_v48 = vadd.f32 %v3340_v33, %v4816_v19  ;;  %v1518_v44 = vpop.f32.mrf.mxu0 }
 0x140   : > { %v1283_v41 = vpop.f32.mrf.mxu1 }
 0x141   : > { %v4887_v24 = vadd.f32 %v3384_v45, %v1363_v48  ;;  %v1362_v22 = vadd.f32 %v1283_v41, %v4818_v16  ;;  %v3387_v52 = vpop.f32.mrf.mxu0 }
 0x142   : > { %v3343_v14 = vpop.f32.mrf.mxu1 }
 0x143   : > { %v4890_v40 = vadd.f32 %v1518_v44, %v1362_v22  ;;  %v1365_v35 = vadd.f32 %v3343_v14, %v4821_v49  ;;  %v1528_v62 = vpop.f32.mrf.mxu0 }
 0x144   : > { %v1293_v9 = vpop.f32.mrf.mxu1 }
 0x145   : > { %v4893_v13 = vadd.f32 %v3387_v52, %v1365_v35  ;;  %v1364_v46 = vadd.f32 %v1293_v9, %v4824_v31  ;;  %v3390_v28 = vpop.f32.mrf.mxu0 }
 0x146   : > { %v3346_v19 = vpop.f32.mrf.mxu1 }
 0x147   : > { %v4896_v61 = vadd.f32 %v1528_v62, %v1364_v46  ;;  %v1367_v23 = vadd.f32 %v3346_v19, %v4827_v4  ;;  %v1538_v8 = vpop.f32.mrf.mxu0 }
 0x148   : > { %v1303_v16 = vpop.f32.mrf.mxu1 }
 0x149   : > { %v4899_v17 = vadd.f32 %v3390_v28, %v1367_v23  ;;  %v1366_v54 = vadd.f32 %v1303_v16, %v4830_v0  ;;  %v3393_v55 = vpop.f32.mrf.mxu0 }
 0x14a   : > { %v3349_v49 = vpop.f32.mrf.mxu1 }
 0x14b   : > { %v4902_v43 = vadd.f32 %v1538_v8, %v1366_v54  ;;  %v1369_v18 = vadd.f32 %v3349_v49, %v4833_v5  ;;  %v1548_v21 = vpop.f32.mrf.mxu0 }
 0x14c   : > { %v1313_v31 = vpop.f32.mrf.mxu1 }
 0x14d   : > { %v4905_v20 = vadd.f32 %v3393_v55, %v1369_v18  ;;  %v1368_v29 = vadd.f32 %v1313_v31, %v4836_v37  ;;  %v3396_v2 = vpop.f32.mrf.mxu0 }
 0x14e   : > { %v3352_v4 = vpop.f32.mrf.mxu1 }
 0x14f   : > { %v4908_v10 = vadd.f32 %v1548_v21, %v1368_v29  ;;  %v1371_v42 = vadd.f32 %v3352_v4, %v4839_v56  ;;  %v1558_v32 = vpop.f32.mrf.mxu0 }
 0x150   : > { %v1323_v0 = vpop.f32.mrf.mxu1 }
 0x151   : > { %v4911_v26 = vadd.f32 %v3396_v2, %v1371_v42  ;;  %v1370_v27 = vadd.f32 %v1323_v0, %v4842_v53  ;;  %v3399_v25 = vpop.f32.mrf.mxu0 }
 0x152   : > { %v3355_v5 = vpop.f32.mrf.mxu1 }
 0x153   : > { %5248 = vst [vmem:[#allocation8_spill] sm:$0xff] %v4911_v26  ;;  %v4914_v30 = vadd.f32 %v1558_v32, %v1370_v27  ;;  %v1373_v7 = vadd.f32 %v3355_v5, %v4845_v60  ;;  %v1568_v34 = vpop.f32.mrf.mxu0 }
 0x154   : > { %v1333_v37 = vpop.f32.mrf.mxu1 }
 0x155   : > { %5249 = vst [vmem:[#allocation10_spill] sm:$0xff] %v4914_v30  ;;  %v4917_v15 = vadd.f32 %v3399_v25, %v1373_v7  ;;  %v1372_v3 = vadd.f32 %v1333_v37, %v4848_v1  ;;  %v3402_v39 = vpop.f32.mrf.mxu0 }
 0x156   : > { %v3358_v56 = vpop.f32.mrf.mxu1 }
 0x157   : > { %5250 = vst [vmem:[#allocation12_spill] sm:$0xff] %v4917_v15  ;;  %v4920_v45 = vadd.f32 %v1568_v34, %v1372_v3  ;;  %v1375_v33 = vadd.f32 %v3358_v56, %v4851_v47  ;;  %v1578_v48 = vpop.f32.mrf.mxu0 }
 0x158   : > { %v1343_v53 = vpop.f32.mrf.mxu1 }
 0x159   : > { %5251 = vst [vmem:[#allocation13_spill] sm:$0xff] %v4920_v45  ;;  %v4923_v44 = vadd.f32 %v3402_v39, %v1375_v33  ;;  %v1374_v41 = vadd.f32 %v1343_v53, %v4854_v58  ;;  %v3457_v22 = vpop.f32.mrf.mxu0 }
 0x15a   : > { %v3413_v60 = vpop.f32.mrf.mxu1 }
 0x15b   : > { %5252 = vst [vmem:[#allocation15_spill] sm:$0xff] %v4923_v44  ;;  %v4926_v52 = vadd.f32 %v1578_v48, %v1374_v41  ;;  %v1926_v14 = vpop.f32.mrf.mxu0  ;;  %v1820_v30 = vadd.f32 %v3413_v60, %v4857_v38 }
 0x15c   : > { %v1700_v35 = vpop.f32.mrf.mxu1 }
 0x15d   : > { %5253 = vst [vmem:[#allocation17_spill] sm:$0xff] %v4926_v52  ;;  %v3460_v62 = vpop.f32.mrf.mxu0 }
 0x15e   : > { %v3416_v1 = vpop.f32.mrf.mxu1 }
 0x15f   : > { %v4928_v9 = vpop.f32.mrf.mxu0 }
 0x160   : > { %v1710_v46 = vpop.f32.mrf.mxu1 }
 0x161   : > { %v4930_v28 = vpop.f32.mrf.mxu0  ;;  %v1821_v38 = vadd.f32 %v1710_v46, %v4866_v50 }
 0x162   : > { %v3419_v47 = vpop.f32.mrf.mxu1 }
 0x163   : > { %v4932_v19 = vpop.f32.mrf.mxu0 }
 0x164   : > { %v1720_v23 = vpop.f32.mrf.mxu1 }
 0x165   : > { %v4934_v8 = vpop.f32.mrf.mxu0 }
 0x166   : > { %v4936_v58 = vpop.f32.mrf.mxu1 }
 0x167   : > { %v4938_v16 = vpop.f32.mrf.mxu0 }
 0x168   : > { %v4940_v54 = vpop.f32.mrf.mxu1 }
 0x169   : > { %v4942_v55 = vpop.f32.mrf.mxu0 }
 0x16a   : > { %v4944_v49 = vpop.f32.mrf.mxu1 }
 0x16b   : > { %v4946_v18 = vpop.f32.mrf.mxu0 }
 0x16c   : > { %v4948_v21 = vpop.f32.mrf.mxu1 }
 0x16d   : > { %v4950_v31 = vpop.f32.mrf.mxu0 }
 0x16e   : > { %v4952_v29 = vpop.f32.mrf.mxu1 }
 0x16f   : > { %v4954_v2 = vpop.f32.mrf.mxu0 }
 0x170   : > { %v4956_v4 = vpop.f32.mrf.mxu1 }
 0x171   : > { %v4958_v42 = vpop.f32.mrf.mxu0 }
 0x172   : > { %v4960_v32 = vpop.f32.mrf.mxu1 }
 0x173   : > { %v4962_v0 = vpop.f32.mrf.mxu0 }
 0x174   : > { %v4964_v27 = vpop.f32.mrf.mxu1 }
 0x175   : > { %v4966_v25 = vpop.f32.mrf.mxu0 }
 0x176   : > { %v4968_v5 = vpop.f32.mrf.mxu1 }
 0x177   : > { %v4970_v7 = vpop.f32.mrf.mxu0 }
 0x178   : > { %5254 = vst [vmem:[#allocation11_spill] sm:$0xff] %v4970_v7  ;;  %v4972_v34 = vpop.f32.mrf.mxu1 }
 0x179   : > { %v4974_v37 = vpop.f32.mrf.mxu0 }
 0x17a   : > { %5255 = vst [vmem:[#allocation14_spill] sm:$0xff] %v4974_v37  ;;  %v4976_v3 = vpop.f32.mrf.mxu1 }
 0x17b   : > { %v4978_v39 = vpop.f32.mrf.mxu0 }
 0x17c   : > { %5256 = vst [vmem:[#allocation16_spill] sm:$0xff] %v4978_v39  ;;  %v4980_v56 = vpop.f32.mrf.mxu1 }
 0x17d   : > { %v4982_v33 = vpop.f32.mrf.mxu0 }
 0x17e   : > { %5257 = vst [vmem:[#allocation20_spill] sm:$0xff] %v4982_v33  ;;  %v4984_v48 = vpop.f32.mrf.mxu1 }
 0x17f   : > { %5258 = vst [vmem:[#allocation5_spill] sm:$0xff] %v4984_v48  ;;  %v4986_v53 = vpop.f32.mrf.mxu0  ;;  %v1819_v48 = vadd.f32 %v1700_v35, %v4860_v63 }
 0x180   : > { %5259 = vst [vmem:[#allocation7_spill] sm:$0xff] %v4986_v53  ;;  %v4988_v41 = vpop.f32.mrf.mxu1 }
 0x181   : > { %5260 = vst [vmem:[#allocation9_spill] sm:$0xff] %v4988_v41  ;;  %v4990_v52 = vpop.f32.mrf.mxu0 }
 0x182   : > { %5261 = vst [vmem:[#allocation6_spill] sm:$0xff] %v4990_v52  ;;  %v4992_v44 = vpop.f32.mrf.mxu1  ;;  %v2046_v52 = vadd.f32 %v3457_v22, %v1820_v30  ;;  %v1823_v30 = vadd.f32 %v1720_v23, %v4872_v59  ;;  %v2047_v22 = vadd.f32 %v4928_v9, %v1821_v38  ;;  %v1825_v9 = vadd.f32 %v4940_v54, %v4878_v11 }
 0x183   : > { %5262 = vst [vmem:[#allocation18_spill] sm:$0xff] %v4992_v44  ;;  %v4994_v45 = vpop.f32.mrf.mxu0  ;;  %v1822_v44 = vadd.f32 %v3416_v1, %v4863_v36  ;;  %v1828_v23 = vadd.f32 %v4944_v49, %v4881_v57  ;;  %v1827_v54 = vadd.f32 %v4948_v21, %v4884_v12 }
 0x184   : > { %5263 = vst [vmem:[#allocation19_spill] sm:$0xff] %v4994_v45  ;;  %v4996_v15 = vpop.f32.mrf.mxu1 }
 0x185   : > { %5264 = vst [vmem:[#allocation21_spill] sm:$0xff] %v4996_v15  ;;  %v4999_v39 = vpop.f32.mrf.mxu0  ;;  %v2045_v15 = vadd.f32 %v1926_v14, %v1819_v48  ;;  %v2048_v35 = vadd.f32 %v3460_v62, %v1822_v44  ;;  %v2054_v38 = vadd.f32 %v4942_v55, %v1828_v23 }
 0x186   : > { %5265 = vst [vmem:[#allocation22_spill] sm:$0xff] %v4999_v39  ;;  %v5001_v33 = vpop.f32.mrf.mxu1 }
 0x187   : > { %5266 = vst [vmem:[#allocation23_spill] sm:$0xff] %v5001_v33  ;;  %v5004_v53 = vpop.f32.mrf.mxu0  ;;  %v1824_v33 = vadd.f32 %v3419_v47, %v4869_v6  ;;  %v1826_v6 = vadd.f32 %v4936_v58, %v4875_v51 }
 0x188   : > { %5267 = vst [vmem:[#allocation24_spill] sm:$0xff] %v5004_v53  ;;  %v5007_v41 = vpop.f32.mrf.mxu1 }
 0x189   : > { %5268 = vst [vmem:[#allocation25_spill] sm:$0xff] %v5007_v41  ;;  %v3545_v26 = vpop.f32.mrf.mxu0  ;;  %v2050_v50 = vadd.f32 %v4930_v28, %v1824_v33 }
 0x18a   : > { %v3501_v45 = vpop.f32.mrf.mxu1 }
 0x18b   : > { %v2281_v60 = vadd.f32 %v3501_v45, %v2046_v52  ;;  %v2393_v39 = vpop.f32.mrf.mxu0  ;;  %v2049_v52 = vadd.f32 %v4932_v19, %v1823_v30  ;;  %v2053_v30 = vadd.f32 %v4946_v18, %v1827_v54 }
 0x18c   : > { %v2161_v63 = vpop.f32.mrf.mxu1 }
 0x18d   : > { %v2513_v53 = vadd.f32 %v3545_v26, %v2281_v60  ;;  %v2280_v37 = vadd.f32 %v2161_v63, %v2045_v15  ;;  %v3548_v7 = vpop.f32.mrf.mxu0  ;;  %v1830_v63 = vadd.f32 %v4952_v29, %v4887_v24  ;;  %v1832_v29 = vadd.f32 %v4960_v32, %v4893_v13 }
 0x18e   : > { %v3504_v36 = vpop.f32.mrf.mxu1 }
 0x18f   : > { %v2537_v1 = vmax.f32 %v2513_v53, 0.0  ;;  %v2512_v41 = vadd.f32 %v2393_v39, %v2280_v37  ;;  %v2283_v14 = vadd.f32 %v3504_v36, %v2048_v35  ;;  %v2403_v48 = vpop.f32.mrf.mxu0  ;;  %v2051_v53 = vadd.f32 %v4938_v16, %v1825_v9 }
 0x190   : > { %v2171_v45 = vpop.f32.mrf.mxu1 }
 0x191   : > { %2562 = vst.msk [vmem:[%s5019_s26 + $0x8] sm:$0xff] %vm2560_vm4, %v2537_v1  ;;  %v2536_v59 = vmax.f32 %v2512_v41, 0.0  ;;  %v2515_v26 = vadd.f32 %v3548_v7, %v2283_v14  ;;  %v2282_v15 = vadd.f32 %v2171_v45, %v2047_v22  ;;  %v3551_v44 = vpop.f32.mrf.mxu0  ;;  %v2052_v7 = vadd.f32 %v4934_v8, %v1826_v6 }
 0x192   : > { %v3507_v62 = vpop.f32.mrf.mxu1  ;;  %v1829_v22 = vadd.f32 %v4956_v4, %v4890_v40  ;;  %v1831_v4 = vadd.f32 %v4964_v27, %v4896_v61 }
 0x193   : > { %2561 = vst.msk [vmem:[%s5019_s26] sm:$0xff] %vm2560_vm4, %v2536_v59  ;;  %v2539_v51 = vmax.f32 %v2515_v26, 0.0  ;;  %v2514_v46 = vadd.f32 %v2403_v48, %v2282_v15  ;;  %v2285_v28 = vadd.f32 %v3507_v62, %v2050_v50  ;;  %v2413_v47 = vpop.f32.mrf.mxu0  ;;  %v2056_v50 = vadd.f32 %v4950_v31, %v1830_v63 }
 0x194   : > { %v2181_v58 = vpop.f32.mrf.mxu1  ;;  %v2055_v26 = vadd.f32 %v4954_v2, %v1829_v22  ;;  %v1834_v62 = vadd.f32 %v4968_v5, %v4899_v17  ;;  %v1836_v5 = vadd.f32 %v4976_v3, %v4905_v20 }
 0x195   : > { %2564 = vst.msk [vmem:[%s5019_s26 + $0x18] sm:$0xff] %vm2560_vm4, %v2539_v51  ;;  %v2538_v19 = vmax.f32 %v2514_v46, 0.0  ;;  %v2517_v37 = vadd.f32 %v3551_v44, %v2285_v28  ;;  %v2284_v39 = vadd.f32 %v2181_v58, %v2049_v52  ;;  %v3554_v11 = vpop.f32.mrf.mxu0  ;;  %v2058_v44 = vadd.f32 %v4958_v42, %v1832_v29  ;;  %v5277_v29 = vld [vmem:[#allocation18_spill] sm:$0xff] }
 0x196   : > { %v3510_v33 = vpop.f32.mrf.mxu1  ;;  %v2057_v51 = vadd.f32 %v4962_v0, %v1831_v4  ;;  %v1833_v28 = vadd.f32 %v4972_v34, %v4902_v43  ;;  %v1835_v34 = vadd.f32 %v4980_v56, %v4908_v10 }
 0x197   : > { %2563 = vst.msk [vmem:[%s5019_s26 + $0x10] sm:$0xff] %vm2560_vm4, %v2538_v19  ;;  %v2541_v57 = vmax.f32 %v2517_v37, 0.0  ;;  %v2516_v49 = vadd.f32 %v2413_v47, %v2284_v39  ;;  %v2287_v41 = vadd.f32 %v3510_v33, %v2052_v7  ;;  %v2423_v8 = vpop.f32.mrf.mxu0  ;;  %v2060_v7 = vadd.f32 %v4966_v25, %v1834_v62 }
 0x198   : > { %v2191_v60 = vpop.f32.mrf.mxu1 }
 0x199   : > { %2566 = vst.msk [vmem:[%s5019_s26 + $0x28] sm:$0xff] %vm2560_vm4, %v2541_v57  ;;  %v2540_v12 = vmax.f32 %v2516_v49, 0.0  ;;  %v2519_v21 = vadd.f32 %v3554_v11, %v2287_v41  ;;  %v2286_v35 = vadd.f32 %v2191_v60, %v2051_v53  ;;  %v3557_v16 = vpop.f32.mrf.mxu0  ;;  %v5269_v11 = vld [vmem:[#allocation11_spill] sm:$0xff]  ;;  %v5270_v53 = vld [vmem:[#allocation14_spill] sm:$0xff]  ;;  %v5271_v41 = vld [vmem:[#allocation8_spill] sm:$0xff] }
 0x19a   : > { %v3513_v36 = vpop.f32.mrf.mxu1  ;;  %v2059_v54 = vadd.f32 %v5269_v11, %v1833_v28  ;;  %v2062_v57 = vadd.f32 %v5270_v53, %v1836_v5  ;;  %v5284_v28 = vld [vmem:[#allocation23_spill] sm:$0xff] }
 0x19b   : > { %2565 = vst.msk [vmem:[%s5019_s26 + $0x20] sm:$0xff] %vm2560_vm4, %v2540_v12  ;;  %v2543_v55 = vmax.f32 %v2519_v21, 0.0  ;;  %v2518_v1 = vadd.f32 %v2423_v8, %v2286_v35  ;;  %v2289_v14 = vadd.f32 %v3513_v36, %v2054_v38  ;;  %v2433_v24 = vpop.f32.mrf.mxu0  ;;  %v5272_v8 = vld [vmem:[#allocation5_spill] sm:$0xff]  ;;  %v5273_v12 = vld [vmem:[#allocation16_spill] sm:$0xff] }
 0x19c   : > { %v2201_v48 = vpop.f32.mrf.mxu1  ;;  %v1838_v38 = vadd.f32 %v5272_v8, %v5271_v41  ;;  %v2061_v21 = vadd.f32 %v5273_v12, %v1835_v34  ;;  %v5289_v8 = vld [vmem:[#allocation24_spill] sm:$0xff] }
 0x19d   : > { %2568 = vst.msk [vmem:[%s5019_s26 + $0x38] sm:$0xff] %vm2560_vm4, %v2543_v55  ;;  %v2542_v18 = vmax.f32 %v2518_v1, 0.0  ;;  %v2521_v45 = vadd.f32 %v3557_v16, %v2289_v14  ;;  %v2288_v6 = vadd.f32 %v2201_v48, %v2053_v30  ;;  %v3560_v40 = vpop.f32.mrf.mxu0  ;;  %v5274_v16 = vld [vmem:[#allocation10_spill] sm:$0xff]  ;;  %v5275_v30 = vld [vmem:[#allocation9_spill] sm:$0xff] }
 0x19e   : > { %v3516_v59 = vpop.f32.mrf.mxu1  ;;  %v1837_v36 = vadd.f32 %v5275_v30, %v5274_v16 }
 0x19f   : > { %2567 = vst.msk [vmem:[%s5019_s26 + $0x30] sm:$0xff] %vm2560_vm4, %v2542_v18  ;;  %v2545_v13 = vmax.f32 %v2521_v45, 0.0  ;;  %v2520_v32 = vadd.f32 %v2433_v24, %v2288_v6  ;;  %v2291_v15 = vadd.f32 %v3516_v59, %v2056_v50  ;;  %v2443_v31 = vpop.f32.mrf.mxu0  ;;  %v5276_v24 = vld [vmem:[#allocation12_spill] sm:$0xff] }
 0x1a0   : > { %v2211_v52 = vpop.f32.mrf.mxu1  ;;  %v1840_v48 = vadd.f32 %v5277_v29, %v5276_v24  ;;  %v5278_v18 = vld [vmem:[#allocation20_spill] sm:$0xff] }
 0x1a1   : > { %2570 = vst.msk [vmem:[%s5019_s26 + $0x48] sm:$0xff] %vm2560_vm4, %v2545_v13  ;;  %v2544_v61 = vmax.f32 %v2520_v32, 0.0  ;;  %v2523_v27 = vadd.f32 %v3560_v40, %v2291_v15  ;;  %v2290_v9 = vadd.f32 %v2211_v52, %v2055_v26  ;;  %v3563_v2 = vpop.f32.mrf.mxu0  ;;  %v2064_v45 = vadd.f32 %v5278_v18, %v1838_v38  ;;  %v5279_v26 = vld [vmem:[#allocation13_spill] sm:$0xff] }
 0x1a2   : > { %v3519_v46 = vpop.f32.mrf.mxu1  ;;  %v5280_v13 = vld [vmem:[#allocation21_spill] sm:$0xff] }
 0x1a3   : > { %2569 = vst.msk [vmem:[%s5019_s26 + $0x40] sm:$0xff] %vm2560_vm4, %v2544_v61  ;;  %v2547_v42 = vmax.f32 %v2523_v27, 0.0  ;;  %v2522_v47 = vadd.f32 %v2443_v31, %v2290_v9  ;;  %v2293_v23 = vadd.f32 %v3519_v46, %v2058_v44  ;;  %v2453_v17 = vpop.f32.mrf.mxu0  ;;  %v1839_v32 = vadd.f32 %v5280_v13, %v5279_v26  ;;  %v5281_v31 = vld [vmem:[#allocation7_spill] sm:$0xff]  ;;  %v5282_v9 = vld [vmem:[#allocation6_spill] sm:$0xff] }
 0x1a4   : > { %v2221_v58 = vpop.f32.mrf.mxu1  ;;  %v2063_v44 = vadd.f32 %v5281_v31, %v1837_v36  ;;  %v5283_v46 = vld [vmem:[#allocation15_spill] sm:$0xff] }
 0x1a5   : > { %2572 = vst.msk [vmem:[%s5019_s26 + $0x58] sm:$0xff] %vm2560_vm4, %v2547_v42  ;;  %v2546_v0 = vmax.f32 %v2522_v47, 0.0  ;;  %v2525_v19 = vadd.f32 %v3563_v2, %v2293_v23  ;;  %v2292_v37 = vadd.f32 %v2221_v58, %v2057_v51  ;;  %v3566_v43 = vpop.f32.mrf.mxu0  ;;  %v2066_v2 = vadd.f32 %v5282_v9, %v1840_v48  ;;  %v5285_v58 = vld [vmem:[#allocation19_spill] sm:$0xff] }
 0x1a6   : > { %v3522_v39 = vpop.f32.mrf.mxu1  ;;  %v1842_v42 = vadd.f32 %v5284_v28, %v5283_v46 }
 0x1a7   : > { %2571 = vst.msk [vmem:[%s5019_s26 + $0x50] sm:$0xff] %vm2560_vm4, %v2546_v0  ;;  %v2549_v20 = vmax.f32 %v2525_v19, 0.0  ;;  %v2524_v3 = vadd.f32 %v2453_v17, %v2292_v37  ;;  %v2295_v33 = vadd.f32 %v3522_v39, %v2060_v7  ;;  %v2463_v25 = vpop.f32.mrf.mxu0  ;;  %v2065_v7 = vadd.f32 %v5285_v58, %v1839_v32  ;;  %v5286_v19 = vld [vmem:[#allocation17_spill] sm:$0xff] }
 0x1a8   : > { %v2231_v49 = vpop.f32.mrf.mxu1  ;;  %v5287_v37 = vld [vmem:[#allocation25_spill] sm:$0xff] }
 0x1a9   : > { %2574 = vst.msk [vmem:[%s5019_s26 + $0x68] sm:$0xff] %vm2560_vm4, %v2549_v20  ;;  %v2548_v10 = vmax.f32 %v2524_v3, 0.0  ;;  %v2527_v56 = vadd.f32 %v3566_v43, %v2295_v33  ;;  %v2294_v60 = vadd.f32 %v2231_v49, %v2059_v54  ;;  %v3569_v63 = vpop.f32.mrf.mxu0  ;;  %v1841_v43 = vadd.f32 %v5287_v37, %v5286_v19  ;;  %v5288_v3 = vld [vmem:[#allocation22_spill] sm:$0xff] }
 0x1aa   : > { %v3525_v35 = vpop.f32.mrf.mxu1  ;;  %v2068_v33 = vadd.f32 %v5288_v3, %v1842_v42 }
 0x1ab   : > { %2573 = vst.msk [vmem:[%s5019_s26 + $0x60] sm:$0xff] %vm2560_vm4, %v2548_v10  ;;  %v2551_v22 = vmax.f32 %v2527_v56, 0.0  ;;  %v2526_v55 = vadd.f32 %v2463_v25, %v2294_v60  ;;  %v2297_v1 = vadd.f32 %v3525_v35, %v2062_v57  ;;  %v2473_v14 = vpop.f32.mrf.mxu0  ;;  %v2067_v38 = vadd.f32 %v5289_v8, %v1841_v43 }
 0x1ac   : > { %v2241_v50 = vpop.f32.mrf.mxu1 }
 0x1ad   : > { %2576 = vst.msk [vmem:[%s5019_s26 + $0x78] sm:$0xff] %vm2560_vm4, %v2551_v22  ;;  %v2550_v6 = vmax.f32 %v2526_v55, 0.0  ;;  %v2529_v40 = vadd.f32 %v3569_v63, %v2297_v1  ;;  %v2296_v4 = vadd.f32 %v2241_v50, %v2061_v21  ;;  %v3572_v59 = vpop.f32.mrf.mxu0 }
 0x1ae   : > { %v3528_v15 = vpop.f32.mrf.mxu1 }
 0x1af   : > { %2575 = vst.msk [vmem:[%s5019_s26 + $0x70] sm:$0xff] %vm2560_vm4, %v2550_v6  ;;  %v2553_v52 = vmax.f32 %v2529_v40, 0.0  ;;  %v2528_v62 = vadd.f32 %v2473_v14, %v2296_v4  ;;  %v2299_v61 = vadd.f32 %v3528_v15, %v2064_v45  ;;  %v2483_v27 = vpop.f32.mrf.mxu0 }
 0x1b0   : > { %v2251_v51 = vpop.f32.mrf.mxu1 }
 0x1b1   : > { %2578 = vst.msk [vmem:[%s5019_s26 + $0x88] sm:$0xff] %vm2560_vm4, %v2553_v52  ;;  %v2552_v47 = vmax.f32 %v2528_v62, 0.0  ;;  %v2531_v23 = vadd.f32 %v3572_v59, %v2299_v61  ;;  %v2298_v17 = vadd.f32 %v2251_v51, %v2063_v44  ;;  %v3575_v5 = vpop.f32.mrf.mxu0 }
 0x1b2   : > { %v3531_v0 = vpop.f32.mrf.mxu1 }
 0x1b3   : > { %2577 = vst.msk [vmem:[%s5019_s26 + $0x80] sm:$0xff] %vm2560_vm4, %v2552_v47  ;;  %v2555_v34 = vmax.f32 %v2531_v23, 0.0  ;;  %v2530_v39 = vadd.f32 %v2483_v27, %v2298_v17  ;;  %v2301_v11 = vadd.f32 %v3531_v0, %v2066_v2  ;;  %v2493_v54 = vpop.f32.mrf.mxu0 }
 0x1b4   : > { %v2261_v20 = vpop.f32.mrf.mxu1 }
 0x1b5   : > { %2580 = vst.msk [vmem:[%s5019_s26 + $0x98] sm:$0xff] %vm2560_vm4, %v2555_v34  ;;  %v2554_v25 = vmax.f32 %v2530_v39, 0.0  ;;  %v2533_v53 = vadd.f32 %v3575_v5, %v2301_v11  ;;  %v2300_v57 = vadd.f32 %v2261_v20, %v2065_v7  ;;  %v3578_v41 = vpop.f32.mrf.mxu0 }
 0x1b6   : > { %v3534_v49 = vpop.f32.mrf.mxu1 }
 0x1b7   : > { %2579 = vst.msk [vmem:[%s5019_s26 + $0x90] sm:$0xff] %vm2560_vm4, %v2554_v25  ;;  %v2557_v10 = vmax.f32 %v2533_v53, 0.0  ;;  %v2532_v56 = vadd.f32 %v2493_v54, %v2300_v57  ;;  %v2303_v60 = vadd.f32 %v3534_v49, %v2068_v33  ;;  %v2503_v16 = vpop.f32.mrf.mxu0 }
 0x1b8   : > { %v2271_v63 = vpop.f32.mrf.mxu1 }
 0x1b9   : > { %2582 = vst.msk [vmem:[%s5019_s26 + $0xa8] sm:$0xff] %vm2560_vm4, %v2557_v10  ;;  %v2556_v12 = vmax.f32 %v2532_v56, 0.0  ;;  %v2535_v21 = vadd.f32 %v3578_v41, %v2303_v60  ;;  %v2302_v35 = vadd.f32 %v2271_v63, %v2067_v38 }
 0x1bb   : > { %2581 = vst.msk [vmem:[%s5019_s26 + $0xa0] sm:$0xff] %vm2560_vm4, %v2556_v12  ;;  %v2559_v30 = vmax.f32 %v2535_v21, 0.0  ;;  %v2534_v36 = vadd.f32 %v2503_v16, %v2302_v35 }
 0x1bd   : > { %2584 = vst.msk [vmem:[%s5019_s26 + $0xb8] sm:$0xff] %vm2560_vm4, %v2559_v30  ;;  %v2558_v22 = vmax.f32 %v2534_v36, 0.0 }
 0x1bf   : > { %2583 = vst.msk [vmem:[%s5019_s26 + $0xb0] sm:$0xff] %vm2560_vm4, %v2558_v22 }
 0x1c0   : > { %3643 = shalt.err (!%p3640_p3)
}
 0x1c1   : > { %s3644_s8 = scalar_lea.hbm %s5123_s3, 3072  ;;  %s3648_s21 = scalar_lea.hbm %s5175_s2, 6144 }
 0x1c2   : > { %p3645_p4 = scmp.ne.s32.totalorder %s5123_s3, %s3644_s8  ;;  %p3649_p9 = scmp.lt.s32.totalorder %s5123_s3, %s5175_s2 }
 0x1c3   : > { %p3650_p10 = scmp.lt.s32.totalorder %s3648_s21, %s3644_s8 }
 0x1c4   : > { %p3646_p7 = pnand %p3645_p4, %p3748_p5 }
 0x1c5   : > { %p3651_p11 = por %p3650_p10, %p3649_p9 }
 0x1c6   : > { %p3647_p8 = pneg %p3646_p7 }
 0x1c8   : > { %p3652_p12 = pnand %p3651_p11, %p3647_p8 }
 0x1ca   : > { %3655 = shalt.err (!%p3652_p12)
}
 0x1cb   : > { %s3693_s24 = smov 128   ;;  %s3694_s14 = smov 8  }
 0x1cc   : > { %3589 = dma.vmem_to_hbm [thread:$0]  (%p3748_p5), %s5125_s28, 3072, %s5123_s3, %s5133_s13, %s3693_s24, %s3693_s24, %s3694_s14  }
 0x1cd PF: > { %p3595_p13 = scmp.ge.s32.totalorder %s3690_s12, 2  ;;  %s2615_s25 = sand.u32 1, %s3678_s9  }
 0x1ce   : > { %s2616_s26 = scalar_lea.sflag [#allocation3], %s2615_s25 }
 0x1cf   : > { %p3592_p0 = pnand %p3595_p13, %p3752_p6 }
 0x1d1   : > { %p3593_p1 = pneg %p3592_p0 }
 0x1d3   : > { %3673 = dma.done.wait (%p3593_p1), %s2616_s26, 3072  }
 0x1d4   : > { %3675 = vsyncadd (%p3593_p1), %s2616_s26, 4294964224  ;;  %p12_p2 = scmp.ge.s32.totalorder %s3735_s15, 4   ;;  %s5290_s9 = smov %s3682_s10 }
 0x1d5   : > { %s5291_s10 = smov %s3686_s11  ;;  %s5292_s11 = smov %s3746_s18 }
 0x1d6   : > { %s5293_s12 = smov %s3735_s15  ;;  %14 = sbr.rel (!%p12_p2) target bundleno = 3 (0x3), region = 71 }
 0x1db   :  { %2621 = vsyncpa [#allocation3], 1 }
 0x1dc   :  { %2623 = vsyncpa [#allocation3 + $0x1], 1 }

</bundles_post_ra>
